<compile_context>
chip_gen: v7x
topology: tpu7x:2x2x1
jax: 0.10.0
libtpu: 0.0.40
codegen_flags: <defaults>
</compile_context>

<pallas_src>
import functools

import jax
import jax.numpy as jnp
from jax.experimental import pallas as pl
from jax.experimental.pallas import tpu as pltpu

ACT_DTYPE = jnp.bfloat16   # inter-layer activation storage dtype
MXU_DTYPE = jnp.bfloat16   # matmul input dtype (accumulation is f32)
MAX_L_TILE = 1024          # lane-tile cap (multiple of 128); conservative for v7x VMEM


def _leaky(x, slope=0.2):
    return jnp.where(x >= 0, x, slope * x)


def _pick_l_tile(l_out):
    """Largest multiple-of-128 divisor of l_out that is <= MAX_L_TILE, else full length."""
    if l_out % 128 != 0 or l_out <= MAX_L_TILE:
        return l_out
    for cand in range(MAX_L_TILE - MAX_L_TILE % 128, 127, -128):
        if l_out % cand == 0:
            return cand
    return l_out


# ----------------------------------------------------------------------------
# Pallas kernel: Conv1d on a pre-padded input as ONE im2col matmul per tile.
#   x_ref: (1, Cin, Lp)  full padded line for this batch element (resident
#                        across the L-tile grid axis -> fetched once)
#   w_ref: (Cout, K*Cin) im2col weight, bf16
#   b_ref: (Cout, 1)     f32 bias
#   o_ref: (1, Cout, l_tile)
# ----------------------------------------------------------------------------
def _conv_im2col_kernel(x_ref, w_ref, b_ref, o_ref, *, K, dilation, l_tile,
                        n_tiles, act):
    halo = dilation * (K - 1)
    if n_tiles == 1:
        win = x_ref[0]                                       # (Cin, l_tile + halo)
    else:
        base = pl.multiple_of(pl.program_id(1) * l_tile, 128)
        win = x_ref[0, :, pl.ds(base, l_tile + halo)]        # aligned dynamic window

    taps = [win[:, k * dilation: k * dilation + l_tile].astype(jnp.float32)
            for k in range(K)]
    a = jnp.concatenate(taps, axis=0).astype(MXU_DTYPE)      # (K*Cin, l_tile)
    acc = jnp.dot(w_ref[...], a, preferred_element_type=jnp.float32)
    acc = acc + b_ref[...]
    if act == "leaky":
        acc = _leaky(acc)
    elif act == "tanh":
        acc = jnp.tanh(acc)
    o_ref[0] = acc.astype(o_ref.dtype)


def conv1d_im2col(x_padded, w2, b, *, K, dilation=1, act="none",
                  out_dtype=ACT_DTYPE):
    """x_padded: (B, Cin, Lp) already padded; w2: (Cout, K*Cin); b: (Cout, 1)."""
    B, Cin, Lp = x_padded.shape
    Cout = w2.shape[0]
    halo = dilation * (K - 1)
    L_out = Lp - halo
    l_tile = _pick_l_tile(L_out)
    n_tiles = L_out // l_tile
    kernel = functools.partial(_conv_im2col_kernel, K=K, dilation=dilation,
                               l_tile=l_tile, n_tiles=n_tiles, act=act)
    return pl.pallas_call(
        kernel,
        out_shape=jax.ShapeDtypeStruct((B, Cout, L_out), out_dtype),
        grid=(B, n_tiles),
        in_specs=[
            pl.BlockSpec((1, Cin, Lp), lambda bi, li: (bi, 0, 0)),
            pl.BlockSpec((Cout, K * Cin), lambda bi, li: (0, 0)),
            pl.BlockSpec((Cout, 1), lambda bi, li: (0, 0)),
        ],
        out_specs=pl.BlockSpec((1, Cout, l_tile), lambda bi, li: (bi, 0, li)),
        compiler_params=pltpu.CompilerParams(
            dimension_semantics=("parallel", "parallel")),
    )(x_padded, w2, b)


# ----------------------------------------------------------------------------
# Pallas kernel: fused ResnetBlock
#   out = Conv1x1_shortcut(x) + alpha * Conv1x1(LeakyReLU(Conv3_dil(LeakyReLU(pad(x)))))
# LeakyReLU and ReflectionPad commute (pointwise), so the kernel receives the
# reflection-padded x and applies LeakyReLU on the tap slices.
# ----------------------------------------------------------------------------
def _resnet_kernel(xp_ref, w3_ref, b3_ref, w1_ref, b1_ref, ws_ref, bs_ref,
                   alpha_ref, o_ref, *, dilation, l_tile, n_tiles, final_act):
    pad = dilation
    if n_tiles == 1:
        win = xp_ref[0]                                      # (C, l_tile + 2*pad)
    else:
        base = pl.multiple_of(pl.program_id(1) * l_tile, 128)
        win = xp_ref[0, :, pl.ds(base, l_tile + 2 * pad)]

    # shortcut: 1x1 conv on the (un-activated) center slice
    xc = win[:, pad: pad + l_tile].astype(MXU_DTYPE)
    sc = jnp.dot(ws_ref[...], xc, preferred_element_type=jnp.float32) + bs_ref[...]

    # block: LeakyReLU -> dilated k=3 conv (single im2col matmul) -> LeakyReLU -> 1x1 conv
    taps = [_leaky(win[:, k * dilation: k * dilation + l_tile].astype(jnp.float32))
            for k in range(3)]
    h = jnp.concatenate(taps, axis=0).astype(MXU_DTYPE)      # (3C, l_tile)
    acc = jnp.dot(w3_ref[...], h, preferred_element_type=jnp.float32) + b3_ref[...]
    acc = _leaky(acc)
    blk = jnp.dot(w1_ref[...], acc.astype(MXU_DTYPE),
                  preferred_element_type=jnp.float32) + b1_ref[...]

    out = sc + blk * alpha_ref[...]          # alpha: (C, 1), broadcast over L
    if final_act == "leaky":                 # trailing nn.LeakyReLU of the stage
        out = _leaky(out)
    o_ref[0] = out.astype(o_ref.dtype)


def resnet_block(x, params, *, dilation, final_act="none", out_dtype=ACT_DTYPE):
    B, C, L = x.shape
    pad = dilation
    xp = jnp.pad(x, ((0, 0), (0, 0), (pad, pad)), mode="reflect")
    Lp = L + 2 * pad
    l_tile = _pick_l_tile(L)
    n_tiles = L // l_tile
    kernel = functools.partial(_resnet_kernel, dilation=dilation, l_tile=l_tile,
                               n_tiles=n_tiles, final_act=final_act)
    return pl.pallas_call(
        kernel,
        out_shape=jax.ShapeDtypeStruct((B, C, L), out_dtype),
        grid=(B, n_tiles),
        in_specs=[
            pl.BlockSpec((1, C, Lp), lambda bi, li: (bi, 0, 0)),
            pl.BlockSpec((C, 3 * C), lambda bi, li: (0, 0)),
            pl.BlockSpec((C, 1), lambda bi, li: (0, 0)),
            pl.BlockSpec((C, C), lambda bi, li: (0, 0)),
            pl.BlockSpec((C, 1), lambda bi, li: (0, 0)),
            pl.BlockSpec((C, C), lambda bi, li: (0, 0)),
            pl.BlockSpec((C, 1), lambda bi, li: (0, 0)),
            pl.BlockSpec((C, 1), lambda bi, li: (0, 0)),
        ],
        out_specs=pl.BlockSpec((1, C, l_tile), lambda bi, li: (bi, 0, li)),
        compiler_params=pltpu.CompilerParams(
            dimension_semantics=("parallel", "parallel")),
    )(xp, params["w3"], params["b3"], params["w1"], params["b1"],
      params["ws"], params["bs"], params["alpha"])


# ----------------------------------------------------------------------------
# Deterministic parameter construction, pre-reshaped to kernel layouts.
# ----------------------------------------------------------------------------
def _raw_conv(key, cin, cout, k):
    kw, kb = jax.random.split(key)
    w = 0.02 * jax.random.normal(kw, (k, cout, cin), jnp.float32)   # (K, Cout, Cin)
    b = 0.01 * jax.random.normal(kb, (cout, 1), jnp.float32)
    return w, b


def _conv_params(key, cin, cout, k):
    w, b = _raw_conv(key, cin, cout, k)
    w2 = w.transpose(1, 0, 2).reshape(cout, k * cin).astype(MXU_DTYPE)  # im2col
    return {"w": w2, "b": b, "K": k}


def _convT_polyphase_params(key, cin, cout, r):
    """ConvTranspose1d(cin, cout, kernel=2r, stride=r, padding=r//2+r%2,
    output_padding=r%2) precomputed as a 3-tap forward conv that produces all
    r output phases at once (phase ph lives in output rows [ph*cout, (ph+1)*cout))."""
    kw, kb = jax.random.split(key)
    K = 2 * r
    w_ct = 0.02 * jax.random.normal(kw, (cin, cout, K), jnp.float32)  # PyTorch layout
    b = 0.01 * jax.random.normal(kb, (cout, 1), jnp.float32)
    p = r // 2 + r % 2
    w3 = jnp.zeros((3, r * cout, cin), jnp.float32)
    for ph in range(r):
        k0 = (ph + p) % r
        delta = (ph + p - k0) // r            # 0 or 1
        for m in range(2):                    # K = 2r -> exactly 2 taps per phase
            k = k0 + m * r                    # contributing ConvTranspose tap
            t = delta + 1 - m                 # tap position in the 3-tap forward conv
            w3 = w3.at[t, ph * cout:(ph + 1) * cout, :].set(w_ct[:, :, k].T)
    w2 = w3.transpose(1, 0, 2).reshape(r * cout, 3 * cin).astype(MXU_DTYPE)
    b_big = jnp.tile(b, (r, 1))               # (r*cout, 1)
    return {"w": w2, "b": b_big, "cout": cout, "r": r}


def _resnet_params(key, dim):
    k1, k2, k3 = jax.random.split(key, 3)
    w3, b3 = _raw_conv(k1, dim, dim, 3)   # dilated conv k=3
    w1, b1 = _raw_conv(k2, dim, dim, 1)   # 1x1 conv in block
    ws, bs = _raw_conv(k3, dim, dim, 1)   # shortcut 1x1 conv
    return {
        "w3": w3.transpose(1, 0, 2).reshape(dim, 3 * dim).astype(MXU_DTYPE),
        "b3": b3,
        "w1": w1[0].astype(MXU_DTYPE),
        "b1": b1,
        "ws": ws[0].astype(MXU_DTYPE),
        "bs": bs,
        "alpha": jnp.zeros((dim, 1), jnp.float32),   # module fills alpha with 0
    }


class CodecDecoderPallas:
    def __init__(self, key, in_channels=16, ngf=4,
                 n_residual_layers=(2, 2, 2, 2), up_ratios=(2, 5, 5, 4)):
        self.up_ratios = up_ratios
        self.n_residual_layers = n_residual_layers
        mul = int(2 ** len(up_ratios))
        params = {}
        key, sub = jax.random.split(key)
        params["pre"] = _conv_params(sub, in_channels, mul * ngf, 7)
        for i, r in enumerate(up_ratios):
            key, sub = jax.random.split(key)
            params[f"up_{i}_convT"] = _convT_polyphase_params(
                sub, mul * ngf, mul * ngf // 2, r)
            for j in range(n_residual_layers[i]):
                key, sub = jax.random.split(key)
                params[f"up_{i}_res_{j}"] = _resnet_params(sub, mul * ngf // 2)
            mul //= 2
        key, sub = jax.random.split(key)
        params["post"] = _conv_params(sub, ngf, 1, 7)
        self.params = params

    def forward(self, x):
        """Decoder path of CodecDecoder.forward with vq=False (== inference())."""
        p = self.params
        h = x.astype(ACT_DTYPE)

        # pre_model: ReflectionPad1d(3) -> Conv1d(k=7) -> LeakyReLU(0.2)
        h = jnp.pad(h, ((0, 0), (0, 0), (3, 3)), mode="reflect")
        h = conv1d_im2col(h, p["pre"]["w"], p["pre"]["b"], K=7, act="leaky")

        # upsample stages
        for i, r in enumerate(self.up_ratios):
            ct = p[f"up_{i}_convT"]
            # polyphase ConvTranspose1d: zero-pad by 1, one 3-tap conv emitting all
            # r phases stacked on channels, then lane-interleave the phases.
            B, _, Lin = h.shape
            hp = jnp.pad(h, ((0, 0), (0, 0), (1, 1)))
            y = conv1d_im2col(hp, ct["w"], ct["b"], K=3, act="none")
            cout = ct["cout"]
            h = (y.reshape(B, r, cout, Lin)
                  .transpose(0, 2, 3, 1)
                  .reshape(B, cout, Lin * r))

            nres = self.n_residual_layers[i]
            for j in range(nres):
                final_act = "leaky" if j == nres - 1 else "none"
                h = resnet_block(h, p[f"up_{i}_res_{j}"], dilation=3 ** j,
                                 final_act=final_act)
            if nres == 0:  # trailing LeakyReLU when there are no residual blocks
                h = _leaky(h.astype(jnp.float32)).astype(ACT_DTYPE)

        # post_model: ReflectionPad1d(3) -> Conv1d(ngf -> 1, k=7) -> Tanh
        h = jnp.pad(h, ((0, 0), (0, 0), (3, 3)), mode="reflect")
        h = conv1d_im2col(h, p["post"]["w"], p["post"]["b"], K=7, act="tanh",
                          out_dtype=jnp.float32)
        return h


if __name__ == "__main__":
    key = jax.random.PRNGKey(0)
    kparam, kx = jax.random.split(key)

    B, Cin, T = 2, 16, 16
    up_ratios = (2, 5, 5, 4)
    dec = CodecDecoderPallas(kparam, in_channels=Cin, ngf=4,
                             n_residual_layers=(2, 2, 2, 2), up_ratios=up_ratios)

    x = jax.random.normal(kx, (B, Cin, T), jnp.float32)
    y = jax.jit(dec.forward)(x)
    jax.block_until_ready(y)

    hop = 1
    for r in up_ratios:
        hop *= r
    assert y.shape == (B, 1, T * hop), y.shape
    assert y.dtype == jnp.float32
    assert bool(jnp.all(jnp.isfinite(y)))
    print("KERNEL_OK")
</pallas_src>

<mosaic_0001>
module attributes {stable_mosaic.version = 11 : i64} {
  func.func @_conv_im2col_kernel(%arg0: i32, %arg1: i32, %arg2: memref<1x16x22xbf16, #tpu.memory_space<vmem>>, %arg3: memref<64x112xbf16, #tpu.memory_space<vmem>>, %arg4: memref<64x1xf32, #tpu.memory_space<vmem>>, %arg5: memref<1x64x16xbf16, #tpu.memory_space<vmem>>) attributes {dimension_semantics = [#tpu.dimension_semantics<parallel>, #tpu.dimension_semantics<parallel>], iteration_bounds = array<i64: 2, 1>, scalar_prefetch = 0 : i64, scratch_operands = 0 : i64, tpu.core_type = #tpu.core_type<tc>, window_params = [{transform_indices = @transform_0, window_bounds = array<i64: 1, 16, 22>}, {pipeline_mode = #tpu.pipeline_mode<synchronous>, transform_indices = @transform_1, window_bounds = array<i64: 64, 112>}, {pipeline_mode = #tpu.pipeline_mode<synchronous>, transform_indices = @transform_2, window_bounds = array<i64: 64, 1>}, {transform_indices = @transform_3, window_bounds = array<i64: 1, 64, 16>}]} {
    %c0 = arith.constant 0 : index
    %c0_0 = arith.constant 0 : index
    %c0_1 = arith.constant 0 : index
    %0 = vector.load %arg2[%c0, %c0_0, %c0_1] : memref<1x16x22xbf16, #tpu.memory_space<vmem>>, vector<1x16x22xbf16>
    %1 = vector.shape_cast %0 : vector<1x16x22xbf16> to vector<16x22xbf16>
    %2 = vector.extract_strided_slice %1 {offsets = [0, 0], sizes = [16, 16], strides = [1, 1]} : vector<16x22xbf16> to vector<16x16xbf16>
    %3 = arith.extf %2 : vector<16x16xbf16> to vector<16x16xf32>
    %4 = vector.extract_strided_slice %1 {offsets = [0, 1], sizes = [16, 16], strides = [1, 1]} : vector<16x22xbf16> to vector<16x16xbf16>
    %5 = arith.extf %4 : vector<16x16xbf16> to vector<16x16xf32>
    %6 = vector.extract_strided_slice %1 {offsets = [0, 2], sizes = [16, 16], strides = [1, 1]} : vector<16x22xbf16> to vector<16x16xbf16>
    %7 = arith.extf %6 : vector<16x16xbf16> to vector<16x16xf32>
    %8 = vector.extract_strided_slice %1 {offsets = [0, 3], sizes = [16, 16], strides = [1, 1]} : vector<16x22xbf16> to vector<16x16xbf16>
    %9 = arith.extf %8 : vector<16x16xbf16> to vector<16x16xf32>
    %10 = vector.extract_strided_slice %1 {offsets = [0, 4], sizes = [16, 16], strides = [1, 1]} : vector<16x22xbf16> to vector<16x16xbf16>
    %11 = arith.extf %10 : vector<16x16xbf16> to vector<16x16xf32>
    %12 = vector.extract_strided_slice %1 {offsets = [0, 5], sizes = [16, 16], strides = [1, 1]} : vector<16x22xbf16> to vector<16x16xbf16>
    %13 = arith.extf %12 : vector<16x16xbf16> to vector<16x16xf32>
    %14 = vector.extract_strided_slice %1 {offsets = [0, 6], sizes = [16, 16], strides = [1, 1]} : vector<16x22xbf16> to vector<16x16xbf16>
    %15 = arith.extf %14 : vector<16x16xbf16> to vector<16x16xf32>
    %16 = tpu.concatenate %3, %5, %7, %9, %11, %13, %15 in 0 : vector<16x16xf32>, vector<16x16xf32>, vector<16x16xf32>, vector<16x16xf32>, vector<16x16xf32>, vector<16x16xf32>, vector<16x16xf32> -> vector<112x16xf32>
    %17 = arith.truncf %16 : vector<112x16xf32> to vector<112x16xbf16>
    %c0_2 = arith.constant 0 : index
    %c0_3 = arith.constant 0 : index
    %18 = vector.load %arg3[%c0_2, %c0_3] : memref<64x112xbf16, #tpu.memory_space<vmem>>, vector<64x112xbf16>
    %cst = arith.constant dense<0.000000e+00> : vector<64x16xf32>
    %19 = tpu.matmul %18, %17, %cst {dimension_numbers = #tpu.dot_dimension_numbers<[1], [0], [0], [1], [0, 0, 1, 1], [], []>} : vector<64x112xbf16>, vector<112x16xbf16>, vector<64x16xf32> -> vector<64x16xf32>
    %c0_4 = arith.constant 0 : index
    %c0_5 = arith.constant 0 : index
    %20 = vector.load %arg4[%c0_4, %c0_5] : memref<64x1xf32, #tpu.memory_space<vmem>>, vector<64x1xf32>
    %21 = vector.broadcast %20 : vector<64x1xf32> to vector<64x16xf32>
    %22 = arith.addf %19, %21 : vector<64x16xf32>
    %cst_6 = arith.constant 0.000000e+00 : f32
    %23 = vector.broadcast %cst_6 : f32 to vector<64x16xf32>
    %24 = arith.cmpf oge, %22, %23 : vector<64x16xf32>
    %cst_7 = arith.constant 2.000000e-01 : f32
    %25 = vector.broadcast %cst_7 : f32 to vector<64x16xf32>
    %26 = arith.mulf %25, %22 : vector<64x16xf32>
    %27 = arith.select %24, %22, %26 : vector<64x16xi1>, vector<64x16xf32>
    %28 = arith.truncf %27 : vector<64x16xf32> to vector<64x16xbf16>
    %c0_8 = arith.constant 0 : index
    %c0_9 = arith.constant 0 : index
    %c0_10 = arith.constant 0 : index
    %29 = vector.load %arg5[%c0_8, %c0_9, %c0_10] : memref<1x64x16xbf16, #tpu.memory_space<vmem>>, vector<1x64x16xbf16>
    %30 = vector.shape_cast %29 : vector<1x64x16xbf16> to vector<64x16xbf16>
    %31 = vector.shape_cast %28 : vector<64x16xbf16> to vector<1x64x16xbf16>
    tpu.vector_store %arg5[%c0_8, %c0_9, %c0_10], %31 {strides = array<i32>} : memref<1x64x16xbf16, #tpu.memory_space<vmem>>, vector<1x64x16xbf16>,
    return
  }
  func.func @transform_0(%arg0: i32, %arg1: i32) -> (i32, i32, i32) {
    %c0_i32 = arith.constant 0 : i32
    %c0_i32_0 = arith.constant 0 : i32
    %c0_i32_1 = arith.constant 0 : i32
    return %arg0, %c0_i32, %c0_i32_0 : i32, i32, i32
  }
  func.func @transform_1(%arg0: i32, %arg1: i32) -> (i32, i32) {
    %c0_i32 = arith.constant 0 : i32
    %c0_i32_0 = arith.constant 0 : i32
    %c0_i32_1 = arith.constant 0 : i32
    return %c0_i32, %c0_i32_0 : i32, i32
  }
  func.func @transform_2(%arg0: i32, %arg1: i32) -> (i32, i32) {
    %c0_i32 = arith.constant 0 : i32
    %c0_i32_0 = arith.constant 0 : i32
    %c0_i32_1 = arith.constant 0 : i32
    return %c0_i32, %c0_i32_0 : i32, i32
  }
  func.func @transform_3(%arg0: i32, %arg1: i32) -> (i32, i32, i32) {
    %c0_i32 = arith.constant 0 : i32
    %c0_i32_0 = arith.constant 0 : i32
    return %arg0, %c0_i32, %arg1 : i32, i32, i32
  }
}

module attributes {stable_mosaic.version = 11 : i64} {
  func.func @_conv_im2col_kernel(%arg0: i32, %arg1: i32, %arg2: memref<1x64x18xbf16, #tpu.memory_space<vmem>>, %arg3: memref<64x192xbf16, #tpu.memory_space<vmem>>, %arg4: memref<64x1xf32, #tpu.memory_space<vmem>>, %arg5: memref<1x64x16xbf16, #tpu.memory_space<vmem>>) attributes {dimension_semantics = [#tpu.dimension_semantics<parallel>, #tpu.dimension_semantics<parallel>], iteration_bounds = array<i64: 2, 1>, scalar_prefetch = 0 : i64, scratch_operands = 0 : i64, tpu.core_type = #tpu.core_type<tc>, window_params = [{transform_indices = @transform_0, window_bounds = array<i64: 1, 64, 18>}, {pipeline_mode = #tpu.pipeline_mode<synchronous>, transform_indices = @transform_1, window_bounds = array<i64: 64, 192>}, {pipeline_mode = #tpu.pipeline_mode<synchronous>, transform_indices = @transform_2, window_bounds = array<i64: 64, 1>}, {transform_indices = @transform_3, window_bounds = array<i64: 1, 64, 16>}]} {
    %c0 = arith.constant 0 : index
    %c0_0 = arith.constant 0 : index
    %c0_1 = arith.constant 0 : index
    %0 = vector.load %arg2[%c0, %c0_0, %c0_1] : memref<1x64x18xbf16, #tpu.memory_space<vmem>>, vector<1x64x18xbf16>
    %1 = vector.shape_cast %0 : vector<1x64x18xbf16> to vector<64x18xbf16>
    %2 = vector.extract_strided_slice %1 {offsets = [0, 0], sizes = [64, 16], strides = [1, 1]} : vector<64x18xbf16> to vector<64x16xbf16>
    %3 = arith.extf %2 : vector<64x16xbf16> to vector<64x16xf32>
    %4 = vector.extract_strided_slice %1 {offsets = [0, 1], sizes = [64, 16], strides = [1, 1]} : vector<64x18xbf16> to vector<64x16xbf16>
    %5 = arith.extf %4 : vector<64x16xbf16> to vector<64x16xf32>
    %6 = vector.extract_strided_slice %1 {offsets = [0, 2], sizes = [64, 16], strides = [1, 1]} : vector<64x18xbf16> to vector<64x16xbf16>
    %7 = arith.extf %6 : vector<64x16xbf16> to vector<64x16xf32>
    %8 = tpu.concatenate %3, %5, %7 in 0 : vector<64x16xf32>, vector<64x16xf32>, vector<64x16xf32> -> vector<192x16xf32>
    %9 = arith.truncf %8 : vector<192x16xf32> to vector<192x16xbf16>
    %c0_2 = arith.constant 0 : index
    %c0_3 = arith.constant 0 : index
    %10 = vector.load %arg3[%c0_2, %c0_3] : memref<64x192xbf16, #tpu.memory_space<vmem>>, vector<64x192xbf16>
    %cst = arith.constant dense<0.000000e+00> : vector<64x16xf32>
    %11 = tpu.matmul %10, %9, %cst {dimension_numbers = #tpu.dot_dimension_numbers<[1], [0], [0], [1], [0, 0, 1, 1], [], []>} : vector<64x192xbf16>, vector<192x16xbf16>, vector<64x16xf32> -> vector<64x16xf32>
    %c0_4 = arith.constant 0 : index
    %c0_5 = arith.constant 0 : index
    %12 = vector.load %arg4[%c0_4, %c0_5] : memref<64x1xf32, #tpu.memory_space<vmem>>, vector<64x1xf32>
    %13 = vector.broadcast %12 : vector<64x1xf32> to vector<64x16xf32>
    %14 = arith.addf %11, %13 : vector<64x16xf32>
    %15 = arith.truncf %14 : vector<64x16xf32> to vector<64x16xbf16>
    %c0_6 = arith.constant 0 : index
    %c0_7 = arith.constant 0 : index
    %c0_8 = arith.constant 0 : index
    %16 = vector.load %arg5[%c0_6, %c0_7, %c0_8] : memref<1x64x16xbf16, #tpu.memory_space<vmem>>, vector<1x64x16xbf16>
    %17 = vector.shape_cast %16 : vector<1x64x16xbf16> to vector<64x16xbf16>
    %18 = vector.shape_cast %15 : vector<64x16xbf16> to vector<1x64x16xbf16>
    tpu.vector_store %arg5[%c0_6, %c0_7, %c0_8], %18 {strides = array<i32>} : memref<1x64x16xbf16, #tpu.memory_space<vmem>>, vector<1x64x16xbf16>,
    return
  }
  func.func @transform_0(%arg0: i32, %arg1: i32) -> (i32, i32, i32) {
    %c0_i32 = arith.constant 0 : i32
    %c0_i32_0 = arith.constant 0 : i32
    %c0_i32_1 = arith.constant 0 : i32
    return %arg0, %c0_i32, %c0_i32_0 : i32, i32, i32
  }
  func.func @transform_1(%arg0: i32, %arg1: i32) -> (i32, i32) {
    %c0_i32 = arith.constant 0 : i32
    %c0_i32_0 = arith.constant 0 : i32
    %c0_i32_1 = arith.constant 0 : i32
    return %c0_i32, %c0_i32_0 : i32, i32
  }
  func.func @transform_2(%arg0: i32, %arg1: i32) -> (i32, i32) {
    %c0_i32 = arith.constant 0 : i32
    %c0_i32_0 = arith.constant 0 : i32
    %c0_i32_1 = arith.constant 0 : i32
    return %c0_i32, %c0_i32_0 : i32, i32
  }
  func.func @transform_3(%arg0: i32, %arg1: i32) -> (i32, i32, i32) {
    %c0_i32 = arith.constant 0 : i32
    %c0_i32_0 = arith.constant 0 : i32
    return %arg0, %c0_i32, %arg1 : i32, i32, i32
  }
}

module attributes {stable_mosaic.version = 11 : i64} {
  func.func @_resnet_kernel(%arg0: i32, %arg1: i32, %arg2: memref<1x32x34xbf16, #tpu.memory_space<vmem>>, %arg3: memref<32x96xbf16, #tpu.memory_space<vmem>>, %arg4: memref<32x1xf32, #tpu.memory_space<vmem>>, %arg5: memref<32x32xbf16, #tpu.memory_space<vmem>>, %arg6: memref<32x1xf32, #tpu.memory_space<vmem>>, %arg7: memref<32x32xbf16, #tpu.memory_space<vmem>>, %arg8: memref<32x1xf32, #tpu.memory_space<vmem>>, %arg9: memref<32x1xf32, #tpu.memory_space<vmem>>, %arg10: memref<1x32x32xbf16, #tpu.memory_space<vmem>>) attributes {dimension_semantics = [#tpu.dimension_semantics<parallel>, #tpu.dimension_semantics<parallel>], iteration_bounds = array<i64: 2, 1>, scalar_prefetch = 0 : i64, scratch_operands = 0 : i64, tpu.core_type = #tpu.core_type<tc>, window_params = [{transform_indices = @transform_0, window_bounds = array<i64: 1, 32, 34>}, {pipeline_mode = #tpu.pipeline_mode<synchronous>, transform_indices = @transform_1, window_bounds = array<i64: 32, 96>}, {pipeline_mode = #tpu.pipeline_mode<synchronous>, transform_indices = @transform_2, window_bounds = array<i64: 32, 1>}, {pipeline_mode = #tpu.pipeline_mode<synchronous>, transform_indices = @transform_3, window_bounds = array<i64: 32, 32>}, {pipeline_mode = #tpu.pipeline_mode<synchronous>, transform_indices = @transform_4, window_bounds = array<i64: 32, 1>}, {pipeline_mode = #tpu.pipeline_mode<synchronous>, transform_indices = @transform_5, window_bounds = array<i64: 32, 32>}, {pipeline_mode = #tpu.pipeline_mode<synchronous>, transform_indices = @transform_6, window_bounds = array<i64: 32, 1>}, {pipeline_mode = #tpu.pipeline_mode<synchronous>, transform_indices = @transform_7, window_bounds = array<i64: 32, 1>}, {transform_indices = @transform_8, window_bounds = array<i64: 1, 32, 32>}]} {
    %c0 = arith.constant 0 : index
    %c0_0 = arith.constant 0 : index
    %c0_1 = arith.constant 0 : index
    %0 = vector.load %arg2[%c0, %c0_0, %c0_1] : memref<1x32x34xbf16, #tpu.memory_space<vmem>>, vector<1x32x34xbf16>
    %1 = vector.shape_cast %0 : vector<1x32x34xbf16> to vector<32x34xbf16>
    %2 = vector.extract_strided_slice %1 {offsets = [0, 1], sizes = [32, 32], strides = [1, 1]} : vector<32x34xbf16> to vector<32x32xbf16>
    %c0_2 = arith.constant 0 : index
    %c0_3 = arith.constant 0 : index
    %3 = vector.load %arg7[%c0_2, %c0_3] : memref<32x32xbf16, #tpu.memory_space<vmem>>, vector<32x32xbf16>
    %cst = arith.constant dense<0.000000e+00> : vector<32x32xf32>
    %4 = tpu.matmul %3, %2, %cst {dimension_numbers = #tpu.dot_dimension_numbers<[1], [0], [0], [1], [0, 0, 1, 1], [], []>} : vector<32x32xbf16>, vector<32x32xbf16>, vector<32x32xf32> -> vector<32x32xf32>
    %c0_4 = arith.constant 0 : index
    %c0_5 = arith.constant 0 : index
    %5 = vector.load %arg8[%c0_4, %c0_5] : memref<32x1xf32, #tpu.memory_space<vmem>>, vector<32x1xf32>
    %6 = vector.broadcast %5 : vector<32x1xf32> to vector<32x32xf32>
    %7 = arith.addf %4, %6 : vector<32x32xf32>
    %8 = vector.extract_strided_slice %1 {offsets = [0, 0], sizes = [32, 32], strides = [1, 1]} : vector<32x34xbf16> to vector<32x32xbf16>
    %9 = arith.extf %8 : vector<32x32xbf16> to vector<32x32xf32>
    %cst_6 = arith.constant 0.000000e+00 : f32
    %10 = vector.broadcast %cst_6 : f32 to vector<32x32xf32>
    %11 = arith.cmpf oge, %9, %10 : vector<32x32xf32>
    %cst_7 = arith.constant 2.000000e-01 : f32
    %12 = vector.broadcast %cst_7 : f32 to vector<32x32xf32>
    %13 = arith.mulf %12, %9 : vector<32x32xf32>
    %14 = arith.select %11, %9, %13 : vector<32x32xi1>, vector<32x32xf32>
    %15 = vector.extract_strided_slice %1 {offsets = [0, 1], sizes = [32, 32], strides = [1, 1]} : vector<32x34xbf16> to vector<32x32xbf16>
    %16 = arith.extf %15 : vector<32x32xbf16> to vector<32x32xf32>
    %cst_8 = arith.constant 0.000000e+00 : f32
    %17 = vector.broadcast %cst_8 : f32 to vector<32x32xf32>
    %18 = arith.cmpf oge, %16, %17 : vector<32x32xf32>
    %cst_9 = arith.constant 2.000000e-01 : f32
    %19 = vector.broadcast %cst_9 : f32 to vector<32x32xf32>
    %20 = arith.mulf %19, %16 : vector<32x32xf32>
    %21 = arith.select %18, %16, %20 : vector<32x32xi1>, vector<32x32xf32>
    %22 = vector.extract_strided_slice %1 {offsets = [0, 2], sizes = [32, 32], strides = [1, 1]} : vector<32x34xbf16> to vector<32x32xbf16>
    %23 = arith.extf %22 : vector<32x32xbf16> to vector<32x32xf32>
    %cst_10 = arith.constant 0.000000e+00 : f32
    %24 = vector.broadcast %cst_10 : f32 to vector<32x32xf32>
    %25 = arith.cmpf oge, %23, %24 : vector<32x32xf32>
    %cst_11 = arith.constant 2.000000e-01 : f32
    %26 = vector.broadcast %cst_11 : f32 to vector<32x32xf32>
    %27 = arith.mulf %26, %23 : vector<32x32xf32>
    %28 = arith.select %25, %23, %27 : vector<32x32xi1>, vector<32x32xf32>
    %29 = tpu.concatenate %14, %21, %28 in 0 : vector<32x32xf32>, vector<32x32xf32>, vector<32x32xf32> -> vector<96x32xf32>
    %30 = arith.truncf %29 : vector<96x32xf32> to vector<96x32xbf16>
    %c0_12 = arith.constant 0 : index
    %c0_13 = arith.constant 0 : index
    %31 = vector.load %arg3[%c0_12, %c0_13] : memref<32x96xbf16, #tpu.memory_space<vmem>>, vector<32x96xbf16>
    %cst_14 = arith.constant dense<0.000000e+00> : vector<32x32xf32>
    %32 = tpu.matmul %31, %30, %cst_14 {dimension_numbers = #tpu.dot_dimension_numbers<[1], [0], [0], [1], [0, 0, 1, 1], [], []>} : vector<32x96xbf16>, vector<96x32xbf16>, vector<32x32xf32> -> vector<32x32xf32>
    %c0_15 = arith.constant 0 : index
    %c0_16 = arith.constant 0 : index
    %33 = vector.load %arg4[%c0_15, %c0_16] : memref<32x1xf32, #tpu.memory_space<vmem>>, vector<32x1xf32>
    %34 = vector.broadcast %33 : vector<32x1xf32> to vector<32x32xf32>
    %35 = arith.addf %32, %34 : vector<32x32xf32>
    %cst_17 = arith.constant 0.000000e+00 : f32
    %36 = vector.broadcast %cst_17 : f32 to vector<32x32xf32>
    %37 = arith.cmpf oge, %35, %36 : vector<32x32xf32>
    %cst_18 = arith.constant 2.000000e-01 : f32
    %38 = vector.broadcast %cst_18 : f32 to vector<32x32xf32>
    %39 = arith.mulf %38, %35 : vector<32x32xf32>
    %40 = arith.select %37, %35, %39 : vector<32x32xi1>, vector<32x32xf32>
    %c0_19 = arith.constant 0 : index
    %c0_20 = arith.constant 0 : index
    %41 = vector.load %arg5[%c0_19, %c0_20] : memref<32x32xbf16, #tpu.memory_space<vmem>>, vector<32x32xbf16>
    %42 = arith.truncf %40 : vector<32x32xf32> to vector<32x32xbf16>
    %cst_21 = arith.constant dense<0.000000e+00> : vector<32x32xf32>
    %43 = tpu.matmul %41, %42, %cst_21 {dimension_numbers = #tpu.dot_dimension_numbers<[1], [0], [0], [1], [0, 0, 1, 1], [], []>} : vector<32x32xbf16>, vector<32x32xbf16>, vector<32x32xf32> -> vector<32x32xf32>
    %c0_22 = arith.constant 0 : index
    %c0_23 = arith.constant 0 : index
    %44 = vector.load %arg6[%c0_22, %c0_23] : memref<32x1xf32, #tpu.memory_space<vmem>>, vector<32x1xf32>
    %45 = vector.broadcast %44 : vector<32x1xf32> to vector<32x32xf32>
    %46 = arith.addf %43, %45 : vector<32x32xf32>
    %c0_24 = arith.constant 0 : index
    %c0_25 = arith.constant 0 : index
    %47 = vector.load %arg9[%c0_24, %c0_25] : memref<32x1xf32, #tpu.memory_space<vmem>>, vector<32x1xf32>
    %48 = vector.broadcast %47 : vector<32x1xf32> to vector<32x32xf32>
    %49 = arith.mulf %46, %48 : vector<32x32xf32>
    %50 = arith.addf %7, %49 : vector<32x32xf32>
    %51 = arith.truncf %50 : vector<32x32xf32> to vector<32x32xbf16>
    %c0_26 = arith.constant 0 : index
    %c0_27 = arith.constant 0 : index
    %c0_28 = arith.constant 0 : index
    %52 = vector.load %arg10[%c0_26, %c0_27, %c0_28] : memref<1x32x32xbf16, #tpu.memory_space<vmem>>, vector<1x32x32xbf16>
    %53 = vector.shape_cast %52 : vector<1x32x32xbf16> to vector<32x32xbf16>
    %54 = vector.shape_cast %51 : vector<32x32xbf16> to vector<1x32x32xbf16>
    tpu.vector_store %arg10[%c0_26, %c0_27, %c0_28], %54 {strides = array<i32>} : memref<1x32x32xbf16, #tpu.memory_space<vmem>>, vector<1x32x32xbf16>,
    return
  }
  func.func @transform_0(%arg0: i32, %arg1: i32) -> (i32, i32, i32) {
    %c0_i32 = arith.constant 0 : i32
    %c0_i32_0 = arith.constant 0 : i32
    %c0_i32_1 = arith.constant 0 : i32
    return %arg0, %c0_i32, %c0_i32_0 : i32, i32, i32
  }
  func.func @transform_1(%arg0: i32, %arg1: i32) -> (i32, i32) {
    %c0_i32 = arith.constant 0 : i32
    %c0_i32_0 = arith.constant 0 : i32
    %c0_i32_1 = arith.constant 0 : i32
    return %c0_i32, %c0_i32_0 : i32, i32
  }
  func.func @transform_2(%arg0: i32, %arg1: i32) -> (i32, i32) {
    %c0_i32 = arith.constant 0 : i32
    %c0_i32_0 = arith.constant 0 : i32
    %c0_i32_1 = arith.constant 0 : i32
    return %c0_i32, %c0_i32_0 : i32, i32
  }
  func.func @transform_3(%arg0: i32, %arg1: i32) -> (i32, i32) {
    %c0_i32 = arith.constant 0 : i32
    %c0_i32_0 = arith.constant 0 : i32
    %c0_i32_1 = arith.constant 0 : i32
    return %c0_i32, %c0_i32_0 : i32, i32
  }
  func.func @transform_4(%arg0: i32, %arg1: i32) -> (i32, i32) {
    %c0_i32 = arith.constant 0 : i32
    %c0_i32_0 = arith.constant 0 : i32
    %c0_i32_1 = arith.constant 0 : i32
    return %c0_i32, %c0_i32_0 : i32, i32
  }
  func.func @transform_5(%arg0: i32, %arg1: i32) -> (i32, i32) {
    %c0_i32 = arith.constant 0 : i32
    %c0_i32_0 = arith.constant 0 : i32
    %c0_i32_1 = arith.constant 0 : i32
    return %c0_i32, %c0_i32_0 : i32, i32
  }
  func.func @transform_6(%arg0: i32, %arg1: i32) -> (i32, i32) {
    %c0_i32 = arith.constant 0 : i32
    %c0_i32_0 = arith.constant 0 : i32
    %c0_i32_1 = arith.constant 0 : i32
    return %c0_i32, %c0_i32_0 : i32, i32
  }
  func.func @transform_7(%arg0: i32, %arg1: i32) -> (i32, i32) {
    %c0_i32 = arith.constant 0 : i32
    %c0_i32_0 = arith.constant 0 : i32
    %c0_i32_1 = arith.constant 0 : i32
    return %c0_i32, %c0_i32_0 : i32, i32
  }
  func.func @transform_8(%arg0: i32, %arg1: i32) -> (i32, i32, i32) {
    %c0_i32 = arith.constant 0 : i32
    %c0_i32_0 = arith.constant 0 : i32
    return %arg0, %c0_i32, %arg1 : i32, i32, i32
  }
}

module attributes {stable_mosaic.version = 11 : i64} {
  func.func @_resnet_kernel(%arg0: i32, %arg1: i32, %arg2: memref<1x32x38xbf16, #tpu.memory_space<vmem>>, %arg3: memref<32x96xbf16, #tpu.memory_space<vmem>>, %arg4: memref<32x1xf32, #tpu.memory_space<vmem>>, %arg5: memref<32x32xbf16, #tpu.memory_space<vmem>>, %arg6: memref<32x1xf32, #tpu.memory_space<vmem>>, %arg7: memref<32x32xbf16, #tpu.memory_space<vmem>>, %arg8: memref<32x1xf32, #tpu.memory_space<vmem>>, %arg9: memref<32x1xf32, #tpu.memory_space<vmem>>, %arg10: memref<1x32x32xbf16, #tpu.memory_space<vmem>>) attributes {dimension_semantics = [#tpu.dimension_semantics<parallel>, #tpu.dimension_semantics<parallel>], iteration_bounds = array<i64: 2, 1>, scalar_prefetch = 0 : i64, scratch_operands = 0 : i64, tpu.core_type = #tpu.core_type<tc>, window_params = [{transform_indices = @transform_0, window_bounds = array<i64: 1, 32, 38>}, {pipeline_mode = #tpu.pipeline_mode<synchronous>, transform_indices = @transform_1, window_bounds = array<i64: 32, 96>}, {pipeline_mode = #tpu.pipeline_mode<synchronous>, transform_indices = @transform_2, window_bounds = array<i64: 32, 1>}, {pipeline_mode = #tpu.pipeline_mode<synchronous>, transform_indices = @transform_3, window_bounds = array<i64: 32, 32>}, {pipeline_mode = #tpu.pipeline_mode<synchronous>, transform_indices = @transform_4, window_bounds = array<i64: 32, 1>}, {pipeline_mode = #tpu.pipeline_mode<synchronous>, transform_indices = @transform_5, window_bounds = array<i64: 32, 32>}, {pipeline_mode = #tpu.pipeline_mode<synchronous>, transform_indices = @transform_6, window_bounds = array<i64: 32, 1>}, {pipeline_mode = #tpu.pipeline_mode<synchronous>, transform_indices = @transform_7, window_bounds = array<i64: 32, 1>}, {transform_indices = @transform_8, window_bounds = array<i64: 1, 32, 32>}]} {
    %c0 = arith.constant 0 : index
    %c0_0 = arith.constant 0 : index
    %c0_1 = arith.constant 0 : index
    %0 = vector.load %arg2[%c0, %c0_0, %c0_1] : memref<1x32x38xbf16, #tpu.memory_space<vmem>>, vector<1x32x38xbf16>
    %1 = vector.shape_cast %0 : vector<1x32x38xbf16> to vector<32x38xbf16>
    %2 = vector.extract_strided_slice %1 {offsets = [0, 3], sizes = [32, 32], strides = [1, 1]} : vector<32x38xbf16> to vector<32x32xbf16>
    %c0_2 = arith.constant 0 : index
    %c0_3 = arith.constant 0 : index
    %3 = vector.load %arg7[%c0_2, %c0_3] : memref<32x32xbf16, #tpu.memory_space<vmem>>, vector<32x32xbf16>
    %cst = arith.constant dense<0.000000e+00> : vector<32x32xf32>
    %4 = tpu.matmul %3, %2, %cst {dimension_numbers = #tpu.dot_dimension_numbers<[1], [0], [0], [1], [0, 0, 1, 1], [], []>} : vector<32x32xbf16>, vector<32x32xbf16>, vector<32x32xf32> -> vector<32x32xf32>
    %c0_4 = arith.constant 0 : index
    %c0_5 = arith.constant 0 : index
    %5 = vector.load %arg8[%c0_4, %c0_5] : memref<32x1xf32, #tpu.memory_space<vmem>>, vector<32x1xf32>
    %6 = vector.broadcast %5 : vector<32x1xf32> to vector<32x32xf32>
    %7 = arith.addf %4, %6 : vector<32x32xf32>
    %8 = vector.extract_strided_slice %1 {offsets = [0, 0], sizes = [32, 32], strides = [1, 1]} : vector<32x38xbf16> to vector<32x32xbf16>
    %9 = arith.extf %8 : vector<32x32xbf16> to vector<32x32xf32>
    %cst_6 = arith.constant 0.000000e+00 : f32
    %10 = vector.broadcast %cst_6 : f32 to vector<32x32xf32>
    %11 = arith.cmpf oge, %9, %10 : vector<32x32xf32>
    %cst_7 = arith.constant 2.000000e-01 : f32
    %12 = vector.broadcast %cst_7 : f32 to vector<32x32xf32>
    %13 = arith.mulf %12, %9 : vector<32x32xf32>
    %14 = arith.select %11, %9, %13 : vector<32x32xi1>, vector<32x32xf32>
    %15 = vector.extract_strided_slice %1 {offsets = [0, 3], sizes = [32, 32], strides = [1, 1]} : vector<32x38xbf16> to vector<32x32xbf16>
    %16 = arith.extf %15 : vector<32x32xbf16> to vector<32x32xf32>
    %cst_8 = arith.constant 0.000000e+00 : f32
    %17 = vector.broadcast %cst_8 : f32 to vector<32x32xf32>
    %18 = arith.cmpf oge, %16, %17 : vector<32x32xf32>
    %cst_9 = arith.constant 2.000000e-01 : f32
    %19 = vector.broadcast %cst_9 : f32 to vector<32x32xf32>
    %20 = arith.mulf %19, %16 : vector<32x32xf32>
    %21 = arith.select %18, %16, %20 : vector<32x32xi1>, vector<32x32xf32>
    %22 = vector.extract_strided_slice %1 {offsets = [0, 6], sizes = [32, 32], strides = [1, 1]} : vector<32x38xbf16> to vector<32x32xbf16>
    %23 = arith.extf %22 : vector<32x32xbf16> to vector<32x32xf32>
    %cst_10 = arith.constant 0.000000e+00 : f32
    %24 = vector.broadcast %cst_10 : f32 to vector<32x32xf32>
    %25 = arith.cmpf oge, %23, %24 : vector<32x32xf32>
    %cst_11 = arith.constant 2.000000e-01 : f32
    %26 = vector.broadcast %cst_11 : f32 to vector<32x32xf32>
    %27 = arith.mulf %26, %23 : vector<32x32xf32>
    %28 = arith.select %25, %23, %27 : vector<32x32xi1>, vector<32x32xf32>
    %29 = tpu.concatenate %14, %21, %28 in 0 : vector<32x32xf32>, vector<32x32xf32>, vector<32x32xf32> -> vector<96x32xf32>
    %30 = arith.truncf %29 : vector<96x32xf32> to vector<96x32xbf16>
    %c0_12 = arith.constant 0 : index
    %c0_13 = arith.constant 0 : index
    %31 = vector.load %arg3[%c0_12, %c0_13] : memref<32x96xbf16, #tpu.memory_space<vmem>>, vector<32x96xbf16>
    %cst_14 = arith.constant dense<0.000000e+00> : vector<32x32xf32>
    %32 = tpu.matmul %31, %30, %cst_14 {dimension_numbers = #tpu.dot_dimension_numbers<[1], [0], [0], [1], [0, 0, 1, 1], [], []>} : vector<32x96xbf16>, vector<96x32xbf16>, vector<32x32xf32> -> vector<32x32xf32>
    %c0_15 = arith.constant 0 : index
    %c0_16 = arith.constant 0 : index
    %33 = vector.load %arg4[%c0_15, %c0_16] : memref<32x1xf32, #tpu.memory_space<vmem>>, vector<32x1xf32>
    %34 = vector.broadcast %33 : vector<32x1xf32> to vector<32x32xf32>
    %35 = arith.addf %32, %34 : vector<32x32xf32>
    %cst_17 = arith.constant 0.000000e+00 : f32
    %36 = vector.broadcast %cst_17 : f32 to vector<32x32xf32>
    %37 = arith.cmpf oge, %35, %36 : vector<32x32xf32>
    %cst_18 = arith.constant 2.000000e-01 : f32
    %38 = vector.broadcast %cst_18 : f32 to vector<32x32xf32>
    %39 = arith.mulf %38, %35 : vector<32x32xf32>
    %40 = arith.select %37, %35, %39 : vector<32x32xi1>, vector<32x32xf32>
    %c0_19 = arith.constant 0 : index
    %c0_20 = arith.constant 0 : index
    %41 = vector.load %arg5[%c0_19, %c0_20] : memref<32x32xbf16, #tpu.memory_space<vmem>>, vector<32x32xbf16>
    %42 = arith.truncf %40 : vector<32x32xf32> to vector<32x32xbf16>
    %cst_21 = arith.constant dense<0.000000e+00> : vector<32x32xf32>
    %43 = tpu.matmul %41, %42, %cst_21 {dimension_numbers = #tpu.dot_dimension_numbers<[1], [0], [0], [1], [0, 0, 1, 1], [], []>} : vector<32x32xbf16>, vector<32x32xbf16>, vector<32x32xf32> -> vector<32x32xf32>
    %c0_22 = arith.constant 0 : index
    %c0_23 = arith.constant 0 : index
    %44 = vector.load %arg6[%c0_22, %c0_23] : memref<32x1xf32, #tpu.memory_space<vmem>>, vector<32x1xf32>
    %45 = vector.broadcast %44 : vector<32x1xf32> to vector<32x32xf32>
    %46 = arith.addf %43, %45 : vector<32x32xf32>
    %c0_24 = arith.constant 0 : index
    %c0_25 = arith.constant 0 : index
    %47 = vector.load %arg9[%c0_24, %c0_25] : memref<32x1xf32, #tpu.memory_space<vmem>>, vector<32x1xf32>
    %48 = vector.broadcast %47 : vector<32x1xf32> to vector<32x32xf32>
    %49 = arith.mulf %46, %48 : vector<32x32xf32>
    %50 = arith.addf %7, %49 : vector<32x32xf32>
    %cst_26 = arith.constant 0.000000e+00 : f32
    %51 = vector.broadcast %cst_26 : f32 to vector<32x32xf32>
    %52 = arith.cmpf oge, %50, %51 : vector<32x32xf32>
    %cst_27 = arith.constant 2.000000e-01 : f32
    %53 = vector.broadcast %cst_27 : f32 to vector<32x32xf32>
    %54 = arith.mulf %53, %50 : vector<32x32xf32>
    %55 = arith.select %52, %50, %54 : vector<32x32xi1>, vector<32x32xf32>
    %56 = arith.truncf %55 : vector<32x32xf32> to vector<32x32xbf16>
    %c0_28 = arith.constant 0 : index
    %c0_29 = arith.constant 0 : index
    %c0_30 = arith.constant 0 : index
    %57 = vector.load %arg10[%c0_28, %c0_29, %c0_30] : memref<1x32x32xbf16, #tpu.memory_space<vmem>>, vector<1x32x32xbf16>
    %58 = vector.shape_cast %57 : vector<1x32x32xbf16> to vector<32x32xbf16>
    %59 = vector.shape_cast %56 : vector<32x32xbf16> to vector<1x32x32xbf16>
    tpu.vector_store %arg10[%c0_28, %c0_29, %c0_30], %59 {strides = array<i32>} : memref<1x32x32xbf16, #tpu.memory_space<vmem>>, vector<1x32x32xbf16>,
    return
  }
  func.func @transform_0(%arg0: i32, %arg1: i32) -> (i32, i32, i32) {
    %c0_i32 = arith.constant 0 : i32
    %c0_i32_0 = arith.constant 0 : i32
    %c0_i32_1 = arith.constant 0 : i32
    return %arg0, %c0_i32, %c0_i32_0 : i32, i32, i32
  }
  func.func @transform_1(%arg0: i32, %arg1: i32) -> (i32, i32) {
    %c0_i32 = arith.constant 0 : i32
    %c0_i32_0 = arith.constant 0 : i32
    %c0_i32_1 = arith.constant 0 : i32
    return %c0_i32, %c0_i32_0 : i32, i32
  }
  func.func @transform_2(%arg0: i32, %arg1: i32) -> (i32, i32) {
    %c0_i32 = arith.constant 0 : i32
    %c0_i32_0 = arith.constant 0 : i32
    %c0_i32_1 = arith.constant 0 : i32
    return %c0_i32, %c0_i32_0 : i32, i32
  }
  func.func @transform_3(%arg0: i32, %arg1: i32) -> (i32, i32) {
    %c0_i32 = arith.constant 0 : i32
    %c0_i32_0 = arith.constant 0 : i32
    %c0_i32_1 = arith.constant 0 : i32
    return %c0_i32, %c0_i32_0 : i32, i32
  }
  func.func @transform_4(%arg0: i32, %arg1: i32) -> (i32, i32) {
    %c0_i32 = arith.constant 0 : i32
    %c0_i32_0 = arith.constant 0 : i32
    %c0_i32_1 = arith.constant 0 : i32
    return %c0_i32, %c0_i32_0 : i32, i32
  }
  func.func @transform_5(%arg0: i32, %arg1: i32) -> (i32, i32) {
    %c0_i32 = arith.constant 0 : i32
    %c0_i32_0 = arith.constant 0 : i32
    %c0_i32_1 = arith.constant 0 : i32
    return %c0_i32, %c0_i32_0 : i32, i32
  }
  func.func @transform_6(%arg0: i32, %arg1: i32) -> (i32, i32) {
    %c0_i32 = arith.constant 0 : i32
    %c0_i32_0 = arith.constant 0 : i32
    %c0_i32_1 = arith.constant 0 : i32
    return %c0_i32, %c0_i32_0 : i32, i32
  }
  func.func @transform_7(%arg0: i32, %arg1: i32) -> (i32, i32) {
    %c0_i32 = arith.constant 0 : i32
    %c0_i32_0 = arith.constant 0 : i32
    %c0_i32_1 = arith.constant 0 : i32
    return %c0_i32, %c0_i32_0 : i32, i32
  }
  func.func @transform_8(%arg0: i32, %arg1: i32) -> (i32, i32, i32) {
    %c0_i32 = arith.constant 0 : i32
    %c0_i32_0 = arith.constant 0 : i32
    return %arg0, %c0_i32, %arg1 : i32, i32, i32
  }
}

module attributes {stable_mosaic.version = 11 : i64} {
  func.func @_conv_im2col_kernel(%arg0: i32, %arg1: i32, %arg2: memref<1x32x34xbf16, #tpu.memory_space<vmem>>, %arg3: memref<80x96xbf16, #tpu.memory_space<vmem>>, %arg4: memref<80x1xf32, #tpu.memory_space<vmem>>, %arg5: memref<1x80x32xbf16, #tpu.memory_space<vmem>>) attributes {dimension_semantics = [#tpu.dimension_semantics<parallel>, #tpu.dimension_semantics<parallel>], iteration_bounds = array<i64: 2, 1>, scalar_prefetch = 0 : i64, scratch_operands = 0 : i64, tpu.core_type = #tpu.core_type<tc>, window_params = [{transform_indices = @transform_0, window_bounds = array<i64: 1, 32, 34>}, {pipeline_mode = #tpu.pipeline_mode<synchronous>, transform_indices = @transform_1, window_bounds = array<i64: 80, 96>}, {pipeline_mode = #tpu.pipeline_mode<synchronous>, transform_indices = @transform_2, window_bounds = array<i64: 80, 1>}, {transform_indices = @transform_3, window_bounds = array<i64: 1, 80, 32>}]} {
    %c0 = arith.constant 0 : index
    %c0_0 = arith.constant 0 : index
    %c0_1 = arith.constant 0 : index
    %0 = vector.load %arg2[%c0, %c0_0, %c0_1] : memref<1x32x34xbf16, #tpu.memory_space<vmem>>, vector<1x32x34xbf16>
    %1 = vector.shape_cast %0 : vector<1x32x34xbf16> to vector<32x34xbf16>
    %2 = vector.extract_strided_slice %1 {offsets = [0, 0], sizes = [32, 32], strides = [1, 1]} : vector<32x34xbf16> to vector<32x32xbf16>
    %3 = arith.extf %2 : vector<32x32xbf16> to vector<32x32xf32>
    %4 = vector.extract_strided_slice %1 {offsets = [0, 1], sizes = [32, 32], strides = [1, 1]} : vector<32x34xbf16> to vector<32x32xbf16>
    %5 = arith.extf %4 : vector<32x32xbf16> to vector<32x32xf32>
    %6 = vector.extract_strided_slice %1 {offsets = [0, 2], sizes = [32, 32], strides = [1, 1]} : vector<32x34xbf16> to vector<32x32xbf16>
    %7 = arith.extf %6 : vector<32x32xbf16> to vector<32x32xf32>
    %8 = tpu.concatenate %3, %5, %7 in 0 : vector<32x32xf32>, vector<32x32xf32>, vector<32x32xf32> -> vector<96x32xf32>
    %9 = arith.truncf %8 : vector<96x32xf32> to vector<96x32xbf16>
    %c0_2 = arith.constant 0 : index
    %c0_3 = arith.constant 0 : index
    %10 = vector.load %arg3[%c0_2, %c0_3] : memref<80x96xbf16, #tpu.memory_space<vmem>>, vector<80x96xbf16>
    %cst = arith.constant dense<0.000000e+00> : vector<80x32xf32>
    %11 = tpu.matmul %10, %9, %cst {dimension_numbers = #tpu.dot_dimension_numbers<[1], [0], [0], [1], [0, 0, 1, 1], [], []>} : vector<80x96xbf16>, vector<96x32xbf16>, vector<80x32xf32> -> vector<80x32xf32>
    %c0_4 = arith.constant 0 : index
    %c0_5 = arith.constant 0 : index
    %12 = vector.load %arg4[%c0_4, %c0_5] : memref<80x1xf32, #tpu.memory_space<vmem>>, vector<80x1xf32>
    %13 = vector.broadcast %12 : vector<80x1xf32> to vector<80x32xf32>
    %14 = arith.addf %11, %13 : vector<80x32xf32>
    %15 = arith.truncf %14 : vector<80x32xf32> to vector<80x32xbf16>
    %c0_6 = arith.constant 0 : index
    %c0_7 = arith.constant 0 : index
    %c0_8 = arith.constant 0 : index
    %16 = vector.load %arg5[%c0_6, %c0_7, %c0_8] : memref<1x80x32xbf16, #tpu.memory_space<vmem>>, vector<1x80x32xbf16>
    %17 = vector.shape_cast %16 : vector<1x80x32xbf16> to vector<80x32xbf16>
    %18 = vector.shape_cast %15 : vector<80x32xbf16> to vector<1x80x32xbf16>
    tpu.vector_store %arg5[%c0_6, %c0_7, %c0_8], %18 {strides = array<i32>} : memref<1x80x32xbf16, #tpu.memory_space<vmem>>, vector<1x80x32xbf16>,
    return
  }
  func.func @transform_0(%arg0: i32, %arg1: i32) -> (i32, i32, i32) {
    %c0_i32 = arith.constant 0 : i32
    %c0_i32_0 = arith.constant 0 : i32
    %c0_i32_1 = arith.constant 0 : i32
    return %arg0, %c0_i32, %c0_i32_0 : i32, i32, i32
  }
  func.func @transform_1(%arg0: i32, %arg1: i32) -> (i32, i32) {
    %c0_i32 = arith.constant 0 : i32
    %c0_i32_0 = arith.constant 0 : i32
    %c0_i32_1 = arith.constant 0 : i32
    return %c0_i32, %c0_i32_0 : i32, i32
  }
  func.func @transform_2(%arg0: i32, %arg1: i32) -> (i32, i32) {
    %c0_i32 = arith.constant 0 : i32
    %c0_i32_0 = arith.constant 0 : i32
    %c0_i32_1 = arith.constant 0 : i32
    return %c0_i32, %c0_i32_0 : i32, i32
  }
  func.func @transform_3(%arg0: i32, %arg1: i32) -> (i32, i32, i32) {
    %c0_i32 = arith.constant 0 : i32
    %c0_i32_0 = arith.constant 0 : i32
    return %arg0, %c0_i32, %arg1 : i32, i32, i32
  }
}

module attributes {stable_mosaic.version = 11 : i64} {
  func.func @_resnet_kernel(%arg0: i32, %arg1: i32, %arg2: memref<1x16x162xbf16, #tpu.memory_space<vmem>>, %arg3: memref<16x48xbf16, #tpu.memory_space<vmem>>, %arg4: memref<16x1xf32, #tpu.memory_space<vmem>>, %arg5: memref<16x16xbf16, #tpu.memory_space<vmem>>, %arg6: memref<16x1xf32, #tpu.memory_space<vmem>>, %arg7: memref<16x16xbf16, #tpu.memory_space<vmem>>, %arg8: memref<16x1xf32, #tpu.memory_space<vmem>>, %arg9: memref<16x1xf32, #tpu.memory_space<vmem>>, %arg10: memref<1x16x160xbf16, #tpu.memory_space<vmem>>) attributes {dimension_semantics = [#tpu.dimension_semantics<parallel>, #tpu.dimension_semantics<parallel>], iteration_bounds = array<i64: 2, 1>, scalar_prefetch = 0 : i64, scratch_operands = 0 : i64, tpu.core_type = #tpu.core_type<tc>, window_params = [{transform_indices = @transform_0, window_bounds = array<i64: 1, 16, 162>}, {pipeline_mode = #tpu.pipeline_mode<synchronous>, transform_indices = @transform_1, window_bounds = array<i64: 16, 48>}, {pipeline_mode = #tpu.pipeline_mode<synchronous>, transform_indices = @transform_2, window_bounds = array<i64: 16, 1>}, {pipeline_mode = #tpu.pipeline_mode<synchronous>, transform_indices = @transform_3, window_bounds = array<i64: 16, 16>}, {pipeline_mode = #tpu.pipeline_mode<synchronous>, transform_indices = @transform_4, window_bounds = array<i64: 16, 1>}, {pipeline_mode = #tpu.pipeline_mode<synchronous>, transform_indices = @transform_5, window_bounds = array<i64: 16, 16>}, {pipeline_mode = #tpu.pipeline_mode<synchronous>, transform_indices = @transform_6, window_bounds = array<i64: 16, 1>}, {pipeline_mode = #tpu.pipeline_mode<synchronous>, transform_indices = @transform_7, window_bounds = array<i64: 16, 1>}, {transform_indices = @transform_8, window_bounds = array<i64: 1, 16, 160>}]} {
    %c0 = arith.constant 0 : index
    %c0_0 = arith.constant 0 : index
    %c0_1 = arith.constant 0 : index
    %0 = vector.load %arg2[%c0, %c0_0, %c0_1] : memref<1x16x162xbf16, #tpu.memory_space<vmem>>, vector<1x16x162xbf16>
    %1 = vector.shape_cast %0 : vector<1x16x162xbf16> to vector<16x162xbf16>
    %2 = vector.extract_strided_slice %1 {offsets = [0, 1], sizes = [16, 160], strides = [1, 1]} : vector<16x162xbf16> to vector<16x160xbf16>
    %c0_2 = arith.constant 0 : index
    %c0_3 = arith.constant 0 : index
    %3 = vector.load %arg7[%c0_2, %c0_3] : memref<16x16xbf16, #tpu.memory_space<vmem>>, vector<16x16xbf16>
    %cst = arith.constant dense<0.000000e+00> : vector<16x160xf32>
    %4 = tpu.matmul %3, %2, %cst {dimension_numbers = #tpu.dot_dimension_numbers<[1], [0], [0], [1], [0, 0, 1, 1], [], []>} : vector<16x16xbf16>, vector<16x160xbf16>, vector<16x160xf32> -> vector<16x160xf32>
    %c0_4 = arith.constant 0 : index
    %c0_5 = arith.constant 0 : index
    %5 = vector.load %arg8[%c0_4, %c0_5] : memref<16x1xf32, #tpu.memory_space<vmem>>, vector<16x1xf32>
    %6 = vector.broadcast %5 : vector<16x1xf32> to vector<16x160xf32>
    %7 = arith.addf %4, %6 : vector<16x160xf32>
    %8 = vector.extract_strided_slice %1 {offsets = [0, 0], sizes = [16, 160], strides = [1, 1]} : vector<16x162xbf16> to vector<16x160xbf16>
    %9 = arith.extf %8 : vector<16x160xbf16> to vector<16x160xf32>
    %cst_6 = arith.constant 0.000000e+00 : f32
    %10 = vector.broadcast %cst_6 : f32 to vector<16x160xf32>
    %11 = arith.cmpf oge, %9, %10 : vector<16x160xf32>
    %cst_7 = arith.constant 2.000000e-01 : f32
    %12 = vector.broadcast %cst_7 : f32 to vector<16x160xf32>
    %13 = arith.mulf %12, %9 : vector<16x160xf32>
    %14 = arith.select %11, %9, %13 : vector<16x160xi1>, vector<16x160xf32>
    %15 = vector.extract_strided_slice %1 {offsets = [0, 1], sizes = [16, 160], strides = [1, 1]} : vector<16x162xbf16> to vector<16x160xbf16>
    %16 = arith.extf %15 : vector<16x160xbf16> to vector<16x160xf32>
    %cst_8 = arith.constant 0.000000e+00 : f32
    %17 = vector.broadcast %cst_8 : f32 to vector<16x160xf32>
    %18 = arith.cmpf oge, %16, %17 : vector<16x160xf32>
    %cst_9 = arith.constant 2.000000e-01 : f32
    %19 = vector.broadcast %cst_9 : f32 to vector<16x160xf32>
    %20 = arith.mulf %19, %16 : vector<16x160xf32>
    %21 = arith.select %18, %16, %20 : vector<16x160xi1>, vector<16x160xf32>
    %22 = vector.extract_strided_slice %1 {offsets = [0, 2], sizes = [16, 160], strides = [1, 1]} : vector<16x162xbf16> to vector<16x160xbf16>
    %23 = arith.extf %22 : vector<16x160xbf16> to vector<16x160xf32>
    %cst_10 = arith.constant 0.000000e+00 : f32
    %24 = vector.broadcast %cst_10 : f32 to vector<16x160xf32>
    %25 = arith.cmpf oge, %23, %24 : vector<16x160xf32>
    %cst_11 = arith.constant 2.000000e-01 : f32
    %26 = vector.broadcast %cst_11 : f32 to vector<16x160xf32>
    %27 = arith.mulf %26, %23 : vector<16x160xf32>
    %28 = arith.select %25, %23, %27 : vector<16x160xi1>, vector<16x160xf32>
    %29 = tpu.concatenate %14, %21, %28 in 0 : vector<16x160xf32>, vector<16x160xf32>, vector<16x160xf32> -> vector<48x160xf32>
    %30 = arith.truncf %29 : vector<48x160xf32> to vector<48x160xbf16>
    %c0_12 = arith.constant 0 : index
    %c0_13 = arith.constant 0 : index
    %31 = vector.load %arg3[%c0_12, %c0_13] : memref<16x48xbf16, #tpu.memory_space<vmem>>, vector<16x48xbf16>
    %cst_14 = arith.constant dense<0.000000e+00> : vector<16x160xf32>
    %32 = tpu.matmul %31, %30, %cst_14 {dimension_numbers = #tpu.dot_dimension_numbers<[1], [0], [0], [1], [0, 0, 1, 1], [], []>} : vector<16x48xbf16>, vector<48x160xbf16>, vector<16x160xf32> -> vector<16x160xf32>
    %c0_15 = arith.constant 0 : index
    %c0_16 = arith.constant 0 : index
    %33 = vector.load %arg4[%c0_15, %c0_16] : memref<16x1xf32, #tpu.memory_space<vmem>>, vector<16x1xf32>
    %34 = vector.broadcast %33 : vector<16x1xf32> to vector<16x160xf32>
    %35 = arith.addf %32, %34 : vector<16x160xf32>
    %cst_17 = arith.constant 0.000000e+00 : f32
    %36 = vector.broadcast %cst_17 : f32 to vector<16x160xf32>
    %37 = arith.cmpf oge, %35, %36 : vector<16x160xf32>
    %cst_18 = arith.constant 2.000000e-01 : f32
    %38 = vector.broadcast %cst_18 : f32 to vector<16x160xf32>
    %39 = arith.mulf %38, %35 : vector<16x160xf32>
    %40 = arith.select %37, %35, %39 : vector<16x160xi1>, vector<16x160xf32>
    %c0_19 = arith.constant 0 : index
    %c0_20 = arith.constant 0 : index
    %41 = vector.load %arg5[%c0_19, %c0_20] : memref<16x16xbf16, #tpu.memory_space<vmem>>, vector<16x16xbf16>
    %42 = arith.truncf %40 : vector<16x160xf32> to vector<16x160xbf16>
    %cst_21 = arith.constant dense<0.000000e+00> : vector<16x160xf32>
    %43 = tpu.matmul %41, %42, %cst_21 {dimension_numbers = #tpu.dot_dimension_numbers<[1], [0], [0], [1], [0, 0, 1, 1], [], []>} : vector<16x16xbf16>, vector<16x160xbf16>, vector<16x160xf32> -> vector<16x160xf32>
    %c0_22 = arith.constant 0 : index
    %c0_23 = arith.constant 0 : index
    %44 = vector.load %arg6[%c0_22, %c0_23] : memref<16x1xf32, #tpu.memory_space<vmem>>, vector<16x1xf32>
    %45 = vector.broadcast %44 : vector<16x1xf32> to vector<16x160xf32>
    %46 = arith.addf %43, %45 : vector<16x160xf32>
    %c0_24 = arith.constant 0 : index
    %c0_25 = arith.constant 0 : index
    %47 = vector.load %arg9[%c0_24, %c0_25] : memref<16x1xf32, #tpu.memory_space<vmem>>, vector<16x1xf32>
    %48 = vector.broadcast %47 : vector<16x1xf32> to vector<16x160xf32>
    %49 = arith.mulf %46, %48 : vector<16x160xf32>
    %50 = arith.addf %7, %49 : vector<16x160xf32>
    %51 = arith.truncf %50 : vector<16x160xf32> to vector<16x160xbf16>
    %c0_26 = arith.constant 0 : index
    %c0_27 = arith.constant 0 : index
    %c0_28 = arith.constant 0 : index
    %52 = vector.load %arg10[%c0_26, %c0_27, %c0_28] : memref<1x16x160xbf16, #tpu.memory_space<vmem>>, vector<1x16x160xbf16>
    %53 = vector.shape_cast %52 : vector<1x16x160xbf16> to vector<16x160xbf16>
    %54 = vector.shape_cast %51 : vector<16x160xbf16> to vector<1x16x160xbf16>
    tpu.vector_store %arg10[%c0_26, %c0_27, %c0_28], %54 {strides = array<i32>} : memref<1x16x160xbf16, #tpu.memory_space<vmem>>, vector<1x16x160xbf16>,
    return
  }
  func.func @transform_0(%arg0: i32, %arg1: i32) -> (i32, i32, i32) {
    %c0_i32 = arith.constant 0 : i32
    %c0_i32_0 = arith.constant 0 : i32
    %c0_i32_1 = arith.constant 0 : i32
    return %arg0, %c0_i32, %c0_i32_0 : i32, i32, i32
  }
  func.func @transform_1(%arg0: i32, %arg1: i32) -> (i32, i32) {
    %c0_i32 = arith.constant 0 : i32
    %c0_i32_0 = arith.constant 0 : i32
    %c0_i32_1 = arith.constant 0 : i32
    return %c0_i32, %c0_i32_0 : i32, i32
  }
  func.func @transform_2(%arg0: i32, %arg1: i32) -> (i32, i32) {
    %c0_i32 = arith.constant 0 : i32
    %c0_i32_0 = arith.constant 0 : i32
    %c0_i32_1 = arith.constant 0 : i32
    return %c0_i32, %c0_i32_0 : i32, i32
  }
  func.func @transform_3(%arg0: i32, %arg1: i32) -> (i32, i32) {
    %c0_i32 = arith.constant 0 : i32
    %c0_i32_0 = arith.constant 0 : i32
    %c0_i32_1 = arith.constant 0 : i32
    return %c0_i32, %c0_i32_0 : i32, i32
  }
  func.func @transform_4(%arg0: i32, %arg1: i32) -> (i32, i32) {
    %c0_i32 = arith.constant 0 : i32
    %c0_i32_0 = arith.constant 0 : i32
    %c0_i32_1 = arith.constant 0 : i32
    return %c0_i32, %c0_i32_0 : i32, i32
  }
  func.func @transform_5(%arg0: i32, %arg1: i32) -> (i32, i32) {
    %c0_i32 = arith.constant 0 : i32
    %c0_i32_0 = arith.constant 0 : i32
    %c0_i32_1 = arith.constant 0 : i32
    return %c0_i32, %c0_i32_0 : i32, i32
  }
  func.func @transform_6(%arg0: i32, %arg1: i32) -> (i32, i32) {
    %c0_i32 = arith.constant 0 : i32
    %c0_i32_0 = arith.constant 0 : i32
    %c0_i32_1 = arith.constant 0 : i32
    return %c0_i32, %c0_i32_0 : i32, i32
  }
  func.func @transform_7(%arg0: i32, %arg1: i32) -> (i32, i32) {
    %c0_i32 = arith.constant 0 : i32
    %c0_i32_0 = arith.constant 0 : i32
    %c0_i32_1 = arith.constant 0 : i32
    return %c0_i32, %c0_i32_0 : i32, i32
  }
  func.func @transform_8(%arg0: i32, %arg1: i32) -> (i32, i32, i32) {
    %c0_i32 = arith.constant 0 : i32
    %c0_i32_0 = arith.constant 0 : i32
    return %arg0, %c0_i32, %arg1 : i32, i32, i32
  }
}

module attributes {stable_mosaic.version = 11 : i64} {
  func.func @_resnet_kernel(%arg0: i32, %arg1: i32, %arg2: memref<1x16x166xbf16, #tpu.memory_space<vmem>>, %arg3: memref<16x48xbf16, #tpu.memory_space<vmem>>, %arg4: memref<16x1xf32, #tpu.memory_space<vmem>>, %arg5: memref<16x16xbf16, #tpu.memory_space<vmem>>, %arg6: memref<16x1xf32, #tpu.memory_space<vmem>>, %arg7: memref<16x16xbf16, #tpu.memory_space<vmem>>, %arg8: memref<16x1xf32, #tpu.memory_space<vmem>>, %arg9: memref<16x1xf32, #tpu.memory_space<vmem>>, %arg10: memref<1x16x160xbf16, #tpu.memory_space<vmem>>) attributes {dimension_semantics = [#tpu.dimension_semantics<parallel>, #tpu.dimension_semantics<parallel>], iteration_bounds = array<i64: 2, 1>, scalar_prefetch = 0 : i64, scratch_operands = 0 : i64, tpu.core_type = #tpu.core_type<tc>, window_params = [{transform_indices = @transform_0, window_bounds = array<i64: 1, 16, 166>}, {pipeline_mode = #tpu.pipeline_mode<synchronous>, transform_indices = @transform_1, window_bounds = array<i64: 16, 48>}, {pipeline_mode = #tpu.pipeline_mode<synchronous>, transform_indices = @transform_2, window_bounds = array<i64: 16, 1>}, {pipeline_mode = #tpu.pipeline_mode<synchronous>, transform_indices = @transform_3, window_bounds = array<i64: 16, 16>}, {pipeline_mode = #tpu.pipeline_mode<synchronous>, transform_indices = @transform_4, window_bounds = array<i64: 16, 1>}, {pipeline_mode = #tpu.pipeline_mode<synchronous>, transform_indices = @transform_5, window_bounds = array<i64: 16, 16>}, {pipeline_mode = #tpu.pipeline_mode<synchronous>, transform_indices = @transform_6, window_bounds = array<i64: 16, 1>}, {pipeline_mode = #tpu.pipeline_mode<synchronous>, transform_indices = @transform_7, window_bounds = array<i64: 16, 1>}, {transform_indices = @transform_8, window_bounds = array<i64: 1, 16, 160>}]} {
    %c0 = arith.constant 0 : index
    %c0_0 = arith.constant 0 : index
    %c0_1 = arith.constant 0 : index
    %0 = vector.load %arg2[%c0, %c0_0, %c0_1] : memref<1x16x166xbf16, #tpu.memory_space<vmem>>, vector<1x16x166xbf16>
    %1 = vector.shape_cast %0 : vector<1x16x166xbf16> to vector<16x166xbf16>
    %2 = vector.extract_strided_slice %1 {offsets = [0, 3], sizes = [16, 160], strides = [1, 1]} : vector<16x166xbf16> to vector<16x160xbf16>
    %c0_2 = arith.constant 0 : index
    %c0_3 = arith.constant 0 : index
    %3 = vector.load %arg7[%c0_2, %c0_3] : memref<16x16xbf16, #tpu.memory_space<vmem>>, vector<16x16xbf16>
    %cst = arith.constant dense<0.000000e+00> : vector<16x160xf32>
    %4 = tpu.matmul %3, %2, %cst {dimension_numbers = #tpu.dot_dimension_numbers<[1], [0], [0], [1], [0, 0, 1, 1], [], []>} : vector<16x16xbf16>, vector<16x160xbf16>, vector<16x160xf32> -> vector<16x160xf32>
    %c0_4 = arith.constant 0 : index
    %c0_5 = arith.constant 0 : index
    %5 = vector.load %arg8[%c0_4, %c0_5] : memref<16x1xf32, #tpu.memory_space<vmem>>, vector<16x1xf32>
    %6 = vector.broadcast %5 : vector<16x1xf32> to vector<16x160xf32>
    %7 = arith.addf %4, %6 : vector<16x160xf32>
    %8 = vector.extract_strided_slice %1 {offsets = [0, 0], sizes = [16, 160], strides = [1, 1]} : vector<16x166xbf16> to vector<16x160xbf16>
    %9 = arith.extf %8 : vector<16x160xbf16> to vector<16x160xf32>
    %cst_6 = arith.constant 0.000000e+00 : f32
    %10 = vector.broadcast %cst_6 : f32 to vector<16x160xf32>
    %11 = arith.cmpf oge, %9, %10 : vector<16x160xf32>
    %cst_7 = arith.constant 2.000000e-01 : f32
    %12 = vector.broadcast %cst_7 : f32 to vector<16x160xf32>
    %13 = arith.mulf %12, %9 : vector<16x160xf32>
    %14 = arith.select %11, %9, %13 : vector<16x160xi1>, vector<16x160xf32>
    %15 = vector.extract_strided_slice %1 {offsets = [0, 3], sizes = [16, 160], strides = [1, 1]} : vector<16x166xbf16> to vector<16x160xbf16>
    %16 = arith.extf %15 : vector<16x160xbf16> to vector<16x160xf32>
    %cst_8 = arith.constant 0.000000e+00 : f32
    %17 = vector.broadcast %cst_8 : f32 to vector<16x160xf32>
    %18 = arith.cmpf oge, %16, %17 : vector<16x160xf32>
    %cst_9 = arith.constant 2.000000e-01 : f32
    %19 = vector.broadcast %cst_9 : f32 to vector<16x160xf32>
    %20 = arith.mulf %19, %16 : vector<16x160xf32>
    %21 = arith.select %18, %16, %20 : vector<16x160xi1>, vector<16x160xf32>
    %22 = vector.extract_strided_slice %1 {offsets = [0, 6], sizes = [16, 160], strides = [1, 1]} : vector<16x166xbf16> to vector<16x160xbf16>
    %23 = arith.extf %22 : vector<16x160xbf16> to vector<16x160xf32>
    %cst_10 = arith.constant 0.000000e+00 : f32
    %24 = vector.broadcast %cst_10 : f32 to vector<16x160xf32>
    %25 = arith.cmpf oge, %23, %24 : vector<16x160xf32>
    %cst_11 = arith.constant 2.000000e-01 : f32
    %26 = vector.broadcast %cst_11 : f32 to vector<16x160xf32>
    %27 = arith.mulf %26, %23 : vector<16x160xf32>
    %28 = arith.select %25, %23, %27 : vector<16x160xi1>, vector<16x160xf32>
    %29 = tpu.concatenate %14, %21, %28 in 0 : vector<16x160xf32>, vector<16x160xf32>, vector<16x160xf32> -> vector<48x160xf32>
    %30 = arith.truncf %29 : vector<48x160xf32> to vector<48x160xbf16>
    %c0_12 = arith.constant 0 : index
    %c0_13 = arith.constant 0 : index
    %31 = vector.load %arg3[%c0_12, %c0_13] : memref<16x48xbf16, #tpu.memory_space<vmem>>, vector<16x48xbf16>
    %cst_14 = arith.constant dense<0.000000e+00> : vector<16x160xf32>
    %32 = tpu.matmul %31, %30, %cst_14 {dimension_numbers = #tpu.dot_dimension_numbers<[1], [0], [0], [1], [0, 0, 1, 1], [], []>} : vector<16x48xbf16>, vector<48x160xbf16>, vector<16x160xf32> -> vector<16x160xf32>
    %c0_15 = arith.constant 0 : index
    %c0_16 = arith.constant 0 : index
    %33 = vector.load %arg4[%c0_15, %c0_16] : memref<16x1xf32, #tpu.memory_space<vmem>>, vector<16x1xf32>
    %34 = vector.broadcast %33 : vector<16x1xf32> to vector<16x160xf32>
    %35 = arith.addf %32, %34 : vector<16x160xf32>
    %cst_17 = arith.constant 0.000000e+00 : f32
    %36 = vector.broadcast %cst_17 : f32 to vector<16x160xf32>
    %37 = arith.cmpf oge, %35, %36 : vector<16x160xf32>
    %cst_18 = arith.constant 2.000000e-01 : f32
    %38 = vector.broadcast %cst_18 : f32 to vector<16x160xf32>
    %39 = arith.mulf %38, %35 : vector<16x160xf32>
    %40 = arith.select %37, %35, %39 : vector<16x160xi1>, vector<16x160xf32>
    %c0_19 = arith.constant 0 : index
    %c0_20 = arith.constant 0 : index
    %41 = vector.load %arg5[%c0_19, %c0_20] : memref<16x16xbf16, #tpu.memory_space<vmem>>, vector<16x16xbf16>
    %42 = arith.truncf %40 : vector<16x160xf32> to vector<16x160xbf16>
    %cst_21 = arith.constant dense<0.000000e+00> : vector<16x160xf32>
    %43 = tpu.matmul %41, %42, %cst_21 {dimension_numbers = #tpu.dot_dimension_numbers<[1], [0], [0], [1], [0, 0, 1, 1], [], []>} : vector<16x16xbf16>, vector<16x160xbf16>, vector<16x160xf32> -> vector<16x160xf32>
    %c0_22 = arith.constant 0 : index
    %c0_23 = arith.constant 0 : index
    %44 = vector.load %arg6[%c0_22, %c0_23] : memref<16x1xf32, #tpu.memory_space<vmem>>, vector<16x1xf32>
    %45 = vector.broadcast %44 : vector<16x1xf32> to vector<16x160xf32>
    %46 = arith.addf %43, %45 : vector<16x160xf32>
    %c0_24 = arith.constant 0 : index
    %c0_25 = arith.constant 0 : index
    %47 = vector.load %arg9[%c0_24, %c0_25] : memref<16x1xf32, #tpu.memory_space<vmem>>, vector<16x1xf32>
    %48 = vector.broadcast %47 : vector<16x1xf32> to vector<16x160xf32>
    %49 = arith.mulf %46, %48 : vector<16x160xf32>
    %50 = arith.addf %7, %49 : vector<16x160xf32>
    %cst_26 = arith.constant 0.000000e+00 : f32
    %51 = vector.broadcast %cst_26 : f32 to vector<16x160xf32>
    %52 = arith.cmpf oge, %50, %51 : vector<16x160xf32>
    %cst_27 = arith.constant 2.000000e-01 : f32
    %53 = vector.broadcast %cst_27 : f32 to vector<16x160xf32>
    %54 = arith.mulf %53, %50 : vector<16x160xf32>
    %55 = arith.select %52, %50, %54 : vector<16x160xi1>, vector<16x160xf32>
    %56 = arith.truncf %55 : vector<16x160xf32> to vector<16x160xbf16>
    %c0_28 = arith.constant 0 : index
    %c0_29 = arith.constant 0 : index
    %c0_30 = arith.constant 0 : index
    %57 = vector.load %arg10[%c0_28, %c0_29, %c0_30] : memref<1x16x160xbf16, #tpu.memory_space<vmem>>, vector<1x16x160xbf16>
    %58 = vector.shape_cast %57 : vector<1x16x160xbf16> to vector<16x160xbf16>
    %59 = vector.shape_cast %56 : vector<16x160xbf16> to vector<1x16x160xbf16>
    tpu.vector_store %arg10[%c0_28, %c0_29, %c0_30], %59 {strides = array<i32>} : memref<1x16x160xbf16, #tpu.memory_space<vmem>>, vector<1x16x160xbf16>,
    return
  }
  func.func @transform_0(%arg0: i32, %arg1: i32) -> (i32, i32, i32) {
    %c0_i32 = arith.constant 0 : i32
    %c0_i32_0 = arith.constant 0 : i32
    %c0_i32_1 = arith.constant 0 : i32
    return %arg0, %c0_i32, %c0_i32_0 : i32, i32, i32
  }
  func.func @transform_1(%arg0: i32, %arg1: i32) -> (i32, i32) {
    %c0_i32 = arith.constant 0 : i32
    %c0_i32_0 = arith.constant 0 : i32
    %c0_i32_1 = arith.constant 0 : i32
    return %c0_i32, %c0_i32_0 : i32, i32
  }
  func.func @transform_2(%arg0: i32, %arg1: i32) -> (i32, i32) {
    %c0_i32 = arith.constant 0 : i32
    %c0_i32_0 = arith.constant 0 : i32
    %c0_i32_1 = arith.constant 0 : i32
    return %c0_i32, %c0_i32_0 : i32, i32
  }
  func.func @transform_3(%arg0: i32, %arg1: i32) -> (i32, i32) {
    %c0_i32 = arith.constant 0 : i32
    %c0_i32_0 = arith.constant 0 : i32
    %c0_i32_1 = arith.constant 0 : i32
    return %c0_i32, %c0_i32_0 : i32, i32
  }
  func.func @transform_4(%arg0: i32, %arg1: i32) -> (i32, i32) {
    %c0_i32 = arith.constant 0 : i32
    %c0_i32_0 = arith.constant 0 : i32
    %c0_i32_1 = arith.constant 0 : i32
    return %c0_i32, %c0_i32_0 : i32, i32
  }
  func.func @transform_5(%arg0: i32, %arg1: i32) -> (i32, i32) {
    %c0_i32 = arith.constant 0 : i32
    %c0_i32_0 = arith.constant 0 : i32
    %c0_i32_1 = arith.constant 0 : i32
    return %c0_i32, %c0_i32_0 : i32, i32
  }
  func.func @transform_6(%arg0: i32, %arg1: i32) -> (i32, i32) {
    %c0_i32 = arith.constant 0 : i32
    %c0_i32_0 = arith.constant 0 : i32
    %c0_i32_1 = arith.constant 0 : i32
    return %c0_i32, %c0_i32_0 : i32, i32
  }
  func.func @transform_7(%arg0: i32, %arg1: i32) -> (i32, i32) {
    %c0_i32 = arith.constant 0 : i32
    %c0_i32_0 = arith.constant 0 : i32
    %c0_i32_1 = arith.constant 0 : i32
    return %c0_i32, %c0_i32_0 : i32, i32
  }
  func.func @transform_8(%arg0: i32, %arg1: i32) -> (i32, i32, i32) {
    %c0_i32 = arith.constant 0 : i32
    %c0_i32_0 = arith.constant 0 : i32
    return %arg0, %c0_i32, %arg1 : i32, i32, i32
  }
}

module attributes {stable_mosaic.version = 11 : i64} {
  func.func @_conv_im2col_kernel(%arg0: i32, %arg1: i32, %arg2: memref<1x16x162xbf16, #tpu.memory_space<vmem>>, %arg3: memref<40x48xbf16, #tpu.memory_space<vmem>>, %arg4: memref<40x1xf32, #tpu.memory_space<vmem>>, %arg5: memref<1x40x160xbf16, #tpu.memory_space<vmem>>) attributes {dimension_semantics = [#tpu.dimension_semantics<parallel>, #tpu.dimension_semantics<parallel>], iteration_bounds = array<i64: 2, 1>, scalar_prefetch = 0 : i64, scratch_operands = 0 : i64, tpu.core_type = #tpu.core_type<tc>, window_params = [{transform_indices = @transform_0, window_bounds = array<i64: 1, 16, 162>}, {pipeline_mode = #tpu.pipeline_mode<synchronous>, transform_indices = @transform_1, window_bounds = array<i64: 40, 48>}, {pipeline_mode = #tpu.pipeline_mode<synchronous>, transform_indices = @transform_2, window_bounds = array<i64: 40, 1>}, {transform_indices = @transform_3, window_bounds = array<i64: 1, 40, 160>}]} {
    %c0 = arith.constant 0 : index
    %c0_0 = arith.constant 0 : index
    %c0_1 = arith.constant 0 : index
    %0 = vector.load %arg2[%c0, %c0_0, %c0_1] : memref<1x16x162xbf16, #tpu.memory_space<vmem>>, vector<1x16x162xbf16>
    %1 = vector.shape_cast %0 : vector<1x16x162xbf16> to vector<16x162xbf16>
    %2 = vector.extract_strided_slice %1 {offsets = [0, 0], sizes = [16, 160], strides = [1, 1]} : vector<16x162xbf16> to vector<16x160xbf16>
    %3 = arith.extf %2 : vector<16x160xbf16> to vector<16x160xf32>
    %4 = vector.extract_strided_slice %1 {offsets = [0, 1], sizes = [16, 160], strides = [1, 1]} : vector<16x162xbf16> to vector<16x160xbf16>
    %5 = arith.extf %4 : vector<16x160xbf16> to vector<16x160xf32>
    %6 = vector.extract_strided_slice %1 {offsets = [0, 2], sizes = [16, 160], strides = [1, 1]} : vector<16x162xbf16> to vector<16x160xbf16>
    %7 = arith.extf %6 : vector<16x160xbf16> to vector<16x160xf32>
    %8 = tpu.concatenate %3, %5, %7 in 0 : vector<16x160xf32>, vector<16x160xf32>, vector<16x160xf32> -> vector<48x160xf32>
    %9 = arith.truncf %8 : vector<48x160xf32> to vector<48x160xbf16>
    %c0_2 = arith.constant 0 : index
    %c0_3 = arith.constant 0 : index
    %10 = vector.load %arg3[%c0_2, %c0_3] : memref<40x48xbf16, #tpu.memory_space<vmem>>, vector<40x48xbf16>
    %cst = arith.constant dense<0.000000e+00> : vector<40x160xf32>
    %11 = tpu.matmul %10, %9, %cst {dimension_numbers = #tpu.dot_dimension_numbers<[1], [0], [0], [1], [0, 0, 1, 1], [], []>} : vector<40x48xbf16>, vector<48x160xbf16>, vector<40x160xf32> -> vector<40x160xf32>
    %c0_4 = arith.constant 0 : index
    %c0_5 = arith.constant 0 : index
    %12 = vector.load %arg4[%c0_4, %c0_5] : memref<40x1xf32, #tpu.memory_space<vmem>>, vector<40x1xf32>
    %13 = vector.broadcast %12 : vector<40x1xf32> to vector<40x160xf32>
    %14 = arith.addf %11, %13 : vector<40x160xf32>
    %15 = arith.truncf %14 : vector<40x160xf32> to vector<40x160xbf16>
    %c0_6 = arith.constant 0 : index
    %c0_7 = arith.constant 0 : index
    %c0_8 = arith.constant 0 : index
    %16 = vector.load %arg5[%c0_6, %c0_7, %c0_8] : memref<1x40x160xbf16, #tpu.memory_space<vmem>>, vector<1x40x160xbf16>
    %17 = vector.shape_cast %16 : vector<1x40x160xbf16> to vector<40x160xbf16>
    %18 = vector.shape_cast %15 : vector<40x160xbf16> to vector<1x40x160xbf16>
    tpu.vector_store %arg5[%c0_6, %c0_7, %c0_8], %18 {strides = array<i32>} : memref<1x40x160xbf16, #tpu.memory_space<vmem>>, vector<1x40x160xbf16>,
    return
  }
  func.func @transform_0(%arg0: i32, %arg1: i32) -> (i32, i32, i32) {
    %c0_i32 = arith.constant 0 : i32
    %c0_i32_0 = arith.constant 0 : i32
    %c0_i32_1 = arith.constant 0 : i32
    return %arg0, %c0_i32, %c0_i32_0 : i32, i32, i32
  }
  func.func @transform_1(%arg0: i32, %arg1: i32) -> (i32, i32) {
    %c0_i32 = arith.constant 0 : i32
    %c0_i32_0 = arith.constant 0 : i32
    %c0_i32_1 = arith.constant 0 : i32
    return %c0_i32, %c0_i32_0 : i32, i32
  }
  func.func @transform_2(%arg0: i32, %arg1: i32) -> (i32, i32) {
    %c0_i32 = arith.constant 0 : i32
    %c0_i32_0 = arith.constant 0 : i32
    %c0_i32_1 = arith.constant 0 : i32
    return %c0_i32, %c0_i32_0 : i32, i32
  }
  func.func @transform_3(%arg0: i32, %arg1: i32) -> (i32, i32, i32) {
    %c0_i32 = arith.constant 0 : i32
    %c0_i32_0 = arith.constant 0 : i32
    return %arg0, %c0_i32, %arg1 : i32, i32, i32
  }
}

module attributes {stable_mosaic.version = 11 : i64} {
  func.func @_resnet_kernel(%arg0: i32, %arg1: i32, %arg2: memref<1x8x802xbf16, #tpu.memory_space<vmem>>, %arg3: memref<8x24xbf16, #tpu.memory_space<vmem>>, %arg4: memref<8x1xf32, #tpu.memory_space<vmem>>, %arg5: memref<8x8xbf16, #tpu.memory_space<vmem>>, %arg6: memref<8x1xf32, #tpu.memory_space<vmem>>, %arg7: memref<8x8xbf16, #tpu.memory_space<vmem>>, %arg8: memref<8x1xf32, #tpu.memory_space<vmem>>, %arg9: memref<8x1xf32, #tpu.memory_space<vmem>>, %arg10: memref<1x8x800xbf16, #tpu.memory_space<vmem>>) attributes {dimension_semantics = [#tpu.dimension_semantics<parallel>, #tpu.dimension_semantics<parallel>], iteration_bounds = array<i64: 2, 1>, scalar_prefetch = 0 : i64, scratch_operands = 0 : i64, tpu.core_type = #tpu.core_type<tc>, window_params = [{transform_indices = @transform_0, window_bounds = array<i64: 1, 8, 802>}, {pipeline_mode = #tpu.pipeline_mode<synchronous>, transform_indices = @transform_1, window_bounds = array<i64: 8, 24>}, {pipeline_mode = #tpu.pipeline_mode<synchronous>, transform_indices = @transform_2, window_bounds = array<i64: 8, 1>}, {pipeline_mode = #tpu.pipeline_mode<synchronous>, transform_indices = @transform_3, window_bounds = array<i64: 8, 8>}, {pipeline_mode = #tpu.pipeline_mode<synchronous>, transform_indices = @transform_4, window_bounds = array<i64: 8, 1>}, {pipeline_mode = #tpu.pipeline_mode<synchronous>, transform_indices = @transform_5, window_bounds = array<i64: 8, 8>}, {pipeline_mode = #tpu.pipeline_mode<synchronous>, transform_indices = @transform_6, window_bounds = array<i64: 8, 1>}, {pipeline_mode = #tpu.pipeline_mode<synchronous>, transform_indices = @transform_7, window_bounds = array<i64: 8, 1>}, {transform_indices = @transform_8, window_bounds = array<i64: 1, 8, 800>}]} {
    %c0 = arith.constant 0 : index
    %c0_0 = arith.constant 0 : index
    %c0_1 = arith.constant 0 : index
    %0 = vector.load %arg2[%c0, %c0_0, %c0_1] : memref<1x8x802xbf16, #tpu.memory_space<vmem>>, vector<1x8x802xbf16>
    %1 = vector.shape_cast %0 : vector<1x8x802xbf16> to vector<8x802xbf16>
    %2 = vector.extract_strided_slice %1 {offsets = [0, 1], sizes = [8, 800], strides = [1, 1]} : vector<8x802xbf16> to vector<8x800xbf16>
    %c0_2 = arith.constant 0 : index
    %c0_3 = arith.constant 0 : index
    %3 = vector.load %arg7[%c0_2, %c0_3] : memref<8x8xbf16, #tpu.memory_space<vmem>>, vector<8x8xbf16>
    %cst = arith.constant dense<0.000000e+00> : vector<8x800xf32>
    %4 = tpu.matmul %3, %2, %cst {dimension_numbers = #tpu.dot_dimension_numbers<[1], [0], [0], [1], [0, 0, 1, 1], [], []>} : vector<8x8xbf16>, vector<8x800xbf16>, vector<8x800xf32> -> vector<8x800xf32>
    %c0_4 = arith.constant 0 : index
    %c0_5 = arith.constant 0 : index
    %5 = vector.load %arg8[%c0_4, %c0_5] : memref<8x1xf32, #tpu.memory_space<vmem>>, vector<8x1xf32>
    %6 = vector.broadcast %5 : vector<8x1xf32> to vector<8x800xf32>
    %7 = arith.addf %4, %6 : vector<8x800xf32>
    %8 = vector.extract_strided_slice %1 {offsets = [0, 0], sizes = [8, 800], strides = [1, 1]} : vector<8x802xbf16> to vector<8x800xbf16>
    %9 = arith.extf %8 : vector<8x800xbf16> to vector<8x800xf32>
    %cst_6 = arith.constant 0.000000e+00 : f32
    %10 = vector.broadcast %cst_6 : f32 to vector<8x800xf32>
    %11 = arith.cmpf oge, %9, %10 : vector<8x800xf32>
    %cst_7 = arith.constant 2.000000e-01 : f32
    %12 = vector.broadcast %cst_7 : f32 to vector<8x800xf32>
    %13 = arith.mulf %12, %9 : vector<8x800xf32>
    %14 = arith.select %11, %9, %13 : vector<8x800xi1>, vector<8x800xf32>
    %15 = vector.extract_strided_slice %1 {offsets = [0, 1], sizes = [8, 800], strides = [1, 1]} : vector<8x802xbf16> to vector<8x800xbf16>
    %16 = arith.extf %15 : vector<8x800xbf16> to vector<8x800xf32>
    %cst_8 = arith.constant 0.000000e+00 : f32
    %17 = vector.broadcast %cst_8 : f32 to vector<8x800xf32>
    %18 = arith.cmpf oge, %16, %17 : vector<8x800xf32>
    %cst_9 = arith.constant 2.000000e-01 : f32
    %19 = vector.broadcast %cst_9 : f32 to vector<8x800xf32>
    %20 = arith.mulf %19, %16 : vector<8x800xf32>
    %21 = arith.select %18, %16, %20 : vector<8x800xi1>, vector<8x800xf32>
    %22 = vector.extract_strided_slice %1 {offsets = [0, 2], sizes = [8, 800], strides = [1, 1]} : vector<8x802xbf16> to vector<8x800xbf16>
    %23 = arith.extf %22 : vector<8x800xbf16> to vector<8x800xf32>
    %cst_10 = arith.constant 0.000000e+00 : f32
    %24 = vector.broadcast %cst_10 : f32 to vector<8x800xf32>
    %25 = arith.cmpf oge, %23, %24 : vector<8x800xf32>
    %cst_11 = arith.constant 2.000000e-01 : f32
    %26 = vector.broadcast %cst_11 : f32 to vector<8x800xf32>
    %27 = arith.mulf %26, %23 : vector<8x800xf32>
    %28 = arith.select %25, %23, %27 : vector<8x800xi1>, vector<8x800xf32>
    %29 = tpu.concatenate %14, %21, %28 in 0 : vector<8x800xf32>, vector<8x800xf32>, vector<8x800xf32> -> vector<24x800xf32>
    %30 = arith.truncf %29 : vector<24x800xf32> to vector<24x800xbf16>
    %c0_12 = arith.constant 0 : index
    %c0_13 = arith.constant 0 : index
    %31 = vector.load %arg3[%c0_12, %c0_13] : memref<8x24xbf16, #tpu.memory_space<vmem>>, vector<8x24xbf16>
    %cst_14 = arith.constant dense<0.000000e+00> : vector<8x800xf32>
    %32 = tpu.matmul %31, %30, %cst_14 {dimension_numbers = #tpu.dot_dimension_numbers<[1], [0], [0], [1], [0, 0, 1, 1], [], []>} : vector<8x24xbf16>, vector<24x800xbf16>, vector<8x800xf32> -> vector<8x800xf32>
    %c0_15 = arith.constant 0 : index
    %c0_16 = arith.constant 0 : index
    %33 = vector.load %arg4[%c0_15, %c0_16] : memref<8x1xf32, #tpu.memory_space<vmem>>, vector<8x1xf32>
    %34 = vector.broadcast %33 : vector<8x1xf32> to vector<8x800xf32>
    %35 = arith.addf %32, %34 : vector<8x800xf32>
    %cst_17 = arith.constant 0.000000e+00 : f32
    %36 = vector.broadcast %cst_17 : f32 to vector<8x800xf32>
    %37 = arith.cmpf oge, %35, %36 : vector<8x800xf32>
    %cst_18 = arith.constant 2.000000e-01 : f32
    %38 = vector.broadcast %cst_18 : f32 to vector<8x800xf32>
    %39 = arith.mulf %38, %35 : vector<8x800xf32>
    %40 = arith.select %37, %35, %39 : vector<8x800xi1>, vector<8x800xf32>
    %c0_19 = arith.constant 0 : index
    %c0_20 = arith.constant 0 : index
    %41 = vector.load %arg5[%c0_19, %c0_20] : memref<8x8xbf16, #tpu.memory_space<vmem>>, vector<8x8xbf16>
    %42 = arith.truncf %40 : vector<8x800xf32> to vector<8x800xbf16>
    %cst_21 = arith.constant dense<0.000000e+00> : vector<8x800xf32>
    %43 = tpu.matmul %41, %42, %cst_21 {dimension_numbers = #tpu.dot_dimension_numbers<[1], [0], [0], [1], [0, 0, 1, 1], [], []>} : vector<8x8xbf16>, vector<8x800xbf16>, vector<8x800xf32> -> vector<8x800xf32>
    %c0_22 = arith.constant 0 : index
    %c0_23 = arith.constant 0 : index
    %44 = vector.load %arg6[%c0_22, %c0_23] : memref<8x1xf32, #tpu.memory_space<vmem>>, vector<8x1xf32>
    %45 = vector.broadcast %44 : vector<8x1xf32> to vector<8x800xf32>
    %46 = arith.addf %43, %45 : vector<8x800xf32>
    %c0_24 = arith.constant 0 : index
    %c0_25 = arith.constant 0 : index
    %47 = vector.load %arg9[%c0_24, %c0_25] : memref<8x1xf32, #tpu.memory_space<vmem>>, vector<8x1xf32>
    %48 = vector.broadcast %47 : vector<8x1xf32> to vector<8x800xf32>
    %49 = arith.mulf %46, %48 : vector<8x800xf32>
    %50 = arith.addf %7, %49 : vector<8x800xf32>
    %51 = arith.truncf %50 : vector<8x800xf32> to vector<8x800xbf16>
    %c0_26 = arith.constant 0 : index
    %c0_27 = arith.constant 0 : index
    %c0_28 = arith.constant 0 : index
    %52 = vector.load %arg10[%c0_26, %c0_27, %c0_28] : memref<1x8x800xbf16, #tpu.memory_space<vmem>>, vector<1x8x800xbf16>
    %53 = vector.shape_cast %52 : vector<1x8x800xbf16> to vector<8x800xbf16>
    %54 = vector.shape_cast %51 : vector<8x800xbf16> to vector<1x8x800xbf16>
    tpu.vector_store %arg10[%c0_26, %c0_27, %c0_28], %54 {strides = array<i32>} : memref<1x8x800xbf16, #tpu.memory_space<vmem>>, vector<1x8x800xbf16>,
    return
  }
  func.func @transform_0(%arg0: i32, %arg1: i32) -> (i32, i32, i32) {
    %c0_i32 = arith.constant 0 : i32
    %c0_i32_0 = arith.constant 0 : i32
    %c0_i32_1 = arith.constant 0 : i32
    return %arg0, %c0_i32, %c0_i32_0 : i32, i32, i32
  }
  func.func @transform_1(%arg0: i32, %arg1: i32) -> (i32, i32) {
    %c0_i32 = arith.constant 0 : i32
    %c0_i32_0 = arith.constant 0 : i32
    %c0_i32_1 = arith.constant 0 : i32
    return %c0_i32, %c0_i32_0 : i32, i32
  }
  func.func @transform_2(%arg0: i32, %arg1: i32) -> (i32, i32) {
    %c0_i32 = arith.constant 0 : i32
    %c0_i32_0 = arith.constant 0 : i32
    %c0_i32_1 = arith.constant 0 : i32
    return %c0_i32, %c0_i32_0 : i32, i32
  }
  func.func @transform_3(%arg0: i32, %arg1: i32) -> (i32, i32) {
    %c0_i32 = arith.constant 0 : i32
    %c0_i32_0 = arith.constant 0 : i32
    %c0_i32_1 = arith.constant 0 : i32
    return %c0_i32, %c0_i32_0 : i32, i32
  }
  func.func @transform_4(%arg0: i32, %arg1: i32) -> (i32, i32) {
    %c0_i32 = arith.constant 0 : i32
    %c0_i32_0 = arith.constant 0 : i32
    %c0_i32_1 = arith.constant 0 : i32
    return %c0_i32, %c0_i32_0 : i32, i32
  }
  func.func @transform_5(%arg0: i32, %arg1: i32) -> (i32, i32) {
    %c0_i32 = arith.constant 0 : i32
    %c0_i32_0 = arith.constant 0 : i32
    %c0_i32_1 = arith.constant 0 : i32
    return %c0_i32, %c0_i32_0 : i32, i32
  }
  func.func @transform_6(%arg0: i32, %arg1: i32) -> (i32, i32) {
    %c0_i32 = arith.constant 0 : i32
    %c0_i32_0 = arith.constant 0 : i32
    %c0_i32_1 = arith.constant 0 : i32
    return %c0_i32, %c0_i32_0 : i32, i32
  }
  func.func @transform_7(%arg0: i32, %arg1: i32) -> (i32, i32) {
    %c0_i32 = arith.constant 0 : i32
    %c0_i32_0 = arith.constant 0 : i32
    %c0_i32_1 = arith.constant 0 : i32
    return %c0_i32, %c0_i32_0 : i32, i32
  }
  func.func @transform_8(%arg0: i32, %arg1: i32) -> (i32, i32, i32) {
    %c0_i32 = arith.constant 0 : i32
    %c0_i32_0 = arith.constant 0 : i32
    return %arg0, %c0_i32, %arg1 : i32, i32, i32
  }
}

module attributes {stable_mosaic.version = 11 : i64} {
  func.func @_resnet_kernel(%arg0: i32, %arg1: i32, %arg2: memref<1x8x806xbf16, #tpu.memory_space<vmem>>, %arg3: memref<8x24xbf16, #tpu.memory_space<vmem>>, %arg4: memref<8x1xf32, #tpu.memory_space<vmem>>, %arg5: memref<8x8xbf16, #tpu.memory_space<vmem>>, %arg6: memref<8x1xf32, #tpu.memory_space<vmem>>, %arg7: memref<8x8xbf16, #tpu.memory_space<vmem>>, %arg8: memref<8x1xf32, #tpu.memory_space<vmem>>, %arg9: memref<8x1xf32, #tpu.memory_space<vmem>>, %arg10: memref<1x8x800xbf16, #tpu.memory_space<vmem>>) attributes {dimension_semantics = [#tpu.dimension_semantics<parallel>, #tpu.dimension_semantics<parallel>], iteration_bounds = array<i64: 2, 1>, scalar_prefetch = 0 : i64, scratch_operands = 0 : i64, tpu.core_type = #tpu.core_type<tc>, window_params = [{transform_indices = @transform_0, window_bounds = array<i64: 1, 8, 806>}, {pipeline_mode = #tpu.pipeline_mode<synchronous>, transform_indices = @transform_1, window_bounds = array<i64: 8, 24>}, {pipeline_mode = #tpu.pipeline_mode<synchronous>, transform_indices = @transform_2, window_bounds = array<i64: 8, 1>}, {pipeline_mode = #tpu.pipeline_mode<synchronous>, transform_indices = @transform_3, window_bounds = array<i64: 8, 8>}, {pipeline_mode = #tpu.pipeline_mode<synchronous>, transform_indices = @transform_4, window_bounds = array<i64: 8, 1>}, {pipeline_mode = #tpu.pipeline_mode<synchronous>, transform_indices = @transform_5, window_bounds = array<i64: 8, 8>}, {pipeline_mode = #tpu.pipeline_mode<synchronous>, transform_indices = @transform_6, window_bounds = array<i64: 8, 1>}, {pipeline_mode = #tpu.pipeline_mode<synchronous>, transform_indices = @transform_7, window_bounds = array<i64: 8, 1>}, {transform_indices = @transform_8, window_bounds = array<i64: 1, 8, 800>}]} {
    %c0 = arith.constant 0 : index
    %c0_0 = arith.constant 0 : index
    %c0_1 = arith.constant 0 : index
    %0 = vector.load %arg2[%c0, %c0_0, %c0_1] : memref<1x8x806xbf16, #tpu.memory_space<vmem>>, vector<1x8x806xbf16>
    %1 = vector.shape_cast %0 : vector<1x8x806xbf16> to vector<8x806xbf16>
    %2 = vector.extract_strided_slice %1 {offsets = [0, 3], sizes = [8, 800], strides = [1, 1]} : vector<8x806xbf16> to vector<8x800xbf16>
    %c0_2 = arith.constant 0 : index
    %c0_3 = arith.constant 0 : index
    %3 = vector.load %arg7[%c0_2, %c0_3] : memref<8x8xbf16, #tpu.memory_space<vmem>>, vector<8x8xbf16>
    %cst = arith.constant dense<0.000000e+00> : vector<8x800xf32>
    %4 = tpu.matmul %3, %2, %cst {dimension_numbers = #tpu.dot_dimension_numbers<[1], [0], [0], [1], [0, 0, 1, 1], [], []>} : vector<8x8xbf16>, vector<8x800xbf16>, vector<8x800xf32> -> vector<8x800xf32>
    %c0_4 = arith.constant 0 : index
    %c0_5 = arith.constant 0 : index
    %5 = vector.load %arg8[%c0_4, %c0_5] : memref<8x1xf32, #tpu.memory_space<vmem>>, vector<8x1xf32>
    %6 = vector.broadcast %5 : vector<8x1xf32> to vector<8x800xf32>
    %7 = arith.addf %4, %6 : vector<8x800xf32>
    %8 = vector.extract_strided_slice %1 {offsets = [0, 0], sizes = [8, 800], strides = [1, 1]} : vector<8x806xbf16> to vector<8x800xbf16>
    %9 = arith.extf %8 : vector<8x800xbf16> to vector<8x800xf32>
    %cst_6 = arith.constant 0.000000e+00 : f32
    %10 = vector.broadcast %cst_6 : f32 to vector<8x800xf32>
    %11 = arith.cmpf oge, %9, %10 : vector<8x800xf32>
    %cst_7 = arith.constant 2.000000e-01 : f32
    %12 = vector.broadcast %cst_7 : f32 to vector<8x800xf32>
    %13 = arith.mulf %12, %9 : vector<8x800xf32>
    %14 = arith.select %11, %9, %13 : vector<8x800xi1>, vector<8x800xf32>
    %15 = vector.extract_strided_slice %1 {offsets = [0, 3], sizes = [8, 800], strides = [1, 1]} : vector<8x806xbf16> to vector<8x800xbf16>
    %16 = arith.extf %15 : vector<8x800xbf16> to vector<8x800xf32>
    %cst_8 = arith.constant 0.000000e+00 : f32
    %17 = vector.broadcast %cst_8 : f32 to vector<8x800xf32>
    %18 = arith.cmpf oge, %16, %17 : vector<8x800xf32>
    %cst_9 = arith.constant 2.000000e-01 : f32
    %19 = vector.broadcast %cst_9 : f32 to vector<8x800xf32>
    %20 = arith.mulf %19, %16 : vector<8x800xf32>
    %21 = arith.select %18, %16, %20 : vector<8x800xi1>, vector<8x800xf32>
    %22 = vector.extract_strided_slice %1 {offsets = [0, 6], sizes = [8, 800], strides = [1, 1]} : vector<8x806xbf16> to vector<8x800xbf16>
    %23 = arith.extf %22 : vector<8x800xbf16> to vector<8x800xf32>
    %cst_10 = arith.constant 0.000000e+00 : f32
    %24 = vector.broadcast %cst_10 : f32 to vector<8x800xf32>
    %25 = arith.cmpf oge, %23, %24 : vector<8x800xf32>
    %cst_11 = arith.constant 2.000000e-01 : f32
    %26 = vector.broadcast %cst_11 : f32 to vector<8x800xf32>
    %27 = arith.mulf %26, %23 : vector<8x800xf32>
    %28 = arith.select %25, %23, %27 : vector<8x800xi1>, vector<8x800xf32>
    %29 = tpu.concatenate %14, %21, %28 in 0 : vector<8x800xf32>, vector<8x800xf32>, vector<8x800xf32> -> vector<24x800xf32>
    %30 = arith.truncf %29 : vector<24x800xf32> to vector<24x800xbf16>
    %c0_12 = arith.constant 0 : index
    %c0_13 = arith.constant 0 : index
    %31 = vector.load %arg3[%c0_12, %c0_13] : memref<8x24xbf16, #tpu.memory_space<vmem>>, vector<8x24xbf16>
    %cst_14 = arith.constant dense<0.000000e+00> : vector<8x800xf32>
    %32 = tpu.matmul %31, %30, %cst_14 {dimension_numbers = #tpu.dot_dimension_numbers<[1], [0], [0], [1], [0, 0, 1, 1], [], []>} : vector<8x24xbf16>, vector<24x800xbf16>, vector<8x800xf32> -> vector<8x800xf32>
    %c0_15 = arith.constant 0 : index
    %c0_16 = arith.constant 0 : index
    %33 = vector.load %arg4[%c0_15, %c0_16] : memref<8x1xf32, #tpu.memory_space<vmem>>, vector<8x1xf32>
    %34 = vector.broadcast %33 : vector<8x1xf32> to vector<8x800xf32>
    %35 = arith.addf %32, %34 : vector<8x800xf32>
    %cst_17 = arith.constant 0.000000e+00 : f32
    %36 = vector.broadcast %cst_17 : f32 to vector<8x800xf32>
    %37 = arith.cmpf oge, %35, %36 : vector<8x800xf32>
    %cst_18 = arith.constant 2.000000e-01 : f32
    %38 = vector.broadcast %cst_18 : f32 to vector<8x800xf32>
    %39 = arith.mulf %38, %35 : vector<8x800xf32>
    %40 = arith.select %37, %35, %39 : vector<8x800xi1>, vector<8x800xf32>
    %c0_19 = arith.constant 0 : index
    %c0_20 = arith.constant 0 : index
    %41 = vector.load %arg5[%c0_19, %c0_20] : memref<8x8xbf16, #tpu.memory_space<vmem>>, vector<8x8xbf16>
    %42 = arith.truncf %40 : vector<8x800xf32> to vector<8x800xbf16>
    %cst_21 = arith.constant dense<0.000000e+00> : vector<8x800xf32>
    %43 = tpu.matmul %41, %42, %cst_21 {dimension_numbers = #tpu.dot_dimension_numbers<[1], [0], [0], [1], [0, 0, 1, 1], [], []>} : vector<8x8xbf16>, vector<8x800xbf16>, vector<8x800xf32> -> vector<8x800xf32>
    %c0_22 = arith.constant 0 : index
    %c0_23 = arith.constant 0 : index
    %44 = vector.load %arg6[%c0_22, %c0_23] : memref<8x1xf32, #tpu.memory_space<vmem>>, vector<8x1xf32>
    %45 = vector.broadcast %44 : vector<8x1xf32> to vector<8x800xf32>
    %46 = arith.addf %43, %45 : vector<8x800xf32>
    %c0_24 = arith.constant 0 : index
    %c0_25 = arith.constant 0 : index
    %47 = vector.load %arg9[%c0_24, %c0_25] : memref<8x1xf32, #tpu.memory_space<vmem>>, vector<8x1xf32>
    %48 = vector.broadcast %47 : vector<8x1xf32> to vector<8x800xf32>
    %49 = arith.mulf %46, %48 : vector<8x800xf32>
    %50 = arith.addf %7, %49 : vector<8x800xf32>
    %cst_26 = arith.constant 0.000000e+00 : f32
    %51 = vector.broadcast %cst_26 : f32 to vector<8x800xf32>
    %52 = arith.cmpf oge, %50, %51 : vector<8x800xf32>
    %cst_27 = arith.constant 2.000000e-01 : f32
    %53 = vector.broadcast %cst_27 : f32 to vector<8x800xf32>
    %54 = arith.mulf %53, %50 : vector<8x800xf32>
    %55 = arith.select %52, %50, %54 : vector<8x800xi1>, vector<8x800xf32>
    %56 = arith.truncf %55 : vector<8x800xf32> to vector<8x800xbf16>
    %c0_28 = arith.constant 0 : index
    %c0_29 = arith.constant 0 : index
    %c0_30 = arith.constant 0 : index
    %57 = vector.load %arg10[%c0_28, %c0_29, %c0_30] : memref<1x8x800xbf16, #tpu.memory_space<vmem>>, vector<1x8x800xbf16>
    %58 = vector.shape_cast %57 : vector<1x8x800xbf16> to vector<8x800xbf16>
    %59 = vector.shape_cast %56 : vector<8x800xbf16> to vector<1x8x800xbf16>
    tpu.vector_store %arg10[%c0_28, %c0_29, %c0_30], %59 {strides = array<i32>} : memref<1x8x800xbf16, #tpu.memory_space<vmem>>, vector<1x8x800xbf16>,
    return
  }
  func.func @transform_0(%arg0: i32, %arg1: i32) -> (i32, i32, i32) {
    %c0_i32 = arith.constant 0 : i32
    %c0_i32_0 = arith.constant 0 : i32
    %c0_i32_1 = arith.constant 0 : i32
    return %arg0, %c0_i32, %c0_i32_0 : i32, i32, i32
  }
  func.func @transform_1(%arg0: i32, %arg1: i32) -> (i32, i32) {
    %c0_i32 = arith.constant 0 : i32
    %c0_i32_0 = arith.constant 0 : i32
    %c0_i32_1 = arith.constant 0 : i32
    return %c0_i32, %c0_i32_0 : i32, i32
  }
  func.func @transform_2(%arg0: i32, %arg1: i32) -> (i32, i32) {
    %c0_i32 = arith.constant 0 : i32
    %c0_i32_0 = arith.constant 0 : i32
    %c0_i32_1 = arith.constant 0 : i32
    return %c0_i32, %c0_i32_0 : i32, i32
  }
  func.func @transform_3(%arg0: i32, %arg1: i32) -> (i32, i32) {
    %c0_i32 = arith.constant 0 : i32
    %c0_i32_0 = arith.constant 0 : i32
    %c0_i32_1 = arith.constant 0 : i32
    return %c0_i32, %c0_i32_0 : i32, i32
  }
  func.func @transform_4(%arg0: i32, %arg1: i32) -> (i32, i32) {
    %c0_i32 = arith.constant 0 : i32
    %c0_i32_0 = arith.constant 0 : i32
    %c0_i32_1 = arith.constant 0 : i32
    return %c0_i32, %c0_i32_0 : i32, i32
  }
  func.func @transform_5(%arg0: i32, %arg1: i32) -> (i32, i32) {
    %c0_i32 = arith.constant 0 : i32
    %c0_i32_0 = arith.constant 0 : i32
    %c0_i32_1 = arith.constant 0 : i32
    return %c0_i32, %c0_i32_0 : i32, i32
  }
  func.func @transform_6(%arg0: i32, %arg1: i32) -> (i32, i32) {
    %c0_i32 = arith.constant 0 : i32
    %c0_i32_0 = arith.constant 0 : i32
    %c0_i32_1 = arith.constant 0 : i32
    return %c0_i32, %c0_i32_0 : i32, i32
  }
  func.func @transform_7(%arg0: i32, %arg1: i32) -> (i32, i32) {
    %c0_i32 = arith.constant 0 : i32
    %c0_i32_0 = arith.constant 0 : i32
    %c0_i32_1 = arith.constant 0 : i32
    return %c0_i32, %c0_i32_0 : i32, i32
  }
  func.func @transform_8(%arg0: i32, %arg1: i32) -> (i32, i32, i32) {
    %c0_i32 = arith.constant 0 : i32
    %c0_i32_0 = arith.constant 0 : i32
    return %arg0, %c0_i32, %arg1 : i32, i32, i32
  }
}

module attributes {stable_mosaic.version = 11 : i64} {
  func.func @_conv_im2col_kernel(%arg0: i32, %arg1: i32, %arg2: memref<1x8x802xbf16, #tpu.memory_space<vmem>>, %arg3: memref<16x24xbf16, #tpu.memory_space<vmem>>, %arg4: memref<16x1xf32, #tpu.memory_space<vmem>>, %arg5: memref<1x16x800xbf16, #tpu.memory_space<vmem>>) attributes {dimension_semantics = [#tpu.dimension_semantics<parallel>, #tpu.dimension_semantics<parallel>], iteration_bounds = array<i64: 2, 1>, scalar_prefetch = 0 : i64, scratch_operands = 0 : i64, tpu.core_type = #tpu.core_type<tc>, window_params = [{transform_indices = @transform_0, window_bounds = array<i64: 1, 8, 802>}, {pipeline_mode = #tpu.pipeline_mode<synchronous>, transform_indices = @transform_1, window_bounds = array<i64: 16, 24>}, {pipeline_mode = #tpu.pipeline_mode<synchronous>, transform_indices = @transform_2, window_bounds = array<i64: 16, 1>}, {transform_indices = @transform_3, window_bounds = array<i64: 1, 16, 800>}]} {
    %c0 = arith.constant 0 : index
    %c0_0 = arith.constant 0 : index
    %c0_1 = arith.constant 0 : index
    %0 = vector.load %arg2[%c0, %c0_0, %c0_1] : memref<1x8x802xbf16, #tpu.memory_space<vmem>>, vector<1x8x802xbf16>
    %1 = vector.shape_cast %0 : vector<1x8x802xbf16> to vector<8x802xbf16>
    %2 = vector.extract_strided_slice %1 {offsets = [0, 0], sizes = [8, 800], strides = [1, 1]} : vector<8x802xbf16> to vector<8x800xbf16>
    %3 = arith.extf %2 : vector<8x800xbf16> to vector<8x800xf32>
    %4 = vector.extract_strided_slice %1 {offsets = [0, 1], sizes = [8, 800], strides = [1, 1]} : vector<8x802xbf16> to vector<8x800xbf16>
    %5 = arith.extf %4 : vector<8x800xbf16> to vector<8x800xf32>
    %6 = vector.extract_strided_slice %1 {offsets = [0, 2], sizes = [8, 800], strides = [1, 1]} : vector<8x802xbf16> to vector<8x800xbf16>
    %7 = arith.extf %6 : vector<8x800xbf16> to vector<8x800xf32>
    %8 = tpu.concatenate %3, %5, %7 in 0 : vector<8x800xf32>, vector<8x800xf32>, vector<8x800xf32> -> vector<24x800xf32>
    %9 = arith.truncf %8 : vector<24x800xf32> to vector<24x800xbf16>
    %c0_2 = arith.constant 0 : index
    %c0_3 = arith.constant 0 : index
    %10 = vector.load %arg3[%c0_2, %c0_3] : memref<16x24xbf16, #tpu.memory_space<vmem>>, vector<16x24xbf16>
    %cst = arith.constant dense<0.000000e+00> : vector<16x800xf32>
    %11 = tpu.matmul %10, %9, %cst {dimension_numbers = #tpu.dot_dimension_numbers<[1], [0], [0], [1], [0, 0, 1, 1], [], []>} : vector<16x24xbf16>, vector<24x800xbf16>, vector<16x800xf32> -> vector<16x800xf32>
    %c0_4 = arith.constant 0 : index
    %c0_5 = arith.constant 0 : index
    %12 = vector.load %arg4[%c0_4, %c0_5] : memref<16x1xf32, #tpu.memory_space<vmem>>, vector<16x1xf32>
    %13 = vector.broadcast %12 : vector<16x1xf32> to vector<16x800xf32>
    %14 = arith.addf %11, %13 : vector<16x800xf32>
    %15 = arith.truncf %14 : vector<16x800xf32> to vector<16x800xbf16>
    %c0_6 = arith.constant 0 : index
    %c0_7 = arith.constant 0 : index
    %c0_8 = arith.constant 0 : index
    %16 = vector.load %arg5[%c0_6, %c0_7, %c0_8] : memref<1x16x800xbf16, #tpu.memory_space<vmem>>, vector<1x16x800xbf16>
    %17 = vector.shape_cast %16 : vector<1x16x800xbf16> to vector<16x800xbf16>
    %18 = vector.shape_cast %15 : vector<16x800xbf16> to vector<1x16x800xbf16>
    tpu.vector_store %arg5[%c0_6, %c0_7, %c0_8], %18 {strides = array<i32>} : memref<1x16x800xbf16, #tpu.memory_space<vmem>>, vector<1x16x800xbf16>,
    return
  }
  func.func @transform_0(%arg0: i32, %arg1: i32) -> (i32, i32, i32) {
    %c0_i32 = arith.constant 0 : i32
    %c0_i32_0 = arith.constant 0 : i32
    %c0_i32_1 = arith.constant 0 : i32
    return %arg0, %c0_i32, %c0_i32_0 : i32, i32, i32
  }
  func.func @transform_1(%arg0: i32, %arg1: i32) -> (i32, i32) {
    %c0_i32 = arith.constant 0 : i32
    %c0_i32_0 = arith.constant 0 : i32
    %c0_i32_1 = arith.constant 0 : i32
    return %c0_i32, %c0_i32_0 : i32, i32
  }
  func.func @transform_2(%arg0: i32, %arg1: i32) -> (i32, i32) {
    %c0_i32 = arith.constant 0 : i32
    %c0_i32_0 = arith.constant 0 : i32
    %c0_i32_1 = arith.constant 0 : i32
    return %c0_i32, %c0_i32_0 : i32, i32
  }
  func.func @transform_3(%arg0: i32, %arg1: i32) -> (i32, i32, i32) {
    %c0_i32 = arith.constant 0 : i32
    %c0_i32_0 = arith.constant 0 : i32
    return %arg0, %c0_i32, %arg1 : i32, i32, i32
  }
}

module attributes {stable_mosaic.version = 11 : i64} {
  func.func @_resnet_kernel(%arg0: i32, %arg1: i32, %arg2: memref<1x4x3202xbf16, #tpu.memory_space<vmem>>, %arg3: memref<4x12xbf16, #tpu.memory_space<vmem>>, %arg4: memref<4x1xf32, #tpu.memory_space<vmem>>, %arg5: memref<4x4xbf16, #tpu.memory_space<vmem>>, %arg6: memref<4x1xf32, #tpu.memory_space<vmem>>, %arg7: memref<4x4xbf16, #tpu.memory_space<vmem>>, %arg8: memref<4x1xf32, #tpu.memory_space<vmem>>, %arg9: memref<4x1xf32, #tpu.memory_space<vmem>>, %arg10: memref<1x4x640xbf16, #tpu.memory_space<vmem>>) attributes {dimension_semantics = [#tpu.dimension_semantics<parallel>, #tpu.dimension_semantics<parallel>], iteration_bounds = array<i64: 2, 5>, scalar_prefetch = 0 : i64, scratch_operands = 0 : i64, tpu.core_type = #tpu.core_type<tc>, window_params = [{transform_indices = @transform_0, window_bounds = array<i64: 1, 4, 3202>}, {pipeline_mode = #tpu.pipeline_mode<synchronous>, transform_indices = @transform_1, window_bounds = array<i64: 4, 12>}, {pipeline_mode = #tpu.pipeline_mode<synchronous>, transform_indices = @transform_2, window_bounds = array<i64: 4, 1>}, {pipeline_mode = #tpu.pipeline_mode<synchronous>, transform_indices = @transform_3, window_bounds = array<i64: 4, 4>}, {pipeline_mode = #tpu.pipeline_mode<synchronous>, transform_indices = @transform_4, window_bounds = array<i64: 4, 1>}, {pipeline_mode = #tpu.pipeline_mode<synchronous>, transform_indices = @transform_5, window_bounds = array<i64: 4, 4>}, {pipeline_mode = #tpu.pipeline_mode<synchronous>, transform_indices = @transform_6, window_bounds = array<i64: 4, 1>}, {pipeline_mode = #tpu.pipeline_mode<synchronous>, transform_indices = @transform_7, window_bounds = array<i64: 4, 1>}, {transform_indices = @transform_8, window_bounds = array<i64: 1, 4, 640>}]} {
    %c640_i32 = arith.constant 640 : i32
    %0 = arith.muli %arg1, %c640_i32 : i32
    %1 = tpu.assume_multiple %0, 128 : i32
    %c0 = arith.constant 0 : index
    %c0_0 = arith.constant 0 : index
    %2 = arith.index_cast %1 : i32 to index
    %3 = vector.load %arg2[%c0, %c0_0, %2] : memref<1x4x3202xbf16, #tpu.memory_space<vmem>>, vector<1x4x642xbf16>
    %4 = vector.shape_cast %3 : vector<1x4x642xbf16> to vector<4x642xbf16>
    %5 = vector.extract_strided_slice %4 {offsets = [0, 1], sizes = [4, 640], strides = [1, 1]} : vector<4x642xbf16> to vector<4x640xbf16>
    %c0_1 = arith.constant 0 : index
    %c0_2 = arith.constant 0 : index
    %6 = vector.load %arg7[%c0_1, %c0_2] : memref<4x4xbf16, #tpu.memory_space<vmem>>, vector<4x4xbf16>
    %cst = arith.constant dense<0.000000e+00> : vector<4x640xf32>
    %7 = tpu.matmul %6, %5, %cst {dimension_numbers = #tpu.dot_dimension_numbers<[1], [0], [0], [1], [0, 0, 1, 1], [], []>} : vector<4x4xbf16>, vector<4x640xbf16>, vector<4x640xf32> -> vector<4x640xf32>
    %c0_3 = arith.constant 0 : index
    %c0_4 = arith.constant 0 : index
    %8 = vector.load %arg8[%c0_3, %c0_4] : memref<4x1xf32, #tpu.memory_space<vmem>>, vector<4x1xf32>
    %9 = vector.broadcast %8 : vector<4x1xf32> to vector<4x640xf32>
    %10 = arith.addf %7, %9 : vector<4x640xf32>
    %11 = vector.extract_strided_slice %4 {offsets = [0, 0], sizes = [4, 640], strides = [1, 1]} : vector<4x642xbf16> to vector<4x640xbf16>
    %12 = arith.extf %11 : vector<4x640xbf16> to vector<4x640xf32>
    %cst_5 = arith.constant 0.000000e+00 : f32
    %13 = vector.broadcast %cst_5 : f32 to vector<4x640xf32>
    %14 = arith.cmpf oge, %12, %13 : vector<4x640xf32>
    %cst_6 = arith.constant 2.000000e-01 : f32
    %15 = vector.broadcast %cst_6 : f32 to vector<4x640xf32>
    %16 = arith.mulf %15, %12 : vector<4x640xf32>
    %17 = arith.select %14, %12, %16 : vector<4x640xi1>, vector<4x640xf32>
    %18 = vector.extract_strided_slice %4 {offsets = [0, 1], sizes = [4, 640], strides = [1, 1]} : vector<4x642xbf16> to vector<4x640xbf16>
    %19 = arith.extf %18 : vector<4x640xbf16> to vector<4x640xf32>
    %cst_7 = arith.constant 0.000000e+00 : f32
    %20 = vector.broadcast %cst_7 : f32 to vector<4x640xf32>
    %21 = arith.cmpf oge, %19, %20 : vector<4x640xf32>
    %cst_8 = arith.constant 2.000000e-01 : f32
    %22 = vector.broadcast %cst_8 : f32 to vector<4x640xf32>
    %23 = arith.mulf %22, %19 : vector<4x640xf32>
    %24 = arith.select %21, %19, %23 : vector<4x640xi1>, vector<4x640xf32>
    %25 = vector.extract_strided_slice %4 {offsets = [0, 2], sizes = [4, 640], strides = [1, 1]} : vector<4x642xbf16> to vector<4x640xbf16>
    %26 = arith.extf %25 : vector<4x640xbf16> to vector<4x640xf32>
    %cst_9 = arith.constant 0.000000e+00 : f32
    %27 = vector.broadcast %cst_9 : f32 to vector<4x640xf32>
    %28 = arith.cmpf oge, %26, %27 : vector<4x640xf32>
    %cst_10 = arith.constant 2.000000e-01 : f32
    %29 = vector.broadcast %cst_10 : f32 to vector<4x640xf32>
    %30 = arith.mulf %29, %26 : vector<4x640xf32>
    %31 = arith.select %28, %26, %30 : vector<4x640xi1>, vector<4x640xf32>
    %32 = tpu.concatenate %17, %24, %31 in 0 : vector<4x640xf32>, vector<4x640xf32>, vector<4x640xf32> -> vector<12x640xf32>
    %33 = arith.truncf %32 : vector<12x640xf32> to vector<12x640xbf16>
    %c0_11 = arith.constant 0 : index
    %c0_12 = arith.constant 0 : index
    %34 = vector.load %arg3[%c0_11, %c0_12] : memref<4x12xbf16, #tpu.memory_space<vmem>>, vector<4x12xbf16>
    %cst_13 = arith.constant dense<0.000000e+00> : vector<4x640xf32>
    %35 = tpu.matmul %34, %33, %cst_13 {dimension_numbers = #tpu.dot_dimension_numbers<[1], [0], [0], [1], [0, 0, 1, 1], [], []>} : vector<4x12xbf16>, vector<12x640xbf16>, vector<4x640xf32> -> vector<4x640xf32>
    %c0_14 = arith.constant 0 : index
    %c0_15 = arith.constant 0 : index
    %36 = vector.load %arg4[%c0_14, %c0_15] : memref<4x1xf32, #tpu.memory_space<vmem>>, vector<4x1xf32>
    %37 = vector.broadcast %36 : vector<4x1xf32> to vector<4x640xf32>
    %38 = arith.addf %35, %37 : vector<4x640xf32>
    %cst_16 = arith.constant 0.000000e+00 : f32
    %39 = vector.broadcast %cst_16 : f32 to vector<4x640xf32>
    %40 = arith.cmpf oge, %38, %39 : vector<4x640xf32>
    %cst_17 = arith.constant 2.000000e-01 : f32
    %41 = vector.broadcast %cst_17 : f32 to vector<4x640xf32>
    %42 = arith.mulf %41, %38 : vector<4x640xf32>
    %43 = arith.select %40, %38, %42 : vector<4x640xi1>, vector<4x640xf32>
    %c0_18 = arith.constant 0 : index
    %c0_19 = arith.constant 0 : index
    %44 = vector.load %arg5[%c0_18, %c0_19] : memref<4x4xbf16, #tpu.memory_space<vmem>>, vector<4x4xbf16>
    %45 = arith.truncf %43 : vector<4x640xf32> to vector<4x640xbf16>
    %cst_20 = arith.constant dense<0.000000e+00> : vector<4x640xf32>
    %46 = tpu.matmul %44, %45, %cst_20 {dimension_numbers = #tpu.dot_dimension_numbers<[1], [0], [0], [1], [0, 0, 1, 1], [], []>} : vector<4x4xbf16>, vector<4x640xbf16>, vector<4x640xf32> -> vector<4x640xf32>
    %c0_21 = arith.constant 0 : index
    %c0_22 = arith.constant 0 : index
    %47 = vector.load %arg6[%c0_21, %c0_22] : memref<4x1xf32, #tpu.memory_space<vmem>>, vector<4x1xf32>
    %48 = vector.broadcast %47 : vector<4x1xf32> to vector<4x640xf32>
    %49 = arith.addf %46, %48 : vector<4x640xf32>
    %c0_23 = arith.constant 0 : index
    %c0_24 = arith.constant 0 : index
    %50 = vector.load %arg9[%c0_23, %c0_24] : memref<4x1xf32, #tpu.memory_space<vmem>>, vector<4x1xf32>
    %51 = vector.broadcast %50 : vector<4x1xf32> to vector<4x640xf32>
    %52 = arith.mulf %49, %51 : vector<4x640xf32>
    %53 = arith.addf %10, %52 : vector<4x640xf32>
    %54 = arith.truncf %53 : vector<4x640xf32> to vector<4x640xbf16>
    %c0_25 = arith.constant 0 : index
    %c0_26 = arith.constant 0 : index
    %c0_27 = arith.constant 0 : index
    %55 = vector.load %arg10[%c0_25, %c0_26, %c0_27] : memref<1x4x640xbf16, #tpu.memory_space<vmem>>, vector<1x4x640xbf16>
    %56 = vector.shape_cast %55 : vector<1x4x640xbf16> to vector<4x640xbf16>
    %57 = vector.shape_cast %54 : vector<4x640xbf16> to vector<1x4x640xbf16>
    tpu.vector_store %arg10[%c0_25, %c0_26, %c0_27], %57 {strides = array<i32>} : memref<1x4x640xbf16, #tpu.memory_space<vmem>>, vector<1x4x640xbf16>,
    return
  }
  func.func @transform_0(%arg0: i32, %arg1: i32) -> (i32, i32, i32) {
    %c0_i32 = arith.constant 0 : i32
    %c0_i32_0 = arith.constant 0 : i32
    %c0_i32_1 = arith.constant 0 : i32
    return %arg0, %c0_i32, %c0_i32_0 : i32, i32, i32
  }
  func.func @transform_1(%arg0: i32, %arg1: i32) -> (i32, i32) {
    %c0_i32 = arith.constant 0 : i32
    %c0_i32_0 = arith.constant 0 : i32
    %c0_i32_1 = arith.constant 0 : i32
    return %c0_i32, %c0_i32_0 : i32, i32
  }
  func.func @transform_2(%arg0: i32, %arg1: i32) -> (i32, i32) {
    %c0_i32 = arith.constant 0 : i32
    %c0_i32_0 = arith.constant 0 : i32
    %c0_i32_1 = arith.constant 0 : i32
    return %c0_i32, %c0_i32_0 : i32, i32
  }
  func.func @transform_3(%arg0: i32, %arg1: i32) -> (i32, i32) {
    %c0_i32 = arith.constant 0 : i32
    %c0_i32_0 = arith.constant 0 : i32
    %c0_i32_1 = arith.constant 0 : i32
    return %c0_i32, %c0_i32_0 : i32, i32
  }
  func.func @transform_4(%arg0: i32, %arg1: i32) -> (i32, i32) {
    %c0_i32 = arith.constant 0 : i32
    %c0_i32_0 = arith.constant 0 : i32
    %c0_i32_1 = arith.constant 0 : i32
    return %c0_i32, %c0_i32_0 : i32, i32
  }
  func.func @transform_5(%arg0: i32, %arg1: i32) -> (i32, i32) {
    %c0_i32 = arith.constant 0 : i32
    %c0_i32_0 = arith.constant 0 : i32
    %c0_i32_1 = arith.constant 0 : i32
    return %c0_i32, %c0_i32_0 : i32, i32
  }
  func.func @transform_6(%arg0: i32, %arg1: i32) -> (i32, i32) {
    %c0_i32 = arith.constant 0 : i32
    %c0_i32_0 = arith.constant 0 : i32
    %c0_i32_1 = arith.constant 0 : i32
    return %c0_i32, %c0_i32_0 : i32, i32
  }
  func.func @transform_7(%arg0: i32, %arg1: i32) -> (i32, i32) {
    %c0_i32 = arith.constant 0 : i32
    %c0_i32_0 = arith.constant 0 : i32
    %c0_i32_1 = arith.constant 0 : i32
    return %c0_i32, %c0_i32_0 : i32, i32
  }
  func.func @transform_8(%arg0: i32, %arg1: i32) -> (i32, i32, i32) {
    %c0_i32 = arith.constant 0 : i32
    %c0_i32_0 = arith.constant 0 : i32
    return %arg0, %c0_i32, %arg1 : i32, i32, i32
  }
}

module attributes {stable_mosaic.version = 11 : i64} {
  func.func @_resnet_kernel(%arg0: i32, %arg1: i32, %arg2: memref<1x4x3206xbf16, #tpu.memory_space<vmem>>, %arg3: memref<4x12xbf16, #tpu.memory_space<vmem>>, %arg4: memref<4x1xf32, #tpu.memory_space<vmem>>, %arg5: memref<4x4xbf16, #tpu.memory_space<vmem>>, %arg6: memref<4x1xf32, #tpu.memory_space<vmem>>, %arg7: memref<4x4xbf16, #tpu.memory_space<vmem>>, %arg8: memref<4x1xf32, #tpu.memory_space<vmem>>, %arg9: memref<4x1xf32, #tpu.memory_space<vmem>>, %arg10: memref<1x4x640xbf16, #tpu.memory_space<vmem>>) attributes {dimension_semantics = [#tpu.dimension_semantics<parallel>, #tpu.dimension_semantics<parallel>], iteration_bounds = array<i64: 2, 5>, scalar_prefetch = 0 : i64, scratch_operands = 0 : i64, tpu.core_type = #tpu.core_type<tc>, window_params = [{transform_indices = @transform_0, window_bounds = array<i64: 1, 4, 3206>}, {pipeline_mode = #tpu.pipeline_mode<synchronous>, transform_indices = @transform_1, window_bounds = array<i64: 4, 12>}, {pipeline_mode = #tpu.pipeline_mode<synchronous>, transform_indices = @transform_2, window_bounds = array<i64: 4, 1>}, {pipeline_mode = #tpu.pipeline_mode<synchronous>, transform_indices = @transform_3, window_bounds = array<i64: 4, 4>}, {pipeline_mode = #tpu.pipeline_mode<synchronous>, transform_indices = @transform_4, window_bounds = array<i64: 4, 1>}, {pipeline_mode = #tpu.pipeline_mode<synchronous>, transform_indices = @transform_5, window_bounds = array<i64: 4, 4>}, {pipeline_mode = #tpu.pipeline_mode<synchronous>, transform_indices = @transform_6, window_bounds = array<i64: 4, 1>}, {pipeline_mode = #tpu.pipeline_mode<synchronous>, transform_indices = @transform_7, window_bounds = array<i64: 4, 1>}, {transform_indices = @transform_8, window_bounds = array<i64: 1, 4, 640>}]} {
    %c640_i32 = arith.constant 640 : i32
    %0 = arith.muli %arg1, %c640_i32 : i32
    %1 = tpu.assume_multiple %0, 128 : i32
    %c0 = arith.constant 0 : index
    %c0_0 = arith.constant 0 : index
    %2 = arith.index_cast %1 : i32 to index
    %3 = vector.load %arg2[%c0, %c0_0, %2] : memref<1x4x3206xbf16, #tpu.memory_space<vmem>>, vector<1x4x646xbf16>
    %4 = vector.shape_cast %3 : vector<1x4x646xbf16> to vector<4x646xbf16>
    %5 = vector.extract_strided_slice %4 {offsets = [0, 3], sizes = [4, 640], strides = [1, 1]} : vector<4x646xbf16> to vector<4x640xbf16>
    %c0_1 = arith.constant 0 : index
    %c0_2 = arith.constant 0 : index
    %6 = vector.load %arg7[%c0_1, %c0_2] : memref<4x4xbf16, #tpu.memory_space<vmem>>, vector<4x4xbf16>
    %cst = arith.constant dense<0.000000e+00> : vector<4x640xf32>
    %7 = tpu.matmul %6, %5, %cst {dimension_numbers = #tpu.dot_dimension_numbers<[1], [0], [0], [1], [0, 0, 1, 1], [], []>} : vector<4x4xbf16>, vector<4x640xbf16>, vector<4x640xf32> -> vector<4x640xf32>
    %c0_3 = arith.constant 0 : index
    %c0_4 = arith.constant 0 : index
    %8 = vector.load %arg8[%c0_3, %c0_4] : memref<4x1xf32, #tpu.memory_space<vmem>>, vector<4x1xf32>
    %9 = vector.broadcast %8 : vector<4x1xf32> to vector<4x640xf32>
    %10 = arith.addf %7, %9 : vector<4x640xf32>
    %11 = vector.extract_strided_slice %4 {offsets = [0, 0], sizes = [4, 640], strides = [1, 1]} : vector<4x646xbf16> to vector<4x640xbf16>
    %12 = arith.extf %11 : vector<4x640xbf16> to vector<4x640xf32>
    %cst_5 = arith.constant 0.000000e+00 : f32
    %13 = vector.broadcast %cst_5 : f32 to vector<4x640xf32>
    %14 = arith.cmpf oge, %12, %13 : vector<4x640xf32>
    %cst_6 = arith.constant 2.000000e-01 : f32
    %15 = vector.broadcast %cst_6 : f32 to vector<4x640xf32>
    %16 = arith.mulf %15, %12 : vector<4x640xf32>
    %17 = arith.select %14, %12, %16 : vector<4x640xi1>, vector<4x640xf32>
    %18 = vector.extract_strided_slice %4 {offsets = [0, 3], sizes = [4, 640], strides = [1, 1]} : vector<4x646xbf16> to vector<4x640xbf16>
    %19 = arith.extf %18 : vector<4x640xbf16> to vector<4x640xf32>
    %cst_7 = arith.constant 0.000000e+00 : f32
    %20 = vector.broadcast %cst_7 : f32 to vector<4x640xf32>
    %21 = arith.cmpf oge, %19, %20 : vector<4x640xf32>
    %cst_8 = arith.constant 2.000000e-01 : f32
    %22 = vector.broadcast %cst_8 : f32 to vector<4x640xf32>
    %23 = arith.mulf %22, %19 : vector<4x640xf32>
    %24 = arith.select %21, %19, %23 : vector<4x640xi1>, vector<4x640xf32>
    %25 = vector.extract_strided_slice %4 {offsets = [0, 6], sizes = [4, 640], strides = [1, 1]} : vector<4x646xbf16> to vector<4x640xbf16>
    %26 = arith.extf %25 : vector<4x640xbf16> to vector<4x640xf32>
    %cst_9 = arith.constant 0.000000e+00 : f32
    %27 = vector.broadcast %cst_9 : f32 to vector<4x640xf32>
    %28 = arith.cmpf oge, %26, %27 : vector<4x640xf32>
    %cst_10 = arith.constant 2.000000e-01 : f32
    %29 = vector.broadcast %cst_10 : f32 to vector<4x640xf32>
    %30 = arith.mulf %29, %26 : vector<4x640xf32>
    %31 = arith.select %28, %26, %30 : vector<4x640xi1>, vector<4x640xf32>
    %32 = tpu.concatenate %17, %24, %31 in 0 : vector<4x640xf32>, vector<4x640xf32>, vector<4x640xf32> -> vector<12x640xf32>
    %33 = arith.truncf %32 : vector<12x640xf32> to vector<12x640xbf16>
    %c0_11 = arith.constant 0 : index
    %c0_12 = arith.constant 0 : index
    %34 = vector.load %arg3[%c0_11, %c0_12] : memref<4x12xbf16, #tpu.memory_space<vmem>>, vector<4x12xbf16>
    %cst_13 = arith.constant dense<0.000000e+00> : vector<4x640xf32>
    %35 = tpu.matmul %34, %33, %cst_13 {dimension_numbers = #tpu.dot_dimension_numbers<[1], [0], [0], [1], [0, 0, 1, 1], [], []>} : vector<4x12xbf16>, vector<12x640xbf16>, vector<4x640xf32> -> vector<4x640xf32>
    %c0_14 = arith.constant 0 : index
    %c0_15 = arith.constant 0 : index
    %36 = vector.load %arg4[%c0_14, %c0_15] : memref<4x1xf32, #tpu.memory_space<vmem>>, vector<4x1xf32>
    %37 = vector.broadcast %36 : vector<4x1xf32> to vector<4x640xf32>
    %38 = arith.addf %35, %37 : vector<4x640xf32>
    %cst_16 = arith.constant 0.000000e+00 : f32
    %39 = vector.broadcast %cst_16 : f32 to vector<4x640xf32>
    %40 = arith.cmpf oge, %38, %39 : vector<4x640xf32>
    %cst_17 = arith.constant 2.000000e-01 : f32
    %41 = vector.broadcast %cst_17 : f32 to vector<4x640xf32>
    %42 = arith.mulf %41, %38 : vector<4x640xf32>
    %43 = arith.select %40, %38, %42 : vector<4x640xi1>, vector<4x640xf32>
    %c0_18 = arith.constant 0 : index
    %c0_19 = arith.constant 0 : index
    %44 = vector.load %arg5[%c0_18, %c0_19] : memref<4x4xbf16, #tpu.memory_space<vmem>>, vector<4x4xbf16>
    %45 = arith.truncf %43 : vector<4x640xf32> to vector<4x640xbf16>
    %cst_20 = arith.constant dense<0.000000e+00> : vector<4x640xf32>
    %46 = tpu.matmul %44, %45, %cst_20 {dimension_numbers = #tpu.dot_dimension_numbers<[1], [0], [0], [1], [0, 0, 1, 1], [], []>} : vector<4x4xbf16>, vector<4x640xbf16>, vector<4x640xf32> -> vector<4x640xf32>
    %c0_21 = arith.constant 0 : index
    %c0_22 = arith.constant 0 : index
    %47 = vector.load %arg6[%c0_21, %c0_22] : memref<4x1xf32, #tpu.memory_space<vmem>>, vector<4x1xf32>
    %48 = vector.broadcast %47 : vector<4x1xf32> to vector<4x640xf32>
    %49 = arith.addf %46, %48 : vector<4x640xf32>
    %c0_23 = arith.constant 0 : index
    %c0_24 = arith.constant 0 : index
    %50 = vector.load %arg9[%c0_23, %c0_24] : memref<4x1xf32, #tpu.memory_space<vmem>>, vector<4x1xf32>
    %51 = vector.broadcast %50 : vector<4x1xf32> to vector<4x640xf32>
    %52 = arith.mulf %49, %51 : vector<4x640xf32>
    %53 = arith.addf %10, %52 : vector<4x640xf32>
    %cst_25 = arith.constant 0.000000e+00 : f32
    %54 = vector.broadcast %cst_25 : f32 to vector<4x640xf32>
    %55 = arith.cmpf oge, %53, %54 : vector<4x640xf32>
    %cst_26 = arith.constant 2.000000e-01 : f32
    %56 = vector.broadcast %cst_26 : f32 to vector<4x640xf32>
    %57 = arith.mulf %56, %53 : vector<4x640xf32>
    %58 = arith.select %55, %53, %57 : vector<4x640xi1>, vector<4x640xf32>
    %59 = arith.truncf %58 : vector<4x640xf32> to vector<4x640xbf16>
    %c0_27 = arith.constant 0 : index
    %c0_28 = arith.constant 0 : index
    %c0_29 = arith.constant 0 : index
    %60 = vector.load %arg10[%c0_27, %c0_28, %c0_29] : memref<1x4x640xbf16, #tpu.memory_space<vmem>>, vector<1x4x640xbf16>
    %61 = vector.shape_cast %60 : vector<1x4x640xbf16> to vector<4x640xbf16>
    %62 = vector.shape_cast %59 : vector<4x640xbf16> to vector<1x4x640xbf16>
    tpu.vector_store %arg10[%c0_27, %c0_28, %c0_29], %62 {strides = array<i32>} : memref<1x4x640xbf16, #tpu.memory_space<vmem>>, vector<1x4x640xbf16>,
    return
  }
  func.func @transform_0(%arg0: i32, %arg1: i32) -> (i32, i32, i32) {
    %c0_i32 = arith.constant 0 : i32
    %c0_i32_0 = arith.constant 0 : i32
    %c0_i32_1 = arith.constant 0 : i32
    return %arg0, %c0_i32, %c0_i32_0 : i32, i32, i32
  }
  func.func @transform_1(%arg0: i32, %arg1: i32) -> (i32, i32) {
    %c0_i32 = arith.constant 0 : i32
    %c0_i32_0 = arith.constant 0 : i32
    %c0_i32_1 = arith.constant 0 : i32
    return %c0_i32, %c0_i32_0 : i32, i32
  }
  func.func @transform_2(%arg0: i32, %arg1: i32) -> (i32, i32) {
    %c0_i32 = arith.constant 0 : i32
    %c0_i32_0 = arith.constant 0 : i32
    %c0_i32_1 = arith.constant 0 : i32
    return %c0_i32, %c0_i32_0 : i32, i32
  }
  func.func @transform_3(%arg0: i32, %arg1: i32) -> (i32, i32) {
    %c0_i32 = arith.constant 0 : i32
    %c0_i32_0 = arith.constant 0 : i32
    %c0_i32_1 = arith.constant 0 : i32
    return %c0_i32, %c0_i32_0 : i32, i32
  }
  func.func @transform_4(%arg0: i32, %arg1: i32) -> (i32, i32) {
    %c0_i32 = arith.constant 0 : i32
    %c0_i32_0 = arith.constant 0 : i32
    %c0_i32_1 = arith.constant 0 : i32
    return %c0_i32, %c0_i32_0 : i32, i32
  }
  func.func @transform_5(%arg0: i32, %arg1: i32) -> (i32, i32) {
    %c0_i32 = arith.constant 0 : i32
    %c0_i32_0 = arith.constant 0 : i32
    %c0_i32_1 = arith.constant 0 : i32
    return %c0_i32, %c0_i32_0 : i32, i32
  }
  func.func @transform_6(%arg0: i32, %arg1: i32) -> (i32, i32) {
    %c0_i32 = arith.constant 0 : i32
    %c0_i32_0 = arith.constant 0 : i32
    %c0_i32_1 = arith.constant 0 : i32
    return %c0_i32, %c0_i32_0 : i32, i32
  }
  func.func @transform_7(%arg0: i32, %arg1: i32) -> (i32, i32) {
    %c0_i32 = arith.constant 0 : i32
    %c0_i32_0 = arith.constant 0 : i32
    %c0_i32_1 = arith.constant 0 : i32
    return %c0_i32, %c0_i32_0 : i32, i32
  }
  func.func @transform_8(%arg0: i32, %arg1: i32) -> (i32, i32, i32) {
    %c0_i32 = arith.constant 0 : i32
    %c0_i32_0 = arith.constant 0 : i32
    return %arg0, %c0_i32, %arg1 : i32, i32, i32
  }
}

module attributes {stable_mosaic.version = 11 : i64} {
  func.func @_conv_im2col_kernel(%arg0: i32, %arg1: i32, %arg2: memref<1x4x3206xbf16, #tpu.memory_space<vmem>>, %arg3: memref<1x28xbf16, #tpu.memory_space<vmem>>, %arg4: memref<1x1xf32, #tpu.memory_space<vmem>>, %arg5: memref<1x1x640xf32, #tpu.memory_space<vmem>>) attributes {dimension_semantics = [#tpu.dimension_semantics<parallel>, #tpu.dimension_semantics<parallel>], iteration_bounds = array<i64: 2, 5>, scalar_prefetch = 0 : i64, scratch_operands = 0 : i64, tpu.core_type = #tpu.core_type<tc>, window_params = [{transform_indices = @transform_0, window_bounds = array<i64: 1, 4, 3206>}, {pipeline_mode = #tpu.pipeline_mode<synchronous>, transform_indices = @transform_1, window_bounds = array<i64: 1, 28>}, {pipeline_mode = #tpu.pipeline_mode<synchronous>, transform_indices = @transform_2, window_bounds = array<i64: 1, 1>}, {transform_indices = @transform_3, window_bounds = array<i64: 1, 1, 640>}]} {
    %c640_i32 = arith.constant 640 : i32
    %0 = arith.muli %arg1, %c640_i32 : i32
    %1 = tpu.assume_multiple %0, 128 : i32
    %c0 = arith.constant 0 : index
    %c0_0 = arith.constant 0 : index
    %2 = arith.index_cast %1 : i32 to index
    %3 = vector.load %arg2[%c0, %c0_0, %2] : memref<1x4x3206xbf16, #tpu.memory_space<vmem>>, vector<1x4x646xbf16>
    %4 = vector.shape_cast %3 : vector<1x4x646xbf16> to vector<4x646xbf16>
    %5 = vector.extract_strided_slice %4 {offsets = [0, 0], sizes = [4, 640], strides = [1, 1]} : vector<4x646xbf16> to vector<4x640xbf16>
    %6 = arith.extf %5 : vector<4x640xbf16> to vector<4x640xf32>
    %7 = vector.extract_strided_slice %4 {offsets = [0, 1], sizes = [4, 640], strides = [1, 1]} : vector<4x646xbf16> to vector<4x640xbf16>
    %8 = arith.extf %7 : vector<4x640xbf16> to vector<4x640xf32>
    %9 = vector.extract_strided_slice %4 {offsets = [0, 2], sizes = [4, 640], strides = [1, 1]} : vector<4x646xbf16> to vector<4x640xbf16>
    %10 = arith.extf %9 : vector<4x640xbf16> to vector<4x640xf32>
    %11 = vector.extract_strided_slice %4 {offsets = [0, 3], sizes = [4, 640], strides = [1, 1]} : vector<4x646xbf16> to vector<4x640xbf16>
    %12 = arith.extf %11 : vector<4x640xbf16> to vector<4x640xf32>
    %13 = vector.extract_strided_slice %4 {offsets = [0, 4], sizes = [4, 640], strides = [1, 1]} : vector<4x646xbf16> to vector<4x640xbf16>
    %14 = arith.extf %13 : vector<4x640xbf16> to vector<4x640xf32>
    %15 = vector.extract_strided_slice %4 {offsets = [0, 5], sizes = [4, 640], strides = [1, 1]} : vector<4x646xbf16> to vector<4x640xbf16>
    %16 = arith.extf %15 : vector<4x640xbf16> to vector<4x640xf32>
    %17 = vector.extract_strided_slice %4 {offsets = [0, 6], sizes = [4, 640], strides = [1, 1]} : vector<4x646xbf16> to vector<4x640xbf16>
    %18 = arith.extf %17 : vector<4x640xbf16> to vector<4x640xf32>
    %19 = tpu.concatenate %6, %8, %10, %12, %14, %16, %18 in 0 : vector<4x640xf32>, vector<4x640xf32>, vector<4x640xf32>, vector<4x640xf32>, vector<4x640xf32>, vector<4x640xf32>, vector<4x640xf32> -> vector<28x640xf32>
    %20 = arith.truncf %19 : vector<28x640xf32> to vector<28x640xbf16>
    %c0_1 = arith.constant 0 : index
    %c0_2 = arith.constant 0 : index
    %21 = vector.load %arg3[%c0_1, %c0_2] : memref<1x28xbf16, #tpu.memory_space<vmem>>, vector<1x28xbf16>
    %cst = arith.constant dense<0.000000e+00> : vector<1x640xf32>
    %22 = tpu.matmul %21, %20, %cst {dimension_numbers = #tpu.dot_dimension_numbers<[1], [0], [0], [1], [0, 0, 1, 1], [], []>} : vector<1x28xbf16>, vector<28x640xbf16>, vector<1x640xf32> -> vector<1x640xf32>
    %c0_3 = arith.constant 0 : index
    %c0_4 = arith.constant 0 : index
    %23 = vector.load %arg4[%c0_3, %c0_4] : memref<1x1xf32, #tpu.memory_space<vmem>>, vector<1x1xf32>
    %24 = vector.broadcast %23 : vector<1x1xf32> to vector<1x640xf32>
    %25 = arith.addf %22, %24 : vector<1x640xf32>
    %26 = math.tanh %25 : vector<1x640xf32>
    %c0_5 = arith.constant 0 : index
    %c0_6 = arith.constant 0 : index
    %c0_7 = arith.constant 0 : index
    %27 = vector.load %arg5[%c0_5, %c0_6, %c0_7] : memref<1x1x640xf32, #tpu.memory_space<vmem>>, vector<1x1x640xf32>
    %28 = vector.shape_cast %27 : vector<1x1x640xf32> to vector<1x640xf32>
    %29 = vector.shape_cast %26 : vector<1x640xf32> to vector<1x1x640xf32>
    tpu.vector_store %arg5[%c0_5, %c0_6, %c0_7], %29 {strides = array<i32>} : memref<1x1x640xf32, #tpu.memory_space<vmem>>, vector<1x1x640xf32>,
    return
  }
  func.func @transform_0(%arg0: i32, %arg1: i32) -> (i32, i32, i32) {
    %c0_i32 = arith.constant 0 : i32
    %c0_i32_0 = arith.constant 0 : i32
    %c0_i32_1 = arith.constant 0 : i32
    return %arg0, %c0_i32, %c0_i32_0 : i32, i32, i32
  }
  func.func @transform_1(%arg0: i32, %arg1: i32) -> (i32, i32) {
    %c0_i32 = arith.constant 0 : i32
    %c0_i32_0 = arith.constant 0 : i32
    %c0_i32_1 = arith.constant 0 : i32
    return %c0_i32, %c0_i32_0 : i32, i32
  }
  func.func @transform_2(%arg0: i32, %arg1: i32) -> (i32, i32) {
    %c0_i32 = arith.constant 0 : i32
    %c0_i32_0 = arith.constant 0 : i32
    %c0_i32_1 = arith.constant 0 : i32
    return %c0_i32, %c0_i32_0 : i32, i32
  }
  func.func @transform_3(%arg0: i32, %arg1: i32) -> (i32, i32, i32) {
    %c0_i32 = arith.constant 0 : i32
    %c0_i32_0 = arith.constant 0 : i32
    return %arg0, %c0_i32, %arg1 : i32, i32, i32
  }
}

</mosaic_0001>

<bundles_post_ra>
// kernel: forward.15
= control target key start
LH: loop header
LB: loop body
LE: loop exit
PB: predicated region body
PF: predicated region fallthrough
CT: control target
= control target key end

     0   :  { %8 = vsyncpa [#allocation3], 0  ;;  %s847_s12 = smov 0   ;;  %s849_s13 = smov 0   ;;  %s1002_s0 = inlined_call_operand.vmem [shape: bf16[2,64,18], index: 0, kind: input, shape index: {}]   ;;  %s1003_s1 = inlined_call_operand.vmem [shape: bf16[64,192], index: 1, kind: input, shape index: {}]   ;;  %s1004_s2 = inlined_call_operand.hbm [shape: f32[64,1], index: 2, kind: input, shape index: {}]   ;;  %s1005_s3 = inlined_call_operand.vmem [shape: bf16[2,64,16], index: 3, kind: output, shape index: {}]  }
   0x1   :  { %s851_s14 = smov 0  }
   0x2 LB: > { %s592_s15 = sadd.s32 4294967295, %s819_s14   ;;  %s26_s16 = sadd.s32 1, %s815_s13  ;;  %s819_s14 = sphi %s851_s14, %s14_s14   ;;  %s815_s13 = sphi %s849_s13, %s1015_s13   ;;  %s811_s12 = sphi %s847_s12, %s1014_s12  }
   0x3   : > { %p28_p0 = scmp.ge.s32.totalorder %s26_s16, 2  ;;  %p594_p1 = scmp.ge.s32.totalorder %s819_s14, 1 }
   0x4   : > { %p127_p2 = scmp.lt.s32.totalorder %s819_s14, 3  ;;  %p872_p4 = scmp.eq.s32.totalorder %s592_s15, 0 }
   0x5   : > { %s1017_s16 = smov (%p28_p0, %s26_s16), 0  ;;  %s821_s19 = smov [#allocation2]  }
   0x6   : > { %p868_p3 = pnand %p594_p1, %p127_p2  ;;  %s142_s20 = sshll.u32 %s821_s19, 4  ;;  %s143_s20 = int_to_ptr.vmem [resolvable:$true] %s142_s20 }
   0x7   : > { %s1010_s18 = scalar_select %p872_p4, 1, 0 }
   0x8   : > { %s1009_s17 = scalar_select %p868_p3, 1, 0 }
   0x9   : > { %p667_p5 = pneg %p868_p3  ;;  %s765_s24 = scalar_lea.hbm %s1004_s2, 1024 }
   0xa   : > { %p766_p7 = scmp.ne.s32.totalorder %s1004_s2, %s765_s24  ;;  %p772_p11 = scmp.lt.u32.totalorder %s765_s24, %s1004_s2 }
   0xb   : > { %p880_p6 = pnand %p872_p4, %p667_p5 }
   0xd   : > { %p767_p8 = pneg %p880_p6 }
   0xf   : > { %p768_p9 = pnand %p767_p8, %p766_p7 }
  0x11   : > { %p769_p10 = pneg %p768_p9 }
  0x13   : > { %p774_p12 = pnand %p772_p11, %p769_p10 }
  0x15   : > { %777 = shalt.err (!%p774_p12)
}
  0x16   : > { %s778_s29 = scalar_lea.vmem %s143_s20, 1024  ;;  %p786_p2 = scmp.lt.s32.totalorder %s143_s20, %s143_s20 }
  0x17   : > { %p779_p13 = scmp.ne.s32.totalorder %s143_s20, %s778_s29  ;;  %p787_p5 = scmp.lt.s32.totalorder %s778_s29, %s778_s29 }
  0x19   : > { %p781_p0 = pnand %p779_p13, %p767_p8  ;;  %p788_p4 = por %p787_p5, %p786_p2 }
  0x1b   : > { %p782_p1 = pneg %p781_p0 }
  0x1d   : > { %p789_p3 = pnand %p788_p4, %p782_p1 }
  0x1f   : > { %792 = shalt.err (!%p789_p3)
}
  0x20   : > { %s822_s30 = smov 128   ;;  %s823_s4 = smov 8  }
  0x21   : > { %670 = dma.hbm_to_vmem [thread:$0]  (!%p880_p6), %s1004_s2, 1024, %s143_s20, [#allocation3], %s822_s30, %s822_s30, %s823_s4  }
  0x22   : > { %p1012_p7 = scmp.ne.s32.totalorder %s1009_s17, 0 }
  0x23   : > { %p1013_p9 = scmp.ne.s32.totalorder (!%p1012_p7), %s1010_s18, 0 }
  0x24   : > { %166 = sbr.rel (%p1012_p7) target bundleno = 431 (0x1af), region = 32 }
  0x2b   : > { %806 = dma.done.wait (%p1013_p9), [#allocation3], 1024  }
  0x2c   : > { %808 = vsyncadd (%p1013_p9), [#allocation3], 4294966272  ;;  %p193_p3 = scmp.lt.s32.totalorder %s811_s12, 1  ;;  %v824_v0 = vmov 0   ;;  %s825_s11 = smov 127   ;;  %vm383_vm0 = vcmask 523264  }
  0x2d   : > { %396 = vmatprep.subr.bf16.mxu0 %v824_v0  ;;  %639 = vmatprep.subr.bf16.mxu1 %v824_v0  ;;  %s826_s15 = smov 126   ;;  %v751_v17 = vld [vmem:[%s1003_s1 + $0x4] ss:$8 sps:$4 sm:$0xff]   ;;  %v301_v21 = vld [vmem:[#allocation2 + $0x10] sm:$0xff]  ;;  %v302_v22 = vld [vmem:[#allocation2 + $0x18] sm:$0xff]  ;;  %vm493_vm1 = vcmask 125952  }
  0x2e   : > { %s1019_s12 = smov (!%p193_p3, %s811_s12), 1  ;;  %744 = vset.pattern.permute.xlu1 %v824_v0  ;;  %743 = vset.pattern.permute.xlu0 %v824_v0  ;;  %v754_v18 = vld [vmem:[%s1003_s1 + $0x24] ss:$8 sps:$4 sm:$0xff]   ;;  %v305_v25 = vld [vmem:[#allocation2 + $0x30] sm:$0xff]  ;;  %v306_v26 = vld [vmem:[#allocation2 + $0x38] sm:$0xff] }
  0x2f   : > { %s629_s7 = sshll.u32 %s1019_s12, 5  ;;  %615 = vmatprep.mubr.msk.bf16.mxu0 %vm383_vm0, %v751_v17  ;;  %617 = vmatprep.mubr.msk.bf16.mxu1 %vm383_vm0, %v754_v18  ;;  %v300_v19 = vld [vmem:[#allocation2 + $0x8] sm:$0xff]  ;;  %v299_v20 = vld [vmem:[#allocation2] sm:$0xff]  ;;  %v755_v61 = vld [vmem:[%s1003_s1 + $0x14] ss:$8 sps:$4 sm:$0xff]  }
  0x30   : > { %s197_s10 = scalar_lea.vmem %s1002_s0, %s629_s7  ;;  %v303_v23 = vld [vmem:[#allocation2 + $0x20] sm:$0xff]  ;;  %v304_v24 = vld [vmem:[#allocation2 + $0x28] sm:$0xff]  ;;  %v757_v62 = vld [vmem:[%s1003_s1 + $0x34] ss:$8 sps:$4 sm:$0xff]   ;;  %s975_s9 = scalar_lea.vmem %s1005_s3, %s629_s7 }
  0x31   : > { %v207_v1 = vld [vmem:[%s197_s10] sm:$0xff]   ;;  %v209_v2 = vld [vmem:[%s197_s10 + $0x8] sm:$0xff]   ;;  %v211_v3 = vld [vmem:[%s197_s10 + $0x10] sm:$0xff]  }
  0x32   : > { %v215_v4 = vunpack.c.l.bf16 %v207_v1  ;;  %v216_v5 = vunpack.c.h.bf16 %v207_v1  ;;  %v217_v6 = vunpack.c.l.bf16 %v209_v2  ;;  %v218_v7 = vunpack.c.h.bf16 %v209_v2  ;;  %v213_v8 = vld [vmem:[%s197_s10 + $0x18] sm:$0xff]   ;;  %397 = vmatpush1.bf16.msra.mxu0 %v207_v1  ;;  %651 = vmatpush1.bf16.msra.mxu1 %v207_v1  ;;  %v749_v59 = vld [vmem:[%s1003_s1] ss:$8 sps:$4 sm:$0xff]  }
  0x33   : > { %v219_v9 = vunpack.c.l.bf16 %v211_v3  ;;  %v220_v10 = vunpack.c.h.bf16 %v211_v3  ;;  %v221_v11 = vunpack.c.l.bf16 %v213_v8  ;;  %v222_v12 = vunpack.c.h.bf16 %v213_v8  ;;  %398 = vmatprep.subr.bf16.mxu0 %v824_v0  ;;  %640 = vmatprep.subr.bf16.mxu1 %v824_v0  ;;  %v752_v60 = vld [vmem:[%s1003_s1 + $0x20] ss:$8 sps:$4 sm:$0xff]   ;;  %v759_v63 = vld [vmem:[%s1003_s1 + $0x10] ss:$8 sps:$4 sm:$0xff]  }
  0x34   : > { %v703_v13 = vpack.i.bf16 %v216_v5, %v215_v4  ;;  %v708_v15 = vpack.i.bf16 %v218_v7, %v217_v6 }
  0x35   : > { %v713_v14 = vpack.i.bf16 %v220_v10, %v219_v9  ;;  %v718_v16 = vpack.i.bf16 %v222_v12, %v221_v11 }
  0x36   : > { %704 = vrot.lane.b32.xlu0 %v703_v13, %s825_s11  ;;  %399 = vmatpush1.bf16.msra.mxu0 %v209_v2 }
  0x37   : > { %714 = vrot.lane.b32.xlu1 %v713_v14, %s825_s11  ;;  %652 = vmatpush1.bf16.msra.mxu1 %v209_v2 }
  0x38   : > { %400 = vmatprep.subr.bf16.mxu0 %v824_v0  ;;  %641 = vmatprep.subr.bf16.mxu1 %v824_v0 }
  0x3a   : > { %709 = vrot.lane.b32.xlu0 %v708_v15, %s825_s11  ;;  %401 = vmatpush1.bf16.msra.mxu0 %v211_v3 }
  0x3b   : > { %719 = vrot.lane.b32.xlu1 %v718_v16, %s825_s11  ;;  %653 = vmatpush1.bf16.msra.mxu1 %v211_v3 }
  0x3c   : > { %402 = vmatprep.subr.bf16.mxu0 %v824_v0  ;;  %642 = vmatprep.subr.bf16.mxu1 %v824_v0 }
  0x3e   : > { %724 = vrot.lane.b32.xlu0 %v703_v13, %s826_s15  ;;  %403 = vmatpush1.bf16.msra.mxu0 %v213_v8 }
  0x3f   : > { %729 = vrot.lane.b32.xlu1 %v708_v15, %s826_s15  ;;  %654 = vmatpush1.bf16.msra.mxu1 %v213_v8 }
  0x40   : > { %404 = vmatprep.subr.bf16.mxu0 %v824_v0  ;;  %643 = vmatprep.subr.bf16.mxu1 %v824_v0 }
  0x42   : > { %734 = vrot.lane.b32.xlu0 %v713_v14, %s826_s15 }
  0x43   : > { %739 = vrot.lane.b32.xlu1 %v718_v16, %s826_s15 }
  0x46   : > { %309 = vperm.xlu0 %743, %v299_v20  }
  0x47   : > { %314 = vperm.xlu1 %744, %v300_v19  }
  0x4a   : > { %324 = vperm.xlu0 %743, %v302_v22  }
  0x4b   : > { %319 = vperm.xlu1 %744, %v301_v21  }
  0x4e   : > { %334 = vperm.xlu0 %743, %v304_v24  }
  0x4f   : > { %329 = vperm.xlu1 %744, %v303_v23  }
  0x52   : > { %344 = vperm.xlu0 %743, %v306_v26  }
  0x53   : > { %339 = vperm.xlu1 %744, %v305_v25  }
  0xa8   : > { %v705_v27 = vpop.permute.xlu0 %704 }
  0xa9   : > { %v707_v28 = vunpack.i.h.bf16 %v705_v27  ;;  %v706_v29 = vunpack.i.l.bf16 %v705_v27  ;;  %v715_v30 = vpop.permute.xlu1 %714 }
  0xaa   : > { %v717_v35 = vunpack.i.h.bf16 %v715_v30  ;;  %v716_v36 = vunpack.i.l.bf16 %v715_v30 }
  0xab   : > { %v283_v31 = vpack.c.bf16 %v707_v28, %v706_v29 }
  0xac   : > { %v710_v32 = vpop.permute.xlu0 %709  ;;  %v285_v39 = vpack.c.bf16 %v717_v35, %v716_v36 }
  0xad   : > { %v712_v33 = vunpack.i.h.bf16 %v710_v32  ;;  %v711_v34 = vunpack.i.l.bf16 %v710_v32  ;;  %405 = vmatpush1.bf16.msra.mxu0 %v283_v31  ;;  %655 = vmatpush1.bf16.msra.mxu1 %v283_v31  ;;  %v720_v37 = vpop.permute.xlu1 %719 }
  0xae   : > { %406 = vmatprep.subr.bf16.mxu0 %v824_v0  ;;  %644 = vmatprep.subr.bf16.mxu1 %v824_v0  ;;  %v722_v40 = vunpack.i.h.bf16 %v720_v37  ;;  %v721_v41 = vunpack.i.l.bf16 %v720_v37 }
  0xaf   : > { %v284_v38 = vpack.c.bf16 %v712_v33, %v711_v34 }
  0xb0   : > { %v725_v42 = vpop.permute.xlu0 %724  ;;  %v286_v43 = vpack.c.bf16 %v722_v40, %v721_v41 }
  0xb1   : > { %407 = vmatpush1.bf16.msra.mxu0 %v284_v38  ;;  %656 = vmatpush1.bf16.msra.mxu1 %v284_v38  ;;  %v727_v44 = vunpack.i.h.bf16 %v725_v42  ;;  %v726_v45 = vunpack.i.l.bf16 %v725_v42  ;;  %v730_v46 = vpop.permute.xlu1 %729 }
  0xb2   : > { %408 = vmatprep.subr.bf16.mxu0 %v824_v0  ;;  %645 = vmatprep.subr.bf16.mxu1 %v824_v0  ;;  %v732_v48 = vunpack.i.h.bf16 %v730_v46  ;;  %v731_v49 = vunpack.i.l.bf16 %v730_v46 }
  0xb3   : > { %v287_v47 = vpack.c.bf16 %v727_v44, %v726_v45 }
  0xb4   : > { %v735_v50 = vpop.permute.xlu0 %734  ;;  %v288_v51 = vpack.c.bf16 %v732_v48, %v731_v49 }
  0xb5   : > { %409 = vmatpush1.bf16.msra.mxu0 %v285_v39  ;;  %657 = vmatpush1.bf16.msra.mxu1 %v285_v39  ;;  %v737_v52 = vunpack.i.h.bf16 %v735_v50  ;;  %v736_v53 = vunpack.i.l.bf16 %v735_v50  ;;  %v740_v54 = vpop.permute.xlu1 %739 }
  0xb6   : > { %410 = vmatprep.subr.bf16.mxu0 %v824_v0  ;;  %646 = vmatprep.subr.bf16.mxu1 %v824_v0  ;;  %v742_v56 = vunpack.i.h.bf16 %v740_v54  ;;  %v741_v57 = vunpack.i.l.bf16 %v740_v54 }
  0xb7   : > { %v289_v55 = vpack.c.bf16 %v737_v52, %v736_v53 }
  0xb8   : > { %v290_v58 = vpack.c.bf16 %v742_v56, %v741_v57 }
  0xb9   : > { %411 = vmatpush1.bf16.msra.mxu0 %v286_v43  ;;  %658 = vmatpush1.bf16.msra.mxu1 %v286_v43 }
  0xba   : > { %412 = vmatprep.subr.bf16.mxu0 %v824_v0  ;;  %647 = vmatprep.subr.bf16.mxu1 %v824_v0 }
  0xbd   : > { %413 = vmatpush1.bf16.msra.mxu0 %v287_v47  ;;  %659 = vmatpush1.bf16.msra.mxu1 %v287_v47 }
  0xbe   : > { %414 = vmatprep.subr.bf16.mxu0 %v824_v0  ;;  %648 = vmatprep.subr.bf16.mxu1 %v824_v0 }
  0xc1   : > { %415 = vmatpush1.bf16.msra.mxu0 %v288_v51  ;;  %660 = vmatpush1.bf16.msra.mxu1 %v288_v51 }
  0xc2   : > { %416 = vmatprep.subr.bf16.mxu0 %v824_v0  ;;  %649 = vmatprep.subr.bf16.mxu1 %v824_v0 }
  0xc5   : > { %417 = vmatpush1.bf16.msra.mxu0 %v289_v55  ;;  %661 = vmatpush1.bf16.msra.mxu1 %v289_v55  ;;  %v310_v2 = vpop.permute.xlu0 %309 }
  0xc6   : > { %418 = vmatprep.subr.bf16.mxu0 %v824_v0  ;;  %650 = vmatprep.subr.bf16.mxu1 %v824_v0  ;;  %v760_v0 = vld [vmem:[%s1003_s1 + $0x30] ss:$8 sps:$4 sm:$0xff]   ;;  %v315_v1 = vpop.permute.xlu1 %314 }
  0xc9   : > { %419 = vmatpush1.bf16.msra.mxu0 %v290_v58  ;;  %662 = vmatpush1.bf16.msra.mxu1 %v290_v58  ;;  %v325_v4 = vpop.permute.xlu0 %324 }
  0xca   : > { %v320_v3 = vpop.permute.xlu1 %319 }
  0xcc   : > { %429 = vmatmul.mubr.bf16.vlgmr.msra.gmra.mrb[0].mxu0 %v749_v59  ;;  %445 = vmatmul.mubr.bf16.vlgmr.msra.gmra.mrb[0].mxu1 %v752_v60 }
  0xcd   : > { %616 = vmatprep.mubr.msk.bf16.mxu0 %vm383_vm0, %v755_v61  ;;  %618 = vmatprep.mubr.msk.bf16.mxu1 %vm383_vm0, %v757_v62  ;;  %v335_v6 = vpop.permute.xlu0 %334 }
  0xce   : > { %v330_v5 = vpop.permute.xlu1 %329 }
  0xd1   : > { %v345_v24 = vpop.permute.xlu0 %344 }
  0xd2   : > { %v340_v23 = vpop.permute.xlu1 %339 }
  0xd4   : > { %437 = vmatmul.mubr.bf16.gmra.mrb[4].mxu0 %v759_v63  ;;  %453 = vmatmul.mubr.bf16.gmra.mrb[4].mxu1 %v760_v0 }
 0x19f   : > { %v430_v7 = vpop.f32.mrb[0].mxu0  ;;  %v446_v8 = vpop.f32.mrb[0].mxu1 }
 0x1a0   : > { %v431_v9 = vadd.f32 %v430_v7, %v310_v2  ;;  %v447_v10 = vadd.f32 %v446_v8, %v330_v5  ;;  %v432_v11 = vpop.f32.mrb[1].mxu0  ;;  %v448_v12 = vpop.f32.mrb[1].mxu1 }
 0x1a1   : > { %v433_v13 = vpop.f32.mrb[2].mxu0  ;;  %v449_v14 = vpop.f32.mrb[2].mxu1 }
 0x1a2   : > { %v631_v15 = vpack.c.bf16 %v431_v9, %v431_v9  ;;  %v635_v16 = vpack.c.bf16 %v447_v10, %v447_v10  ;;  %v434_v17 = vadd.f32 %v433_v13, %v315_v1  ;;  %v450_v18 = vadd.f32 %v449_v14, %v335_v6  ;;  %v435_v19 = vpop.f32.mrb[3].mxu0  ;;  %v451_v20 = vpop.f32.mrb[3].mxu1 }
 0x1a4   : > { %494 = vst.msk [vmem:[%s975_s9] sm:$0xf] %vm493_vm1, %v631_v15  ;;  %498 = vst.msk [vmem:[%s975_s9 + $0x10] sm:$0xf] %vm493_vm1, %v635_v16  ;;  %v632_v21 = vpack.c.bf16 %v434_v17, %v434_v17  ;;  %v636_v22 = vpack.c.bf16 %v450_v18, %v450_v18 }
 0x1a6   : > { %495 = vst.msk [vmem:[%s975_s9 + $0x4] sm:$0xf] %vm493_vm1, %v632_v21  ;;  %499 = vst.msk [vmem:[%s975_s9 + $0x14] sm:$0xf] %vm493_vm1, %v636_v22 }
 0x1a7   : > { %v438_v25 = vpop.f32.mrb[4].mxu0  ;;  %v454_v26 = vpop.f32.mrb[4].mxu1 }
 0x1a8   : > { %v439_v27 = vadd.f32 %v438_v25, %v320_v3  ;;  %v455_v28 = vadd.f32 %v454_v26, %v340_v23  ;;  %v440_v29 = vpop.f32.mrb[5].mxu0  ;;  %v456_v30 = vpop.f32.mrb[5].mxu1 }
 0x1a9   : > { %v441_v31 = vpop.f32.mrb[6].mxu0  ;;  %v457_v32 = vpop.f32.mrb[6].mxu1 }
 0x1aa   : > { %v633_v33 = vpack.c.bf16 %v439_v27, %v439_v27  ;;  %v637_v34 = vpack.c.bf16 %v455_v28, %v455_v28  ;;  %v442_v35 = vadd.f32 %v441_v31, %v325_v4  ;;  %v458_v36 = vadd.f32 %v457_v32, %v345_v24  ;;  %v443_v37 = vpop.f32.mrb[7].mxu0  ;;  %v459_v38 = vpop.f32.mrb[7].mxu1 }
 0x1ac   : > { %496 = vst.msk [vmem:[%s975_s9 + $0x8] sm:$0xf] %vm493_vm1, %v633_v33  ;;  %500 = vst.msk [vmem:[%s975_s9 + $0x18] sm:$0xf] %vm493_vm1, %v637_v34  ;;  %v634_v39 = vpack.c.bf16 %v442_v35, %v442_v35  ;;  %v638_v40 = vpack.c.bf16 %v458_v36, %v458_v36 }
 0x1ae   : > { %497 = vst.msk [vmem:[%s975_s9 + $0xc] sm:$0xf] %vm493_vm1, %v634_v39  ;;  %501 = vst.msk [vmem:[%s975_s9 + $0x1c] sm:$0xf] %vm493_vm1, %v638_v40 }
 0x1af PF: > { %s14_s14 = sadd.s32 1, %s819_s14   ;;  %s1014_s12 = smov %s815_s13 }
 0x1b0   : > { %p11_p4 = scmp.ge.s32.totalorder %s14_s14, 4   ;;  %s1015_s13 = smov %s1017_s16 }
 0x1b2   :  { %13 = sbr.rel (!%p11_p4) target bundleno = 2 (0x2), region = 67 }
 0x1b9   :  { %529 = vsyncpa [#allocation3], 1 }
 0x1ba   :  { %531 = vsyncpa [#allocation3 + $0x1], 1 }

// kernel: forward.14
= control target key start
LH: loop header
LB: loop body
LE: loop exit
PB: predicated region body
PF: predicated region fallthrough
CT: control target
= control target key end

     0   :  { %8 = vsyncpa [#allocation3], 0  ;;  %s1033_s0 = inlined_call_operand.vmem [shape: bf16[2,16,22], index: 0, kind: input, shape index: {}]   ;;  %s1034_s1 = inlined_call_operand.hbm [shape: bf16[64,112], index: 1, kind: input, shape index: {}]   ;;  %s1035_s2 = inlined_call_operand.hbm [shape: f32[64,1], index: 2, kind: input, shape index: {}]   ;;  %s1036_s3 = inlined_call_operand.vmem [shape: bf16[2,64,16], index: 3, kind: output, shape index: {}]  }
   0x1   :  { %9 = vsyncpa [#allocation5], 0  ;;  %s894_s12 = smov 0   ;;  %s896_s13 = smov 0  }
   0x2   :  { %s898_s14 = smov 0  }
   0x3 LB: > { %s590_s15 = sadd.s32 4294967295, %s859_s14   ;;  %s27_s16 = sadd.s32 1, %s855_s13  ;;  %s859_s14 = sphi %s898_s14, %s15_s14   ;;  %s855_s13 = sphi %s896_s13, %s1046_s13   ;;  %s851_s12 = sphi %s894_s12, %s1045_s12  }
   0x4   : > { %p29_p0 = scmp.ge.s32.totalorder %s27_s16, 2  ;;  %p592_p1 = scmp.ge.s32.totalorder %s859_s14, 1 }
   0x5   : > { %p128_p2 = scmp.lt.s32.totalorder %s859_s14, 3  ;;  %p919_p4 = scmp.eq.s32.totalorder %s590_s15, 0 }
   0x6   : > { %s1048_s16 = smov (%p29_p0, %s27_s16), 0  ;;  %s861_s19 = smov [#allocation2]  }
   0x7   : > { %p915_p3 = pnand %p592_p1, %p128_p2  ;;  %s140_s20 = sshll.u32 %s861_s19, 4  ;;  %s141_s20 = int_to_ptr.vmem [resolvable:$true] %s140_s20 }
   0x8   : > { %s1041_s18 = scalar_select %p919_p4, 1, 0 }
   0x9   : > { %s1040_s17 = scalar_select %p915_p3, 1, 0 }
   0xa   : > { %p687_p5 = pneg %p915_p3  ;;  %s862_s22 = smov [#allocation4]  }
   0xb   : > { %s153_s23 = sshll.u32 %s862_s22, 4  ;;  %s773_s26 = scalar_lea.hbm %s1034_s1, 512  ;;  %s931_s23 = int_to_ptr.vmem [resolvable:$true] %s153_s23 }
   0xc   : > { %p927_p6 = pnand %p919_p4, %p687_p5  ;;  %p774_p7 = scmp.ne.s32.totalorder %s1034_s1, %s773_s26 }
   0xd   : > { %p780_p11 = scmp.lt.u32.totalorder %s773_s26, %s1034_s1 }
   0xe   : > { %p775_p8 = pneg %p927_p6 }
  0x10   : > { %p776_p9 = pnand %p775_p8, %p774_p7 }
  0x12   : > { %p777_p10 = pneg %p776_p9 }
  0x14   : > { %p782_p12 = pnand %p780_p11, %p777_p10 }
  0x16   : > { %785 = shalt.err (!%p782_p12)
}
  0x17   : > { %s786_s4 = scalar_lea.vmem %s141_s20, 512  ;;  %p794_p2 = scmp.lt.s32.totalorder %s141_s20, %s141_s20 }
  0x18   : > { %p787_p13 = scmp.ne.s32.totalorder %s141_s20, %s786_s4  ;;  %p795_p5 = scmp.lt.s32.totalorder %s786_s4, %s786_s4 }
  0x1a   : > { %p789_p0 = pnand %p787_p13, %p775_p8  ;;  %p796_p4 = por %p795_p5, %p794_p2 }
  0x1c   : > { %p790_p1 = pneg %p789_p0 }
  0x1e   : > { %p797_p3 = pnand %p796_p4, %p790_p1 }
  0x20   : > { %800 = shalt.err (!%p797_p3)
}
  0x21   : > { %s863_s5 = smov 64   ;;  %s864_s6 = smov 4  }
  0x22   : > { %690 = dma.hbm_to_vmem [thread:$0]  (!%p927_p6), %s1034_s1, 512, %s141_s20, [#allocation3], %s863_s5, %s863_s5, %s864_s6  }
  0x23   : > { %s801_s11 = scalar_lea.hbm %s1035_s2, 1024 }
  0x24   : > { %p802_p7 = scmp.ne.s32.totalorder %s1035_s2, %s801_s11  ;;  %p808_p9 = scmp.lt.u32.totalorder %s801_s11, %s1035_s2 }
  0x26   : > { %p804_p3 = pnand %p802_p7, %p775_p8 }
  0x28   : > { %p805_p4 = pneg %p804_p3 }
  0x2a   : > { %p810_p10 = pnand %p808_p9, %p805_p4 }
  0x2c   : > { %813 = shalt.err (!%p810_p10)
}
  0x2d   : > { %s814_s20 = scalar_lea.vmem %s931_s23, 1024  ;;  %p822_p0 = scmp.lt.s32.totalorder %s931_s23, %s931_s23 }
  0x2e   : > { %p815_p11 = scmp.ne.s32.totalorder %s931_s23, %s814_s20  ;;  %p823_p1 = scmp.lt.s32.totalorder %s814_s20, %s814_s20 }
  0x30   : > { %p817_p12 = pnand %p815_p11, %p775_p8  ;;  %p824_p2 = por %p823_p1, %p822_p0 }
  0x32   : > { %p818_p13 = pneg %p817_p12 }
  0x34   : > { %p825_p5 = pnand %p824_p2, %p818_p13 }
  0x36   : > { %828 = shalt.err (!%p825_p5)
}
  0x37   : > { %s865_s25 = smov 128   ;;  %s866_s26 = smov 8  }
  0x38   : > { %693 = dma.hbm_to_vmem [thread:$0]  (!%p927_p6), %s1035_s2, 1024, %s931_s23, [#allocation5], %s865_s25, %s865_s25, %s866_s26  }
  0x39   : > { %p1043_p7 = scmp.ne.s32.totalorder %s1040_s17, 0 }
  0x3a   : > { %p1044_p8 = scmp.ne.s32.totalorder (!%p1043_p7), %s1041_s18, 0 }
  0x3b   : > { %177 = sbr.rel (%p1043_p7) target bundleno = 450 (0x1c2), region = 32 }
  0x42   : > { %842 = dma.done.wait (%p1044_p8), [#allocation3], 512  }
  0x43   : > { %844 = vsyncadd (%p1044_p8), [#allocation3], 4294966784 }
  0x44   : > { %846 = dma.done.wait (%p1044_p8), [#allocation5], 1024  }
  0x45   : > { %848 = vsyncadd (%p1044_p8), [#allocation5], 4294966272  ;;  %p208_p3 = scmp.lt.s32.totalorder %s851_s12, 1  ;;  %s867_s18 = smov 127   ;;  %v768_v4 = vld [vmem:[#allocation2] sm:$0xff]   ;;  %vm347_vm0 = vcmask 916480  }
  0x46   : > { %s868_s30 = smov 125   ;;  %s869_s4 = smov 126   ;;  %v769_v5 = vld [vmem:[#allocation2 + $0x10] sm:$0xff]   ;;  %657 = vmatprep.mubr.msk.bf16.mxu0 %vm347_vm0, %v768_v4  ;;  %v280_v6 = vld [vmem:[#allocation4 + $0x8] sm:$0xff]  ;;  %v279_v7 = vld [vmem:[#allocation4] sm:$0xff]  ;;  %v873_v8 = vmov 0  }
  0x47   : > { %s1050_s12 = smov (!%p208_p3, %s851_s12), 1  ;;  %s870_s5 = smov 124   ;;  %661 = vmatprep.mubr.msk.bf16.mxu1 %vm347_vm0, %v769_v5  ;;  %766 = vset.pattern.permute.xlu1 %v873_v8  ;;  %v281_v9 = vld [vmem:[#allocation4 + $0x10] sm:$0xff]  ;;  %v282_v10 = vld [vmem:[#allocation4 + $0x18] sm:$0xff]  ;;  %v283_v11 = vld [vmem:[#allocation4 + $0x20] sm:$0xff]  ;;  %vm481_vm1 = vcmask 125952  }
  0x48   : > { %s622_s17 = sshll.u32 %s1050_s12, 3  ;;  %s871_s6 = smov 123   ;;  %765 = vset.pattern.permute.xlu0 %v873_v8  ;;  %v284_v12 = vld [vmem:[#allocation4 + $0x28] sm:$0xff]  ;;  %v285_v13 = vld [vmem:[#allocation4 + $0x30] sm:$0xff]  ;;  %v286_v14 = vld [vmem:[#allocation4 + $0x38] sm:$0xff] }
  0x49   : > { %s212_s29 = scalar_lea.vmem %s1033_s0, %s622_s17  ;;  %s872_s7 = smov 122   ;;  %v770_v39 = vld [vmem:[#allocation2 + $0x8] sm:$0xff]   ;;  %v771_v40 = vld [vmem:[#allocation2 + $0x18] sm:$0xff]  }
  0x4a   : > { %v222_v0 = vld [vmem:[%s212_s29] sm:$0xff]   ;;  %s623_s8 = sshll.u32 %s1050_s12, 5 }
  0x4b   : > { %v224_v1 = vunpack.c.l.bf16 %v222_v0  ;;  %v225_v2 = vunpack.c.h.bf16 %v222_v0  ;;  %643 = vmatprep.subr.bf16.mxu0 %v222_v0  ;;  %665 = vmatprep.subr.bf16.mxu1 %v222_v0  ;;  %s1006_s11 = scalar_lea.vmem %s1036_s3, %s623_s8 }
  0x4c   : > { %644 = vmatpush3.bf16.msra.mxu0 %v222_v0  ;;  %672 = vmatpush3.bf16.msra.mxu1 %v222_v0 }
  0x4d   : > { %v735_v3 = vpack.i.bf16 %v225_v2, %v224_v1 }
  0x4f   : > { %736 = vrot.lane.b32.xlu0 %v735_v3, %s867_s18  ;;  %746 = vrot.lane.b32.xlu1 %v735_v3, %s868_s30 }
  0x53   : > { %741 = vrot.lane.b32.xlu0 %v735_v3, %s869_s4  ;;  %751 = vrot.lane.b32.xlu1 %v735_v3, %s870_s5 }
  0x57   : > { %756 = vrot.lane.b32.xlu0 %v735_v3, %s871_s6  ;;  %761 = vrot.lane.b32.xlu1 %v735_v3, %s872_s7 }
  0x5b   : > { %294 = vperm.xlu1 %766, %v280_v6   ;;  %289 = vperm.xlu0 %765, %v279_v7  }
  0x5f   : > { %299 = vperm.xlu1 %766, %v281_v9   ;;  %304 = vperm.xlu0 %765, %v282_v10  }
  0x63   : > { %309 = vperm.xlu1 %766, %v283_v11   ;;  %314 = vperm.xlu0 %765, %v284_v12  }
  0x67   : > { %319 = vperm.xlu1 %766, %v285_v13   ;;  %324 = vperm.xlu0 %765, %v286_v14  }
  0xc1   : > { %v737_v15 = vpop.permute.xlu0 %736  ;;  %v747_v16 = vpop.permute.xlu1 %746 }
  0xc2   : > { %v739_v17 = vunpack.i.h.bf16 %v737_v15  ;;  %v738_v18 = vunpack.i.l.bf16 %v737_v15  ;;  %v749_v20 = vunpack.i.h.bf16 %v747_v16  ;;  %v748_v21 = vunpack.i.l.bf16 %v747_v16 }
  0xc4   : > { %v265_v19 = vpack.c.bf16 %v739_v17, %v738_v18  ;;  %v267_v27 = vpack.c.bf16 %v749_v20, %v748_v21 }
  0xc5   : > { %v742_v22 = vpop.permute.xlu0 %741  ;;  %v752_v23 = vpop.permute.xlu1 %751 }
  0xc6   : > { %v744_v24 = vunpack.i.h.bf16 %v742_v22  ;;  %v743_v25 = vunpack.i.l.bf16 %v742_v22  ;;  %645 = vmatprep.subr.bf16.mxu0 %v265_v19  ;;  %666 = vmatprep.subr.bf16.mxu1 %v265_v19  ;;  %v754_v28 = vunpack.i.h.bf16 %v752_v23  ;;  %v753_v29 = vunpack.i.l.bf16 %v752_v23 }
  0xc7   : > { %646 = vmatpush3.bf16.msra.mxu0 %v265_v19  ;;  %673 = vmatpush3.bf16.msra.mxu1 %v265_v19 }
  0xc8   : > { %v266_v26 = vpack.c.bf16 %v744_v24, %v743_v25  ;;  %v268_v31 = vpack.c.bf16 %v754_v28, %v753_v29 }
  0xc9   : > { %v757_v30 = vpop.permute.xlu0 %756  ;;  %v762_v34 = vpop.permute.xlu1 %761 }
  0xca   : > { %647 = vmatprep.subr.bf16.mxu0 %v266_v26  ;;  %667 = vmatprep.subr.bf16.mxu1 %v266_v26  ;;  %v759_v32 = vunpack.i.h.bf16 %v757_v30  ;;  %v758_v33 = vunpack.i.l.bf16 %v757_v30  ;;  %v764_v36 = vunpack.i.h.bf16 %v762_v34  ;;  %v763_v37 = vunpack.i.l.bf16 %v762_v34 }
  0xcb   : > { %648 = vmatpush3.bf16.msra.mxu0 %v266_v26  ;;  %674 = vmatpush3.bf16.msra.mxu1 %v266_v26 }
  0xcc   : > { %649 = vmatprep.subr.bf16.mxu0 %v267_v27  ;;  %668 = vmatprep.subr.bf16.mxu1 %v267_v27  ;;  %v269_v35 = vpack.c.bf16 %v759_v32, %v758_v33  ;;  %v270_v38 = vpack.c.bf16 %v764_v36, %v763_v37 }
  0xcf   : > { %650 = vmatpush3.bf16.msra.mxu0 %v267_v27  ;;  %675 = vmatpush3.bf16.msra.mxu1 %v267_v27 }
  0xd0   : > { %651 = vmatprep.subr.bf16.mxu0 %v268_v31  ;;  %669 = vmatprep.subr.bf16.mxu1 %v268_v31 }
  0xd3   : > { %652 = vmatpush3.bf16.msra.mxu0 %v268_v31  ;;  %676 = vmatpush3.bf16.msra.mxu1 %v268_v31 }
  0xd4   : > { %653 = vmatprep.subr.bf16.mxu0 %v269_v35  ;;  %670 = vmatprep.subr.bf16.mxu1 %v269_v35 }
  0xd7   : > { %654 = vmatpush3.bf16.msra.mxu0 %v269_v35  ;;  %677 = vmatpush3.bf16.msra.mxu1 %v269_v35 }
  0xd8   : > { %655 = vmatprep.subr.bf16.mxu0 %v270_v38  ;;  %671 = vmatprep.subr.bf16.mxu1 %v270_v38 }
  0xda   : > { %v295_v41 = vpop.permute.xlu1 %294  ;;  %v290_v42 = vpop.permute.xlu0 %289 }
  0xdb   : > { %656 = vmatpush3.bf16.msra.mxu0 %v270_v38  ;;  %678 = vmatpush3.bf16.msra.mxu1 %v270_v38 }
  0xde   : > { %658 = vmatmul.mubr.msk.bf16.vlgmr.msra.gmra.mrb[0].mxu0 %vm347_vm0, %v770_v39  ;;  %662 = vmatmul.mubr.msk.bf16.vlgmr.msra.gmra.mrb[0].mxu1 %vm347_vm0, %v771_v40  ;;  %v300_v43 = vpop.permute.xlu1 %299  ;;  %v305_v44 = vpop.permute.xlu0 %304 }
  0xe2   : > { %v310_v45 = vpop.permute.xlu1 %309  ;;  %v315_v46 = vpop.permute.xlu0 %314 }
  0xe6   : > { %v320_v47 = vpop.permute.xlu1 %319  ;;  %v325_v60 = vpop.permute.xlu0 %324 }
 0x1b1   : > { %v659_v48 = vpop.f32.mrb[0].mxu0  ;;  %v663_v49 = vpop.f32.mrb[0].mxu1 }
 0x1b2   : > { %v403_v50 = vadd.f32 %v659_v48, %v300_v43  ;;  %v419_v51 = vadd.f32 %v663_v49, %v320_v47  ;;  %v394_v52 = vpop.f32.mrb[1].mxu0  ;;  %v410_v53 = vpop.f32.mrb[1].mxu1 }
 0x1b3   : > { %v395_v54 = vadd.f32 %v394_v52, %v290_v42  ;;  %v411_v55 = vadd.f32 %v410_v53, %v310_v45  ;;  %v660_v56 = vpop.f32.mrb[2].mxu0  ;;  %v664_v57 = vpop.f32.mrb[2].mxu1 }
 0x1b4   : > { %vm427_vm2 = vcmp.ge.f32.partialorder %v403_v50, 0.0  ;;  %v435_v58 = vmul.f32 0.2, %v403_v50  ;;  %vm431_vm3 = vcmp.ge.f32.partialorder %v419_v51, 0.0  ;;  %v439_v59 = vmul.f32 0.2, %v419_v51 }
 0x1b5   : > { %vm425_vm4 = vcmp.ge.f32.partialorder %v395_v54, 0.0  ;;  %v433_v61 = vmul.f32 0.2, %v395_v54  ;;  %vm429_vm5 = vcmp.ge.f32.partialorder %v411_v55, 0.0  ;;  %v437_v62 = vmul.f32 0.2, %v411_v55 }
 0x1b6   : > { %v443_v63 = vsel %vm427_vm2, %v403_v50, %v435_v58  ;;  %v447_v0 = vsel %vm431_vm3, %v419_v51, %v439_v59  ;;  %v406_v1 = vadd.f32 %v660_v56, %v305_v44  ;;  %v422_v2 = vadd.f32 %v664_v57, %v325_v60  ;;  %v397_v3 = vpop.f32.mrb[3].mxu0  ;;  %v413_v4 = vpop.f32.mrb[3].mxu1 }
 0x1b7   : > { %v626_v5 = vpack.c.bf16 %v443_v63, %v443_v63  ;;  %v630_v6 = vpack.c.bf16 %v447_v0, %v447_v0  ;;  %v441_v7 = vsel %vm425_vm4, %v395_v54, %v433_v61  ;;  %v445_v8 = vsel %vm429_vm5, %v411_v55, %v437_v62 }
 0x1b8   : > { %v624_v9 = vpack.c.bf16 %v441_v7, %v441_v7  ;;  %v628_v10 = vpack.c.bf16 %v445_v8, %v445_v8  ;;  %vm428_vm6 = vcmp.ge.f32.partialorder %v406_v1, 0.0  ;;  %v436_v11 = vmul.f32 0.2, %v406_v1 }
 0x1b9   : > { %484 = vst.msk [vmem:[%s1006_s11 + $0x8] sm:$0xf] %vm481_vm1, %v626_v5  ;;  %488 = vst.msk [vmem:[%s1006_s11 + $0x18] sm:$0xf] %vm481_vm1, %v630_v6  ;;  %vm432_vm7 = vcmp.ge.f32.partialorder %v422_v2, 0.0  ;;  %v398_v13 = vadd.f32 %v397_v3, %v295_v41  ;;  %v414_v14 = vadd.f32 %v413_v4, %v315_v46 }
 0x1ba   : > { %v440_v12 = vmul.f32 0.2, %v422_v2  ;;  %482 = vst.msk [vmem:[%s1006_s11] sm:$0xf] %vm481_vm1, %v624_v9  ;;  %486 = vst.msk [vmem:[%s1006_s11 + $0x10] sm:$0xf] %vm481_vm1, %v628_v10  ;;  %v444_v15 = vsel %vm428_vm6, %v406_v1, %v436_v11 }
 0x1bb   : > { %v627_v16 = vpack.c.bf16 %v444_v15, %v444_v15  ;;  %vm426_vm8 = vcmp.ge.f32.partialorder %v398_v13, 0.0  ;;  %v434_v18 = vmul.f32 0.2, %v398_v13  ;;  %vm430_vm9 = vcmp.ge.f32.partialorder %v414_v14, 0.0 }
 0x1bc   : > { %v448_v17 = vsel %vm432_vm7, %v422_v2, %v440_v12  ;;  %v438_v20 = vmul.f32 0.2, %v414_v14 }
 0x1bd   : > { %v631_v19 = vpack.c.bf16 %v448_v17, %v448_v17  ;;  %485 = vst.msk [vmem:[%s1006_s11 + $0xc] sm:$0xf] %vm481_vm1, %v627_v16  ;;  %v442_v21 = vsel %vm426_vm8, %v398_v13, %v434_v18 }
 0x1be   : > { %v625_v22 = vpack.c.bf16 %v442_v21, %v442_v21  ;;  %v446_v23 = vsel %vm430_vm9, %v414_v14, %v438_v20 }
 0x1bf   : > { %489 = vst.msk [vmem:[%s1006_s11 + $0x1c] sm:$0xf] %vm481_vm1, %v631_v19  ;;  %v629_v24 = vpack.c.bf16 %v446_v23, %v446_v23 }
 0x1c0   : > { %483 = vst.msk [vmem:[%s1006_s11 + $0x4] sm:$0xf] %vm481_vm1, %v625_v22 }
 0x1c1   : > { %487 = vst.msk [vmem:[%s1006_s11 + $0x14] sm:$0xf] %vm481_vm1, %v629_v24 }
 0x1c2 PF: > { %s15_s14 = sadd.s32 1, %s859_s14   ;;  %s1045_s12 = smov %s855_s13 }
 0x1c3   : > { %p12_p6 = scmp.ge.s32.totalorder %s15_s14, 4   ;;  %s1046_s13 = smov %s1048_s16 }
 0x1c5   :  { %14 = sbr.rel (!%p12_p6) target bundleno = 3 (0x3), region = 71 }
 0x1cc   :  { %517 = vsyncpa [#allocation3], 1 }
 0x1cd   :  { %519 = vsyncpa [#allocation3 + $0x1], 1 }
 0x1ce   :  { %520 = vsyncpa [#allocation5], 1 }

// kernel: forward.16
= control target key start
LH: loop header
LB: loop body
LE: loop exit
PB: predicated region body
PF: predicated region fallthrough
CT: control target
= control target key end

     0   :  { %13 = vsyncpa [#allocation3], 0  ;;  %s1710_s0 = inlined_call_operand.vmem [shape: bf16[2,32,34], index: 0, kind: input, shape index: {}]   ;;  %s1711_s1 = inlined_call_operand.hbm [shape: bf16[32,96], index: 1, kind: input, shape index: {}]   ;;  %s1712_s2 = inlined_call_operand.hbm [shape: f32[32,1], index: 2, kind: input, shape index: {}]   ;;  %s1713_s3 = inlined_call_operand.hbm [shape: bf16[32,32], index: 3, kind: input, shape index: {}]   ;;  %s1714_s4 = inlined_call_operand.hbm [shape: f32[32,1], index: 4, kind: input, shape index: {}]   ;;  %s1715_s5 = inlined_call_operand.hbm [shape: bf16[32,32], index: 5, kind: input, shape index: {}]   ;;  %s1716_s6 = inlined_call_operand.hbm [shape: f32[32,1], index: 6, kind: input, shape index: {}]   ;;  %s1717_s7 = inlined_call_operand.vmem [shape: f32[32,1], index: 7, kind: input, shape index: {}]   ;;  %s1718_s8 = inlined_call_operand.vmem [shape: bf16[2,32,32], index: 8, kind: output, shape index: {}]  }
   0x1   :  { %14 = vsyncpa [#allocation5], 0 }
   0x2   :  { %15 = vsyncpa [#allocation8], 0 }
   0x3   :  { %16 = vsyncpa [#allocation11], 0  ;;  %s1456_s27 = smov 0   ;;  %s1458_s28 = smov 0  }
   0x4   :  { %s1460_s29 = smov 0  }
   0x5 LB: > { %s1398_s30 = smov [#allocation4]   ;;  %s971_s10 = sadd.s32 4294967295, %s1396_s29   ;;  %s1396_s29 = sphi %s1460_s29, %s22_s29   ;;  %s1392_s28 = sphi %s1458_s28, %s1733_s28   ;;  %s1388_s27 = sphi %s1456_s27, %s1732_s27  }
   0x6   : > { %s265_s9 = sshll.u32 %s1398_s30, 4  ;;  %p973_p0 = scmp.ge.s32.totalorder %s1396_s29, 1  ;;  %s1478_s9 = int_to_ptr.vmem [resolvable:$true] %s265_s9 }
   0x7   : > { %p240_p1 = scmp.lt.s32.totalorder %s1396_s29, 3  ;;  %p1474_p2 = scmp.eq.s32.totalorder %s971_s10, 0 }
   0x8   : > { %s1399_s13 = smov [#allocation7]   ;;  %s34_s16 = sadd.s32 1, %s1392_s28 }
   0x9   : > { %s1724_s11 = scalar_select %p1474_p2, 1, 0 }
   0xa   : > { %p1480_p3 = pnand %p973_p0, %p240_p1  ;;  %s291_s14 = sshll.u32 %s1399_s13, 4  ;;  %s1486_s14 = int_to_ptr.vmem [resolvable:$true] %s291_s14 }
   0xb   : > { %s1190_s19 = scalar_lea.hbm %s1712_s2, 512 }
   0xc   : > { %s1725_s12 = scalar_select %p1480_p3, 1, 0 }
   0xd   : > { %p1090_p4 = pneg %p1480_p3  ;;  %p1191_p6 = scmp.ne.s32.totalorder %s1712_s2, %s1190_s19 }
   0xe   : > { %p1197_p10 = scmp.lt.u32.totalorder %s1190_s19, %s1712_s2 }
   0xf   : > { %p1490_p5 = pnand %p1474_p2, %p1090_p4 }
  0x11   : > { %p1503_p7 = pneg %p1490_p5 }
  0x13   : > { %p1193_p8 = pnand %p1503_p7, %p1191_p6 }
  0x15   : > { %p1194_p9 = pneg %p1193_p8 }
  0x17   : > { %p1199_p11 = pnand %p1197_p10, %p1194_p9 }
  0x19   : > { %1202 = shalt.err (!%p1199_p11)
}
  0x1a   : > { %s1203_s25 = scalar_lea.vmem %s1478_s9, 512  ;;  %p1211_p1 = scmp.lt.s32.totalorder %s1478_s9, %s1478_s9 }
  0x1b   : > { %p1204_p12 = scmp.ne.s32.totalorder %s1478_s9, %s1203_s25  ;;  %p1212_p4 = scmp.lt.s32.totalorder %s1203_s25, %s1203_s25 }
  0x1d   : > { %p1206_p13 = pnand %p1204_p12, %p1503_p7  ;;  %p1213_p6 = por %p1212_p4, %p1211_p1 }
  0x1f   : > { %p1207_p0 = pneg %p1206_p13 }
  0x21   : > { %p1214_p8 = pnand %p1213_p6, %p1207_p0 }
  0x23   : > { %1217 = shalt.err (!%p1214_p8)
}
  0x24   : > { %s1722_s26 = smov 128   ;;  %s1723_s30 = smov 8  }
  0x25   : > { %1096 = dma.hbm_to_vmem [thread:$0]  (!%p1490_p5), %s1712_s2, 512, %s1478_s9, [#allocation5], %s1722_s26, %s1722_s26, %s1723_s30  }
  0x26   : > { %s1218_s19 = scalar_lea.hbm %s1714_s4, 512 }
  0x27   : > { %p1219_p9 = scmp.ne.s32.totalorder %s1714_s4, %s1218_s19  ;;  %p1225_p12 = scmp.lt.u32.totalorder %s1218_s19, %s1714_s4 }
  0x29   : > { %p1221_p10 = pnand %p1219_p9, %p1503_p7 }
  0x2b   : > { %p1222_p11 = pneg %p1221_p10 }
  0x2d   : > { %p1227_p13 = pnand %p1225_p12, %p1222_p11 }
  0x2f   : > { %1230 = shalt.err (!%p1227_p13)
}
  0x30   : > { %s1231_s9 = scalar_lea.vmem %s1486_s14, 512  ;;  %p1239_p6 = scmp.lt.s32.totalorder %s1486_s14, %s1486_s14 }
  0x31   : > { %p1232_p0 = scmp.ne.s32.totalorder %s1486_s14, %s1231_s9  ;;  %p1240_p8 = scmp.lt.s32.totalorder %s1231_s9, %s1231_s9 }
  0x33   : > { %p1234_p1 = pnand %p1232_p0, %p1503_p7  ;;  %p1241_p9 = por %p1240_p8, %p1239_p6 }
  0x35   : > { %p1235_p4 = pneg %p1234_p1 }
  0x37   : > { %p1242_p10 = pnand %p1241_p9, %p1235_p4 }
  0x39   : > { %1245 = shalt.err (!%p1242_p10)
}
  0x3a   : > { %1102 = dma.hbm_to_vmem [thread:$0]  (!%p1490_p5), %s1714_s4, 512, %s1486_s14, [#allocation8], %s1722_s26, %s1722_s26, %s1723_s30  }
  0x3b   : > { %p36_p11 = scmp.ge.s32.totalorder %s34_s16, 2  ;;  %s1402_s13 = smov [#allocation2]  }
  0x3c   : > { %s252_s17 = sshll.u32 %s1402_s13, 4  ;;  %s1246_s20 = scalar_lea.hbm %s1711_s1, 256  ;;  %s253_s17 = int_to_ptr.vmem [resolvable:$true] %s252_s17 }
  0x3d   : > { %s1735_s16 = smov (%p36_p11, %s34_s16), 0  ;;  %p1247_p12 = scmp.ne.s32.totalorder %s1711_s1, %s1246_s20 }
  0x3e   : > { %p1253_p1 = scmp.lt.u32.totalorder %s1246_s20, %s1711_s1 }
  0x3f   : > { %p1249_p13 = pnand %p1247_p12, %p1503_p7 }
  0x41   : > { %p1250_p0 = pneg %p1249_p13 }
  0x43   : > { %p1255_p4 = pnand %p1253_p1, %p1250_p0 }
  0x45   : > { %1258 = shalt.err (!%p1255_p4)
}
  0x46   : > { %s1259_s9 = scalar_lea.vmem %s253_s17, 256  ;;  %p1267_p10 = scmp.lt.s32.totalorder %s253_s17, %s253_s17 }
  0x47   : > { %p1260_p6 = scmp.ne.s32.totalorder %s253_s17, %s1259_s9  ;;  %p1268_p11 = scmp.lt.s32.totalorder %s1259_s9, %s1259_s9 }
  0x49   : > { %p1262_p8 = pnand %p1260_p6, %p1503_p7  ;;  %p1269_p2 = por %p1268_p11, %p1267_p10 }
  0x4b   : > { %p1263_p9 = pneg %p1262_p8 }
  0x4d   : > { %p1270_p3 = pnand %p1269_p2, %p1263_p9 }
  0x4f   : > { %1273 = shalt.err (!%p1270_p3)
}
  0x50   : > { %s1403_s25 = smov 64   ;;  %s1404_s10 = smov 4  }
  0x51   : > { %1093 = dma.hbm_to_vmem [thread:$0]  (!%p1490_p5), %s1711_s1, 256, %s253_s17, [#allocation3], %s1403_s25, %s1403_s25, %s1404_s10  }
  0x52   : > { %s1405_s19 = smov [#allocation6]   ;;  %s1406_s21 = smov [#allocation9]  }
  0x53   : > { %s278_s20 = sshll.u32 %s1405_s19, 4  ;;  %s304_s23 = sshll.u32 %s1406_s21, 4  ;;  %s279_s20 = int_to_ptr.vmem [resolvable:$true] %s278_s20  ;;  %s1580_s23 = int_to_ptr.vmem [resolvable:$true] %s304_s23 }
  0x54   : > { %s1274_s9 = scalar_lea.hbm %s1713_s3, 256 }
  0x55   : > { %p1275_p2 = scmp.ne.s32.totalorder %s1713_s3, %s1274_s9  ;;  %p1281_p13 = scmp.lt.u32.totalorder %s1274_s9, %s1713_s3 }
  0x57   : > { %p1277_p3 = pnand %p1275_p2, %p1503_p7 }
  0x59   : > { %p1278_p12 = pneg %p1277_p3 }
  0x5b   : > { %p1283_p0 = pnand %p1281_p13, %p1278_p12 }
  0x5d   : > { %1286 = shalt.err (!%p1283_p0)
}
  0x5e   : > { %s1287_s18 = scalar_lea.vmem %s279_s20, 256  ;;  %p1295_p8 = scmp.lt.s32.totalorder %s279_s20, %s279_s20 }
  0x5f   : > { %p1288_p1 = scmp.ne.s32.totalorder %s279_s20, %s1287_s18  ;;  %p1296_p9 = scmp.lt.s32.totalorder %s1287_s18, %s1287_s18 }
  0x61   : > { %p1290_p4 = pnand %p1288_p1, %p1503_p7  ;;  %p1297_p10 = por %p1296_p9, %p1295_p8 }
  0x63   : > { %p1291_p6 = pneg %p1290_p4 }
  0x65   : > { %p1298_p11 = pnand %p1297_p10, %p1291_p6 }
  0x67   : > { %1301 = shalt.err (!%p1298_p11)
}
  0x68   : > { %1099 = dma.hbm_to_vmem [thread:$0]  (!%p1490_p5), %s1713_s3, 256, %s279_s20, [#allocation5], %s1403_s25, %s1403_s25, %s1404_s10  }
  0x69   : > { %s1302_s14 = scalar_lea.hbm %s1715_s5, 256 }
  0x6a   : > { %p1303_p2 = scmp.ne.s32.totalorder %s1715_s5, %s1302_s14  ;;  %p1309_p13 = scmp.lt.u32.totalorder %s1302_s14, %s1715_s5 }
  0x6c   : > { %p1305_p3 = pnand %p1303_p2, %p1503_p7 }
  0x6e   : > { %p1306_p12 = pneg %p1305_p3 }
  0x70   : > { %p1311_p0 = pnand %p1309_p13, %p1306_p12 }
  0x72   : > { %1314 = shalt.err (!%p1311_p0)
}
  0x73   : > { %s1315_s20 = scalar_lea.vmem %s1580_s23, 256  ;;  %p1323_p8 = scmp.lt.s32.totalorder %s1580_s23, %s1580_s23 }
  0x74   : > { %p1316_p1 = scmp.ne.s32.totalorder %s1580_s23, %s1315_s20  ;;  %p1324_p9 = scmp.lt.s32.totalorder %s1315_s20, %s1315_s20 }
  0x76   : > { %p1318_p4 = pnand %p1316_p1, %p1503_p7  ;;  %p1325_p10 = por %p1324_p9, %p1323_p8 }
  0x78   : > { %p1319_p6 = pneg %p1318_p4 }
  0x7a   : > { %p1326_p11 = pnand %p1325_p10, %p1319_p6 }
  0x7c   : > { %1329 = shalt.err (!%p1326_p11)
}
  0x7d   : > { %1105 = dma.hbm_to_vmem [thread:$0]  (!%p1490_p5), %s1715_s5, 256, %s1580_s23, [#allocation8], %s1403_s25, %s1403_s25, %s1404_s10  }
  0x7e   : > { %s1407_s30 = smov [#allocation10]   ;;  %s1330_s24 = scalar_lea.hbm %s1716_s6, 512 }
  0x7f   : > { %s317_s19 = sshll.u32 %s1407_s30, 4  ;;  %p1331_p2 = scmp.ne.s32.totalorder %s1716_s6, %s1330_s24  ;;  %s318_s19 = int_to_ptr.vmem [resolvable:$true] %s317_s19 }
  0x80   : > { %p1337_p13 = scmp.lt.u32.totalorder %s1330_s24, %s1716_s6 }
  0x81   : > { %p1333_p3 = pnand %p1331_p2, %p1503_p7 }
  0x83   : > { %p1334_p12 = pneg %p1333_p3 }
  0x85   : > { %p1339_p0 = pnand %p1337_p13, %p1334_p12 }
  0x87   : > { %1342 = shalt.err (!%p1339_p0)
}
  0x88   : > { %s1343_s25 = scalar_lea.vmem %s318_s19, 512  ;;  %p1351_p8 = scmp.lt.s32.totalorder %s318_s19, %s318_s19 }
  0x89   : > { %p1344_p1 = scmp.ne.s32.totalorder %s318_s19, %s1343_s25  ;;  %p1352_p9 = scmp.lt.s32.totalorder %s1343_s25, %s1343_s25 }
  0x8b   : > { %p1346_p4 = pnand %p1344_p1, %p1503_p7  ;;  %p1353_p10 = por %p1352_p9, %p1351_p8 }
  0x8d   : > { %p1347_p6 = pneg %p1346_p4 }
  0x8f   : > { %p1354_p11 = pnand %p1353_p10, %p1347_p6 }
  0x91   : > { %1357 = shalt.err (!%p1354_p11)
}
  0x92   : > { %s1728_s10 = smov 8   ;;  %s1729_s23 = smov 128  }
  0x93   : > { %1108 = dma.hbm_to_vmem [thread:$0]  (!%p1490_p5), %s1716_s6, 512, %s318_s19, [#allocation11], %s1729_s23, %s1729_s23, %s1728_s10  }
  0x94   : > { %p1730_p2 = scmp.ne.s32.totalorder %s1725_s12, 0 }
  0x95   : > { %p1731_p7 = scmp.ne.s32.totalorder (!%p1730_p2), %s1724_s11, 0 }
  0x96   : > { %344 = sbr.rel (%p1730_p2) target bundleno = 766 (0x2fe), region = 52 }
  0x9d   : > { %1371 = dma.done.wait (%p1731_p7), [#allocation3], 256  }
  0x9e   : > { %1373 = vsyncadd (%p1731_p7), [#allocation3], 4294967040 }
  0x9f   : > { %1375 = dma.done.wait (%p1731_p7), [#allocation5], 768  }
  0xa0   : > { %1377 = vsyncadd (%p1731_p7), [#allocation5], 4294966528 }
  0xa1   : > { %1379 = dma.done.wait (%p1731_p7), [#allocation8], 768  }
  0xa2   : > { %1381 = vsyncadd (%p1731_p7), [#allocation8], 4294966528 }
  0xa3   : > { %1383 = dma.done.wait (%p1731_p7), [#allocation11], 512  }
  0xa4   : > { %1385 = vsyncadd (%p1731_p7), [#allocation11], 4294966784  ;;  %p401_p5 = scmp.lt.s32.totalorder %s1388_s27, 1  ;;  %v1408_v0 = vmov 0   ;;  %s1409_s11 = smov 126   ;;  %v1182_v19 = vld [vmem:[#allocation2] sm:$0xff]  }
  0xa5   : > { %1179 = vset.pattern.permute.xlu1 %v1408_v0  ;;  %1178 = vset.pattern.permute.xlu0 %v1408_v0  ;;  %s1410_s19 = smov 127   ;;  %vm617_vm4 = vcmask 785408   ;;  %v584_v20 = vld [vmem:[#allocation4 + $0x8] sm:$0xff]  ;;  %v583_v21 = vld [vmem:[#allocation4] sm:$0xff]  ;;  %v585_v22 = vld [vmem:[#allocation4 + $0x10] sm:$0xff]  ;;  %vm473_vm5 = vcmask 261120  }
  0xa6   : > { %s1737_s27 = smov (!%p401_p5, %s1388_s27), 1  ;;  %1054 = vmatprep.mubr.msk.bf16.mxu1 %vm617_vm4, %v1182_v19  ;;  %v586_v23 = vld [vmem:[#allocation4 + $0x18] sm:$0xff]  ;;  %v1184_v24 = vld [vmem:[#allocation9] sm:$0xff]   ;;  %v693_v27 = vld [vmem:[#allocation7 + $0x10] sm:$0xff]  ;;  %vm828_vm10 = vcmask 257024  }
  0xa7   : > { %s1012_s12 = sshll.u32 %s1737_s27, 4  ;;  %1038 = vmatprep.mubr.msk.bf16.mxu0 %vm473_vm5, %v1184_v24  ;;  %v691_v25 = vld [vmem:[#allocation7] sm:$0xff]  ;;  %v692_v26 = vld [vmem:[#allocation7 + $0x8] sm:$0xff]  ;;  %v694_v28 = vld [vmem:[#allocation7 + $0x18] sm:$0xff] }
  0xa8   : > { %s405_s30 = scalar_lea.vmem %s1710_s0, %s1012_s12  ;;  %v423_v29 = vld [vmem:[#allocation10] sm:$0xff]  ;;  %v424_v30 = vld [vmem:[#allocation10 + $0x8] sm:$0xff]  ;;  %v425_v31 = vld [vmem:[#allocation10 + $0x10] sm:$0xff]  ;;  %s413_s18 = scalar_lea.vmem %s1718_s8, %s1012_s12 }
  0xa9   : > { %v415_v1 = vld [vmem:[%s405_s30] sm:$0xff]   ;;  %v417_v2 = vld [vmem:[%s405_s30 + $0x8] sm:$0xff]   ;;  %v782_v35 = vld [vmem:[%s1717_s7 + $0x10] sm:$0xff] }
  0xaa   : > { %v529_v3 = vunpack.c.l.bf16 %v415_v1  ;;  %v530_v4 = vunpack.c.h.bf16 %v415_v1  ;;  %v531_v5 = vunpack.c.l.bf16 %v417_v2  ;;  %v532_v6 = vunpack.c.h.bf16 %v417_v2  ;;  %v426_v32 = vld [vmem:[#allocation10 + $0x18] sm:$0xff]  ;;  %v780_v33 = vld [vmem:[%s1717_s7] sm:$0xff]  ;;  %v783_v36 = vld [vmem:[%s1717_s7 + $0x18] sm:$0xff] }
  0xab   : > { %v781_v34 = vld [vmem:[%s1717_s7 + $0x8] sm:$0xff]  ;;  %v1186_v61 = vld [vmem:[#allocation6] sm:$0xff]  }
  0xac   : > { %vm533_vm0 = vcmp.ge.f32.partialorder %v529_v3, 0.0  ;;  %vm534_vm1 = vcmp.ge.f32.partialorder %v530_v4, 0.0  ;;  %v537_v7 = vmul.f32 0.2, %v529_v3  ;;  %v538_v8 = vmul.f32 0.2, %v530_v4 }
  0xad   : > { %vm535_vm2 = vcmp.ge.f32.partialorder %v531_v5, 0.0  ;;  %vm536_vm3 = vcmp.ge.f32.partialorder %v532_v6, 0.0  ;;  %v539_v9 = vmul.f32 0.2, %v531_v5  ;;  %v540_v10 = vmul.f32 0.2, %v532_v6 }
  0xae   : > { %v541_v11 = vsel %vm533_vm0, %v529_v3, %v537_v7  ;;  %v542_v12 = vsel %vm534_vm1, %v530_v4, %v538_v8  ;;  %v1183_v53 = vld [vmem:[#allocation2 + $0x8] sm:$0xff]  }
  0xaf   : > { %v1168_v13 = vpack.i.bf16 %v542_v12, %v541_v11  ;;  %v543_v14 = vsel %vm535_vm2, %v531_v5, %v539_v9  ;;  %v544_v15 = vsel %vm536_vm3, %v532_v6, %v540_v10  ;;  %v573_v16 = vpack.c.bf16 %v542_v12, %v541_v11  ;;  %v1185_v60 = vld [vmem:[#allocation9 + $0x8] sm:$0xff]  }
  0xb0   : > { %v574_v17 = vpack.c.bf16 %v544_v15, %v543_v14  ;;  %v1173_v18 = vpack.i.bf16 %v544_v15, %v543_v14 }
  0xb1   : > { %1169 = vrot.lane.b32.xlu1 %v1168_v13, %s1409_s11  ;;  %1159 = vrot.lane.b32.xlu0 %v1168_v13, %s1410_s19 }
  0xb2   : > { %1042 = vmatprep.subr.bf16.mxu1 %v573_v16 }
  0xb3   : > { %1043 = vmatpush3.bf16.msra.mxu1 %v573_v16  ;;  %v1187_v16 = vld [vmem:[#allocation6 + $0x8] sm:$0xff]  }
  0xb4   : > { %1044 = vmatprep.subr.bf16.mxu1 %v574_v17 }
  0xb5   : > { %1174 = vrot.lane.b32.xlu1 %v1173_v18, %s1409_s11  ;;  %1164 = vrot.lane.b32.xlu0 %v1173_v18, %s1410_s19 }
  0xb7   : > { %1045 = vmatpush3.bf16.msra.mxu1 %v574_v17 }
  0xb9   : > { %594 = vperm.xlu1 %1179, %v584_v20   ;;  %589 = vperm.xlu0 %1178, %v583_v21  }
  0xbd   : > { %599 = vperm.xlu1 %1179, %v585_v22   ;;  %604 = vperm.xlu0 %1178, %v586_v23  }
  0xc1   : > { %467 = vrot.lane.b32.xlu1 %v415_v1, %s1410_s19  ;;  %469 = vrot.lane.b32.xlu0 %v417_v2, %s1410_s19 }
  0xc5   : > { %697 = vperm.xlu1 %1179, %v691_v25   ;;  %702 = vperm.xlu0 %1178, %v692_v26  }
  0xc9   : > { %707 = vperm.xlu1 %1179, %v693_v27   ;;  %712 = vperm.xlu0 %1178, %v694_v28  }
  0xcd   : > { %429 = vperm.xlu1 %1179, %v423_v29   ;;  %434 = vperm.xlu0 %1178, %v424_v30  }
  0xd1   : > { %439 = vperm.xlu1 %1179, %v425_v31   ;;  %444 = vperm.xlu0 %1178, %v426_v32  }
  0xd5   : > { %786 = vperm.xlu1 %1179, %v780_v33   ;;  %791 = vperm.xlu0 %1178, %v781_v34  }
  0xd9   : > { %796 = vperm.xlu1 %1179, %v782_v35   ;;  %801 = vperm.xlu0 %1178, %v783_v36  }
 0x123   : > { %v1160_v37 = vpop.permute.xlu0 %1159  ;;  %v1170_v38 = vpop.permute.xlu1 %1169 }
 0x124   : > { %v1162_v39 = vunpack.i.h.bf16 %v1160_v37  ;;  %v1161_v40 = vunpack.i.l.bf16 %v1160_v37  ;;  %v1172_v42 = vunpack.i.h.bf16 %v1170_v38  ;;  %v1171_v43 = vunpack.i.l.bf16 %v1170_v38 }
 0x126   : > { %v575_v41 = vpack.c.bf16 %v1162_v39, %v1161_v40  ;;  %v577_v49 = vpack.c.bf16 %v1172_v42, %v1171_v43 }
 0x127   : > { %v1165_v44 = vpop.permute.xlu0 %1164  ;;  %v1175_v45 = vpop.permute.xlu1 %1174 }
 0x128   : > { %v1167_v46 = vunpack.i.h.bf16 %v1165_v44  ;;  %v1166_v47 = vunpack.i.l.bf16 %v1165_v44  ;;  %1046 = vmatprep.subr.bf16.mxu1 %v575_v41  ;;  %v1177_v50 = vunpack.i.h.bf16 %v1175_v45  ;;  %v1176_v51 = vunpack.i.l.bf16 %v1175_v45 }
 0x129   : > { %1047 = vmatpush3.bf16.msra.mxu1 %v575_v41 }
 0x12a   : > { %v576_v48 = vpack.c.bf16 %v1167_v46, %v1166_v47  ;;  %v578_v52 = vpack.c.bf16 %v1177_v50, %v1176_v51 }
 0x12c   : > { %1048 = vmatprep.subr.bf16.mxu1 %v576_v48 }
 0x12d   : > { %1049 = vmatpush3.bf16.msra.mxu1 %v576_v48 }
 0x12e   : > { %1050 = vmatprep.subr.bf16.mxu1 %v577_v49 }
 0x131   : > { %1051 = vmatpush3.bf16.msra.mxu1 %v577_v49 }
 0x132   : > { %1052 = vmatprep.subr.bf16.mxu1 %v578_v52 }
 0x135   : > { %1053 = vmatpush3.bf16.msra.mxu1 %v578_v52 }
 0x138   : > { %v595_v54 = vpop.permute.xlu1 %594  ;;  %1055 = vmatmul.mubr.msk.bf16.vlgmr.msra.gmra.mrb[0].mxu1 %vm617_vm4, %v1183_v53  ;;  %v590_v55 = vpop.permute.xlu0 %589 }
 0x13c   : > { %v600_v56 = vpop.permute.xlu1 %599  ;;  %v605_v57 = vpop.permute.xlu0 %604 }
 0x140   : > { %v468_v58 = vpop.permute.xlu1 %467  ;;  %v470_v59 = vpop.permute.xlu0 %469 }
 0x141   : > { %1034 = vmatprep.subr.bf16.mxu0 %v468_v58 }
 0x142   : > { %1035 = vmatpush3.bf16.msra.mxu0 %v468_v58 }
 0x143   : > { %1036 = vmatprep.subr.bf16.mxu0 %v470_v59 }
 0x144   : > { %v698_v21 = vpop.permute.xlu1 %697  ;;  %v703_v22 = vpop.permute.xlu0 %702 }
 0x146   : > { %1037 = vmatpush3.bf16.msra.mxu0 %v470_v59 }
 0x148   : > { %v708_v23 = vpop.permute.xlu1 %707  ;;  %v713_v24 = vpop.permute.xlu0 %712 }
 0x149   : > { %1039 = vmatmul.mubr.msk.bf16.vlgmr.msra.gmra.mrb[0].mxu0 %vm473_vm5, %v1185_v60 }
 0x14a   : > { %1062 = vmatprep.mubr.msk.bf16.mxu0 %vm473_vm5, %v1186_v61 }
 0x14c   : > { %v430_v25 = vpop.permute.xlu1 %429  ;;  %v435_v26 = vpop.permute.xlu0 %434 }
 0x150   : > { %v440_v27 = vpop.permute.xlu1 %439  ;;  %v445_v28 = vpop.permute.xlu0 %444 }
 0x154   : > { %v787_v29 = vpop.permute.xlu1 %786  ;;  %v792_v30 = vpop.permute.xlu0 %791 }
 0x158   : > { %v797_v34 = vpop.permute.xlu1 %796  ;;  %v802_v41 = vpop.permute.xlu0 %801 }
 0x20b   : > { %v1056_v62 = vpop.f32.mrb[0].mxu1 }
 0x20c   : > { %v667_v63 = vadd.f32 %v1056_v62, %v600_v56  ;;  %v658_v0 = vpop.f32.mrb[1].mxu1 }
 0x20d   : > { %v659_v1 = vadd.f32 %v658_v0, %v590_v55  ;;  %v1057_v2 = vpop.f32.mrb[2].mxu1 }
 0x20e   : > { %v679_v3 = vmul.f32 0.2, %v667_v63  ;;  %v670_v4 = vadd.f32 %v1057_v2, %v605_v57  ;;  %v661_v5 = vpop.f32.mrb[3].mxu1  ;;  %vm675_vm6 = vcmp.ge.f32.partialorder %v667_v63, 0.0 }
 0x20f   : > { %v677_v6 = vmul.f32 0.2, %v659_v1  ;;  %v662_v7 = vadd.f32 %v661_v5, %v595_v54  ;;  %vm673_vm7 = vcmp.ge.f32.partialorder %v659_v1, 0.0 }
 0x210   : > { %vm676_vm8 = vcmp.ge.f32.partialorder %v670_v4, 0.0  ;;  %v680_v8 = vmul.f32 0.2, %v670_v4  ;;  %v683_v10 = vsel %vm675_vm6, %v667_v63, %v679_v3 }
 0x211   : > { %vm674_vm9 = vcmp.ge.f32.partialorder %v662_v7, 0.0  ;;  %v678_v9 = vmul.f32 0.2, %v662_v7  ;;  %v681_v12 = vsel %vm673_vm7, %v659_v1, %v677_v6 }
 0x212   : > { %v684_v11 = vsel %vm676_vm8, %v670_v4, %v680_v8 }
 0x213   : > { %v682_v13 = vsel %vm674_vm9, %v662_v7, %v678_v9  ;;  %v690_v14 = vpack.c.bf16 %v684_v11, %v683_v10 }
 0x214   : > { %v689_v15 = vpack.c.bf16 %v682_v13, %v681_v12 }
 0x216   : > { %1058 = vmatprep.subr.bf16.mxu0 %v689_v15 }
 0x217   : > { %1059 = vmatpush3.bf16.msra.mxu0 %v689_v15 }
 0x218   : > { %1060 = vmatprep.subr.bf16.mxu0 %v690_v14 }
 0x21b   : > { %1061 = vmatpush3.bf16.msra.mxu0 %v690_v14 }
 0x21c   : > { %v1040_v17 = vpop.f32.mrb[0].mxu0 }
 0x21d   : > { %v514_v18 = vpop.f32.mrb[1].mxu0  ;;  %v523_v37 = vadd.f32 %v1040_v17, %v440_v27 }
 0x21e   : > { %v1041_v19 = vpop.f32.mrb[2].mxu0  ;;  %1063 = vmatmul.mubr.msk.bf16.vlgmr.msra.gmra.mrb[4].mxu0 %vm473_vm5, %v1187_v16  ;;  %v515_v42 = vadd.f32 %v514_v18, %v430_v25 }
 0x21f   : > { %v517_v20 = vpop.f32.mrb[3].mxu0  ;;  %v526_v45 = vadd.f32 %v1041_v19, %v445_v28 }
 0x220   : > { %v518_v48 = vadd.f32 %v517_v20, %v435_v26 }
 0x2f1   : > { %v1064_v31 = vpop.f32.mrb[4].mxu0 }
 0x2f2   : > { %v774_v32 = vadd.f32 %v1064_v31, %v708_v23  ;;  %v765_v33 = vpop.f32.mrb[5].mxu0 }
 0x2f3   : > { %v766_v35 = vadd.f32 %v765_v33, %v698_v21  ;;  %v1065_v36 = vpop.f32.mrb[6].mxu0 }
 0x2f4   : > { %v806_v38 = vmul.f32 %v797_v34, %v774_v32  ;;  %v777_v39 = vadd.f32 %v1065_v36, %v713_v24  ;;  %v768_v40 = vpop.f32.mrb[7].mxu0 }
 0x2f5   : > { %v804_v43 = vmul.f32 %v787_v29, %v766_v35  ;;  %v769_v44 = vadd.f32 %v768_v40, %v703_v22 }
 0x2f6   : > { %v810_v46 = vadd.f32 %v806_v38, %v523_v37  ;;  %v807_v47 = vmul.f32 %v802_v41, %v777_v39 }
 0x2f7   : > { %v808_v49 = vadd.f32 %v804_v43, %v515_v42  ;;  %v805_v50 = vmul.f32 %v792_v30, %v769_v44 }
 0x2f8   : > { %v1016_v51 = vpack.c.bf16 %v810_v46, %v810_v46  ;;  %v811_v52 = vadd.f32 %v807_v47, %v526_v45 }
 0x2f9   : > { %v1014_v53 = vpack.c.bf16 %v808_v49, %v808_v49  ;;  %v809_v54 = vadd.f32 %v805_v50, %v518_v48 }
 0x2fa   : > { %831 = vst.msk [vmem:[%s413_s18 + $0x8] sm:$0xf] %vm828_vm10, %v1016_v51  ;;  %v1017_v55 = vpack.c.bf16 %v811_v52, %v811_v52 }
 0x2fb   : > { %829 = vst.msk [vmem:[%s413_s18] sm:$0xf] %vm828_vm10, %v1014_v53  ;;  %v1015_v56 = vpack.c.bf16 %v809_v54, %v809_v54 }
 0x2fc   : > { %832 = vst.msk [vmem:[%s413_s18 + $0xc] sm:$0xf] %vm828_vm10, %v1017_v55 }
 0x2fd   : > { %830 = vst.msk [vmem:[%s413_s18 + $0x4] sm:$0xf] %vm828_vm10, %v1015_v56 }
 0x2fe PF: > { %s22_s29 = sadd.s32 1, %s1396_s29   ;;  %s1732_s27 = smov %s1392_s28 }
 0x2ff   : > { %p19_p3 = scmp.ge.s32.totalorder %s22_s29, 4   ;;  %s1733_s28 = smov %s1735_s16 }
 0x301   :  { %21 = sbr.rel (!%p19_p3) target bundleno = 5 (0x5), region = 107 }
 0x308   :  { %860 = vsyncpa [#allocation3], 1 }
 0x309   :  { %862 = vsyncpa [#allocation3 + $0x1], 1 }
 0x30a   :  { %863 = vsyncpa [#allocation5], 1 }
 0x30b   :  { %864 = vsyncpa [#allocation8], 1 }
 0x30c   :  { %865 = vsyncpa [#allocation11], 1 }

// kernel: forward.18
= control target key start
LH: loop header
LB: loop body
LE: loop exit
PB: predicated region body
PF: predicated region fallthrough
CT: control target
= control target key end

     0   :  { %8 = vsyncpa [#allocation3], 0  ;;  %s1067_s0 = inlined_call_operand.vmem [shape: bf16[2,32,34], index: 0, kind: input, shape index: {}]   ;;  %s1068_s1 = inlined_call_operand.hbm [shape: bf16[80,96], index: 1, kind: input, shape index: {}]   ;;  %s1069_s2 = inlined_call_operand.hbm [shape: f32[80,1], index: 2, kind: input, shape index: {}]   ;;  %s1070_s3 = inlined_call_operand.vmem [shape: bf16[2,80,32], index: 3, kind: output, shape index: {}]  }
   0x1   :  { %9 = vsyncpa [#allocation5], 0  ;;  %s906_s12 = smov 0   ;;  %s908_s13 = smov 0  }
   0x2   :  { %s910_s14 = smov 0  }
   0x3 LB: > { %s599_s15 = sadd.s32 4294967295, %s873_s14   ;;  %s27_s16 = sadd.s32 1, %s869_s13  ;;  %s873_s14 = sphi %s910_s14, %s15_s14   ;;  %s869_s13 = sphi %s908_s13, %s1080_s13   ;;  %s865_s12 = sphi %s906_s12, %s1079_s12  }
   0x4   : > { %p29_p0 = scmp.ge.s32.totalorder %s27_s16, 2  ;;  %p601_p1 = scmp.ge.s32.totalorder %s873_s14, 1 }
   0x5   : > { %p128_p2 = scmp.lt.s32.totalorder %s873_s14, 3  ;;  %p931_p4 = scmp.eq.s32.totalorder %s599_s15, 0 }
   0x6   : > { %s1082_s16 = smov (%p29_p0, %s27_s16), 0  ;;  %s875_s19 = smov [#allocation2]  }
   0x7   : > { %p927_p3 = pnand %p601_p1, %p128_p2  ;;  %s140_s20 = sshll.u32 %s875_s19, 4  ;;  %s141_s20 = int_to_ptr.vmem [resolvable:$true] %s140_s20 }
   0x8   : > { %s1075_s18 = scalar_select %p931_p4, 1, 0 }
   0x9   : > { %s1074_s17 = scalar_select %p927_p3, 1, 0 }
   0xa   : > { %p710_p5 = pneg %p927_p3  ;;  %s876_s22 = smov [#allocation4]  }
   0xb   : > { %s153_s23 = sshll.u32 %s876_s22, 4  ;;  %s787_s26 = scalar_lea.hbm %s1068_s1, 640  ;;  %s943_s23 = int_to_ptr.vmem [resolvable:$true] %s153_s23 }
   0xc   : > { %p939_p6 = pnand %p931_p4, %p710_p5  ;;  %p788_p7 = scmp.ne.s32.totalorder %s1068_s1, %s787_s26 }
   0xd   : > { %p794_p11 = scmp.lt.u32.totalorder %s787_s26, %s1068_s1 }
   0xe   : > { %p789_p8 = pneg %p939_p6 }
  0x10   : > { %p790_p9 = pnand %p789_p8, %p788_p7 }
  0x12   : > { %p791_p10 = pneg %p790_p9 }
  0x14   : > { %p796_p12 = pnand %p794_p11, %p791_p10 }
  0x16   : > { %799 = shalt.err (!%p796_p12)
}
  0x17   : > { %s800_s4 = scalar_lea.vmem %s141_s20, 640  ;;  %p808_p2 = scmp.lt.s32.totalorder %s141_s20, %s141_s20 }
  0x18   : > { %p801_p13 = scmp.ne.s32.totalorder %s141_s20, %s800_s4  ;;  %p809_p5 = scmp.lt.s32.totalorder %s800_s4, %s800_s4 }
  0x1a   : > { %p803_p0 = pnand %p801_p13, %p789_p8  ;;  %p810_p4 = por %p809_p5, %p808_p2 }
  0x1c   : > { %p804_p1 = pneg %p803_p0 }
  0x1e   : > { %p811_p3 = pnand %p810_p4, %p804_p1 }
  0x20   : > { %814 = shalt.err (!%p811_p3)
}
  0x21   : > { %s877_s5 = smov 64   ;;  %s878_s6 = smov 4  }
  0x22   : > { %713 = dma.hbm_to_vmem [thread:$0]  (!%p939_p6), %s1068_s1, 640, %s141_s20, [#allocation3], %s877_s5, %s877_s5, %s878_s6  }
  0x23   : > { %s815_s11 = scalar_lea.hbm %s1069_s2, 1280 }
  0x24   : > { %p816_p7 = scmp.ne.s32.totalorder %s1069_s2, %s815_s11  ;;  %p822_p9 = scmp.lt.u32.totalorder %s815_s11, %s1069_s2 }
  0x26   : > { %p818_p3 = pnand %p816_p7, %p789_p8 }
  0x28   : > { %p819_p4 = pneg %p818_p3 }
  0x2a   : > { %p824_p10 = pnand %p822_p9, %p819_p4 }
  0x2c   : > { %827 = shalt.err (!%p824_p10)
}
  0x2d   : > { %s828_s20 = scalar_lea.vmem %s943_s23, 1280  ;;  %p836_p0 = scmp.lt.s32.totalorder %s943_s23, %s943_s23 }
  0x2e   : > { %p829_p11 = scmp.ne.s32.totalorder %s943_s23, %s828_s20  ;;  %p837_p1 = scmp.lt.s32.totalorder %s828_s20, %s828_s20 }
  0x30   : > { %p831_p12 = pnand %p829_p11, %p789_p8  ;;  %p838_p2 = por %p837_p1, %p836_p0 }
  0x32   : > { %p832_p13 = pneg %p831_p12 }
  0x34   : > { %p839_p5 = pnand %p838_p2, %p832_p13 }
  0x36   : > { %842 = shalt.err (!%p839_p5)
}
  0x37   : > { %s879_s25 = smov 128   ;;  %s880_s26 = smov 8  }
  0x38   : > { %716 = dma.hbm_to_vmem [thread:$0]  (!%p939_p6), %s1069_s2, 1280, %s943_s23, [#allocation5], %s879_s25, %s879_s25, %s880_s26  }
  0x39   : > { %p1077_p7 = scmp.ne.s32.totalorder %s1074_s17, 0 }
  0x3a   : > { %p1078_p8 = scmp.ne.s32.totalorder (!%p1077_p7), %s1075_s18, 0 }
  0x3b   : > { %177 = sbr.rel (%p1077_p7) target bundleno = 448 (0x1c0), region = 32 }
  0x42   : > { %856 = dma.done.wait (%p1078_p8), [#allocation3], 640  }
  0x43   : > { %858 = vsyncadd (%p1078_p8), [#allocation3], 4294966656 }
  0x44   : > { %860 = dma.done.wait (%p1078_p8), [#allocation5], 1280  }
  0x45   : > { %862 = vsyncadd (%p1078_p8), [#allocation5], 4294966016  ;;  %p208_p3 = scmp.lt.s32.totalorder %s865_s12, 1  ;;  %v881_v0 = vmov 0.0   ;;  %s882_s18 = smov 127   ;;  %vm884_vm0 = vmmov 0  }
  0x46   : > { %657 = vmatprep.subr.bf16.mxu0 %v881_v0  ;;  %689 = vmatprep.subr.bf16.mxu1 %v881_v0  ;;  %s883_s30 = smov 126   ;;  %v275_v9 = vld [vmem:[#allocation4 + $0x8] sm:$0xff]  ;;  %v274_v10 = vld [vmem:[#allocation4] sm:$0xff]  ;;  %v885_v11 = vmov 0   ;;  %v276_v12 = vld [vmem:[#allocation4 + $0x10] sm:$0xff]  ;;  %vm359_vm1 = vcmask 785408  }
  0x47   : > { %s1084_s12 = smov (!%p208_p3, %s865_s12), 1  ;;  %669 = vmatprep.mubr.msk.bf16.mxu0 %vm884_vm0, %v881_v0  ;;  %681 = vmatprep.mubr.msk.bf16.mxu1 %vm884_vm0, %v881_v0  ;;  %v277_v13 = vld [vmem:[#allocation4 + $0x18] sm:$0xff]  ;;  %v278_v14 = vld [vmem:[#allocation4 + $0x20] sm:$0xff]  ;;  %v279_v15 = vld [vmem:[#allocation4 + $0x28] sm:$0xff]  ;;  %vm488_vm2 = vcmask 257024  }
  0x48   : > { %s635_s17 = sshll.u32 %s1084_s12, 4  ;;  %777 = vset.pattern.permute.xlu1 %v885_v11  ;;  %776 = vset.pattern.permute.xlu0 %v885_v11  ;;  %v280_v16 = vld [vmem:[#allocation4 + $0x30] sm:$0xff]  ;;  %v281_v17 = vld [vmem:[#allocation4 + $0x38] sm:$0xff]  ;;  %v282_v18 = vld [vmem:[#allocation4 + $0x40] sm:$0xff]  ;;  %s701_s4 = smul.u32 40, %s1084_s12 }
  0x49   : > { %s212_s29 = scalar_lea.vmem %s1067_s0, %s635_s17  ;;  %v283_v19 = vld [vmem:[#allocation4 + $0x48] sm:$0xff]  ;;  %v780_v36 = vld [vmem:[#allocation2] sm:$0xff]   ;;  %v781_v37 = vld [vmem:[#allocation2 + $0x18] sm:$0xff]  }
  0x4a   : > { %v222_v1 = vld [vmem:[%s212_s29] sm:$0xff]   ;;  %v224_v2 = vld [vmem:[%s212_s29 + $0x8] sm:$0xff]   ;;  %v784_v40 = vld [vmem:[#allocation2 + $0x10] sm:$0xff]   ;;  %s1036_s7 = scalar_lea.vmem %s1070_s3, %s701_s4 }
  0x4b   : > { %v226_v3 = vunpack.c.l.bf16 %v222_v1  ;;  %v227_v4 = vunpack.c.h.bf16 %v222_v1  ;;  %v228_v5 = vunpack.c.l.bf16 %v224_v2  ;;  %v229_v6 = vunpack.c.h.bf16 %v224_v2  ;;  %658 = vmatpush3.bf16.msra.mxu0 %v222_v1  ;;  %695 = vmatpush3.bf16.msra.mxu1 %v222_v1  ;;  %v782_v38 = vld [vmem:[#allocation2 + $0x8] sm:$0xff]   ;;  %v783_v39 = vld [vmem:[#allocation2 + $0x20] sm:$0xff]  }
  0x4c   : > { %659 = vmatprep.subr.bf16.mxu0 %v881_v0  ;;  %690 = vmatprep.subr.bf16.mxu1 %v881_v0 }
  0x4d   : > { %v756_v7 = vpack.i.bf16 %v227_v4, %v226_v3  ;;  %v761_v8 = vpack.i.bf16 %v229_v6, %v228_v5 }
  0x4f   : > { %757 = vrot.lane.b32.xlu0 %v756_v7, %s882_s18  ;;  %767 = vrot.lane.b32.xlu1 %v756_v7, %s883_s30 }
  0x50   : > { %660 = vmatpush3.bf16.msra.mxu0 %v224_v2  ;;  %696 = vmatpush3.bf16.msra.mxu1 %v224_v2 }
  0x51   : > { %661 = vmatprep.subr.bf16.mxu0 %v881_v0  ;;  %691 = vmatprep.subr.bf16.mxu1 %v881_v0 }
  0x53   : > { %762 = vrot.lane.b32.xlu0 %v761_v8, %s882_s18  ;;  %772 = vrot.lane.b32.xlu1 %v761_v8, %s883_s30 }
  0x57   : > { %291 = vperm.xlu1 %777, %v275_v9   ;;  %286 = vperm.xlu0 %776, %v274_v10  }
  0x5b   : > { %296 = vperm.xlu1 %777, %v276_v12   ;;  %301 = vperm.xlu0 %776, %v277_v13  }
  0x5f   : > { %306 = vperm.xlu1 %777, %v278_v14   ;;  %311 = vperm.xlu0 %776, %v279_v15  }
  0x63   : > { %316 = vperm.xlu1 %777, %v280_v16   ;;  %321 = vperm.xlu0 %776, %v281_v17  }
  0x67   : > { %326 = vperm.xlu1 %777, %v282_v18   ;;  %331 = vperm.xlu0 %776, %v283_v19  }
  0xc1   : > { %v758_v20 = vpop.permute.xlu0 %757  ;;  %v768_v21 = vpop.permute.xlu1 %767 }
  0xc2   : > { %v760_v22 = vunpack.i.h.bf16 %v758_v20  ;;  %v759_v23 = vunpack.i.l.bf16 %v758_v20  ;;  %v770_v28 = vunpack.i.h.bf16 %v768_v21  ;;  %v769_v29 = vunpack.i.l.bf16 %v768_v21 }
  0xc4   : > { %v260_v24 = vpack.c.bf16 %v760_v22, %v759_v23  ;;  %v262_v32 = vpack.c.bf16 %v770_v28, %v769_v29 }
  0xc5   : > { %v763_v25 = vpop.permute.xlu0 %762  ;;  %v773_v30 = vpop.permute.xlu1 %772 }
  0xc6   : > { %v765_v26 = vunpack.i.h.bf16 %v763_v25  ;;  %v764_v27 = vunpack.i.l.bf16 %v763_v25  ;;  %662 = vmatpush3.bf16.msra.mxu0 %v260_v24  ;;  %697 = vmatpush3.bf16.msra.mxu1 %v260_v24  ;;  %v775_v33 = vunpack.i.h.bf16 %v773_v30  ;;  %v774_v34 = vunpack.i.l.bf16 %v773_v30 }
  0xc7   : > { %663 = vmatprep.subr.bf16.mxu0 %v881_v0  ;;  %692 = vmatprep.subr.bf16.mxu1 %v881_v0 }
  0xc8   : > { %v261_v31 = vpack.c.bf16 %v765_v26, %v764_v27  ;;  %v263_v35 = vpack.c.bf16 %v775_v33, %v774_v34 }
  0xca   : > { %664 = vmatpush3.bf16.msra.mxu0 %v261_v31  ;;  %698 = vmatpush3.bf16.msra.mxu1 %v261_v31 }
  0xcb   : > { %665 = vmatprep.subr.bf16.mxu0 %v881_v0  ;;  %693 = vmatprep.subr.bf16.mxu1 %v881_v0 }
  0xce   : > { %666 = vmatpush3.bf16.msra.mxu0 %v262_v32  ;;  %699 = vmatpush3.bf16.msra.mxu1 %v262_v32 }
  0xcf   : > { %667 = vmatprep.subr.bf16.mxu0 %v881_v0  ;;  %694 = vmatprep.subr.bf16.mxu1 %v881_v0 }
  0xd2   : > { %668 = vmatpush3.bf16.msra.mxu0 %v263_v35  ;;  %700 = vmatpush3.bf16.msra.mxu1 %v263_v35 }
  0xd5   : > { %670 = vmatmul.mubr.msk.bf16.vlgmr.msra.gmra.mrb[0].mxu0 %vm359_vm1, %v780_v36  ;;  %682 = vmatmul.mubr.msk.bf16.vlgmr.msra.gmra.mrb[0].mxu1 %vm359_vm1, %v781_v37 }
  0xd6   : > { %673 = vmatprep.mubr.msk.bf16.mxu0 %vm884_vm0, %v881_v0  ;;  %685 = vmatprep.mubr.msk.bf16.mxu1 %vm884_vm0, %v881_v0  ;;  %v292_v41 = vpop.permute.xlu1 %291  ;;  %v287_v42 = vpop.permute.xlu0 %286 }
  0xda   : > { %v297_v43 = vpop.permute.xlu1 %296  ;;  %v302_v44 = vpop.permute.xlu0 %301 }
  0xdd   : > { %674 = vmatmul.mubr.msk.bf16.gmra.mrb[4].mxu0 %vm359_vm1, %v782_v38  ;;  %686 = vmatmul.mubr.msk.bf16.gmra.mrb[4].mxu1 %vm359_vm1, %v783_v39 }
  0xde   : > { %677 = vmatprep.mubr.msk.bf16.mxu0 %vm884_vm0, %v881_v0  ;;  %v307_v45 = vpop.permute.xlu1 %306  ;;  %v312_v46 = vpop.permute.xlu0 %311 }
  0xe2   : > { %v317_v47 = vpop.permute.xlu1 %316  ;;  %v322_v48 = vpop.permute.xlu0 %321 }
  0xe5   : > { %678 = vmatmul.mubr.msk.bf16.gmra.mrb[8].mxu0 %vm359_vm1, %v784_v40 }
  0xe6   : > { %v327_v1 = vpop.permute.xlu1 %326  ;;  %v332_v2 = vpop.permute.xlu0 %331 }
 0x1a8   : > { %v409_v49 = vpop.f32.mrb[0].mxu0  ;;  %v433_v50 = vpop.f32.mrb[0].mxu1 }
 0x1a9   : > { %v410_v51 = vadd.f32 %v409_v49, %v287_v42  ;;  %v434_v52 = vadd.f32 %v433_v50, %v317_v47  ;;  %v671_v53 = vpop.f32.mrb[1].mxu0  ;;  %v683_v54 = vpop.f32.mrb[1].mxu1 }
 0x1aa   : > { %v412_v55 = vpop.f32.mrb[2].mxu0  ;;  %v436_v56 = vpop.f32.mrb[2].mxu1 }
 0x1ab   : > { %v636_v57 = vpack.c.bf16 %v410_v51, %v410_v51  ;;  %v642_v58 = vpack.c.bf16 %v434_v52, %v434_v52  ;;  %v413_v59 = vadd.f32 %v412_v55, %v292_v41  ;;  %v437_v60 = vadd.f32 %v436_v56, %v322_v48  ;;  %v672_v61 = vpop.f32.mrb[3].mxu0  ;;  %v684_v62 = vpop.f32.mrb[3].mxu1 }
 0x1ad   : > { %489 = vst.msk [vmem:[%s1036_s7] sm:$0xf] %vm488_vm2, %v636_v57  ;;  %495 = vst.msk [vmem:[%s1036_s7 + $0x18] sm:$0xf] %vm488_vm2, %v642_v58  ;;  %v637_v63 = vpack.c.bf16 %v413_v59, %v413_v59  ;;  %v643_v0 = vpack.c.bf16 %v437_v60, %v437_v60 }
 0x1af   : > { %490 = vst.msk [vmem:[%s1036_s7 + $0x4] sm:$0xf] %vm488_vm2, %v637_v63  ;;  %496 = vst.msk [vmem:[%s1036_s7 + $0x1c] sm:$0xf] %vm488_vm2, %v643_v0 }
 0x1b0   : > { %v417_v3 = vpop.f32.mrb[4].mxu0  ;;  %v441_v4 = vpop.f32.mrb[4].mxu1 }
 0x1b1   : > { %v418_v5 = vadd.f32 %v417_v3, %v297_v43  ;;  %v442_v6 = vadd.f32 %v441_v4, %v327_v1  ;;  %v675_v7 = vpop.f32.mrb[5].mxu0  ;;  %v687_v8 = vpop.f32.mrb[5].mxu1 }
 0x1b2   : > { %v420_v9 = vpop.f32.mrb[6].mxu0  ;;  %v444_v10 = vpop.f32.mrb[6].mxu1 }
 0x1b3   : > { %v638_v11 = vpack.c.bf16 %v418_v5, %v418_v5  ;;  %v644_v12 = vpack.c.bf16 %v442_v6, %v442_v6  ;;  %v421_v13 = vadd.f32 %v420_v9, %v302_v44  ;;  %v445_v14 = vadd.f32 %v444_v10, %v332_v2  ;;  %v676_v15 = vpop.f32.mrb[7].mxu0  ;;  %v688_v16 = vpop.f32.mrb[7].mxu1 }
 0x1b5   : > { %491 = vst.msk [vmem:[%s1036_s7 + $0x8] sm:$0xf] %vm488_vm2, %v638_v11  ;;  %497 = vst.msk [vmem:[%s1036_s7 + $0x20] sm:$0xf] %vm488_vm2, %v644_v12  ;;  %v639_v17 = vpack.c.bf16 %v421_v13, %v421_v13  ;;  %v645_v18 = vpack.c.bf16 %v445_v14, %v445_v14 }
 0x1b7   : > { %492 = vst.msk [vmem:[%s1036_s7 + $0xc] sm:$0xf] %vm488_vm2, %v639_v17  ;;  %498 = vst.msk [vmem:[%s1036_s7 + $0x24] sm:$0xf] %vm488_vm2, %v645_v18 }
 0x1b8   : > { %v425_v19 = vpop.f32.mrb[8].mxu0 }
 0x1b9   : > { %v426_v20 = vadd.f32 %v425_v19, %v307_v45  ;;  %v679_v21 = vpop.f32.mrb[9].mxu0 }
 0x1ba   : > { %v428_v22 = vpop.f32.mrb[10].mxu0 }
 0x1bb   : > { %v640_v23 = vpack.c.bf16 %v426_v20, %v426_v20  ;;  %v429_v24 = vadd.f32 %v428_v22, %v312_v46  ;;  %v680_v25 = vpop.f32.mrb[11].mxu0 }
 0x1bd   : > { %493 = vst.msk [vmem:[%s1036_s7 + $0x10] sm:$0xf] %vm488_vm2, %v640_v23  ;;  %v641_v26 = vpack.c.bf16 %v429_v24, %v429_v24 }
 0x1bf   : > { %494 = vst.msk [vmem:[%s1036_s7 + $0x14] sm:$0xf] %vm488_vm2, %v641_v26 }
 0x1c0 PF: > { %s15_s14 = sadd.s32 1, %s873_s14   ;;  %s1079_s12 = smov %s869_s13 }
 0x1c1   : > { %p12_p6 = scmp.ge.s32.totalorder %s15_s14, 4   ;;  %s1080_s13 = smov %s1082_s16 }
 0x1c3   :  { %14 = sbr.rel (!%p12_p6) target bundleno = 3 (0x3), region = 71 }
 0x1ca   :  { %526 = vsyncpa [#allocation3], 1 }
 0x1cb   :  { %528 = vsyncpa [#allocation3 + $0x1], 1 }
 0x1cc   :  { %529 = vsyncpa [#allocation5], 1 }

// kernel: forward.17
= control target key start
LH: loop header
LB: loop body
LE: loop exit
PB: predicated region body
PF: predicated region fallthrough
CT: control target
= control target key end

     0   :  { %13 = vsyncpa [#allocation3], 0  ;;  %s1722_s0 = inlined_call_operand.vmem [shape: bf16[2,32,38], index: 0, kind: input, shape index: {}]   ;;  %s1723_s1 = inlined_call_operand.hbm [shape: bf16[32,96], index: 1, kind: input, shape index: {}]   ;;  %s1724_s2 = inlined_call_operand.hbm [shape: f32[32,1], index: 2, kind: input, shape index: {}]   ;;  %s1725_s3 = inlined_call_operand.hbm [shape: bf16[32,32], index: 3, kind: input, shape index: {}]   ;;  %s1726_s4 = inlined_call_operand.hbm [shape: f32[32,1], index: 4, kind: input, shape index: {}]   ;;  %s1727_s5 = inlined_call_operand.hbm [shape: bf16[32,32], index: 5, kind: input, shape index: {}]   ;;  %s1728_s6 = inlined_call_operand.hbm [shape: f32[32,1], index: 6, kind: input, shape index: {}]   ;;  %s1729_s7 = inlined_call_operand.vmem [shape: f32[32,1], index: 7, kind: input, shape index: {}]   ;;  %s1730_s8 = inlined_call_operand.vmem [shape: bf16[2,32,32], index: 8, kind: output, shape index: {}]  }
   0x1   :  { %14 = vsyncpa [#allocation5], 0 }
   0x2   :  { %15 = vsyncpa [#allocation8], 0 }
   0x3   :  { %16 = vsyncpa [#allocation11], 0  ;;  %s1468_s27 = smov 0   ;;  %s1470_s28 = smov 0  }
   0x4   :  { %s1472_s29 = smov 0  }
   0x5 LB: > { %s1410_s30 = smov [#allocation4]   ;;  %s983_s10 = sadd.s32 4294967295, %s1408_s29   ;;  %s1408_s29 = sphi %s1472_s29, %s22_s29   ;;  %s1404_s28 = sphi %s1470_s28, %s1745_s28   ;;  %s1400_s27 = sphi %s1468_s27, %s1744_s27  }
   0x6   : > { %s265_s9 = sshll.u32 %s1410_s30, 4  ;;  %p985_p0 = scmp.ge.s32.totalorder %s1408_s29, 1  ;;  %s1490_s9 = int_to_ptr.vmem [resolvable:$true] %s265_s9 }
   0x7   : > { %p240_p1 = scmp.lt.s32.totalorder %s1408_s29, 3  ;;  %p1486_p2 = scmp.eq.s32.totalorder %s983_s10, 0 }
   0x8   : > { %s1411_s13 = smov [#allocation7]   ;;  %s34_s16 = sadd.s32 1, %s1404_s28 }
   0x9   : > { %s1736_s11 = scalar_select %p1486_p2, 1, 0 }
   0xa   : > { %p1492_p3 = pnand %p985_p0, %p240_p1  ;;  %s291_s14 = sshll.u32 %s1411_s13, 4  ;;  %s1498_s14 = int_to_ptr.vmem [resolvable:$true] %s291_s14 }
   0xb   : > { %s1202_s19 = scalar_lea.hbm %s1724_s2, 512 }
   0xc   : > { %s1737_s12 = scalar_select %p1492_p3, 1, 0 }
   0xd   : > { %p1102_p4 = pneg %p1492_p3  ;;  %p1203_p6 = scmp.ne.s32.totalorder %s1724_s2, %s1202_s19 }
   0xe   : > { %p1209_p10 = scmp.lt.u32.totalorder %s1202_s19, %s1724_s2 }
   0xf   : > { %p1502_p5 = pnand %p1486_p2, %p1102_p4 }
  0x11   : > { %p1515_p7 = pneg %p1502_p5 }
  0x13   : > { %p1205_p8 = pnand %p1515_p7, %p1203_p6 }
  0x15   : > { %p1206_p9 = pneg %p1205_p8 }
  0x17   : > { %p1211_p11 = pnand %p1209_p10, %p1206_p9 }
  0x19   : > { %1214 = shalt.err (!%p1211_p11)
}
  0x1a   : > { %s1215_s25 = scalar_lea.vmem %s1490_s9, 512  ;;  %p1223_p1 = scmp.lt.s32.totalorder %s1490_s9, %s1490_s9 }
  0x1b   : > { %p1216_p12 = scmp.ne.s32.totalorder %s1490_s9, %s1215_s25  ;;  %p1224_p4 = scmp.lt.s32.totalorder %s1215_s25, %s1215_s25 }
  0x1d   : > { %p1218_p13 = pnand %p1216_p12, %p1515_p7  ;;  %p1225_p6 = por %p1224_p4, %p1223_p1 }
  0x1f   : > { %p1219_p0 = pneg %p1218_p13 }
  0x21   : > { %p1226_p8 = pnand %p1225_p6, %p1219_p0 }
  0x23   : > { %1229 = shalt.err (!%p1226_p8)
}
  0x24   : > { %s1734_s26 = smov 128   ;;  %s1735_s30 = smov 8  }
  0x25   : > { %1108 = dma.hbm_to_vmem [thread:$0]  (!%p1502_p5), %s1724_s2, 512, %s1490_s9, [#allocation5], %s1734_s26, %s1734_s26, %s1735_s30  }
  0x26   : > { %s1230_s19 = scalar_lea.hbm %s1726_s4, 512 }
  0x27   : > { %p1231_p9 = scmp.ne.s32.totalorder %s1726_s4, %s1230_s19  ;;  %p1237_p12 = scmp.lt.u32.totalorder %s1230_s19, %s1726_s4 }
  0x29   : > { %p1233_p10 = pnand %p1231_p9, %p1515_p7 }
  0x2b   : > { %p1234_p11 = pneg %p1233_p10 }
  0x2d   : > { %p1239_p13 = pnand %p1237_p12, %p1234_p11 }
  0x2f   : > { %1242 = shalt.err (!%p1239_p13)
}
  0x30   : > { %s1243_s9 = scalar_lea.vmem %s1498_s14, 512  ;;  %p1251_p6 = scmp.lt.s32.totalorder %s1498_s14, %s1498_s14 }
  0x31   : > { %p1244_p0 = scmp.ne.s32.totalorder %s1498_s14, %s1243_s9  ;;  %p1252_p8 = scmp.lt.s32.totalorder %s1243_s9, %s1243_s9 }
  0x33   : > { %p1246_p1 = pnand %p1244_p0, %p1515_p7  ;;  %p1253_p9 = por %p1252_p8, %p1251_p6 }
  0x35   : > { %p1247_p4 = pneg %p1246_p1 }
  0x37   : > { %p1254_p10 = pnand %p1253_p9, %p1247_p4 }
  0x39   : > { %1257 = shalt.err (!%p1254_p10)
}
  0x3a   : > { %1114 = dma.hbm_to_vmem [thread:$0]  (!%p1502_p5), %s1726_s4, 512, %s1498_s14, [#allocation8], %s1734_s26, %s1734_s26, %s1735_s30  }
  0x3b   : > { %p36_p11 = scmp.ge.s32.totalorder %s34_s16, 2  ;;  %s1414_s13 = smov [#allocation2]  }
  0x3c   : > { %s252_s17 = sshll.u32 %s1414_s13, 4  ;;  %s1258_s20 = scalar_lea.hbm %s1723_s1, 256  ;;  %s253_s17 = int_to_ptr.vmem [resolvable:$true] %s252_s17 }
  0x3d   : > { %s1747_s16 = smov (%p36_p11, %s34_s16), 0  ;;  %p1259_p12 = scmp.ne.s32.totalorder %s1723_s1, %s1258_s20 }
  0x3e   : > { %p1265_p1 = scmp.lt.u32.totalorder %s1258_s20, %s1723_s1 }
  0x3f   : > { %p1261_p13 = pnand %p1259_p12, %p1515_p7 }
  0x41   : > { %p1262_p0 = pneg %p1261_p13 }
  0x43   : > { %p1267_p4 = pnand %p1265_p1, %p1262_p0 }
  0x45   : > { %1270 = shalt.err (!%p1267_p4)
}
  0x46   : > { %s1271_s9 = scalar_lea.vmem %s253_s17, 256  ;;  %p1279_p10 = scmp.lt.s32.totalorder %s253_s17, %s253_s17 }
  0x47   : > { %p1272_p6 = scmp.ne.s32.totalorder %s253_s17, %s1271_s9  ;;  %p1280_p11 = scmp.lt.s32.totalorder %s1271_s9, %s1271_s9 }
  0x49   : > { %p1274_p8 = pnand %p1272_p6, %p1515_p7  ;;  %p1281_p2 = por %p1280_p11, %p1279_p10 }
  0x4b   : > { %p1275_p9 = pneg %p1274_p8 }
  0x4d   : > { %p1282_p3 = pnand %p1281_p2, %p1275_p9 }
  0x4f   : > { %1285 = shalt.err (!%p1282_p3)
}
  0x50   : > { %s1415_s25 = smov 64   ;;  %s1416_s10 = smov 4  }
  0x51   : > { %1105 = dma.hbm_to_vmem [thread:$0]  (!%p1502_p5), %s1723_s1, 256, %s253_s17, [#allocation3], %s1415_s25, %s1415_s25, %s1416_s10  }
  0x52   : > { %s1417_s19 = smov [#allocation6]   ;;  %s1418_s21 = smov [#allocation9]  }
  0x53   : > { %s278_s20 = sshll.u32 %s1417_s19, 4  ;;  %s304_s23 = sshll.u32 %s1418_s21, 4  ;;  %s279_s20 = int_to_ptr.vmem [resolvable:$true] %s278_s20  ;;  %s1592_s23 = int_to_ptr.vmem [resolvable:$true] %s304_s23 }
  0x54   : > { %s1286_s9 = scalar_lea.hbm %s1725_s3, 256 }
  0x55   : > { %p1287_p2 = scmp.ne.s32.totalorder %s1725_s3, %s1286_s9  ;;  %p1293_p13 = scmp.lt.u32.totalorder %s1286_s9, %s1725_s3 }
  0x57   : > { %p1289_p3 = pnand %p1287_p2, %p1515_p7 }
  0x59   : > { %p1290_p12 = pneg %p1289_p3 }
  0x5b   : > { %p1295_p0 = pnand %p1293_p13, %p1290_p12 }
  0x5d   : > { %1298 = shalt.err (!%p1295_p0)
}
  0x5e   : > { %s1299_s18 = scalar_lea.vmem %s279_s20, 256  ;;  %p1307_p8 = scmp.lt.s32.totalorder %s279_s20, %s279_s20 }
  0x5f   : > { %p1300_p1 = scmp.ne.s32.totalorder %s279_s20, %s1299_s18  ;;  %p1308_p9 = scmp.lt.s32.totalorder %s1299_s18, %s1299_s18 }
  0x61   : > { %p1302_p4 = pnand %p1300_p1, %p1515_p7  ;;  %p1309_p10 = por %p1308_p9, %p1307_p8 }
  0x63   : > { %p1303_p6 = pneg %p1302_p4 }
  0x65   : > { %p1310_p11 = pnand %p1309_p10, %p1303_p6 }
  0x67   : > { %1313 = shalt.err (!%p1310_p11)
}
  0x68   : > { %1111 = dma.hbm_to_vmem [thread:$0]  (!%p1502_p5), %s1725_s3, 256, %s279_s20, [#allocation5], %s1415_s25, %s1415_s25, %s1416_s10  }
  0x69   : > { %s1314_s14 = scalar_lea.hbm %s1727_s5, 256 }
  0x6a   : > { %p1315_p2 = scmp.ne.s32.totalorder %s1727_s5, %s1314_s14  ;;  %p1321_p13 = scmp.lt.u32.totalorder %s1314_s14, %s1727_s5 }
  0x6c   : > { %p1317_p3 = pnand %p1315_p2, %p1515_p7 }
  0x6e   : > { %p1318_p12 = pneg %p1317_p3 }
  0x70   : > { %p1323_p0 = pnand %p1321_p13, %p1318_p12 }
  0x72   : > { %1326 = shalt.err (!%p1323_p0)
}
  0x73   : > { %s1327_s20 = scalar_lea.vmem %s1592_s23, 256  ;;  %p1335_p8 = scmp.lt.s32.totalorder %s1592_s23, %s1592_s23 }
  0x74   : > { %p1328_p1 = scmp.ne.s32.totalorder %s1592_s23, %s1327_s20  ;;  %p1336_p9 = scmp.lt.s32.totalorder %s1327_s20, %s1327_s20 }
  0x76   : > { %p1330_p4 = pnand %p1328_p1, %p1515_p7  ;;  %p1337_p10 = por %p1336_p9, %p1335_p8 }
  0x78   : > { %p1331_p6 = pneg %p1330_p4 }
  0x7a   : > { %p1338_p11 = pnand %p1337_p10, %p1331_p6 }
  0x7c   : > { %1341 = shalt.err (!%p1338_p11)
}
  0x7d   : > { %1117 = dma.hbm_to_vmem [thread:$0]  (!%p1502_p5), %s1727_s5, 256, %s1592_s23, [#allocation8], %s1415_s25, %s1415_s25, %s1416_s10  }
  0x7e   : > { %s1419_s30 = smov [#allocation10]   ;;  %s1342_s24 = scalar_lea.hbm %s1728_s6, 512 }
  0x7f   : > { %s317_s19 = sshll.u32 %s1419_s30, 4  ;;  %p1343_p2 = scmp.ne.s32.totalorder %s1728_s6, %s1342_s24  ;;  %s318_s19 = int_to_ptr.vmem [resolvable:$true] %s317_s19 }
  0x80   : > { %p1349_p13 = scmp.lt.u32.totalorder %s1342_s24, %s1728_s6 }
  0x81   : > { %p1345_p3 = pnand %p1343_p2, %p1515_p7 }
  0x83   : > { %p1346_p12 = pneg %p1345_p3 }
  0x85   : > { %p1351_p0 = pnand %p1349_p13, %p1346_p12 }
  0x87   : > { %1354 = shalt.err (!%p1351_p0)
}
  0x88   : > { %s1355_s25 = scalar_lea.vmem %s318_s19, 512  ;;  %p1363_p8 = scmp.lt.s32.totalorder %s318_s19, %s318_s19 }
  0x89   : > { %p1356_p1 = scmp.ne.s32.totalorder %s318_s19, %s1355_s25  ;;  %p1364_p9 = scmp.lt.s32.totalorder %s1355_s25, %s1355_s25 }
  0x8b   : > { %p1358_p4 = pnand %p1356_p1, %p1515_p7  ;;  %p1365_p10 = por %p1364_p9, %p1363_p8 }
  0x8d   : > { %p1359_p6 = pneg %p1358_p4 }
  0x8f   : > { %p1366_p11 = pnand %p1365_p10, %p1359_p6 }
  0x91   : > { %1369 = shalt.err (!%p1366_p11)
}
  0x92   : > { %s1740_s10 = smov 8   ;;  %s1741_s23 = smov 128  }
  0x93   : > { %1120 = dma.hbm_to_vmem [thread:$0]  (!%p1502_p5), %s1728_s6, 512, %s318_s19, [#allocation11], %s1741_s23, %s1741_s23, %s1740_s10  }
  0x94   : > { %p1742_p2 = scmp.ne.s32.totalorder %s1737_s12, 0 }
  0x95   : > { %p1743_p7 = scmp.ne.s32.totalorder (!%p1742_p2), %s1736_s11, 0 }
  0x96   : > { %344 = sbr.rel (%p1742_p2) target bundleno = 769 (0x301), region = 52 }
  0x9d   : > { %1383 = dma.done.wait (%p1743_p7), [#allocation3], 256  }
  0x9e   : > { %1385 = vsyncadd (%p1743_p7), [#allocation3], 4294967040 }
  0x9f   : > { %1387 = dma.done.wait (%p1743_p7), [#allocation5], 768  }
  0xa0   : > { %1389 = vsyncadd (%p1743_p7), [#allocation5], 4294966528 }
  0xa1   : > { %1391 = dma.done.wait (%p1743_p7), [#allocation8], 768  }
  0xa2   : > { %1393 = vsyncadd (%p1743_p7), [#allocation8], 4294966528 }
  0xa3   : > { %1395 = dma.done.wait (%p1743_p7), [#allocation11], 512  }
  0xa4   : > { %1397 = vsyncadd (%p1743_p7), [#allocation11], 4294966784  ;;  %p401_p5 = scmp.lt.s32.totalorder %s1400_s27, 1  ;;  %v1420_v0 = vmov 0   ;;  %s1421_s11 = smov 122   ;;  %v1194_v19 = vld [vmem:[#allocation2] sm:$0xff]  }
  0xa5   : > { %1191 = vset.pattern.permute.xlu1 %v1420_v0  ;;  %1190 = vset.pattern.permute.xlu0 %v1420_v0  ;;  %s1422_s19 = smov 125   ;;  %vm617_vm4 = vcmask 785408   ;;  %v584_v20 = vld [vmem:[#allocation4 + $0x8] sm:$0xff]  ;;  %v583_v21 = vld [vmem:[#allocation4] sm:$0xff]  ;;  %v585_v22 = vld [vmem:[#allocation4 + $0x10] sm:$0xff]  ;;  %vm473_vm5 = vcmask 261120  }
  0xa6   : > { %s1749_s27 = smov (!%p401_p5, %s1400_s27), 1  ;;  %1066 = vmatprep.mubr.msk.bf16.mxu1 %vm617_vm4, %v1194_v19  ;;  %v586_v23 = vld [vmem:[#allocation4 + $0x18] sm:$0xff]  ;;  %v1196_v24 = vld [vmem:[#allocation9] sm:$0xff]   ;;  %v693_v27 = vld [vmem:[#allocation7 + $0x10] sm:$0xff]  ;;  %vm840_vm12 = vcmask 257024  }
  0xa7   : > { %s1024_s12 = sshll.u32 %s1749_s27, 4  ;;  %1050 = vmatprep.mubr.msk.bf16.mxu0 %vm473_vm5, %v1196_v24  ;;  %v691_v25 = vld [vmem:[#allocation7] sm:$0xff]  ;;  %v692_v26 = vld [vmem:[#allocation7 + $0x8] sm:$0xff]  ;;  %v694_v28 = vld [vmem:[#allocation7 + $0x18] sm:$0xff] }
  0xa8   : > { %s405_s30 = scalar_lea.vmem %s1722_s0, %s1024_s12  ;;  %v423_v29 = vld [vmem:[#allocation10] sm:$0xff]  ;;  %v424_v30 = vld [vmem:[#allocation10 + $0x8] sm:$0xff]  ;;  %v425_v31 = vld [vmem:[#allocation10 + $0x10] sm:$0xff]  ;;  %s413_s18 = scalar_lea.vmem %s1730_s8, %s1024_s12 }
  0xa9   : > { %v415_v1 = vld [vmem:[%s405_s30] sm:$0xff]   ;;  %v417_v2 = vld [vmem:[%s405_s30 + $0x8] sm:$0xff]   ;;  %v782_v35 = vld [vmem:[%s1729_s7 + $0x10] sm:$0xff] }
  0xaa   : > { %v529_v3 = vunpack.c.l.bf16 %v415_v1  ;;  %v530_v4 = vunpack.c.h.bf16 %v415_v1  ;;  %v531_v5 = vunpack.c.l.bf16 %v417_v2  ;;  %v532_v6 = vunpack.c.h.bf16 %v417_v2  ;;  %v426_v32 = vld [vmem:[#allocation10 + $0x18] sm:$0xff]  ;;  %v780_v33 = vld [vmem:[%s1729_s7] sm:$0xff]  ;;  %v783_v36 = vld [vmem:[%s1729_s7 + $0x18] sm:$0xff] }
  0xab   : > { %v781_v34 = vld [vmem:[%s1729_s7 + $0x8] sm:$0xff]  ;;  %v1198_v61 = vld [vmem:[#allocation6] sm:$0xff]  }
  0xac   : > { %vm533_vm0 = vcmp.ge.f32.partialorder %v529_v3, 0.0  ;;  %vm534_vm1 = vcmp.ge.f32.partialorder %v530_v4, 0.0  ;;  %v537_v7 = vmul.f32 0.2, %v529_v3  ;;  %v538_v8 = vmul.f32 0.2, %v530_v4 }
  0xad   : > { %vm535_vm2 = vcmp.ge.f32.partialorder %v531_v5, 0.0  ;;  %vm536_vm3 = vcmp.ge.f32.partialorder %v532_v6, 0.0  ;;  %v539_v9 = vmul.f32 0.2, %v531_v5  ;;  %v540_v10 = vmul.f32 0.2, %v532_v6 }
  0xae   : > { %v541_v11 = vsel %vm533_vm0, %v529_v3, %v537_v7  ;;  %v542_v12 = vsel %vm534_vm1, %v530_v4, %v538_v8  ;;  %v1195_v53 = vld [vmem:[#allocation2 + $0x8] sm:$0xff]  }
  0xaf   : > { %v1180_v13 = vpack.i.bf16 %v542_v12, %v541_v11  ;;  %v543_v14 = vsel %vm535_vm2, %v531_v5, %v539_v9  ;;  %v544_v15 = vsel %vm536_vm3, %v532_v6, %v540_v10  ;;  %v573_v16 = vpack.c.bf16 %v542_v12, %v541_v11  ;;  %v1197_v60 = vld [vmem:[#allocation9 + $0x8] sm:$0xff]  }
  0xb0   : > { %v574_v17 = vpack.c.bf16 %v544_v15, %v543_v14  ;;  %v1185_v18 = vpack.i.bf16 %v544_v15, %v543_v14 }
  0xb1   : > { %1181 = vrot.lane.b32.xlu1 %v1180_v13, %s1421_s11  ;;  %1171 = vrot.lane.b32.xlu0 %v1180_v13, %s1422_s19 }
  0xb2   : > { %1054 = vmatprep.subr.bf16.mxu1 %v573_v16 }
  0xb3   : > { %1055 = vmatpush3.bf16.msra.mxu1 %v573_v16  ;;  %v1199_v16 = vld [vmem:[#allocation6 + $0x8] sm:$0xff]  }
  0xb4   : > { %1056 = vmatprep.subr.bf16.mxu1 %v574_v17 }
  0xb5   : > { %1186 = vrot.lane.b32.xlu1 %v1185_v18, %s1421_s11  ;;  %1176 = vrot.lane.b32.xlu0 %v1185_v18, %s1422_s19 }
  0xb7   : > { %1057 = vmatpush3.bf16.msra.mxu1 %v574_v17 }
  0xb9   : > { %594 = vperm.xlu1 %1191, %v584_v20   ;;  %589 = vperm.xlu0 %1190, %v583_v21  }
  0xbd   : > { %599 = vperm.xlu1 %1191, %v585_v22   ;;  %604 = vperm.xlu0 %1190, %v586_v23  }
  0xc1   : > { %467 = vrot.lane.b32.xlu1 %v415_v1, %s1422_s19  ;;  %469 = vrot.lane.b32.xlu0 %v417_v2, %s1422_s19 }
  0xc5   : > { %697 = vperm.xlu1 %1191, %v691_v25   ;;  %702 = vperm.xlu0 %1190, %v692_v26  }
  0xc9   : > { %707 = vperm.xlu1 %1191, %v693_v27   ;;  %712 = vperm.xlu0 %1190, %v694_v28  }
  0xcd   : > { %429 = vperm.xlu1 %1191, %v423_v29   ;;  %434 = vperm.xlu0 %1190, %v424_v30  }
  0xd1   : > { %439 = vperm.xlu1 %1191, %v425_v31   ;;  %444 = vperm.xlu0 %1190, %v426_v32  }
  0xd5   : > { %786 = vperm.xlu1 %1191, %v780_v33   ;;  %791 = vperm.xlu0 %1190, %v781_v34  }
  0xd9   : > { %796 = vperm.xlu1 %1191, %v782_v35   ;;  %801 = vperm.xlu0 %1190, %v783_v36  }
 0x123   : > { %v1172_v37 = vpop.permute.xlu0 %1171  ;;  %v1182_v38 = vpop.permute.xlu1 %1181 }
 0x124   : > { %v1174_v39 = vunpack.i.h.bf16 %v1172_v37  ;;  %v1173_v40 = vunpack.i.l.bf16 %v1172_v37  ;;  %v1184_v42 = vunpack.i.h.bf16 %v1182_v38  ;;  %v1183_v43 = vunpack.i.l.bf16 %v1182_v38 }
 0x126   : > { %v575_v41 = vpack.c.bf16 %v1174_v39, %v1173_v40  ;;  %v577_v49 = vpack.c.bf16 %v1184_v42, %v1183_v43 }
 0x127   : > { %v1177_v44 = vpop.permute.xlu0 %1176  ;;  %v1187_v45 = vpop.permute.xlu1 %1186 }
 0x128   : > { %v1179_v46 = vunpack.i.h.bf16 %v1177_v44  ;;  %v1178_v47 = vunpack.i.l.bf16 %v1177_v44  ;;  %1058 = vmatprep.subr.bf16.mxu1 %v575_v41  ;;  %v1189_v50 = vunpack.i.h.bf16 %v1187_v45  ;;  %v1188_v51 = vunpack.i.l.bf16 %v1187_v45 }
 0x129   : > { %1059 = vmatpush3.bf16.msra.mxu1 %v575_v41 }
 0x12a   : > { %v576_v48 = vpack.c.bf16 %v1179_v46, %v1178_v47  ;;  %v578_v52 = vpack.c.bf16 %v1189_v50, %v1188_v51 }
 0x12c   : > { %1060 = vmatprep.subr.bf16.mxu1 %v576_v48 }
 0x12d   : > { %1061 = vmatpush3.bf16.msra.mxu1 %v576_v48 }
 0x12e   : > { %1062 = vmatprep.subr.bf16.mxu1 %v577_v49 }
 0x131   : > { %1063 = vmatpush3.bf16.msra.mxu1 %v577_v49 }
 0x132   : > { %1064 = vmatprep.subr.bf16.mxu1 %v578_v52 }
 0x135   : > { %1065 = vmatpush3.bf16.msra.mxu1 %v578_v52 }
 0x138   : > { %v595_v54 = vpop.permute.xlu1 %594  ;;  %1067 = vmatmul.mubr.msk.bf16.vlgmr.msra.gmra.mrb[0].mxu1 %vm617_vm4, %v1195_v53  ;;  %v590_v55 = vpop.permute.xlu0 %589 }
 0x13c   : > { %v600_v56 = vpop.permute.xlu1 %599  ;;  %v605_v57 = vpop.permute.xlu0 %604 }
 0x140   : > { %v468_v58 = vpop.permute.xlu1 %467  ;;  %v470_v59 = vpop.permute.xlu0 %469 }
 0x141   : > { %1046 = vmatprep.subr.bf16.mxu0 %v468_v58 }
 0x142   : > { %1047 = vmatpush3.bf16.msra.mxu0 %v468_v58 }
 0x143   : > { %1048 = vmatprep.subr.bf16.mxu0 %v470_v59 }
 0x144   : > { %v698_v21 = vpop.permute.xlu1 %697  ;;  %v703_v22 = vpop.permute.xlu0 %702 }
 0x146   : > { %1049 = vmatpush3.bf16.msra.mxu0 %v470_v59 }
 0x148   : > { %v708_v23 = vpop.permute.xlu1 %707  ;;  %v713_v24 = vpop.permute.xlu0 %712 }
 0x149   : > { %1051 = vmatmul.mubr.msk.bf16.vlgmr.msra.gmra.mrb[0].mxu0 %vm473_vm5, %v1197_v60 }
 0x14a   : > { %1074 = vmatprep.mubr.msk.bf16.mxu0 %vm473_vm5, %v1198_v61 }
 0x14c   : > { %v430_v25 = vpop.permute.xlu1 %429  ;;  %v435_v26 = vpop.permute.xlu0 %434 }
 0x150   : > { %v440_v27 = vpop.permute.xlu1 %439  ;;  %v445_v28 = vpop.permute.xlu0 %444 }
 0x154   : > { %v787_v29 = vpop.permute.xlu1 %786  ;;  %v792_v30 = vpop.permute.xlu0 %791 }
 0x158   : > { %v797_v34 = vpop.permute.xlu1 %796  ;;  %v802_v41 = vpop.permute.xlu0 %801 }
 0x20b   : > { %v1068_v62 = vpop.f32.mrb[0].mxu1 }
 0x20c   : > { %v667_v63 = vadd.f32 %v1068_v62, %v600_v56  ;;  %v658_v0 = vpop.f32.mrb[1].mxu1 }
 0x20d   : > { %v659_v1 = vadd.f32 %v658_v0, %v590_v55  ;;  %v1069_v2 = vpop.f32.mrb[2].mxu1 }
 0x20e   : > { %v679_v3 = vmul.f32 0.2, %v667_v63  ;;  %v670_v4 = vadd.f32 %v1069_v2, %v605_v57  ;;  %v661_v5 = vpop.f32.mrb[3].mxu1  ;;  %vm675_vm6 = vcmp.ge.f32.partialorder %v667_v63, 0.0 }
 0x20f   : > { %v677_v6 = vmul.f32 0.2, %v659_v1  ;;  %v662_v7 = vadd.f32 %v661_v5, %v595_v54  ;;  %vm673_vm7 = vcmp.ge.f32.partialorder %v659_v1, 0.0 }
 0x210   : > { %vm676_vm8 = vcmp.ge.f32.partialorder %v670_v4, 0.0  ;;  %v680_v8 = vmul.f32 0.2, %v670_v4  ;;  %v683_v10 = vsel %vm675_vm6, %v667_v63, %v679_v3 }
 0x211   : > { %vm674_vm9 = vcmp.ge.f32.partialorder %v662_v7, 0.0  ;;  %v678_v9 = vmul.f32 0.2, %v662_v7  ;;  %v681_v12 = vsel %vm673_vm7, %v659_v1, %v677_v6 }
 0x212   : > { %v684_v11 = vsel %vm676_vm8, %v670_v4, %v680_v8 }
 0x213   : > { %v682_v13 = vsel %vm674_vm9, %v662_v7, %v678_v9  ;;  %v690_v14 = vpack.c.bf16 %v684_v11, %v683_v10 }
 0x214   : > { %v689_v15 = vpack.c.bf16 %v682_v13, %v681_v12 }
 0x216   : > { %1070 = vmatprep.subr.bf16.mxu0 %v689_v15 }
 0x217   : > { %1071 = vmatpush3.bf16.msra.mxu0 %v689_v15 }
 0x218   : > { %1072 = vmatprep.subr.bf16.mxu0 %v690_v14 }
 0x21b   : > { %1073 = vmatpush3.bf16.msra.mxu0 %v690_v14 }
 0x21c   : > { %v1052_v17 = vpop.f32.mrb[0].mxu0 }
 0x21d   : > { %v514_v18 = vpop.f32.mrb[1].mxu0  ;;  %v523_v37 = vadd.f32 %v1052_v17, %v440_v27 }
 0x21e   : > { %v1053_v19 = vpop.f32.mrb[2].mxu0  ;;  %1075 = vmatmul.mubr.msk.bf16.vlgmr.msra.gmra.mrb[4].mxu0 %vm473_vm5, %v1199_v16  ;;  %v515_v42 = vadd.f32 %v514_v18, %v430_v25 }
 0x21f   : > { %v517_v20 = vpop.f32.mrb[3].mxu0  ;;  %v526_v45 = vadd.f32 %v1053_v19, %v445_v28 }
 0x220   : > { %v518_v48 = vadd.f32 %v517_v20, %v435_v26 }
 0x2f1   : > { %v1076_v31 = vpop.f32.mrb[4].mxu0 }
 0x2f2   : > { %v774_v32 = vadd.f32 %v1076_v31, %v708_v23  ;;  %v765_v33 = vpop.f32.mrb[5].mxu0 }
 0x2f3   : > { %v766_v35 = vadd.f32 %v765_v33, %v698_v21  ;;  %v1077_v36 = vpop.f32.mrb[6].mxu0 }
 0x2f4   : > { %v806_v38 = vmul.f32 %v797_v34, %v774_v32  ;;  %v777_v39 = vadd.f32 %v1077_v36, %v713_v24  ;;  %v768_v40 = vpop.f32.mrb[7].mxu0 }
 0x2f5   : > { %v804_v43 = vmul.f32 %v787_v29, %v766_v35  ;;  %v769_v44 = vadd.f32 %v768_v40, %v703_v22 }
 0x2f6   : > { %v810_v46 = vadd.f32 %v806_v38, %v523_v37  ;;  %v807_v47 = vmul.f32 %v802_v41, %v777_v39 }
 0x2f7   : > { %v808_v49 = vadd.f32 %v804_v43, %v515_v42  ;;  %v805_v50 = vmul.f32 %v792_v30, %v769_v44 }
 0x2f8   : > { %vm814_vm10 = vcmp.ge.f32.partialorder %v810_v46, 0.0  ;;  %v818_v51 = vmul.f32 0.2, %v810_v46  ;;  %v811_v52 = vadd.f32 %v807_v47, %v526_v45 }
 0x2f9   : > { %vm812_vm11 = vcmp.ge.f32.partialorder %v808_v49, 0.0  ;;  %v816_v53 = vmul.f32 0.2, %v808_v49  ;;  %v809_v54 = vadd.f32 %v805_v50, %v518_v48 }
 0x2fa   : > { %v822_v55 = vsel %vm814_vm10, %v810_v46, %v818_v51  ;;  %vm815_vm13 = vcmp.ge.f32.partialorder %v811_v52, 0.0  ;;  %v819_v56 = vmul.f32 0.2, %v811_v52 }
 0x2fb   : > { %v1028_v57 = vpack.c.bf16 %v822_v55, %v822_v55  ;;  %v820_v58 = vsel %vm812_vm11, %v808_v49, %v816_v53  ;;  %vm813_vm14 = vcmp.ge.f32.partialorder %v809_v54, 0.0  ;;  %v817_v59 = vmul.f32 0.2, %v809_v54 }
 0x2fc   : > { %v1026_v60 = vpack.c.bf16 %v820_v58, %v820_v58  ;;  %v823_v61 = vsel %vm815_vm13, %v811_v52, %v819_v56 }
 0x2fd   : > { %843 = vst.msk [vmem:[%s413_s18 + $0x8] sm:$0xf] %vm840_vm12, %v1028_v57  ;;  %v1029_v62 = vpack.c.bf16 %v823_v61, %v823_v61  ;;  %v821_v63 = vsel %vm813_vm14, %v809_v54, %v817_v59 }
 0x2fe   : > { %841 = vst.msk [vmem:[%s413_s18] sm:$0xf] %vm840_vm12, %v1026_v60  ;;  %v1027_v0 = vpack.c.bf16 %v821_v63, %v821_v63 }
 0x2ff   : > { %844 = vst.msk [vmem:[%s413_s18 + $0xc] sm:$0xf] %vm840_vm12, %v1029_v62 }
 0x300   : > { %842 = vst.msk [vmem:[%s413_s18 + $0x4] sm:$0xf] %vm840_vm12, %v1027_v0 }
 0x301 PF: > { %s22_s29 = sadd.s32 1, %s1408_s29   ;;  %s1744_s27 = smov %s1404_s28 }
 0x302   : > { %p19_p3 = scmp.ge.s32.totalorder %s22_s29, 4   ;;  %s1745_s28 = smov %s1747_s16 }
 0x304   :  { %21 = sbr.rel (!%p19_p3) target bundleno = 5 (0x5), region = 107 }
 0x30b   :  { %872 = vsyncpa [#allocation3], 1 }
 0x30c   :  { %874 = vsyncpa [#allocation3 + $0x1], 1 }
 0x30d   :  { %875 = vsyncpa [#allocation5], 1 }
 0x30e   :  { %876 = vsyncpa [#allocation8], 1 }
 0x30f   :  { %877 = vsyncpa [#allocation11], 1 }

// kernel: forward.19
= control target key start
LH: loop header
LB: loop body
LE: loop exit
PB: predicated region body
PF: predicated region fallthrough
CT: control target
= control target key end

     0   :  { %s884_s27 = smov 0   ;;  %s886_s28 = smov 0   ;;  %s967_s0 = inlined_call_operand.vmem [shape: bf16[2,16,162], index: 0, kind: input, shape index: {}]   ;;  %s968_s1 = inlined_call_operand.vmem [shape: bf16[16,48], index: 1, kind: input, shape index: {}]   ;;  %s969_s2 = inlined_call_operand.vmem [shape: f32[16,1], index: 2, kind: input, shape index: {}]   ;;  %s970_s3 = inlined_call_operand.vmem [shape: bf16[16,16], index: 3, kind: input, shape index: {}]   ;;  %s971_s4 = inlined_call_operand.vmem [shape: f32[16,1], index: 4, kind: input, shape index: {}]   ;;  %s972_s5 = inlined_call_operand.vmem [shape: bf16[16,16], index: 5, kind: input, shape index: {}]   ;;  %s973_s6 = inlined_call_operand.vmem [shape: f32[16,1], index: 6, kind: input, shape index: {}]   ;;  %s974_s7 = inlined_call_operand.vmem [shape: f32[16,1], index: 7, kind: input, shape index: {}]   ;;  %s975_s8 = inlined_call_operand.vmem [shape: bf16[2,16,160], index: 8, kind: output, shape index: {}]  }
   0x1   :  { %s888_s29 = smov 0  }
   0x2 LB: > { %s30_s30 = sadd.s32 1, %s830_s28  ;;  %p737_p0 = scmp.ge.s32.totalorder %s834_s29, 1  ;;  %s834_s29 = sphi %s888_s29, %s18_s29   ;;  %s830_s28 = sphi %s886_s28, %s977_s28   ;;  %s826_s27 = sphi %s884_s27, %s976_s27  }
   0x3   : > { %p32_p1 = scmp.ge.s32.totalorder %s30_s30, 2  ;;  %p276_p2 = scmp.lt.s32.totalorder %s834_s29, 3 }
   0x5   : > { %s979_s30 = smov (%p32_p1, %s30_s30), 0  ;;  %p277_p3 = pnand %p737_p0, %p276_p2 }
   0x6   : > { %p314_p4 = scmp.lt.s32.totalorder (!%p277_p3), %s826_s27, 1  ;;  %v836_v0 = vmov (!%p277_p3), 0   ;;  %s837_s13 = smov (!%p277_p3), 126   ;;  %v473_v19 = vld [vmem:[%s969_s2 + $0x8] sm:$0xff] (!%p277_p3)  ;;  %v472_v20 = vld [vmem:[%s969_s2] sm:$0xff] (!%p277_p3)  ;;  %vm363_vm4 = vcmask (!%p277_p3), 1039360  }
   0x7   : > { %280 = sbr.rel (%p277_p3) target bundleno = 606 (0x25e), region = 52  ;;  %806 = vset.pattern.permute.xlu1 (!%p277_p3), %v836_v0  ;;  %805 = vset.pattern.permute.xlu0 (!%p277_p3), %v836_v0  ;;  %s838_s14 = smov (!%p277_p3), 127   ;;  %v553_v23 = vld [vmem:[%s971_s4 + $0x8] sm:$0xff] (!%p277_p3)  ;;  %v552_v24 = vld [vmem:[%s971_s4] sm:$0xff] (!%p277_p3)  ;;  %vm457_vm5 = vcmask (!%p277_p3), 1031168   ;;  %vm489_vm6 = vcmask (!%p277_p3), 392192  }
   0x8   : > { %525 = vmatprep.mubr.bf16.mxu1 (!%p277_p3), %v836_v0  ;;  %403 = vmatprep.mubr.bf16.mxu0 (!%p277_p3), %v836_v0  ;;  %v335_v25 = vld [vmem:[%s973_s6 + $0x8] sm:$0xff] (!%p277_p3)  ;;  %v334_v26 = vld [vmem:[%s973_s6] sm:$0xff] (!%p277_p3)  ;;  %vm367_vm7 = vcmask (!%p277_p3), 130048   ;;  %vm647_vm12 = vcmask (!%p277_p3), 1043456   ;;  %vm648_vm13 = vcmask (!%p277_p3), 261124  }
   0x9   : > { %v616_v27 = vld [vmem:[%s974_s7 + $0x8] sm:$0xff] (!%p277_p3)  ;;  %v615_v28 = vld [vmem:[%s974_s7] sm:$0xff] (!%p277_p3)  ;;  %vm649_vm14 = vmor (!%p277_p3), %vm648_vm13, %vm647_vm12 }
   0xa   : > { %v809_v49 = vld [vmem:[%s968_s1] sm:$0xff] (!%p277_p3)  }
   0xb   : > { %v810_v55 = vld [vmem:[%s972_s5] sm:$0xff] (!%p277_p3)  }
   0xe   : > { %s981_s27 = smov (!%p314_p4, %s826_s27), 1 }
   0xf   : > { %s754_s9 = sshll.u32 %s981_s27, 4 }
  0x10   : > { %s318_s12 = scalar_lea.vmem %s967_s0, %s754_s9  ;;  %s327_s22 = scalar_lea.vmem %s975_s8, %s754_s9 }
  0x11   : > { %v330_v1 = vld [vmem:[%s318_s12] sm:$0xff]  ;;  %v331_v2 = vld [vmem:[%s318_s12 + $0x8] sm:$0xff] }
  0x12   : > { %v414_v3 = vunpack.c.l.bf16 %v330_v1  ;;  %v415_v4 = vunpack.c.h.bf16 %v330_v1  ;;  %v416_v5 = vunpack.c.l.bf16 %v331_v2  ;;  %v417_v6 = vunpack.c.h.bf16 %v331_v2 }
  0x13   : > { %v744_v21 = vcombine.high %v330_v1, %v331_v2  ;;  %v743_v22 = vcombine.low %v330_v1, %v331_v2 }
  0x14   : > { %vm418_vm0 = vcmp.ge.f32.partialorder %v414_v3, 0.0  ;;  %vm419_vm1 = vcmp.ge.f32.partialorder %v415_v4, 0.0  ;;  %v422_v7 = vmul.f32 0.2, %v414_v3  ;;  %v423_v8 = vmul.f32 0.2, %v415_v4 }
  0x15   : > { %vm420_vm2 = vcmp.ge.f32.partialorder %v416_v5, 0.0  ;;  %vm421_vm3 = vcmp.ge.f32.partialorder %v417_v6, 0.0  ;;  %v424_v9 = vmul.f32 0.2, %v416_v5  ;;  %v425_v10 = vmul.f32 0.2, %v417_v6 }
  0x16   : > { %v426_v11 = vsel %vm418_vm0, %v414_v3, %v422_v7  ;;  %v427_v12 = vsel %vm419_vm1, %v415_v4, %v423_v8 }
  0x17   : > { %v795_v13 = vpack.i.bf16 %v427_v12, %v426_v11  ;;  %v428_v14 = vsel %vm420_vm2, %v416_v5, %v424_v9  ;;  %v429_v15 = vsel %vm421_vm3, %v417_v6, %v425_v10  ;;  %v811_v10 = vld [vmem:[%s970_s3] sm:$0xff]  }
  0x18   : > { %v465_v16 = vpack.c.bf16 %v429_v15, %v427_v12  ;;  %v464_v17 = vpack.c.bf16 %v428_v14, %v426_v11  ;;  %v800_v18 = vpack.i.bf16 %v429_v15, %v428_v14 }
  0x19   : > { %796 = vrot.lane.b32.xlu1 %v795_v13, %s837_s13  ;;  %786 = vrot.lane.b32.xlu0 %v795_v13, %s838_s14 }
  0x1a   : > { %493 = vmatprep.subr.bf16.mxu1 %v465_v16 }
  0x1b   : > { %494 = vmatpush1.bf16.msra.mxu1 %v464_v17 }
  0x1d   : > { %801 = vrot.lane.b32.xlu1 %v800_v18, %s837_s13  ;;  %791 = vrot.lane.b32.xlu0 %v800_v18, %s838_s14 }
  0x21   : > { %481 = vperm.xlu1 %806, %v473_v19   ;;  %476 = vperm.xlu0 %805, %v472_v20  }
  0x25   : > { %361 = vrot.lane.b32.xlu0 %v744_v21, %s838_s14  ;;  %359 = vrot.lane.b32.xlu1 %v743_v22, %s838_s14 }
  0x29   : > { %561 = vperm.xlu0 %805, %v553_v23   ;;  %556 = vperm.xlu1 %806, %v552_v24  }
  0x2d   : > { %343 = vperm.xlu0 %805, %v335_v25   ;;  %338 = vperm.xlu1 %806, %v334_v26  }
  0x31   : > { %624 = vperm.xlu0 %805, %v616_v27   ;;  %619 = vperm.xlu1 %806, %v615_v28  }
  0x8b   : > { %v797_v29 = vpop.permute.xlu1 %796  ;;  %v787_v30 = vpop.permute.xlu0 %786 }
  0x8c   : > { %v789_v31 = vunpack.i.h.bf16 %v787_v30  ;;  %v788_v32 = vunpack.i.l.bf16 %v787_v30  ;;  %v799_v33 = vunpack.i.h.bf16 %v797_v29  ;;  %v798_v34 = vunpack.i.l.bf16 %v797_v29 }
  0x8e   : > { %v443_v42 = vsel %vm363_vm4, %v788_v32, %v789_v31  ;;  %v458_v46 = vsel %vm457_vm5, %v798_v34, %v799_v33 }
  0x8f   : > { %v802_v35 = vpop.permute.xlu1 %801  ;;  %v792_v36 = vpop.permute.xlu0 %791 }
  0x90   : > { %v804_v37 = vunpack.i.h.bf16 %v802_v35  ;;  %v803_v38 = vunpack.i.l.bf16 %v802_v35  ;;  %v794_v39 = vunpack.i.h.bf16 %v792_v36  ;;  %v793_v40 = vunpack.i.l.bf16 %v792_v36 }
  0x92   : > { %v467_v41 = vpack.c.bf16 %v794_v39, %v789_v31  ;;  %v444_v43 = vsel %vm363_vm4, %v793_v40, %v794_v39  ;;  %v469_v45 = vpack.c.bf16 %v804_v37, %v799_v33  ;;  %v459_v47 = vsel %vm457_vm5, %v803_v38, %v804_v37 }
  0x93   : > { %v466_v44 = vpack.c.bf16 %v444_v43, %v443_v42  ;;  %v468_v48 = vpack.c.bf16 %v459_v47, %v458_v46 }
  0x94   : > { %495 = vmatprep.subr.bf16.mxu1 %v467_v41 }
  0x95   : > { %496 = vmatpush1.bf16.msra.mxu1 %v466_v44 }
  0x96   : > { %497 = vmatprep.subr.bf16.mxu1 %v469_v45 }
  0x99   : > { %498 = vmatpush1.bf16.msra.mxu1 %v468_v48 }
  0x9c   : > { %747 = vmatmul.mubr.msk.bf16.vlgmr.msra.gmra.mrb[0].mxu1 %vm489_vm6, %v809_v49 }
  0xa0   : > { %v482_v50 = vpop.permute.xlu1 %481  ;;  %v477_v51 = vpop.permute.xlu0 %476 }
  0xa4   : > { %v362_v52 = vpop.permute.xlu0 %361  ;;  %v360_v53 = vpop.permute.xlu1 %359 }
  0xa5   : > { %371 = vmatprep.subr.bf16.mxu0 %v362_v52  ;;  %v364_v54 = vsel %vm363_vm4, %v360_v53, %v362_v52 }
  0xa6   : > { %372 = vmatpush1.bf16.msra.mxu0 %v364_v54 }
  0xa8   : > { %v557_v15 = vpop.permute.xlu1 %556  ;;  %v562_v16 = vpop.permute.xlu0 %561 }
  0xa9   : > { %745 = vmatmul.mubr.msk.bf16.vlgmr.msra.gmra.mrb[0].mxu0 %vm367_vm7, %v810_v55 }
  0xaa   : > { %604 = vmatprep.mubr.bf16.mxu0 %v836_v0 }
  0xac   : > { %v339_v17 = vpop.permute.xlu1 %338  ;;  %v344_v18 = vpop.permute.xlu0 %343 }
  0xb0   : > { %v620_v22 = vpop.permute.xlu1 %619  ;;  %v625_v30 = vpop.permute.xlu0 %624 }
 0x16f   : > { %v527_v56 = vpop.f32.mrb[0].mxu1 }
 0x170   : > { %v528_v57 = vadd.f32 %v527_v56, %v477_v51  ;;  %v529_v58 = vpop.f32.mrb[1].mxu1 }
 0x171   : > { %v530_v59 = vadd.f32 %v529_v58, %v477_v51  ;;  %v531_v60 = vpop.f32.mrb[2].mxu1 }
 0x172   : > { %v540_v61 = vmul.f32 0.2, %v528_v57  ;;  %v532_v62 = vadd.f32 %v531_v60, %v482_v50  ;;  %v533_v63 = vpop.f32.mrb[3].mxu1  ;;  %vm536_vm8 = vcmp.ge.f32.partialorder %v528_v57, 0.0 }
 0x173   : > { %v541_v1 = vmul.f32 0.2, %v530_v59  ;;  %v534_v2 = vadd.f32 %v533_v63, %v482_v50  ;;  %vm537_vm9 = vcmp.ge.f32.partialorder %v530_v59, 0.0 }
 0x174   : > { %vm538_vm10 = vcmp.ge.f32.partialorder %v532_v62, 0.0  ;;  %v542_v3 = vmul.f32 0.2, %v532_v62  ;;  %v544_v5 = vsel %vm536_vm8, %v528_v57, %v540_v61 }
 0x175   : > { %vm539_vm11 = vcmp.ge.f32.partialorder %v534_v2, 0.0  ;;  %v543_v4 = vmul.f32 0.2, %v534_v2  ;;  %v545_v0 = vsel %vm537_vm9, %v530_v59, %v541_v1 }
 0x176   : > { %v546_v6 = vsel %vm538_vm10, %v532_v62, %v542_v3 }
 0x177   : > { %v550_v7 = vpack.c.bf16 %v546_v6, %v544_v5  ;;  %v547_v8 = vsel %vm539_vm11, %v534_v2, %v543_v4 }
 0x178   : > { %v551_v9 = vpack.c.bf16 %v547_v8, %v545_v0 }
 0x17a   : > { %572 = vmatprep.subr.bf16.mxu0 %v551_v9 }
 0x17b   : > { %573 = vmatpush1.bf16.msra.mxu0 %v550_v7 }
 0x17c   : > { %v405_v11 = vpop.f32.mrb[0].mxu0 }
 0x17d   : > { %v407_v12 = vpop.f32.mrb[1].mxu0  ;;  %v406_v25 = vadd.f32 %v405_v11, %v339_v17 }
 0x17e   : > { %v409_v13 = vpop.f32.mrb[2].mxu0  ;;  %749 = vmatmul.mubr.msk.bf16.vlgmr.msra.gmra.mrb[4].mxu0 %vm367_vm7, %v811_v10  ;;  %v408_v26 = vadd.f32 %v407_v12, %v339_v17 }
 0x17f   : > { %v411_v14 = vpop.f32.mrb[3].mxu0  ;;  %v410_v33 = vadd.f32 %v409_v13, %v344_v18 }
 0x180   : > { %v412_v36 = vadd.f32 %v411_v14, %v344_v18 }
 0x251   : > { %v606_v19 = vpop.f32.mrb[4].mxu0 }
 0x252   : > { %v607_v20 = vadd.f32 %v606_v19, %v557_v15  ;;  %v608_v21 = vpop.f32.mrb[5].mxu0 }
 0x253   : > { %v609_v23 = vadd.f32 %v608_v21, %v557_v15  ;;  %v610_v24 = vpop.f32.mrb[6].mxu0 }
 0x254   : > { %v627_v27 = vmul.f32 %v620_v22, %v607_v20  ;;  %v611_v28 = vadd.f32 %v610_v24, %v562_v16  ;;  %v612_v29 = vpop.f32.mrb[7].mxu0 }
 0x255   : > { %v628_v31 = vmul.f32 %v620_v22, %v609_v23  ;;  %v613_v32 = vadd.f32 %v612_v29, %v562_v16 }
 0x256   : > { %v631_v34 = vadd.f32 %v627_v27, %v406_v25  ;;  %v629_v35 = vmul.f32 %v625_v30, %v611_v28 }
 0x257   : > { %v632_v37 = vadd.f32 %v628_v31, %v408_v26  ;;  %v630_v38 = vmul.f32 %v625_v30, %v613_v32 }
 0x258   : > { %v633_v39 = vadd.f32 %v629_v35, %v410_v33 }
 0x259   : > { %v756_v40 = vpack.c.bf16 %v632_v37, %v631_v34  ;;  %v634_v41 = vadd.f32 %v630_v38, %v412_v36 }
 0x25b   : > { %650 = vst.msk [vmem:[%s327_s22] sm:$0xff] %vm649_vm14, %v756_v40  ;;  %v757_v42 = vpack.c.bf16 %v634_v41, %v633_v39 }
 0x25d   : > { %651 = vst.msk [vmem:[%s327_s22 + $0x8] sm:$0xff] %vm649_vm14, %v757_v42 }
 0x25e PF: > { %s18_s29 = sadd.s32 1, %s834_s29   ;;  %s976_s27 = smov %s830_s28 }
 0x25f   : > { %p15_p5 = scmp.ge.s32.totalorder %s18_s29, 4   ;;  %s977_s28 = smov %s979_s30 }
 0x261   :  { %17 = sbr.rel (!%p15_p5) target bundleno = 2 (0x2), region = 82 }

// kernel: forward.21
= control target key start
LH: loop header
LB: loop body
LE: loop exit
PB: predicated region body
PF: predicated region fallthrough
CT: control target
= control target key end

     0   :  { %s618_s12 = smov 0   ;;  %s620_s13 = smov 0   ;;  %s693_s0 = inlined_call_operand.vmem [shape: bf16[2,16,162], index: 0, kind: input, shape index: {}]   ;;  %s694_s1 = inlined_call_operand.vmem [shape: bf16[40,48], index: 1, kind: input, shape index: {}]   ;;  %s695_s2 = inlined_call_operand.vmem [shape: f32[40,1], index: 2, kind: input, shape index: {}]   ;;  %s696_s3 = inlined_call_operand.vmem [shape: bf16[2,40,160], index: 3, kind: output, shape index: {}]  }
   0x1   :  { %s622_s14 = smov 0  }
   0x2 LB: > { %s25_s15 = sadd.s32 1, %s589_s13  ;;  %p485_p0 = scmp.ge.s32.totalorder %s593_s14, 1  ;;  %s593_s14 = sphi %s622_s14, %s13_s14   ;;  %s589_s13 = sphi %s620_s13, %s700_s13   ;;  %s585_s12 = sphi %s618_s12, %s699_s12  }
   0x3   : > { %p27_p1 = scmp.ge.s32.totalorder %s25_s15, 2  ;;  %p151_p2 = scmp.lt.s32.totalorder %s593_s14, 3 }
   0x5   : > { %s702_s15 = smov (%p27_p1, %s25_s15), 0  ;;  %p152_p3 = pnand %p485_p0, %p151_p2 }
   0x6   : > { %p179_p4 = scmp.lt.s32.totalorder (!%p152_p3), %s585_s12, 1  ;;  %s595_s20 = smov (!%p152_p3), 126   ;;  %v597_v10 = vmov (!%p152_p3), 0   ;;  %v247_v11 = vld [vmem:[%s695_s2 + $0x8] sm:$0xff] (!%p152_p3)  ;;  %v246_v12 = vld [vmem:[%s695_s2] sm:$0xff] (!%p152_p3)  ;;  %v248_v13 = vld [vmem:[%s695_s2 + $0x10] sm:$0xff] (!%p152_p3) }
   0x7   : > { %155 = sbr.rel (%p152_p3) target bundleno = 379 (0x17b), region = 32  ;;  %s596_s21 = smov (!%p152_p3), 127   ;;  %331 = vmatprep.mubr.bf16.mxu0 (!%p152_p3), %v597_v10  ;;  %341 = vmatprep.mubr.bf16.mxu1 (!%p152_p3), %v597_v10  ;;  %v249_v14 = vld [vmem:[%s695_s2 + $0x18] sm:$0xff] (!%p152_p3)  ;;  %v250_v15 = vld [vmem:[%s695_s2 + $0x20] sm:$0xff] (!%p152_p3)  ;;  %vm213_vm0 = vcmask (!%p152_p3), 1039360   ;;  %vm228_vm1 = vcmask (!%p152_p3), 1031168  }
   0x8   : > { %565 = vset.pattern.permute.xlu1 (!%p152_p3), %v597_v10  ;;  %564 = vset.pattern.permute.xlu0 (!%p152_p3), %v597_v10  ;;  %v568_v36 = vld [vmem:[%s694_s1] sm:$0xff] (!%p152_p3)   ;;  %v569_v37 = vld [vmem:[%s694_s1 + $0x8] sm:$0xff] (!%p152_p3)   ;;  %vm289_vm2 = vcmask (!%p152_p3), 392192   ;;  %v570_v38 = vld [vmem:[%s694_s1 + $0x10] ss:$0 sps:$4 sm:$0xff] (!%p152_p3)   ;;  %vm392_vm3 = vcmask (!%p152_p3), 1043456  }
   0x9   : > { %vm393_vm4 = vcmask (!%p152_p3), 261124  }
   0xa   : > { %vm670_vm5 = vmor (!%p152_p3), %vm393_vm4, %vm392_vm3 }
   0xe   : > { %s704_s12 = smov (!%p179_p4, %s585_s12), 1 }
   0xf   : > { %s504_s16 = sshll.u32 %s704_s12, 4  ;;  %s516_s11 = smul.u32 40, %s704_s12 }
  0x10   : > { %s183_s19 = scalar_lea.vmem %s693_s0, %s504_s16 }
  0x11   : > { %v195_v0 = vld [vmem:[%s183_s19] sm:$0xff]  ;;  %v196_v1 = vld [vmem:[%s183_s19 + $0x8] sm:$0xff]  ;;  %s192_s18 = scalar_lea.vmem %s696_s3, %s516_s11 }
  0x12   : > { %v197_v2 = vunpack.c.l.bf16 %v195_v0  ;;  %v198_v3 = vunpack.c.h.bf16 %v195_v0  ;;  %v199_v4 = vunpack.c.l.bf16 %v196_v1  ;;  %v200_v5 = vunpack.c.h.bf16 %v196_v1 }
  0x13   : > { %v490_v6 = vcombine.high %v195_v0, %v196_v1  ;;  %v489_v7 = vcombine.low %v195_v0, %v196_v1 }
  0x14   : > { %v554_v8 = vpack.i.bf16 %v198_v3, %v197_v2  ;;  %v559_v9 = vpack.i.bf16 %v200_v5, %v199_v4 }
  0x15   : > { %299 = vmatprep.subr.bf16.mxu0 %v490_v6  ;;  %510 = vmatprep.subr.bf16.mxu1 %v490_v6 }
  0x16   : > { %555 = vrot.lane.b32.xlu1 %v554_v8, %s595_s20  ;;  %545 = vrot.lane.b32.xlu0 %v554_v8, %s596_s21 }
  0x17   : > { %300 = vmatpush1.bf16.msra.mxu0 %v489_v7  ;;  %513 = vmatpush1.bf16.msra.mxu1 %v489_v7 }
  0x1a   : > { %560 = vrot.lane.b32.xlu1 %v559_v9, %s595_s20  ;;  %550 = vrot.lane.b32.xlu0 %v559_v9, %s596_s21 }
  0x1e   : > { %258 = vperm.xlu1 %565, %v247_v11   ;;  %253 = vperm.xlu0 %564, %v246_v12  }
  0x22   : > { %263 = vperm.xlu1 %565, %v248_v13   ;;  %268 = vperm.xlu0 %564, %v249_v14  }
  0x26   : > { %273 = vperm.xlu1 %565, %v250_v15  }
  0x88   : > { %v556_v16 = vpop.permute.xlu1 %555  ;;  %v546_v17 = vpop.permute.xlu0 %545 }
  0x89   : > { %v548_v18 = vunpack.i.h.bf16 %v546_v17  ;;  %v547_v19 = vunpack.i.l.bf16 %v546_v17  ;;  %v558_v20 = vunpack.i.h.bf16 %v556_v16  ;;  %v557_v21 = vunpack.i.l.bf16 %v556_v16 }
  0x8b   : > { %v214_v29 = vsel %vm213_vm0, %v547_v19, %v548_v18  ;;  %v229_v33 = vsel %vm228_vm1, %v557_v21, %v558_v20 }
  0x8c   : > { %v561_v22 = vpop.permute.xlu1 %560  ;;  %v551_v23 = vpop.permute.xlu0 %550 }
  0x8d   : > { %v563_v24 = vunpack.i.h.bf16 %v561_v22  ;;  %v562_v25 = vunpack.i.l.bf16 %v561_v22  ;;  %v553_v26 = vunpack.i.h.bf16 %v551_v23  ;;  %v552_v27 = vunpack.i.l.bf16 %v551_v23 }
  0x8f   : > { %v238_v28 = vpack.c.bf16 %v553_v26, %v548_v18  ;;  %v215_v30 = vsel %vm213_vm0, %v552_v27, %v553_v26  ;;  %v240_v32 = vpack.c.bf16 %v563_v24, %v558_v20  ;;  %v230_v34 = vsel %vm228_vm1, %v562_v25, %v563_v24 }
  0x90   : > { %v237_v31 = vpack.c.bf16 %v215_v30, %v214_v29  ;;  %v239_v35 = vpack.c.bf16 %v230_v34, %v229_v33 }
  0x91   : > { %301 = vmatprep.subr.bf16.mxu0 %v238_v28  ;;  %511 = vmatprep.subr.bf16.mxu1 %v238_v28 }
  0x92   : > { %302 = vmatpush1.bf16.msra.mxu0 %v237_v31  ;;  %514 = vmatpush1.bf16.msra.mxu1 %v237_v31 }
  0x93   : > { %303 = vmatprep.subr.bf16.mxu0 %v240_v32  ;;  %512 = vmatprep.subr.bf16.mxu1 %v240_v32 }
  0x96   : > { %304 = vmatpush1.bf16.msra.mxu0 %v239_v35  ;;  %515 = vmatpush1.bf16.msra.mxu1 %v239_v35 }
  0x99   : > { %494 = vmatmul.mubr.msk.bf16.vlgmr.msra.gmra.mrb[0].mxu0 %vm289_vm2, %v568_v36  ;;  %495 = vmatmul.mubr.msk.bf16.vlgmr.msra.gmra.mrb[0].mxu1 %vm289_vm2, %v569_v37 }
  0x9a   : > { %351 = vmatprep.mubr.bf16.mxu1 %v597_v10 }
  0x9d   : > { %v259_v39 = vpop.permute.xlu1 %258  ;;  %v254_v40 = vpop.permute.xlu0 %253 }
  0xa1   : > { %496 = vmatmul.mubr.msk.bf16.gmra.mrb[4].mxu1 %vm289_vm2, %v570_v38  ;;  %v264_v41 = vpop.permute.xlu1 %263  ;;  %v269_v42 = vpop.permute.xlu0 %268 }
  0xa5   : > { %v274_v0 = vpop.permute.xlu1 %273 }
 0x16c   : > { %v333_v43 = vpop.f32.mrb[0].mxu0  ;;  %v343_v44 = vpop.f32.mrb[0].mxu1 }
 0x16d   : > { %v334_v45 = vadd.f32 %v333_v43, %v254_v40  ;;  %v344_v46 = vadd.f32 %v343_v44, %v264_v41  ;;  %v335_v47 = vpop.f32.mrb[1].mxu0  ;;  %v345_v48 = vpop.f32.mrb[1].mxu1 }
 0x16e   : > { %v336_v49 = vadd.f32 %v335_v47, %v254_v40  ;;  %v346_v50 = vadd.f32 %v345_v48, %v264_v41  ;;  %v337_v51 = vpop.f32.mrb[2].mxu0  ;;  %v347_v52 = vpop.f32.mrb[2].mxu1 }
 0x16f   : > { %v338_v54 = vadd.f32 %v337_v51, %v259_v39  ;;  %v348_v55 = vadd.f32 %v347_v52, %v269_v42  ;;  %v339_v56 = vpop.f32.mrb[3].mxu0  ;;  %v349_v57 = vpop.f32.mrb[3].mxu1 }
 0x170   : > { %v505_v58 = vpack.c.bf16 %v336_v49, %v334_v45  ;;  %v507_v59 = vpack.c.bf16 %v346_v50, %v344_v46  ;;  %v340_v60 = vadd.f32 %v339_v56, %v259_v39  ;;  %v350_v61 = vadd.f32 %v349_v57, %v269_v42 }
 0x172   : > { %395 = vst.msk [vmem:[%s192_s18] sm:$0xff] %vm670_vm5, %v505_v58  ;;  %397 = vst.msk [vmem:[%s192_s18 + $0x10] sm:$0xff] %vm670_vm5, %v507_v59  ;;  %v506_v62 = vpack.c.bf16 %v340_v60, %v338_v54  ;;  %v508_v63 = vpack.c.bf16 %v350_v61, %v348_v55 }
 0x174   : > { %396 = vst.msk [vmem:[%s192_s18 + $0x8] sm:$0xff] %vm670_vm5, %v506_v62  ;;  %398 = vst.msk [vmem:[%s192_s18 + $0x18] sm:$0xff] %vm670_vm5, %v508_v63  ;;  %v353_v1 = vpop.f32.mrb[4].mxu1 }
 0x175   : > { %v354_v2 = vadd.f32 %v353_v1, %v274_v0  ;;  %v355_v3 = vpop.f32.mrb[5].mxu1 }
 0x176   : > { %v356_v4 = vadd.f32 %v355_v3, %v274_v0  ;;  %v357_v5 = vpop.f32.mrb[6].mxu1 }
 0x177   : > { %v358_v6 = vpop.f32.mrb[7].mxu1 }
 0x178   : > { %v509_v7 = vpack.c.bf16 %v356_v4, %v354_v2 }
 0x17a   : > { %399 = vst.msk [vmem:[%s192_s18 + $0x20] sm:$0xff] %vm670_vm5, %v509_v7 }
 0x17b PF: > { %s13_s14 = sadd.s32 1, %s593_s14   ;;  %s699_s12 = smov %s589_s13 }
 0x17c   : > { %p10_p5 = scmp.ge.s32.totalorder %s13_s14, 4   ;;  %s700_s13 = smov %s702_s15 }
 0x17e   :  { %12 = sbr.rel (!%p10_p5) target bundleno = 2 (0x2), region = 62 }

// kernel: forward.20
= control target key start
LH: loop header
LB: loop body
LE: loop exit
PB: predicated region body
PF: predicated region fallthrough
CT: control target
= control target key end

     0   :  { %s896_s27 = smov 0   ;;  %s898_s28 = smov 0   ;;  %s979_s0 = inlined_call_operand.vmem [shape: bf16[2,16,166], index: 0, kind: input, shape index: {}]   ;;  %s980_s1 = inlined_call_operand.vmem [shape: bf16[16,48], index: 1, kind: input, shape index: {}]   ;;  %s981_s2 = inlined_call_operand.vmem [shape: f32[16,1], index: 2, kind: input, shape index: {}]   ;;  %s982_s3 = inlined_call_operand.vmem [shape: bf16[16,16], index: 3, kind: input, shape index: {}]   ;;  %s983_s4 = inlined_call_operand.vmem [shape: f32[16,1], index: 4, kind: input, shape index: {}]   ;;  %s984_s5 = inlined_call_operand.vmem [shape: bf16[16,16], index: 5, kind: input, shape index: {}]   ;;  %s985_s6 = inlined_call_operand.vmem [shape: f32[16,1], index: 6, kind: input, shape index: {}]   ;;  %s986_s7 = inlined_call_operand.vmem [shape: f32[16,1], index: 7, kind: input, shape index: {}]   ;;  %s987_s8 = inlined_call_operand.vmem [shape: bf16[2,16,160], index: 8, kind: output, shape index: {}]  }
   0x1   :  { %s900_s29 = smov 0  }
   0x2 LB: > { %s30_s30 = sadd.s32 1, %s842_s28  ;;  %p749_p0 = scmp.ge.s32.totalorder %s846_s29, 1  ;;  %s846_s29 = sphi %s900_s29, %s18_s29   ;;  %s842_s28 = sphi %s898_s28, %s989_s28   ;;  %s838_s27 = sphi %s896_s27, %s988_s27  }
   0x3   : > { %p32_p1 = scmp.ge.s32.totalorder %s30_s30, 2  ;;  %p276_p2 = scmp.lt.s32.totalorder %s846_s29, 3 }
   0x5   : > { %s991_s30 = smov (%p32_p1, %s30_s30), 0  ;;  %p277_p3 = pnand %p749_p0, %p276_p2 }
   0x6   : > { %p314_p4 = scmp.lt.s32.totalorder (!%p277_p3), %s838_s27, 1  ;;  %v848_v0 = vmov (!%p277_p3), 0   ;;  %s849_s13 = smov (!%p277_p3), 122   ;;  %v473_v19 = vld [vmem:[%s981_s2 + $0x8] sm:$0xff] (!%p277_p3)  ;;  %v472_v20 = vld [vmem:[%s981_s2] sm:$0xff] (!%p277_p3)  ;;  %vm363_vm4 = vcmask (!%p277_p3), 1022976  }
   0x7   : > { %280 = sbr.rel (%p277_p3) target bundleno = 609 (0x261), region = 52  ;;  %818 = vset.pattern.permute.xlu1 (!%p277_p3), %v848_v0  ;;  %817 = vset.pattern.permute.xlu0 (!%p277_p3), %v848_v0  ;;  %s850_s14 = smov (!%p277_p3), 125   ;;  %v553_v23 = vld [vmem:[%s983_s4 + $0x8] sm:$0xff] (!%p277_p3)  ;;  %v552_v24 = vld [vmem:[%s983_s4] sm:$0xff] (!%p277_p3)  ;;  %vm457_vm5 = vcmask (!%p277_p3), 998400   ;;  %vm489_vm6 = vcmask (!%p277_p3), 392192  }
   0x8   : > { %525 = vmatprep.mubr.bf16.mxu1 (!%p277_p3), %v848_v0  ;;  %403 = vmatprep.mubr.bf16.mxu0 (!%p277_p3), %v848_v0  ;;  %v335_v25 = vld [vmem:[%s985_s6 + $0x8] sm:$0xff] (!%p277_p3)  ;;  %v334_v26 = vld [vmem:[%s985_s6] sm:$0xff] (!%p277_p3)  ;;  %vm367_vm7 = vcmask (!%p277_p3), 130048   ;;  %vm659_vm12 = vcmask (!%p277_p3), 1043456   ;;  %vm660_vm14 = vcmask (!%p277_p3), 261124  }
   0x9   : > { %v616_v27 = vld [vmem:[%s986_s7 + $0x8] sm:$0xff] (!%p277_p3)  ;;  %v615_v28 = vld [vmem:[%s986_s7] sm:$0xff] (!%p277_p3) }
   0xa   : > { %v821_v49 = vld [vmem:[%s980_s1] sm:$0xff] (!%p277_p3)  }
   0xb   : > { %v822_v55 = vld [vmem:[%s984_s5] sm:$0xff] (!%p277_p3)  }
   0xe   : > { %s993_s27 = smov (!%p314_p4, %s838_s27), 1 }
   0xf   : > { %s766_s9 = sshll.u32 %s993_s27, 4 }
  0x10   : > { %s318_s12 = scalar_lea.vmem %s979_s0, %s766_s9  ;;  %s327_s22 = scalar_lea.vmem %s987_s8, %s766_s9 }
  0x11   : > { %v330_v1 = vld [vmem:[%s318_s12] sm:$0xff]  ;;  %v331_v2 = vld [vmem:[%s318_s12 + $0x8] sm:$0xff] }
  0x12   : > { %v414_v3 = vunpack.c.l.bf16 %v330_v1  ;;  %v415_v4 = vunpack.c.h.bf16 %v330_v1  ;;  %v416_v5 = vunpack.c.l.bf16 %v331_v2  ;;  %v417_v6 = vunpack.c.h.bf16 %v331_v2 }
  0x13   : > { %v756_v21 = vcombine.high %v330_v1, %v331_v2  ;;  %v755_v22 = vcombine.low %v330_v1, %v331_v2 }
  0x14   : > { %vm418_vm0 = vcmp.ge.f32.partialorder %v414_v3, 0.0  ;;  %vm419_vm1 = vcmp.ge.f32.partialorder %v415_v4, 0.0  ;;  %v422_v7 = vmul.f32 0.2, %v414_v3  ;;  %v423_v8 = vmul.f32 0.2, %v415_v4 }
  0x15   : > { %vm420_vm2 = vcmp.ge.f32.partialorder %v416_v5, 0.0  ;;  %vm421_vm3 = vcmp.ge.f32.partialorder %v417_v6, 0.0  ;;  %v424_v9 = vmul.f32 0.2, %v416_v5  ;;  %v425_v10 = vmul.f32 0.2, %v417_v6 }
  0x16   : > { %v426_v11 = vsel %vm418_vm0, %v414_v3, %v422_v7  ;;  %v427_v12 = vsel %vm419_vm1, %v415_v4, %v423_v8  ;;  %vm661_vm1 = vmor %vm660_vm14, %vm659_vm12 }
  0x17   : > { %v807_v13 = vpack.i.bf16 %v427_v12, %v426_v11  ;;  %v428_v14 = vsel %vm420_vm2, %v416_v5, %v424_v9  ;;  %v429_v15 = vsel %vm421_vm3, %v417_v6, %v425_v10  ;;  %v823_v10 = vld [vmem:[%s982_s3] sm:$0xff]  }
  0x18   : > { %v465_v16 = vpack.c.bf16 %v429_v15, %v427_v12  ;;  %v464_v17 = vpack.c.bf16 %v428_v14, %v426_v11  ;;  %v812_v18 = vpack.i.bf16 %v429_v15, %v428_v14 }
  0x19   : > { %808 = vrot.lane.b32.xlu1 %v807_v13, %s849_s13  ;;  %798 = vrot.lane.b32.xlu0 %v807_v13, %s850_s14 }
  0x1a   : > { %493 = vmatprep.subr.bf16.mxu1 %v465_v16 }
  0x1b   : > { %494 = vmatpush1.bf16.msra.mxu1 %v464_v17 }
  0x1d   : > { %813 = vrot.lane.b32.xlu1 %v812_v18, %s849_s13  ;;  %803 = vrot.lane.b32.xlu0 %v812_v18, %s850_s14 }
  0x21   : > { %481 = vperm.xlu1 %818, %v473_v19   ;;  %476 = vperm.xlu0 %817, %v472_v20  }
  0x25   : > { %361 = vrot.lane.b32.xlu0 %v756_v21, %s850_s14  ;;  %359 = vrot.lane.b32.xlu1 %v755_v22, %s850_s14 }
  0x29   : > { %561 = vperm.xlu0 %817, %v553_v23   ;;  %556 = vperm.xlu1 %818, %v552_v24  }
  0x2d   : > { %343 = vperm.xlu0 %817, %v335_v25   ;;  %338 = vperm.xlu1 %818, %v334_v26  }
  0x31   : > { %624 = vperm.xlu0 %817, %v616_v27   ;;  %619 = vperm.xlu1 %818, %v615_v28  }
  0x8b   : > { %v809_v29 = vpop.permute.xlu1 %808  ;;  %v799_v30 = vpop.permute.xlu0 %798 }
  0x8c   : > { %v801_v31 = vunpack.i.h.bf16 %v799_v30  ;;  %v800_v32 = vunpack.i.l.bf16 %v799_v30  ;;  %v811_v33 = vunpack.i.h.bf16 %v809_v29  ;;  %v810_v34 = vunpack.i.l.bf16 %v809_v29 }
  0x8e   : > { %v443_v42 = vsel %vm363_vm4, %v800_v32, %v801_v31  ;;  %v458_v46 = vsel %vm457_vm5, %v810_v34, %v811_v33 }
  0x8f   : > { %v814_v35 = vpop.permute.xlu1 %813  ;;  %v804_v36 = vpop.permute.xlu0 %803 }
  0x90   : > { %v816_v37 = vunpack.i.h.bf16 %v814_v35  ;;  %v815_v38 = vunpack.i.l.bf16 %v814_v35  ;;  %v806_v39 = vunpack.i.h.bf16 %v804_v36  ;;  %v805_v40 = vunpack.i.l.bf16 %v804_v36 }
  0x92   : > { %v467_v41 = vpack.c.bf16 %v806_v39, %v801_v31  ;;  %v444_v43 = vsel %vm363_vm4, %v805_v40, %v806_v39  ;;  %v469_v45 = vpack.c.bf16 %v816_v37, %v811_v33  ;;  %v459_v47 = vsel %vm457_vm5, %v815_v38, %v816_v37 }
  0x93   : > { %v466_v44 = vpack.c.bf16 %v444_v43, %v443_v42  ;;  %v468_v48 = vpack.c.bf16 %v459_v47, %v458_v46 }
  0x94   : > { %495 = vmatprep.subr.bf16.mxu1 %v467_v41 }
  0x95   : > { %496 = vmatpush1.bf16.msra.mxu1 %v466_v44 }
  0x96   : > { %497 = vmatprep.subr.bf16.mxu1 %v469_v45 }
  0x99   : > { %498 = vmatpush1.bf16.msra.mxu1 %v468_v48 }
  0x9c   : > { %759 = vmatmul.mubr.msk.bf16.vlgmr.msra.gmra.mrb[0].mxu1 %vm489_vm6, %v821_v49 }
  0xa0   : > { %v482_v50 = vpop.permute.xlu1 %481  ;;  %v477_v51 = vpop.permute.xlu0 %476 }
  0xa4   : > { %v362_v52 = vpop.permute.xlu0 %361  ;;  %v360_v53 = vpop.permute.xlu1 %359 }
  0xa5   : > { %371 = vmatprep.subr.bf16.mxu0 %v362_v52  ;;  %v364_v54 = vsel %vm363_vm4, %v360_v53, %v362_v52 }
  0xa6   : > { %372 = vmatpush1.bf16.msra.mxu0 %v364_v54 }
  0xa8   : > { %v557_v15 = vpop.permute.xlu1 %556  ;;  %v562_v16 = vpop.permute.xlu0 %561 }
  0xa9   : > { %757 = vmatmul.mubr.msk.bf16.vlgmr.msra.gmra.mrb[0].mxu0 %vm367_vm7, %v822_v55 }
  0xaa   : > { %604 = vmatprep.mubr.bf16.mxu0 %v848_v0 }
  0xac   : > { %v339_v17 = vpop.permute.xlu1 %338  ;;  %v344_v18 = vpop.permute.xlu0 %343 }
  0xb0   : > { %v620_v22 = vpop.permute.xlu1 %619  ;;  %v625_v29 = vpop.permute.xlu0 %624 }
 0x16f   : > { %v527_v56 = vpop.f32.mrb[0].mxu1 }
 0x170   : > { %v528_v57 = vadd.f32 %v527_v56, %v477_v51  ;;  %v529_v58 = vpop.f32.mrb[1].mxu1 }
 0x171   : > { %v530_v59 = vadd.f32 %v529_v58, %v477_v51  ;;  %v531_v60 = vpop.f32.mrb[2].mxu1 }
 0x172   : > { %v540_v61 = vmul.f32 0.2, %v528_v57  ;;  %v532_v62 = vadd.f32 %v531_v60, %v482_v50  ;;  %v533_v63 = vpop.f32.mrb[3].mxu1  ;;  %vm536_vm8 = vcmp.ge.f32.partialorder %v528_v57, 0.0 }
 0x173   : > { %v541_v1 = vmul.f32 0.2, %v530_v59  ;;  %v534_v2 = vadd.f32 %v533_v63, %v482_v50  ;;  %vm537_vm9 = vcmp.ge.f32.partialorder %v530_v59, 0.0 }
 0x174   : > { %vm538_vm10 = vcmp.ge.f32.partialorder %v532_v62, 0.0  ;;  %v542_v3 = vmul.f32 0.2, %v532_v62  ;;  %v544_v5 = vsel %vm536_vm8, %v528_v57, %v540_v61 }
 0x175   : > { %vm539_vm11 = vcmp.ge.f32.partialorder %v534_v2, 0.0  ;;  %v543_v4 = vmul.f32 0.2, %v534_v2  ;;  %v545_v0 = vsel %vm537_vm9, %v530_v59, %v541_v1 }
 0x176   : > { %v546_v6 = vsel %vm538_vm10, %v532_v62, %v542_v3 }
 0x177   : > { %v550_v7 = vpack.c.bf16 %v546_v6, %v544_v5  ;;  %v547_v8 = vsel %vm539_vm11, %v534_v2, %v543_v4 }
 0x178   : > { %v551_v9 = vpack.c.bf16 %v547_v8, %v545_v0 }
 0x17a   : > { %572 = vmatprep.subr.bf16.mxu0 %v551_v9 }
 0x17b   : > { %573 = vmatpush1.bf16.msra.mxu0 %v550_v7 }
 0x17c   : > { %v405_v11 = vpop.f32.mrb[0].mxu0 }
 0x17d   : > { %v407_v12 = vpop.f32.mrb[1].mxu0  ;;  %v406_v25 = vadd.f32 %v405_v11, %v339_v17 }
 0x17e   : > { %v409_v13 = vpop.f32.mrb[2].mxu0  ;;  %761 = vmatmul.mubr.msk.bf16.vlgmr.msra.gmra.mrb[4].mxu0 %vm367_vm7, %v823_v10  ;;  %v408_v30 = vadd.f32 %v407_v12, %v339_v17 }
 0x17f   : > { %v411_v14 = vpop.f32.mrb[3].mxu0  ;;  %v410_v33 = vadd.f32 %v409_v13, %v344_v18 }
 0x180   : > { %v412_v36 = vadd.f32 %v411_v14, %v344_v18 }
 0x251   : > { %v606_v19 = vpop.f32.mrb[4].mxu0 }
 0x252   : > { %v607_v20 = vadd.f32 %v606_v19, %v557_v15  ;;  %v608_v21 = vpop.f32.mrb[5].mxu0 }
 0x253   : > { %v609_v23 = vadd.f32 %v608_v21, %v557_v15  ;;  %v610_v24 = vpop.f32.mrb[6].mxu0 }
 0x254   : > { %v627_v26 = vmul.f32 %v620_v22, %v607_v20  ;;  %v611_v27 = vadd.f32 %v610_v24, %v562_v16  ;;  %v612_v28 = vpop.f32.mrb[7].mxu0 }
 0x255   : > { %v628_v31 = vmul.f32 %v620_v22, %v609_v23  ;;  %v613_v32 = vadd.f32 %v612_v28, %v562_v16 }
 0x256   : > { %v631_v34 = vadd.f32 %v627_v26, %v406_v25  ;;  %v629_v35 = vmul.f32 %v625_v29, %v611_v27 }
 0x257   : > { %v632_v37 = vadd.f32 %v628_v31, %v408_v30  ;;  %v630_v38 = vmul.f32 %v625_v29, %v613_v32 }
 0x258   : > { %vm635_vm13 = vcmp.ge.f32.partialorder %v631_v34, 0.0  ;;  %v639_v39 = vmul.f32 0.2, %v631_v34  ;;  %v633_v40 = vadd.f32 %v629_v35, %v410_v33 }
 0x259   : > { %vm636_vm15 = vcmp.ge.f32.partialorder %v632_v37, 0.0  ;;  %v640_v41 = vmul.f32 0.2, %v632_v37  ;;  %v634_v42 = vadd.f32 %v630_v38, %v412_v36 }
 0x25a   : > { %v643_v43 = vsel %vm635_vm13, %v631_v34, %v639_v39  ;;  %vm637_vm0 = vcmp.ge.f32.partialorder %v633_v40, 0.0  ;;  %v641_v44 = vmul.f32 0.2, %v633_v40 }
 0x25b   : > { %v644_v45 = vsel %vm636_vm15, %v632_v37, %v640_v41  ;;  %vm638_vm2 = vcmp.ge.f32.partialorder %v634_v42, 0.0  ;;  %v642_v46 = vmul.f32 0.2, %v634_v42 }
 0x25c   : > { %v768_v47 = vpack.c.bf16 %v644_v45, %v643_v43  ;;  %v645_v48 = vsel %vm637_vm0, %v633_v40, %v641_v44 }
 0x25d   : > { %v646_v49 = vsel %vm638_vm2, %v634_v42, %v642_v46 }
 0x25e   : > { %662 = vst.msk [vmem:[%s327_s22] sm:$0xff] %vm661_vm1, %v768_v47  ;;  %v769_v50 = vpack.c.bf16 %v646_v49, %v645_v48 }
 0x260   : > { %663 = vst.msk [vmem:[%s327_s22 + $0x8] sm:$0xff] %vm661_vm1, %v769_v50 }
 0x261 PF: > { %s18_s29 = sadd.s32 1, %s846_s29   ;;  %s988_s27 = smov %s842_s28 }
 0x262   : > { %p15_p5 = scmp.ge.s32.totalorder %s18_s29, 4   ;;  %s989_s28 = smov %s991_s30 }
 0x264   :  { %17 = sbr.rel (!%p15_p5) target bundleno = 2 (0x2), region = 82 }

// kernel: forward.22
= control target key start
LH: loop header
LB: loop body
LE: loop exit
PB: predicated region body
PF: predicated region fallthrough
CT: control target
= control target key end

     0   :  { %s1441_s27 = smov 0   ;;  %s1443_s28 = smov 0   ;;  %s1645_s0 = inlined_call_operand.vmem [shape: bf16[2,8,802], index: 0, kind: input, shape index: {}]   ;;  %s1646_s1 = inlined_call_operand.vmem [shape: bf16[8,24], index: 1, kind: input, shape index: {}]   ;;  %s1647_s2 = inlined_call_operand.vmem [shape: f32[8,1], index: 2, kind: input, shape index: {}]   ;;  %s1648_s3 = inlined_call_operand.vmem [shape: bf16[8,8], index: 3, kind: input, shape index: {}]   ;;  %s1649_s4 = inlined_call_operand.vmem [shape: f32[8,1], index: 4, kind: input, shape index: {}]   ;;  %s1650_s5 = inlined_call_operand.vmem [shape: bf16[8,8], index: 5, kind: input, shape index: {}]   ;;  %s1651_s6 = inlined_call_operand.vmem [shape: f32[8,1], index: 6, kind: input, shape index: {}]   ;;  %s1652_s7 = inlined_call_operand.vmem [shape: f32[8,1], index: 7, kind: input, shape index: {}]   ;;  %s1653_s8 = inlined_call_operand.vmem [shape: bf16[2,8,800], index: 8, kind: output, shape index: {}]  }
   0x1   :  { %s1445_s29 = smov 0  }
   0x2 LB: > { %s30_s30 = sadd.s32 1, %s1385_s28  ;;  %p1230_p0 = scmp.ge.s32.totalorder %s1389_s29, 1  ;;  %s1389_s29 = sphi %s1445_s29, %s18_s29   ;;  %s1385_s28 = sphi %s1443_s28, %s1655_s28   ;;  %s1381_s27 = sphi %s1441_s27, %s1654_s27  }
   0x3   : > { %p32_p1 = scmp.ge.s32.totalorder %s30_s30, 2  ;;  %p276_p2 = scmp.lt.s32.totalorder %s1389_s29, 3 }
   0x5   : > { %s1657_s30 = smov (%p32_p1, %s30_s30), 0  ;;  %p277_p3 = pnand %p1230_p0, %p276_p2 }
   0x6   : > { %p314_p4 = scmp.lt.s32.totalorder (!%p277_p3), %s1381_s27, 1  ;;  %v1391_v2 = vmov (!%p277_p3), 0   ;;  %s1392_s13 = smov (!%p277_p3), 127   ;;  %v675_v38 = vld [vmem:[%s1647_s2] sm:$0xff] (!%p277_p3)  ;;  %vm373_vm7 = vcmask (!%p277_p3), 1039360   ;;  %vm384_vm8 = vcmask (!%p277_p3), 1043456  }
   0x7   : > { %280 = sbr.rel (%p277_p3) target bundleno = 620 (0x26c), region = 52  ;;  %438 = vmatprep.mubr.bf16.mxu0 (!%p277_p3), %v1391_v2  ;;  %479 = vmatprep.mubr.bf16.mxu1 (!%p277_p3), %v1391_v2  ;;  %s1393_s14 = smov (!%p277_p3), 126   ;;  %v335_v39 = vld [vmem:[%s1651_s6] sm:$0xff] (!%p277_p3)  ;;  %vm380_vm9 = vcmask (!%p277_p3), 64512   ;;  %v1394_v57 = vmov (!%p277_p3), 0.0   ;;  %vm1395_vm10 = vmmov (!%p277_p3), 0  }
   0x8   : > { %1358 = vset.pattern.permute.xlu1 (!%p277_p3), %v1391_v2  ;;  %1359 = vset.pattern.permute.xlu0 (!%p277_p3), %v1391_v2  ;;  %v1091_v40 = vld [vmem:[%s1652_s7] sm:$0xff] (!%p277_p3)  ;;  %vm646_vm11 = vcmask (!%p277_p3), 1031168   ;;  %vm681_vm12 = vcmask (!%p277_p3), 195584  }
   0x9   : > { %v334_v49 = vld [vmem:[%s1650_s5] sm:$0xf] (!%p277_p3) }
   0xe   : > { %s1659_s27 = smov (!%p314_p4, %s1381_s27), 1 }
   0xf   : > { %s1298_s9 = smul.u32 28, %s1659_s27 }
  0x11   : > { %s318_s12 = scalar_lea.vmem %s1645_s0, %s1298_s9 }
  0x12   : > { %v331_v0 = vld [vmem:[%s318_s12 + $0x8] sm:$0xff]  ;;  %v330_v1 = vld [vmem:[%s318_s12] sm:$0xff]  ;;  %v332_v12 = vld [vmem:[%s318_s12 + $0x10] sm:$0xff] }
  0x13   : > { %v1235_v3 = vcombine.low %v331_v0, %v331_v0  ;;  %v571_v4 = vunpack.c.l.bf16 %v331_v0  ;;  %v1233_v5 = vcombine.low %v330_v1, %v330_v1  ;;  %v570_v6 = vunpack.c.h.bf16 %v330_v1  ;;  %v333_v18 = vld [vmem:[%s318_s12 + $0x18] sm:$0xf] }
  0x14   : > { %v1236_v7 = vcombine.high %v331_v0, %v331_v0  ;;  %v1234_v8 = vcombine.high %v330_v1, %v330_v1  ;;  %v572_v10 = vunpack.c.h.bf16 %v331_v0  ;;  %v569_v11 = vunpack.c.l.bf16 %v330_v1 }
  0x15   : > { %363 = vrot.lane.b32.xlu1 %v1235_v3, %s1392_s13  ;;  %359 = vrot.lane.b32.xlu0 %v1233_v5, %s1392_s13  ;;  %v585_v9 = vmul.f32 0.2, %v571_v4  ;;  %vm578_vm0 = vcmp.ge.f32.partialorder %v571_v4, 0.0  ;;  %v584_v13 = vmul.f32 0.2, %v570_v6  ;;  %vm577_vm1 = vcmp.ge.f32.partialorder %v570_v6, 0.0 }
  0x16   : > { %v1238_v14 = vcombine.high %v332_v12, %v332_v12  ;;  %v1237_v15 = vcombine.low %v332_v12, %v332_v12  ;;  %v573_v19 = vunpack.c.l.bf16 %v332_v12  ;;  %v583_v20 = vmul.f32 0.2, %v569_v11 }
  0x17   : > { %v1475_v16 = vsel %vm578_vm0, %v571_v4, %v585_v9  ;;  %v1477_v17 = vsel %vm577_vm1, %v570_v6, %v584_v13  ;;  %v586_v21 = vmul.f32 0.2, %v572_v10  ;;  %vm576_vm2 = vcmp.ge.f32.partialorder %v569_v11, 0.0 }
  0x18   : > { %vm579_vm3 = vcmp.ge.f32.partialorder %v572_v10, 0.0  ;;  %v1328_v22 = vpack.i.bf16 %v1475_v16, %v1477_v17  ;;  %v1239_v23 = vcombine.low %v333_v18, %v333_v18  ;;  %v575_v24 = vunpack.c.l.bf16 %v333_v18 }
  0x19   : > { %365 = vrot.lane.b32.xlu1 %v1236_v7, %s1392_s13  ;;  %361 = vrot.lane.b32.xlu0 %v1234_v8, %s1392_s13  ;;  %v587_v25 = vmul.f32 0.2, %v573_v19  ;;  %v1483_v26 = vsel %vm576_vm2, %v569_v11, %v583_v20  ;;  %v1485_v27 = vsel %vm579_vm3, %v572_v10, %v586_v21  ;;  %v574_v28 = vunpack.c.h.bf16 %v332_v12 }
  0x1a   : > { %vm580_vm4 = vcmp.ge.f32.partialorder %v573_v19, 0.0  ;;  %v1333_v29 = vpack.i.bf16 %v1485_v27, %v1483_v26  ;;  %v589_v30 = vmul.f32 0.2, %v575_v24  ;;  %vm582_vm6 = vcmp.ge.f32.partialorder %v575_v24, 0.0 }
  0x1b   : > { %v1491_v31 = vsel %vm580_vm4, %v573_v19, %v587_v25  ;;  %v588_v32 = vmul.f32 0.2, %v574_v28  ;;  %vm581_vm5 = vcmp.ge.f32.partialorder %v574_v28, 0.0  ;;  %v1343_v33 = vpack.i.bf16 %v1485_v27, %v1475_v16 }
  0x1c   : > { %v1338_v34 = vpack.i.bf16 %v1477_v17, %v1483_v26  ;;  %v1502_v36 = vsel %vm582_vm6, %v575_v24, %v589_v30  ;;  %vm1143_vm4 = vcmask 257024  }
  0x1d   : > { %369 = vrot.lane.b32.xlu1 %v1238_v14, %s1392_s13  ;;  %367 = vrot.lane.b32.xlu0 %v1237_v15, %s1392_s13  ;;  %v1500_v35 = vsel %vm581_vm5, %v574_v28, %v588_v32 }
  0x1e   : > { %v1348_v37 = vpack.i.bf16 %v1502_v36, %v1500_v35 }
  0x21   : > { %1329 = vrot.lane.b32.xlu1 %v1328_v22, %s1392_s13  ;;  %371 = vrot.lane.b32.xlu0 %v1239_v23, %s1392_s13 }
  0x25   : > { %612 = vrot.lane.b32.xlu1 %v1491_v31, %s1392_s13  ;;  %1334 = vrot.lane.b32.xlu0 %v1333_v29, %s1392_s13 }
  0x29   : > { %1344 = vrot.lane.b32.xlu1 %v1343_v33, %s1393_s14  ;;  %1339 = vrot.lane.b32.xlu0 %v1338_v34, %s1393_s14  ;;  %v674_v34 = vld [vmem:[%s1646_s1] sm:$0xf] }
  0x2d   : > { %1349 = vrot.lane.b32.xlu1 %v1348_v37, %s1392_s13  ;;  %640 = vrot.lane.b32.xlu0 %v1491_v31, %s1393_s14 }
  0x31   : > { %1354 = vrot.lane.b32.xlu0 %v1348_v37, %s1393_s14  ;;  %678 = vperm.xlu1 %1358, %v675_v38   ;;  %s1627_s14 = scalar_lea.vmem %s1653_s8, %s1298_s9 }
  0x35   : > { %338 = vperm.xlu1 %1358, %v335_v39  }
  0x39   : > { %1094 = vperm.xlu1 %1358, %v1091_v40  }
  0x87   : > { %v364_v41 = vpop.permute.xlu1 %363  ;;  %v360_v42 = vpop.permute.xlu0 %359 }
  0x8b   : > { %v366_v43 = vpop.permute.xlu1 %365  ;;  %v362_v44 = vpop.permute.xlu0 %361 }
  0x8c   : > { %v375_v45 = vsel %vm373_vm7, %v362_v44, %v364_v41  ;;  %v374_v46 = vsel %vm373_vm7, %v360_v42, %v362_v44  ;;  %v376_v48 = vsel %vm373_vm7, %v364_v41, %v366_v43 }
  0x8d   : > { %1240 = vmatprep.subr.msk.bf16.mxu0 %vm384_vm8, %v375_v45  ;;  %v386_v47 = vsel %vm384_vm8, %v374_v46, 0  ;;  %v392_v53 = vsel %vm384_vm8, %v376_v48, 0  ;;  %v898_v48 = vld [vmem:[%s1649_s4] sm:$0xff] }
  0x8e   : > { %407 = vmatpush1.bf16.msra.mxu0 %v386_v47  ;;  %901 = vperm.xlu0 %1359, %v898_v48  }
  0x8f   : > { %v370_v50 = vpop.permute.xlu1 %369  ;;  %v368_v51 = vpop.permute.xlu0 %367 }
  0x90   : > { %v377_v52 = vsel %vm373_vm7, %v366_v43, %v368_v51  ;;  %v378_v54 = vsel %vm373_vm7, %v368_v51, %v370_v50 }
  0x91   : > { %1242 = vmatprep.subr.msk.bf16.mxu1 %vm384_vm8, %v377_v52  ;;  %1241 = vmatmul.mubr.msk.bf16.vlgmr.msra.gmra.mrb[0].mxu0 %vm380_vm9, %v334_v49  ;;  %v398_v62 = vsel %vm384_vm8, %v378_v54, 0 }
  0x92   : > { %448 = vmatpush1.bf16.msra.mxu1 %v392_v53  ;;  %520 = vmatprep.mubr.bf16.mxu0 %v1391_v2 }
  0x93   : > { %v1330_v55 = vpop.permute.xlu1 %1329  ;;  %v372_v56 = vpop.permute.xlu0 %371  ;;  %1278 = vmatprep.subr.bf16.mxu1 %v1394_v57 }
  0x94   : > { %v1332_v58 = vunpack.i.h.bf16 %v1330_v55  ;;  %v1331_v59 = vunpack.i.l.bf16 %v1330_v55  ;;  %v379_v60 = vsel %vm373_vm7, %v370_v50, %v372_v56  ;;  %v404_v61 = vsel %vm384_vm8, %v372_v56, 0 }
  0x95   : > { %1243 = vmatmul.mubr.msk.bf16.vlgmr.msra.gmra.mrb[0].mxu1 %vm380_vm9, %v334_v49  ;;  %1244 = vmatprep.subr.msk.bf16.mxu0 %vm384_vm8, %v379_v60 }
  0x96   : > { %489 = vmatpush1.bf16.msra.mxu0 %v398_v62  ;;  %1279 = vmatpush3.bf16.msra.mxu1 %v404_v61  ;;  %v620_v63 = vsel %vm373_vm7, %v1331_v59, %v1332_v58 }
  0x97   : > { %v613_v0 = vpop.permute.xlu1 %612  ;;  %v1335_v1 = vpop.permute.xlu0 %1334  ;;  %v661_v3 = vpack.c.bf16 %v620_v63, %v1477_v17  ;;  %1280 = vmatprep.mubr.msk.bf16.mxu1 %vm1395_vm10, %v1394_v57 }
  0x98   : > { %v1337_v4 = vunpack.i.h.bf16 %v1335_v1  ;;  %v1336_v5 = vunpack.i.l.bf16 %v1335_v1 }
  0x99   : > { %706 = vmatprep.subr.bf16.mxu0 %v661_v3  ;;  %1245 = vmatmul.mubr.msk.bf16.vlgmr.msra.gmra.mrb[4].mxu0 %vm380_vm9, %v334_v49 }
  0x9a   : > { %v621_v6 = vsel %vm373_vm7, %v1332_v58, %v1337_v4  ;;  %v619_v7 = vsel %vm373_vm7, %v1336_v5, %v1331_v59  ;;  %v622_v8 = vsel %vm373_vm7, %v1337_v4, %v613_v0  ;;  %738 = vmatprep.mubr.bf16.mxu0 %v1391_v2 }
  0x9b   : > { %v662_v9 = vpack.c.bf16 %v621_v6, %v1475_v16  ;;  %v660_v10 = vpack.c.bf16 %v619_v7, %v1483_v26  ;;  %v1345_v11 = vpop.permute.xlu1 %1344  ;;  %v1340_v12 = vpop.permute.xlu0 %1339  ;;  %v663_v13 = vpack.c.bf16 %v622_v8, %v1485_v27 }
  0x9c   : > { %v1347_v14 = vunpack.i.h.bf16 %v1345_v11  ;;  %v1346_v15 = vunpack.i.l.bf16 %v1345_v11  ;;  %v1342_v17 = vunpack.i.h.bf16 %v1340_v12  ;;  %v1341_v18 = vunpack.i.l.bf16 %v1340_v12 }
  0x9d   : > { %1281 = vmatmul.mubr.msk.bf16.vlgmr.msra.gmra.mrb[4].mxu1 %vm380_vm9, %v334_v49  ;;  %707 = vmatpush1.bf16.msra.mxu0 %v660_v10 }
  0x9e   : > { %v648_v19 = vsel %vm646_vm11, %v1342_v17, %v1346_v15  ;;  %747 = vmatprep.subr.bf16.mxu1 %v663_v13  ;;  %v647_v20 = vsel %vm646_vm11, %v1341_v18, %v1342_v17  ;;  %v649_v16 = vsel %vm646_vm11, %v1346_v15, %v1347_v14  ;;  %779 = vmatprep.mubr.bf16.mxu1 %v1391_v2 }
  0x9f   : > { %v668_v21 = vpack.c.bf16 %v648_v19, %v648_v19  ;;  %748 = vmatpush1.bf16.msra.mxu1 %v662_v9  ;;  %v1350_v22 = vpop.permute.xlu1 %1349  ;;  %v641_v23 = vpop.permute.xlu0 %640  ;;  %v667_v24 = vpack.c.bf16 %v647_v20, %v647_v20  ;;  %v669_v25 = vpack.c.bf16 %v649_v16, %v649_v16 }
  0xa0   : > { %v1352_v26 = vunpack.i.h.bf16 %v1350_v22  ;;  %v1351_v27 = vunpack.i.l.bf16 %v1350_v22  ;;  %v650_v28 = vsel %vm646_vm11, %v1347_v14, %v641_v23 }
  0xa1   : > { %v670_v29 = vpack.c.bf16 %v650_v28, %v650_v28  ;;  %1247 = vmatprep.subr.msk.bf16.mxu0 %vm384_vm8, %v668_v21  ;;  %v686_v30 = vsel %vm384_vm8, %v667_v24, 0  ;;  %v692_v32 = vsel %vm384_vm8, %v669_v25, 0 }
  0xa2   : > { %v623_v33 = vsel %vm373_vm7, %v613_v0, %v1351_v27  ;;  %709 = vmatpush1.bf16.msra.mxu0 %v686_v30  ;;  %v624_v37 = vsel %vm373_vm7, %v1351_v27, %v1352_v26  ;;  %v666_v43 = vpack.c.bf16 %v1352_v26, %v1502_v36 }
  0xa3   : > { %v664_v38 = vpack.c.bf16 %v623_v33, %v1491_v31  ;;  %v1355_v39 = vpop.permute.xlu0 %1354  ;;  %1249 = vmatprep.subr.msk.bf16.mxu1 %vm384_vm8, %v670_v29  ;;  %v665_v40 = vpack.c.bf16 %v624_v37, %v1500_v35 }
  0xa4   : > { %v1357_v41 = vunpack.i.h.bf16 %v1355_v39  ;;  %v1356_v42 = vunpack.i.l.bf16 %v1355_v39  ;;  %750 = vmatpush1.bf16.msra.mxu1 %v692_v32  ;;  %v890_v39 = vld [vmem:[%s1648_s3] sm:$0xf] }
  0xa5   : > { %1248 = vmatmul.mubr.msk.bf16.vlgmr.msra.gmra.mrb[8].mxu0 %vm681_vm12, %v674_v34  ;;  %788 = vmatprep.subr.bf16.mxu0 %v665_v40 }
  0xa6   : > { %v652_v44 = vsel %vm646_vm11, %v1356_v42, %v1357_v41  ;;  %789 = vmatpush1.bf16.msra.mxu0 %v664_v38  ;;  %1284 = vmatprep.subr.bf16.mxu1 %v1394_v57  ;;  %v651_v31 = vsel %vm646_vm11, %v641_v23, %v1356_v42  ;;  %v673_v45 = vpack.c.bf16 %v1357_v41, %v1357_v41 }
  0xa7   : > { %v672_v46 = vpack.c.bf16 %v652_v44, %v652_v44  ;;  %1250 = vmatmul.mubr.msk.bf16.vlgmr.msra.gmra.mrb[8].mxu1 %vm681_vm12, %v674_v34  ;;  %v671_v35 = vpack.c.bf16 %v651_v31, %v651_v31  ;;  %820 = vmatprep.mubr.bf16.mxu0 %v1391_v2 }
  0xa8   : > { %1285 = vmatpush3.bf16.msra.mxu1 %v666_v43  ;;  %1288 = vmatprep.mubr.msk.bf16.mxu1 %vm1395_vm10, %v1394_v57  ;;  %v704_v47 = vsel %vm384_vm8, %v673_v45, 0 }
  0xa9   : > { %1251 = vmatprep.subr.msk.bf16.mxu0 %vm384_vm8, %v672_v46  ;;  %v698_v36 = vsel %vm384_vm8, %v671_v35, 0  ;;  %1286 = vmatprep.subr.bf16.mxu1 %v1394_v57 }
  0xaa   : > { %791 = vmatpush1.bf16.msra.mxu0 %v698_v36 }
  0xac   : > { %1287 = vmatpush3.bf16.msra.mxu1 %v704_v47 }
  0xad   : > { %1252 = vmatmul.mubr.msk.bf16.vlgmr.msra.gmra.mrb[12].mxu0 %vm681_vm12, %v674_v34 }
  0xae   : > { %960 = vmatprep.mubr.bf16.mxu0 %v1391_v2 }
  0xaf   : > { %1289 = vmatmul.mubr.msk.bf16.vlgmr.msra.gmra.mrb[12].mxu1 %vm681_vm12, %v674_v34 }
  0xb0   : > { %1001 = vmatprep.mubr.bf16.mxu1 %v1391_v2  ;;  %v679_v3 = vpop.permute.xlu1 %678 }
 0x164   : > { %v1586_v49 = vpop.f32.mrb[0].mxu0 }
 0x165   : > { %v1588_v50 = vpop.f32.mrb[1].mxu0 }
 0x166   : > { %v444_v51 = vpop.f32.mrb[2].mxu0 }
 0x167   : > { %v445_v52 = vpop.f32.mrb[3].mxu0 }
 0x168   : > { %v1590_v53 = vpop.f32.mrb[0].mxu1 }
 0x169   : > { %v1592_v54 = vpop.f32.mrb[1].mxu1 }
 0x16a   : > { %v485_v55 = vpop.f32.mrb[2].mxu1 }
 0x16b   : > { %v486_v56 = vpop.f32.mrb[3].mxu1 }
 0x16c   : > { %v1594_v58 = vpop.f32.mrb[4].mxu0 }
 0x16d   : > { %v1596_v59 = vpop.f32.mrb[5].mxu0 }
 0x16e   : > { %v526_v60 = vpop.f32.mrb[6].mxu0 }
 0x16f   : > { %v527_v61 = vpop.f32.mrb[7].mxu0  ;;  %v902_v60 = vpop.permute.xlu0 %901 }
 0x170   : > { %v1598_v62 = vpop.f32.mrb[4].mxu1 }
 0x171   : > { %v1282_v63 = vpop.f32.mrb[5].mxu1 }
 0x172   : > { %v566_v0 = vpop.f32.mrb[6].mxu1 }
 0x173   : > { %v1283_v1 = vpop.f32.mrb[7].mxu1 }
 0x178   : > { %v740_v4 = vpop.f32.mrb[8].mxu0 }
 0x179   : > { %v741_v5 = vadd.f32 %v740_v4, %v679_v3  ;;  %v742_v6 = vpop.f32.mrb[9].mxu0 }
 0x17a   : > { %v743_v7 = vadd.f32 %v742_v6, %v679_v3  ;;  %v744_v8 = vpop.f32.mrb[10].mxu0  ;;  %v781_v9 = vpop.f32.mrb[8].mxu1 }
 0x17b   : > { %vm869_vm13 = vcmp.ge.f32.partialorder %v741_v5, 0.0  ;;  %v876_v10 = vmul.f32 0.2, %v741_v5  ;;  %v782_v11 = vadd.f32 %v781_v9, %v679_v3  ;;  %v745_v12 = vpop.f32.mrb[11].mxu0  ;;  %v783_v13 = vpop.f32.mrb[9].mxu1 }
 0x17c   : > { %vm870_vm14 = vcmp.ge.f32.partialorder %v743_v7, 0.0  ;;  %v877_v14 = vmul.f32 0.2, %v743_v7  ;;  %v784_v15 = vadd.f32 %v783_v13, %v679_v3  ;;  %v785_v17 = vpop.f32.mrb[10].mxu1 }
 0x17d   : > { %v883_v18 = vsel %vm869_vm13, %v741_v5, %v876_v10  ;;  %vm871_vm15 = vcmp.ge.f32.partialorder %v782_v11, 0.0  ;;  %v878_v19 = vmul.f32 0.2, %v782_v11  ;;  %v786_v20 = vpop.f32.mrb[11].mxu1 }
 0x17e   : > { %v891_v16 = vpack.c.bf16 %v883_v18, %v883_v18  ;;  %v884_v21 = vsel %vm870_vm14, %v743_v7, %v877_v14  ;;  %vm872_vm0 = vcmp.ge.f32.partialorder %v784_v15, 0.0  ;;  %v879_v22 = vmul.f32 0.2, %v784_v15 }
 0x17f   : > { %v892_v23 = vpack.c.bf16 %v884_v21, %v884_v21  ;;  %v885_v24 = vsel %vm871_vm15, %v782_v11, %v878_v19 }
 0x180   : > { %v893_v25 = vpack.c.bf16 %v885_v24, %v885_v24  ;;  %v886_v26 = vsel %vm872_vm0, %v784_v15, %v879_v22  ;;  %v822_v27 = vpop.f32.mrb[12].mxu0  ;;  %v908_v28 = vsel %vm384_vm8, %v891_v16, 0 }
 0x181   : > { %v894_v29 = vpack.c.bf16 %v886_v26, %v886_v26  ;;  %v823_v30 = vadd.f32 %v822_v27, %v679_v3  ;;  %v824_v32 = vpop.f32.mrb[13].mxu0  ;;  %1254 = vmatprep.subr.msk.bf16.mxu0 %vm384_vm8, %v892_v23 }
 0x182   : > { %v825_v33 = vadd.f32 %v824_v32, %v679_v3  ;;  %v826_v34 = vpop.f32.mrb[14].mxu0  ;;  %v863_v37 = vpop.f32.mrb[12].mxu1  ;;  %929 = vmatpush1.bf16.msra.mxu0 %v908_v28  ;;  %v914_v38 = vsel %vm384_vm8, %v893_v25, 0 }
 0x183   : > { %vm873_vm1 = vcmp.ge.f32.partialorder %v823_v30, 0.0  ;;  %v880_v40 = vmul.f32 0.2, %v823_v30  ;;  %v864_v41 = vadd.f32 %v863_v37, %v679_v3  ;;  %v827_v42 = vpop.f32.mrb[15].mxu0  ;;  %v1290_v43 = vpop.f32.mrb[13].mxu1  ;;  %1256 = vmatprep.subr.msk.bf16.mxu1 %vm384_vm8, %v894_v29 }
 0x184   : > { %vm874_vm2 = vcmp.ge.f32.partialorder %v825_v33, 0.0  ;;  %v881_v44 = vmul.f32 0.2, %v825_v33  ;;  %v866_v31 = vpop.f32.mrb[14].mxu1  ;;  %970 = vmatpush1.bf16.msra.mxu1 %v914_v38 }
 0x185   : > { %v887_v45 = vsel %vm873_vm1, %v823_v30, %v880_v40  ;;  %vm875_vm3 = vcmp.ge.f32.partialorder %v864_v41, 0.0  ;;  %v882_v46 = vmul.f32 0.2, %v864_v41  ;;  %v1291_v35 = vpop.f32.mrb[15].mxu1  ;;  %1255 = vmatmul.mubr.msk.bf16.vlgmr.msra.gmra.mrb[16].mxu0 %vm380_vm9, %v890_v39  ;;  %1292 = vmatprep.subr.bf16.mxu1 %v1394_v57 }
 0x186   : > { %v895_v36 = vpack.c.bf16 %v887_v45, %v887_v45  ;;  %v888_v47 = vsel %vm874_vm2, %v825_v33, %v881_v44  ;;  %1042 = vmatprep.mubr.bf16.mxu0 %v1391_v2  ;;  %v339_v2 = vpop.permute.xlu1 %338 }
 0x187   : > { %v896_v48 = vpack.c.bf16 %v888_v47, %v888_v47  ;;  %v889_v51 = vsel %vm875_vm3, %v864_v41, %v882_v46  ;;  %1257 = vmatmul.mubr.msk.bf16.vlgmr.msra.gmra.mrb[16].mxu1 %vm380_vm9, %v890_v39  ;;  %v443_v10 = vadd.f32 %v1588_v50, %v339_v2  ;;  %v482_v15 = vadd.f32 %v1590_v53, %v339_v2 }
 0x188   : > { %v897_v52 = vpack.c.bf16 %v889_v51, %v889_v51  ;;  %v920_v55 = vsel %vm384_vm8, %v895_v36, 0  ;;  %1294 = vmatprep.mubr.msk.bf16.mxu1 %vm1395_vm10, %v1394_v57  ;;  %v441_v57 = vadd.f32 %v1586_v49, %v339_v2  ;;  %v484_v19 = vadd.f32 %v1592_v54, %v339_v2 }
 0x189   : > { %1258 = vmatprep.subr.msk.bf16.mxu0 %vm384_vm8, %v896_v48  ;;  %v523_v27 = vadd.f32 %v1594_v58, %v339_v2  ;;  %v525_v33 = vadd.f32 %v1596_v59, %v339_v2  ;;  %v564_v38 = vadd.f32 %v1598_v62, %v339_v2 }
 0x18a   : > { %1011 = vmatpush1.bf16.msra.mxu0 %v920_v55  ;;  %v926_v56 = vsel %vm384_vm8, %v897_v52, 0  ;;  %v1095_v63 = vpop.permute.xlu1 %1094 }
 0x18b   : > { %1293 = vmatpush3.bf16.msra.mxu1 %v926_v56 }
 0x18d   : > { %1259 = vmatmul.mubr.msk.bf16.vlgmr.msra.gmra.mrb[20].mxu0 %vm380_vm9, %v890_v39 }
 0x18f   : > { %1295 = vmatmul.mubr.msk.bf16.vlgmr.msra.gmra.mrb[20].mxu1 %vm380_vm9, %v890_v39 }
 0x258   : > { %v962_v61 = vpop.f32.mrb[16].mxu0 }
 0x259   : > { %v963_v0 = vadd.f32 %v962_v61, %v902_v60  ;;  %v964_v1 = vpop.f32.mrb[17].mxu0 }
 0x25a   : > { %v965_v3 = vadd.f32 %v964_v1, %v902_v60  ;;  %v1003_v4 = vpop.f32.mrb[16].mxu1  ;;  %v966_v5 = vpop.f32.mrb[18].mxu0 }
 0x25b   : > { %v1097_v6 = vmul.f32 %v1095_v63, %v963_v0  ;;  %v1004_v7 = vadd.f32 %v1003_v4, %v902_v60  ;;  %v1005_v8 = vpop.f32.mrb[17].mxu1  ;;  %v967_v9 = vpop.f32.mrb[19].mxu0 }
 0x25c   : > { %v1098_v11 = vmul.f32 %v1095_v63, %v965_v3  ;;  %v1006_v12 = vadd.f32 %v1005_v8, %v902_v60  ;;  %v1007_v13 = vpop.f32.mrb[18].mxu1 }
 0x25d   : > { %v1104_v14 = vadd.f32 %v1097_v6, %v441_v57  ;;  %v1099_v17 = vmul.f32 %v1095_v63, %v1004_v7  ;;  %v1008_v18 = vpop.f32.mrb[19].mxu1 }
 0x25e   : > { %v1105_v20 = vadd.f32 %v1098_v11, %v443_v10  ;;  %v1100_v16 = vmul.f32 %v1095_v63, %v1006_v12 }
 0x25f   : > { %v1106_v49 = vadd.f32 %v1099_v17, %v482_v15 }
 0x260   : > { %v1267_v50 = vpack.c.bf16 %v1105_v20, %v1104_v14  ;;  %v1107_v21 = vadd.f32 %v1100_v16, %v484_v19  ;;  %v1044_v22 = vpop.f32.mrb[20].mxu0 }
 0x261   : > { %v1045_v23 = vadd.f32 %v1044_v22, %v902_v60  ;;  %v1046_v53 = vpop.f32.mrb[21].mxu0 }
 0x262   : > { %1140 = vst [vmem:[%s1627_s14] sm:$0xff] %v1267_v50  ;;  %v1268_v24 = vpack.c.bf16 %v1107_v21, %v1106_v49  ;;  %v1047_v25 = vadd.f32 %v1046_v53, %v902_v60  ;;  %v1085_v54 = vpop.f32.mrb[20].mxu1  ;;  %v1048_v26 = vpop.f32.mrb[22].mxu0 }
 0x263   : > { %v1101_v28 = vmul.f32 %v1095_v63, %v1045_v23  ;;  %v1086_v29 = vadd.f32 %v1085_v54, %v902_v60  ;;  %v1296_v30 = vpop.f32.mrb[21].mxu1  ;;  %v1049_v32 = vpop.f32.mrb[23].mxu0 }
 0x264   : > { %1141 = vst [vmem:[%s1627_s14 + $0x8] sm:$0xff] %v1268_v24  ;;  %v1102_v34 = vmul.f32 %v1095_v63, %v1047_v25  ;;  %v1088_v37 = vpop.f32.mrb[22].mxu1 }
 0x265   : > { %v1108_v39 = vadd.f32 %v1101_v28, %v523_v27  ;;  %v1103_v40 = vmul.f32 %v1095_v63, %v1086_v29  ;;  %v1297_v41 = vpop.f32.mrb[23].mxu1 }
 0x266   : > { %v1109_v42 = vadd.f32 %v1102_v34, %v525_v33 }
 0x267   : > { %v1110_v43 = vadd.f32 %v1103_v40, %v564_v38 }
 0x268   : > { %v1269_v44 = vpack.c.bf16 %v1109_v42, %v1108_v39 }
 0x269   : > { %v1270_v58 = vpack.c.bf16 %v1110_v43, %v1110_v43 }
 0x26a   : > { %1142 = vst [vmem:[%s1627_s14 + $0x10] sm:$0xff] %v1269_v44 }
 0x26b   : > { %1144 = vst.msk [vmem:[%s1627_s14 + $0x18] sm:$0xf] %vm1143_vm4, %v1270_v58 }
 0x26c PF: > { %s18_s29 = sadd.s32 1, %s1389_s29   ;;  %s1654_s27 = smov %s1385_s28 }
 0x26d   : > { %p15_p5 = scmp.ge.s32.totalorder %s18_s29, 4   ;;  %s1655_s28 = smov %s1657_s30 }
 0x26f   :  { %17 = sbr.rel (!%p15_p5) target bundleno = 2 (0x2), region = 82 }

// kernel: forward.23
= control target key start
LH: loop header
LB: loop body
LE: loop exit
PB: predicated region body
PF: predicated region fallthrough
CT: control target
= control target key end

     0   :  { %s1462_s27 = smov 0   ;;  %s1464_s28 = smov 0   ;;  %s1666_s0 = inlined_call_operand.vmem [shape: bf16[2,8,806], index: 0, kind: input, shape index: {}]   ;;  %s1667_s1 = inlined_call_operand.vmem [shape: bf16[8,24], index: 1, kind: input, shape index: {}]   ;;  %s1668_s2 = inlined_call_operand.vmem [shape: f32[8,1], index: 2, kind: input, shape index: {}]   ;;  %s1669_s3 = inlined_call_operand.vmem [shape: bf16[8,8], index: 3, kind: input, shape index: {}]   ;;  %s1670_s4 = inlined_call_operand.vmem [shape: f32[8,1], index: 4, kind: input, shape index: {}]   ;;  %s1671_s5 = inlined_call_operand.vmem [shape: bf16[8,8], index: 5, kind: input, shape index: {}]   ;;  %s1672_s6 = inlined_call_operand.vmem [shape: f32[8,1], index: 6, kind: input, shape index: {}]   ;;  %s1673_s7 = inlined_call_operand.vmem [shape: f32[8,1], index: 7, kind: input, shape index: {}]   ;;  %s1674_s8 = inlined_call_operand.vmem [shape: bf16[2,8,800], index: 8, kind: output, shape index: {}]  }
   0x1   :  { %s1466_s29 = smov 0  }
   0x2 LB: > { %s30_s30 = sadd.s32 1, %s1406_s28  ;;  %p1251_p0 = scmp.ge.s32.totalorder %s1410_s29, 1  ;;  %s1410_s29 = sphi %s1466_s29, %s18_s29   ;;  %s1406_s28 = sphi %s1464_s28, %s1676_s28   ;;  %s1402_s27 = sphi %s1462_s27, %s1675_s27  }
   0x3   : > { %p32_p1 = scmp.ge.s32.totalorder %s30_s30, 2  ;;  %p276_p2 = scmp.lt.s32.totalorder %s1410_s29, 3 }
   0x5   : > { %s1678_s30 = smov (%p32_p1, %s30_s30), 0  ;;  %p277_p3 = pnand %p1251_p0, %p276_p2 }
   0x6   : > { %p314_p4 = scmp.lt.s32.totalorder (!%p277_p3), %s1402_s27, 1  ;;  %v1412_v2 = vmov (!%p277_p3), 0   ;;  %s1413_s13 = smov (!%p277_p3), 125   ;;  %v675_v38 = vld [vmem:[%s1668_s2] sm:$0xff] (!%p277_p3)  ;;  %vm373_vm7 = vcmask (!%p277_p3), 1022976   ;;  %vm384_vm8 = vcmask (!%p277_p3), 1043456  }
   0x7   : > { %280 = sbr.rel (%p277_p3) target bundleno = 623 (0x26f), region = 52  ;;  %438 = vmatprep.mubr.bf16.mxu0 (!%p277_p3), %v1412_v2  ;;  %479 = vmatprep.mubr.bf16.mxu1 (!%p277_p3), %v1412_v2  ;;  %s1414_s14 = smov (!%p277_p3), 122   ;;  %v335_v39 = vld [vmem:[%s1672_s6] sm:$0xff] (!%p277_p3)  ;;  %vm380_vm9 = vcmask (!%p277_p3), 64512   ;;  %v1415_v57 = vmov (!%p277_p3), 0.0   ;;  %vm1416_vm10 = vmmov (!%p277_p3), 0  }
   0x8   : > { %1379 = vset.pattern.permute.xlu1 (!%p277_p3), %v1412_v2  ;;  %1380 = vset.pattern.permute.xlu0 (!%p277_p3), %v1412_v2  ;;  %v1091_v40 = vld [vmem:[%s1673_s7] sm:$0xff] (!%p277_p3)  ;;  %vm646_vm11 = vcmask (!%p277_p3), 998400   ;;  %vm681_vm12 = vcmask (!%p277_p3), 195584  }
   0x9   : > { %v334_v49 = vld [vmem:[%s1671_s5] sm:$0xf] (!%p277_p3) }
   0xe   : > { %s1680_s27 = smov (!%p314_p4, %s1402_s27), 1 }
   0xf   : > { %s1319_s9 = smul.u32 28, %s1680_s27 }
  0x11   : > { %s318_s12 = scalar_lea.vmem %s1666_s0, %s1319_s9 }
  0x12   : > { %v331_v0 = vld [vmem:[%s318_s12 + $0x8] sm:$0xff]  ;;  %v330_v1 = vld [vmem:[%s318_s12] sm:$0xff]  ;;  %v332_v12 = vld [vmem:[%s318_s12 + $0x10] sm:$0xff] }
  0x13   : > { %v1256_v3 = vcombine.low %v331_v0, %v331_v0  ;;  %v571_v4 = vunpack.c.l.bf16 %v331_v0  ;;  %v1254_v5 = vcombine.low %v330_v1, %v330_v1  ;;  %v570_v6 = vunpack.c.h.bf16 %v330_v1  ;;  %v333_v18 = vld [vmem:[%s318_s12 + $0x18] sm:$0xf] }
  0x14   : > { %v1257_v7 = vcombine.high %v331_v0, %v331_v0  ;;  %v1255_v8 = vcombine.high %v330_v1, %v330_v1  ;;  %v572_v10 = vunpack.c.h.bf16 %v331_v0  ;;  %v569_v11 = vunpack.c.l.bf16 %v330_v1 }
  0x15   : > { %363 = vrot.lane.b32.xlu1 %v1256_v3, %s1413_s13  ;;  %359 = vrot.lane.b32.xlu0 %v1254_v5, %s1413_s13  ;;  %v585_v9 = vmul.f32 0.2, %v571_v4  ;;  %vm578_vm0 = vcmp.ge.f32.partialorder %v571_v4, 0.0  ;;  %v584_v13 = vmul.f32 0.2, %v570_v6  ;;  %vm577_vm1 = vcmp.ge.f32.partialorder %v570_v6, 0.0 }
  0x16   : > { %v1259_v14 = vcombine.high %v332_v12, %v332_v12  ;;  %v1258_v15 = vcombine.low %v332_v12, %v332_v12  ;;  %v573_v19 = vunpack.c.l.bf16 %v332_v12  ;;  %v583_v20 = vmul.f32 0.2, %v569_v11 }
  0x17   : > { %v1496_v16 = vsel %vm578_vm0, %v571_v4, %v585_v9  ;;  %v1498_v17 = vsel %vm577_vm1, %v570_v6, %v584_v13  ;;  %v586_v21 = vmul.f32 0.2, %v572_v10  ;;  %vm576_vm2 = vcmp.ge.f32.partialorder %v569_v11, 0.0 }
  0x18   : > { %vm579_vm3 = vcmp.ge.f32.partialorder %v572_v10, 0.0  ;;  %v1349_v22 = vpack.i.bf16 %v1496_v16, %v1498_v17  ;;  %v1260_v23 = vcombine.low %v333_v18, %v333_v18  ;;  %v575_v24 = vunpack.c.l.bf16 %v333_v18 }
  0x19   : > { %365 = vrot.lane.b32.xlu1 %v1257_v7, %s1413_s13  ;;  %361 = vrot.lane.b32.xlu0 %v1255_v8, %s1413_s13  ;;  %v587_v25 = vmul.f32 0.2, %v573_v19  ;;  %v1504_v26 = vsel %vm576_vm2, %v569_v11, %v583_v20  ;;  %v1506_v27 = vsel %vm579_vm3, %v572_v10, %v586_v21  ;;  %v574_v28 = vunpack.c.h.bf16 %v332_v12 }
  0x1a   : > { %vm580_vm4 = vcmp.ge.f32.partialorder %v573_v19, 0.0  ;;  %v1354_v29 = vpack.i.bf16 %v1506_v27, %v1504_v26  ;;  %v589_v30 = vmul.f32 0.2, %v575_v24  ;;  %vm582_vm6 = vcmp.ge.f32.partialorder %v575_v24, 0.0 }
  0x1b   : > { %v1512_v31 = vsel %vm580_vm4, %v573_v19, %v587_v25  ;;  %v588_v32 = vmul.f32 0.2, %v574_v28  ;;  %vm581_vm5 = vcmp.ge.f32.partialorder %v574_v28, 0.0  ;;  %v1364_v33 = vpack.i.bf16 %v1506_v27, %v1496_v16 }
  0x1c   : > { %v1359_v34 = vpack.i.bf16 %v1498_v17, %v1504_v26  ;;  %v1523_v36 = vsel %vm582_vm6, %v575_v24, %v589_v30 }
  0x1d   : > { %369 = vrot.lane.b32.xlu1 %v1259_v14, %s1413_s13  ;;  %367 = vrot.lane.b32.xlu0 %v1258_v15, %s1413_s13  ;;  %v1521_v35 = vsel %vm581_vm5, %v574_v28, %v588_v32 }
  0x1e   : > { %v1369_v37 = vpack.i.bf16 %v1523_v36, %v1521_v35 }
  0x21   : > { %1350 = vrot.lane.b32.xlu1 %v1349_v22, %s1413_s13  ;;  %371 = vrot.lane.b32.xlu0 %v1260_v23, %s1413_s13 }
  0x25   : > { %612 = vrot.lane.b32.xlu1 %v1512_v31, %s1413_s13  ;;  %1355 = vrot.lane.b32.xlu0 %v1354_v29, %s1413_s13 }
  0x29   : > { %1365 = vrot.lane.b32.xlu1 %v1364_v33, %s1414_s14  ;;  %1360 = vrot.lane.b32.xlu0 %v1359_v34, %s1414_s14  ;;  %v674_v34 = vld [vmem:[%s1667_s1] sm:$0xf] }
  0x2d   : > { %1370 = vrot.lane.b32.xlu1 %v1369_v37, %s1413_s13  ;;  %640 = vrot.lane.b32.xlu0 %v1512_v31, %s1414_s14 }
  0x31   : > { %1375 = vrot.lane.b32.xlu0 %v1369_v37, %s1414_s14  ;;  %678 = vperm.xlu1 %1379, %v675_v38   ;;  %s1649_s14 = scalar_lea.vmem %s1674_s8, %s1319_s9 }
  0x35   : > { %338 = vperm.xlu1 %1379, %v335_v39  }
  0x39   : > { %1094 = vperm.xlu1 %1379, %v1091_v40  }
  0x87   : > { %v364_v41 = vpop.permute.xlu1 %363  ;;  %v360_v42 = vpop.permute.xlu0 %359 }
  0x8b   : > { %v366_v43 = vpop.permute.xlu1 %365  ;;  %v362_v44 = vpop.permute.xlu0 %361 }
  0x8c   : > { %v375_v45 = vsel %vm373_vm7, %v362_v44, %v364_v41  ;;  %v374_v46 = vsel %vm373_vm7, %v360_v42, %v362_v44  ;;  %v376_v48 = vsel %vm373_vm7, %v364_v41, %v366_v43 }
  0x8d   : > { %1261 = vmatprep.subr.msk.bf16.mxu0 %vm384_vm8, %v375_v45  ;;  %v386_v47 = vsel %vm384_vm8, %v374_v46, 0  ;;  %v392_v53 = vsel %vm384_vm8, %v376_v48, 0  ;;  %v898_v48 = vld [vmem:[%s1670_s4] sm:$0xff] }
  0x8e   : > { %407 = vmatpush1.bf16.msra.mxu0 %v386_v47  ;;  %901 = vperm.xlu0 %1380, %v898_v48  }
  0x8f   : > { %v370_v50 = vpop.permute.xlu1 %369  ;;  %v368_v51 = vpop.permute.xlu0 %367 }
  0x90   : > { %v377_v52 = vsel %vm373_vm7, %v366_v43, %v368_v51  ;;  %v378_v54 = vsel %vm373_vm7, %v368_v51, %v370_v50 }
  0x91   : > { %1263 = vmatprep.subr.msk.bf16.mxu1 %vm384_vm8, %v377_v52  ;;  %1262 = vmatmul.mubr.msk.bf16.vlgmr.msra.gmra.mrb[0].mxu0 %vm380_vm9, %v334_v49  ;;  %v398_v62 = vsel %vm384_vm8, %v378_v54, 0 }
  0x92   : > { %448 = vmatpush1.bf16.msra.mxu1 %v392_v53  ;;  %520 = vmatprep.mubr.bf16.mxu0 %v1412_v2 }
  0x93   : > { %v1351_v55 = vpop.permute.xlu1 %1350  ;;  %v372_v56 = vpop.permute.xlu0 %371  ;;  %1299 = vmatprep.subr.bf16.mxu1 %v1415_v57 }
  0x94   : > { %v1353_v58 = vunpack.i.h.bf16 %v1351_v55  ;;  %v1352_v59 = vunpack.i.l.bf16 %v1351_v55  ;;  %v379_v60 = vsel %vm373_vm7, %v370_v50, %v372_v56  ;;  %v404_v61 = vsel %vm384_vm8, %v372_v56, 0 }
  0x95   : > { %1264 = vmatmul.mubr.msk.bf16.vlgmr.msra.gmra.mrb[0].mxu1 %vm380_vm9, %v334_v49  ;;  %1265 = vmatprep.subr.msk.bf16.mxu0 %vm384_vm8, %v379_v60 }
  0x96   : > { %489 = vmatpush1.bf16.msra.mxu0 %v398_v62  ;;  %1300 = vmatpush3.bf16.msra.mxu1 %v404_v61  ;;  %v620_v63 = vsel %vm373_vm7, %v1352_v59, %v1353_v58 }
  0x97   : > { %v613_v0 = vpop.permute.xlu1 %612  ;;  %v1356_v1 = vpop.permute.xlu0 %1355  ;;  %v661_v3 = vpack.c.bf16 %v620_v63, %v1498_v17  ;;  %1301 = vmatprep.mubr.msk.bf16.mxu1 %vm1416_vm10, %v1415_v57 }
  0x98   : > { %v1358_v4 = vunpack.i.h.bf16 %v1356_v1  ;;  %v1357_v5 = vunpack.i.l.bf16 %v1356_v1 }
  0x99   : > { %706 = vmatprep.subr.bf16.mxu0 %v661_v3  ;;  %1266 = vmatmul.mubr.msk.bf16.vlgmr.msra.gmra.mrb[4].mxu0 %vm380_vm9, %v334_v49 }
  0x9a   : > { %v621_v6 = vsel %vm373_vm7, %v1353_v58, %v1358_v4  ;;  %v619_v7 = vsel %vm373_vm7, %v1357_v5, %v1352_v59  ;;  %v622_v8 = vsel %vm373_vm7, %v1358_v4, %v613_v0  ;;  %738 = vmatprep.mubr.bf16.mxu0 %v1412_v2 }
  0x9b   : > { %v662_v9 = vpack.c.bf16 %v621_v6, %v1496_v16  ;;  %v660_v10 = vpack.c.bf16 %v619_v7, %v1504_v26  ;;  %v1366_v11 = vpop.permute.xlu1 %1365  ;;  %v1361_v12 = vpop.permute.xlu0 %1360  ;;  %v663_v13 = vpack.c.bf16 %v622_v8, %v1506_v27 }
  0x9c   : > { %v1368_v14 = vunpack.i.h.bf16 %v1366_v11  ;;  %v1367_v15 = vunpack.i.l.bf16 %v1366_v11  ;;  %v1363_v17 = vunpack.i.h.bf16 %v1361_v12  ;;  %v1362_v18 = vunpack.i.l.bf16 %v1361_v12 }
  0x9d   : > { %1302 = vmatmul.mubr.msk.bf16.vlgmr.msra.gmra.mrb[4].mxu1 %vm380_vm9, %v334_v49  ;;  %707 = vmatpush1.bf16.msra.mxu0 %v660_v10 }
  0x9e   : > { %v648_v19 = vsel %vm646_vm11, %v1363_v17, %v1367_v15  ;;  %747 = vmatprep.subr.bf16.mxu1 %v663_v13  ;;  %v647_v20 = vsel %vm646_vm11, %v1362_v18, %v1363_v17  ;;  %v649_v16 = vsel %vm646_vm11, %v1367_v15, %v1368_v14  ;;  %779 = vmatprep.mubr.bf16.mxu1 %v1412_v2 }
  0x9f   : > { %v668_v21 = vpack.c.bf16 %v648_v19, %v648_v19  ;;  %748 = vmatpush1.bf16.msra.mxu1 %v662_v9  ;;  %v1371_v22 = vpop.permute.xlu1 %1370  ;;  %v641_v23 = vpop.permute.xlu0 %640  ;;  %v667_v24 = vpack.c.bf16 %v647_v20, %v647_v20  ;;  %v669_v25 = vpack.c.bf16 %v649_v16, %v649_v16 }
  0xa0   : > { %v1373_v26 = vunpack.i.h.bf16 %v1371_v22  ;;  %v1372_v27 = vunpack.i.l.bf16 %v1371_v22  ;;  %v650_v28 = vsel %vm646_vm11, %v1368_v14, %v641_v23 }
  0xa1   : > { %v670_v29 = vpack.c.bf16 %v650_v28, %v650_v28  ;;  %1268 = vmatprep.subr.msk.bf16.mxu0 %vm384_vm8, %v668_v21  ;;  %v686_v30 = vsel %vm384_vm8, %v667_v24, 0  ;;  %v692_v32 = vsel %vm384_vm8, %v669_v25, 0 }
  0xa2   : > { %v623_v33 = vsel %vm373_vm7, %v613_v0, %v1372_v27  ;;  %709 = vmatpush1.bf16.msra.mxu0 %v686_v30  ;;  %v624_v37 = vsel %vm373_vm7, %v1372_v27, %v1373_v26  ;;  %v666_v43 = vpack.c.bf16 %v1373_v26, %v1523_v36 }
  0xa3   : > { %v664_v38 = vpack.c.bf16 %v623_v33, %v1512_v31  ;;  %v1376_v39 = vpop.permute.xlu0 %1375  ;;  %1270 = vmatprep.subr.msk.bf16.mxu1 %vm384_vm8, %v670_v29  ;;  %v665_v40 = vpack.c.bf16 %v624_v37, %v1521_v35 }
  0xa4   : > { %v1378_v41 = vunpack.i.h.bf16 %v1376_v39  ;;  %v1377_v42 = vunpack.i.l.bf16 %v1376_v39  ;;  %750 = vmatpush1.bf16.msra.mxu1 %v692_v32  ;;  %v890_v39 = vld [vmem:[%s1669_s3] sm:$0xf] }
  0xa5   : > { %1269 = vmatmul.mubr.msk.bf16.vlgmr.msra.gmra.mrb[8].mxu0 %vm681_vm12, %v674_v34  ;;  %788 = vmatprep.subr.bf16.mxu0 %v665_v40 }
  0xa6   : > { %v652_v44 = vsel %vm646_vm11, %v1377_v42, %v1378_v41  ;;  %789 = vmatpush1.bf16.msra.mxu0 %v664_v38  ;;  %1305 = vmatprep.subr.bf16.mxu1 %v1415_v57  ;;  %v651_v31 = vsel %vm646_vm11, %v641_v23, %v1377_v42  ;;  %v673_v45 = vpack.c.bf16 %v1378_v41, %v1378_v41  ;;  %vm1164_vm11 = vcmask 257024  }
  0xa7   : > { %v672_v46 = vpack.c.bf16 %v652_v44, %v652_v44  ;;  %1271 = vmatmul.mubr.msk.bf16.vlgmr.msra.gmra.mrb[8].mxu1 %vm681_vm12, %v674_v34  ;;  %v671_v35 = vpack.c.bf16 %v651_v31, %v651_v31  ;;  %820 = vmatprep.mubr.bf16.mxu0 %v1412_v2 }
  0xa8   : > { %1306 = vmatpush3.bf16.msra.mxu1 %v666_v43  ;;  %1309 = vmatprep.mubr.msk.bf16.mxu1 %vm1416_vm10, %v1415_v57  ;;  %v704_v47 = vsel %vm384_vm8, %v673_v45, 0 }
  0xa9   : > { %1272 = vmatprep.subr.msk.bf16.mxu0 %vm384_vm8, %v672_v46  ;;  %v698_v36 = vsel %vm384_vm8, %v671_v35, 0  ;;  %1307 = vmatprep.subr.bf16.mxu1 %v1415_v57 }
  0xaa   : > { %791 = vmatpush1.bf16.msra.mxu0 %v698_v36 }
  0xac   : > { %1308 = vmatpush3.bf16.msra.mxu1 %v704_v47 }
  0xad   : > { %1273 = vmatmul.mubr.msk.bf16.vlgmr.msra.gmra.mrb[12].mxu0 %vm681_vm12, %v674_v34 }
  0xae   : > { %960 = vmatprep.mubr.bf16.mxu0 %v1412_v2 }
  0xaf   : > { %1310 = vmatmul.mubr.msk.bf16.vlgmr.msra.gmra.mrb[12].mxu1 %vm681_vm12, %v674_v34 }
  0xb0   : > { %1001 = vmatprep.mubr.bf16.mxu1 %v1412_v2  ;;  %v679_v3 = vpop.permute.xlu1 %678 }
 0x164   : > { %v1607_v49 = vpop.f32.mrb[0].mxu0 }
 0x165   : > { %v1609_v50 = vpop.f32.mrb[1].mxu0 }
 0x166   : > { %v444_v51 = vpop.f32.mrb[2].mxu0 }
 0x167   : > { %v445_v52 = vpop.f32.mrb[3].mxu0 }
 0x168   : > { %v1611_v53 = vpop.f32.mrb[0].mxu1 }
 0x169   : > { %v1613_v54 = vpop.f32.mrb[1].mxu1 }
 0x16a   : > { %v485_v55 = vpop.f32.mrb[2].mxu1 }
 0x16b   : > { %v486_v56 = vpop.f32.mrb[3].mxu1 }
 0x16c   : > { %v1615_v58 = vpop.f32.mrb[4].mxu0 }
 0x16d   : > { %v1617_v59 = vpop.f32.mrb[5].mxu0 }
 0x16e   : > { %v526_v60 = vpop.f32.mrb[6].mxu0 }
 0x16f   : > { %v527_v61 = vpop.f32.mrb[7].mxu0  ;;  %v902_v60 = vpop.permute.xlu0 %901 }
 0x170   : > { %v1619_v62 = vpop.f32.mrb[4].mxu1 }
 0x171   : > { %v1303_v63 = vpop.f32.mrb[5].mxu1 }
 0x172   : > { %v566_v0 = vpop.f32.mrb[6].mxu1 }
 0x173   : > { %v1304_v1 = vpop.f32.mrb[7].mxu1 }
 0x178   : > { %v740_v4 = vpop.f32.mrb[8].mxu0 }
 0x179   : > { %v741_v5 = vadd.f32 %v740_v4, %v679_v3  ;;  %v742_v6 = vpop.f32.mrb[9].mxu0 }
 0x17a   : > { %v743_v7 = vadd.f32 %v742_v6, %v679_v3  ;;  %v744_v8 = vpop.f32.mrb[10].mxu0  ;;  %v781_v9 = vpop.f32.mrb[8].mxu1 }
 0x17b   : > { %vm869_vm13 = vcmp.ge.f32.partialorder %v741_v5, 0.0  ;;  %v876_v10 = vmul.f32 0.2, %v741_v5  ;;  %v782_v11 = vadd.f32 %v781_v9, %v679_v3  ;;  %v745_v12 = vpop.f32.mrb[11].mxu0  ;;  %v783_v13 = vpop.f32.mrb[9].mxu1 }
 0x17c   : > { %vm870_vm14 = vcmp.ge.f32.partialorder %v743_v7, 0.0  ;;  %v877_v14 = vmul.f32 0.2, %v743_v7  ;;  %v784_v15 = vadd.f32 %v783_v13, %v679_v3  ;;  %v785_v17 = vpop.f32.mrb[10].mxu1 }
 0x17d   : > { %v883_v18 = vsel %vm869_vm13, %v741_v5, %v876_v10  ;;  %vm871_vm15 = vcmp.ge.f32.partialorder %v782_v11, 0.0  ;;  %v878_v19 = vmul.f32 0.2, %v782_v11  ;;  %v786_v20 = vpop.f32.mrb[11].mxu1 }
 0x17e   : > { %v891_v16 = vpack.c.bf16 %v883_v18, %v883_v18  ;;  %v884_v21 = vsel %vm870_vm14, %v743_v7, %v877_v14  ;;  %vm872_vm0 = vcmp.ge.f32.partialorder %v784_v15, 0.0  ;;  %v879_v22 = vmul.f32 0.2, %v784_v15 }
 0x17f   : > { %v892_v23 = vpack.c.bf16 %v884_v21, %v884_v21  ;;  %v885_v24 = vsel %vm871_vm15, %v782_v11, %v878_v19 }
 0x180   : > { %v893_v25 = vpack.c.bf16 %v885_v24, %v885_v24  ;;  %v886_v26 = vsel %vm872_vm0, %v784_v15, %v879_v22  ;;  %v822_v27 = vpop.f32.mrb[12].mxu0  ;;  %v908_v28 = vsel %vm384_vm8, %v891_v16, 0 }
 0x181   : > { %v894_v29 = vpack.c.bf16 %v886_v26, %v886_v26  ;;  %v823_v30 = vadd.f32 %v822_v27, %v679_v3  ;;  %v824_v32 = vpop.f32.mrb[13].mxu0  ;;  %1275 = vmatprep.subr.msk.bf16.mxu0 %vm384_vm8, %v892_v23 }
 0x182   : > { %v825_v33 = vadd.f32 %v824_v32, %v679_v3  ;;  %v826_v34 = vpop.f32.mrb[14].mxu0  ;;  %v863_v37 = vpop.f32.mrb[12].mxu1  ;;  %929 = vmatpush1.bf16.msra.mxu0 %v908_v28  ;;  %v914_v38 = vsel %vm384_vm8, %v893_v25, 0 }
 0x183   : > { %vm873_vm1 = vcmp.ge.f32.partialorder %v823_v30, 0.0  ;;  %v880_v40 = vmul.f32 0.2, %v823_v30  ;;  %v864_v41 = vadd.f32 %v863_v37, %v679_v3  ;;  %v827_v42 = vpop.f32.mrb[15].mxu0  ;;  %v1311_v43 = vpop.f32.mrb[13].mxu1  ;;  %1277 = vmatprep.subr.msk.bf16.mxu1 %vm384_vm8, %v894_v29 }
 0x184   : > { %vm874_vm2 = vcmp.ge.f32.partialorder %v825_v33, 0.0  ;;  %v881_v44 = vmul.f32 0.2, %v825_v33  ;;  %v866_v31 = vpop.f32.mrb[14].mxu1  ;;  %970 = vmatpush1.bf16.msra.mxu1 %v914_v38 }
 0x185   : > { %v887_v45 = vsel %vm873_vm1, %v823_v30, %v880_v40  ;;  %vm875_vm3 = vcmp.ge.f32.partialorder %v864_v41, 0.0  ;;  %v882_v46 = vmul.f32 0.2, %v864_v41  ;;  %v1312_v35 = vpop.f32.mrb[15].mxu1  ;;  %1276 = vmatmul.mubr.msk.bf16.vlgmr.msra.gmra.mrb[16].mxu0 %vm380_vm9, %v890_v39  ;;  %1313 = vmatprep.subr.bf16.mxu1 %v1415_v57 }
 0x186   : > { %v895_v36 = vpack.c.bf16 %v887_v45, %v887_v45  ;;  %v888_v47 = vsel %vm874_vm2, %v825_v33, %v881_v44  ;;  %1042 = vmatprep.mubr.bf16.mxu0 %v1412_v2  ;;  %v339_v2 = vpop.permute.xlu1 %338 }
 0x187   : > { %v896_v48 = vpack.c.bf16 %v888_v47, %v888_v47  ;;  %v889_v51 = vsel %vm875_vm3, %v864_v41, %v882_v46  ;;  %1278 = vmatmul.mubr.msk.bf16.vlgmr.msra.gmra.mrb[16].mxu1 %vm380_vm9, %v890_v39  ;;  %v443_v10 = vadd.f32 %v1609_v50, %v339_v2  ;;  %v482_v15 = vadd.f32 %v1611_v53, %v339_v2 }
 0x188   : > { %v897_v52 = vpack.c.bf16 %v889_v51, %v889_v51  ;;  %v920_v55 = vsel %vm384_vm8, %v895_v36, 0  ;;  %1315 = vmatprep.mubr.msk.bf16.mxu1 %vm1416_vm10, %v1415_v57  ;;  %v441_v57 = vadd.f32 %v1607_v49, %v339_v2  ;;  %v484_v19 = vadd.f32 %v1613_v54, %v339_v2 }
 0x189   : > { %1279 = vmatprep.subr.msk.bf16.mxu0 %vm384_vm8, %v896_v48  ;;  %v523_v22 = vadd.f32 %v1615_v58, %v339_v2  ;;  %v525_v40 = vadd.f32 %v1617_v59, %v339_v2  ;;  %v564_v44 = vadd.f32 %v1619_v62, %v339_v2 }
 0x18a   : > { %1011 = vmatpush1.bf16.msra.mxu0 %v920_v55  ;;  %v926_v56 = vsel %vm384_vm8, %v897_v52, 0  ;;  %v1095_v63 = vpop.permute.xlu1 %1094 }
 0x18b   : > { %1314 = vmatpush3.bf16.msra.mxu1 %v926_v56 }
 0x18d   : > { %1280 = vmatmul.mubr.msk.bf16.vlgmr.msra.gmra.mrb[20].mxu0 %vm380_vm9, %v890_v39 }
 0x18f   : > { %1316 = vmatmul.mubr.msk.bf16.vlgmr.msra.gmra.mrb[20].mxu1 %vm380_vm9, %v890_v39 }
 0x258   : > { %v962_v61 = vpop.f32.mrb[16].mxu0 }
 0x259   : > { %v963_v0 = vadd.f32 %v962_v61, %v902_v60  ;;  %v964_v1 = vpop.f32.mrb[17].mxu0 }
 0x25a   : > { %v965_v3 = vadd.f32 %v964_v1, %v902_v60  ;;  %v1003_v4 = vpop.f32.mrb[16].mxu1  ;;  %v966_v5 = vpop.f32.mrb[18].mxu0 }
 0x25b   : > { %v1097_v6 = vmul.f32 %v1095_v63, %v963_v0  ;;  %v1004_v7 = vadd.f32 %v1003_v4, %v902_v60  ;;  %v1005_v8 = vpop.f32.mrb[17].mxu1  ;;  %v967_v9 = vpop.f32.mrb[19].mxu0 }
 0x25c   : > { %v1098_v11 = vmul.f32 %v1095_v63, %v965_v3  ;;  %v1006_v12 = vadd.f32 %v1005_v8, %v902_v60  ;;  %v1007_v13 = vpop.f32.mrb[18].mxu1 }
 0x25d   : > { %v1104_v14 = vadd.f32 %v1097_v6, %v441_v57  ;;  %v1099_v17 = vmul.f32 %v1095_v63, %v1004_v7  ;;  %v1008_v18 = vpop.f32.mrb[19].mxu1 }
 0x25e   : > { %v1105_v20 = vadd.f32 %v1098_v11, %v443_v10  ;;  %v1100_v16 = vmul.f32 %v1095_v63, %v1006_v12 }
 0x25f   : > { %vm1111_vm4 = vcmp.ge.f32.partialorder %v1104_v14, 0.0  ;;  %v1118_v49 = vmul.f32 0.2, %v1104_v14  ;;  %v1106_v21 = vadd.f32 %v1099_v17, %v482_v15 }
 0x260   : > { %vm1112_vm5 = vcmp.ge.f32.partialorder %v1105_v20, 0.0  ;;  %v1119_v50 = vmul.f32 0.2, %v1105_v20  ;;  %v1107_v23 = vadd.f32 %v1100_v16, %v484_v19  ;;  %v1044_v24 = vpop.f32.mrb[20].mxu0 }
 0x261   : > { %v1125_v25 = vsel %vm1111_vm4, %v1104_v14, %v1118_v49  ;;  %vm1113_vm6 = vcmp.ge.f32.partialorder %v1106_v21, 0.0  ;;  %v1120_v26 = vmul.f32 0.2, %v1106_v21  ;;  %v1045_v53 = vadd.f32 %v1044_v24, %v902_v60  ;;  %v1046_v27 = vpop.f32.mrb[21].mxu0 }
 0x262   : > { %v1126_v54 = vsel %vm1112_vm5, %v1105_v20, %v1119_v50  ;;  %vm1114_vm7 = vcmp.ge.f32.partialorder %v1107_v23, 0.0  ;;  %v1121_v28 = vmul.f32 0.2, %v1107_v23  ;;  %v1047_v58 = vadd.f32 %v1046_v27, %v902_v60  ;;  %v1085_v29 = vpop.f32.mrb[20].mxu1  ;;  %v1048_v30 = vpop.f32.mrb[22].mxu0 }
 0x263   : > { %v1288_v32 = vpack.c.bf16 %v1126_v54, %v1125_v25  ;;  %v1127_v33 = vsel %vm1113_vm6, %v1106_v21, %v1120_v26  ;;  %v1101_v34 = vmul.f32 %v1095_v63, %v1045_v53  ;;  %v1086_v37 = vadd.f32 %v1085_v29, %v902_v60  ;;  %v1317_v38 = vpop.f32.mrb[21].mxu1  ;;  %v1049_v39 = vpop.f32.mrb[23].mxu0 }
 0x264   : > { %v1128_v41 = vsel %vm1114_vm7, %v1107_v23, %v1121_v28  ;;  %v1102_v42 = vmul.f32 %v1095_v63, %v1047_v58  ;;  %v1088_v43 = vpop.f32.mrb[22].mxu1 }
 0x265   : > { %1161 = vst [vmem:[%s1649_s14] sm:$0xff] %v1288_v32  ;;  %v1289_v31 = vpack.c.bf16 %v1128_v41, %v1127_v33  ;;  %v1108_v45 = vadd.f32 %v1101_v34, %v523_v22  ;;  %v1103_v46 = vmul.f32 %v1095_v63, %v1086_v37  ;;  %v1318_v35 = vpop.f32.mrb[23].mxu1 }
 0x266   : > { %v1109_v36 = vadd.f32 %v1102_v42, %v525_v40 }
 0x267   : > { %1162 = vst [vmem:[%s1649_s14 + $0x8] sm:$0xff] %v1289_v31  ;;  %vm1115_vm8 = vcmp.ge.f32.partialorder %v1108_v45, 0.0  ;;  %v1122_v47 = vmul.f32 0.2, %v1108_v45  ;;  %v1110_v48 = vadd.f32 %v1103_v46, %v564_v44 }
 0x268   : > { %vm1116_vm9 = vcmp.ge.f32.partialorder %v1109_v36, 0.0  ;;  %v1123_v51 = vmul.f32 0.2, %v1109_v36 }
 0x269   : > { %v1129_v59 = vsel %vm1115_vm8, %v1108_v45, %v1122_v47  ;;  %vm1117_vm10 = vcmp.ge.f32.partialorder %v1110_v48, 0.0  ;;  %v1124_v52 = vmul.f32 0.2, %v1110_v48 }
 0x26a   : > { %v1130_v55 = vsel %vm1116_vm9, %v1109_v36, %v1123_v51 }
 0x26b   : > { %v1290_v56 = vpack.c.bf16 %v1130_v55, %v1129_v59  ;;  %v1131_v62 = vsel %vm1117_vm10, %v1110_v48, %v1124_v52 }
 0x26c   : > { %v1291_v2 = vpack.c.bf16 %v1131_v62, %v1131_v62 }
 0x26d   : > { %1163 = vst [vmem:[%s1649_s14 + $0x10] sm:$0xff] %v1290_v56 }
 0x26e   : > { %1165 = vst.msk [vmem:[%s1649_s14 + $0x18] sm:$0xf] %vm1164_vm11, %v1291_v2 }
 0x26f PF: > { %s18_s29 = sadd.s32 1, %s1410_s29   ;;  %s1675_s27 = smov %s1406_s28 }
 0x270   : > { %p15_p5 = scmp.ge.s32.totalorder %s18_s29, 4   ;;  %s1676_s28 = smov %s1678_s30 }
 0x272   :  { %17 = sbr.rel (!%p15_p5) target bundleno = 2 (0x2), region = 82 }

// kernel: forward.24
= control target key start
LH: loop header
LB: loop body
LE: loop exit
PB: predicated region body
PF: predicated region fallthrough
CT: control target
= control target key end

     0   :  { %s789_s12 = smov 0   ;;  %s791_s13 = smov 0   ;;  %s898_s0 = inlined_call_operand.vmem [shape: bf16[2,8,802], index: 0, kind: input, shape index: {}]   ;;  %s899_s1 = inlined_call_operand.vmem [shape: bf16[16,24], index: 1, kind: input, shape index: {}]   ;;  %s900_s2 = inlined_call_operand.vmem [shape: f32[16,1], index: 2, kind: input, shape index: {}]   ;;  %s901_s3 = inlined_call_operand.vmem [shape: bf16[2,16,800], index: 3, kind: output, shape index: {}]  }
   0x1   :  { %s793_s14 = smov 0  }
   0x2 LB: > { %s25_s15 = sadd.s32 1, %s758_s13  ;;  %p636_p0 = scmp.ge.s32.totalorder %s762_s14, 1  ;;  %s762_s14 = sphi %s793_s14, %s13_s14   ;;  %s758_s13 = sphi %s791_s13, %s903_s13   ;;  %s754_s12 = sphi %s789_s12, %s902_s12  }
   0x3   : > { %p27_p1 = scmp.ge.s32.totalorder %s25_s15, 2  ;;  %p151_p2 = scmp.lt.s32.totalorder %s762_s14, 3 }
   0x5   : > { %s905_s15 = smov (%p27_p1, %s25_s15), 0  ;;  %p152_p3 = pnand %p636_p0, %p151_p2 }
   0x6   : > { %p179_p4 = scmp.lt.s32.totalorder (!%p152_p3), %s754_s12, 1  ;;  %s764_s20 = smov (!%p152_p3), 127   ;;  %v766_v15 = vmov (!%p152_p3), 0   ;;  %v285_v17 = vld [vmem:[%s900_s2] sm:$0xff] (!%p152_p3)  ;;  %v286_v18 = vld [vmem:[%s900_s2 + $0x8] sm:$0xff] (!%p152_p3)  ;;  %vm227_vm0 = vcmask (!%p152_p3), 1039360  }
   0x7   : > { %155 = sbr.rel (%p152_p3) target bundleno = 383 (0x17f), region = 32  ;;  %s765_s21 = smov (!%p152_p3), 126   ;;  %360 = vmatprep.mubr.bf16.mxu0 (!%p152_p3), %v766_v15  ;;  %403 = vmatprep.mubr.bf16.mxu1 (!%p152_p3), %v766_v15  ;;  %vm255_vm1 = vcmask (!%p152_p3), 1031168   ;;  %vm306_vm2 = vcmask (!%p152_p3), 1043456   ;;  %v739_v57 = vld [vmem:[%s899_s1] sm:$0xff] (!%p152_p3)   ;;  %vm302_vm3 = vcmask (!%p152_p3), 195584  }
   0x8   : > { %737 = vset.pattern.permute.xlu0 (!%p152_p3), %v766_v15  ;;  %738 = vset.pattern.permute.xlu1 (!%p152_p3), %v766_v15  ;;  %vm768_vm4 = vmmov (!%p152_p3), 0   ;;  %vm545_vm5 = vcmask (!%p152_p3), 257024  }
   0xe   : > { %s907_s12 = smov (!%p179_p4, %s754_s12), 1 }
   0xf   : > { %s676_s16 = smul.u32 28, %s907_s12 }
  0x10   : > { %s677_s28 = smul.u32 56, %s907_s12 }
  0x11   : > { %s183_s19 = scalar_lea.vmem %s898_s0, %s676_s16 }
  0x12   : > { %v813_v0 = vld [vmem:[%s183_s19 + $0x10] sm:$0xff]  ;;  %v195_v1 = vld [vmem:[%s183_s19] sm:$0xff]  ;;  %v196_v2 = vld [vmem:[%s183_s19 + $0x8] sm:$0xff]  ;;  %s879_s4 = scalar_lea.vmem %s901_s3, %s677_s28 }
  0x13   : > { %v816_v3 = vunpack.c.l.bf16 %v813_v0  ;;  %v200_v4 = vunpack.c.h.bf16 %v195_v1  ;;  %v818_v5 = vunpack.c.l.bf16 %v196_v2  ;;  %v202_v6 = vunpack.c.h.bf16 %v196_v2  ;;  %v822_v10 = vld [vmem:[%s183_s19 + $0x18] sm:$0xf] }
  0x14   : > { %v199_v7 = vunpack.c.l.bf16 %v195_v1  ;;  %v204_v12 = vunpack.c.h.bf16 %v813_v0  ;;  %v205_v13 = vunpack.c.l.bf16 %v822_v10 }
  0x15   : > { %221 = vrot.lane.b32.xlu1 %v816_v3, %s764_s20  ;;  %v707_v8 = vpack.i.bf16 %v818_v5, %v200_v4  ;;  %v722_v14 = vpack.i.bf16 %v202_v6, %v818_v5 }
  0x16   : > { %v717_v9 = vpack.i.bf16 %v200_v4, %v199_v7  ;;  %v712_v11 = vpack.i.bf16 %v202_v6, %v199_v7  ;;  %v732_v16 = vpack.i.bf16 %v205_v13, %v204_v12 }
  0x17   : > { %708 = vrot.lane.b32.xlu0 %v707_v8, %s764_s20 }
  0x19   : > { %718 = vrot.lane.b32.xlu1 %v717_v9, %s765_s21 }
  0x1b   : > { %713 = vrot.lane.b32.xlu0 %v712_v11, %s764_s20 }
  0x1d   : > { %249 = vrot.lane.b32.xlu1 %v816_v3, %s765_s21 }
  0x1f   : > { %723 = vrot.lane.b32.xlu0 %v722_v14, %s765_s21 }
  0x21   : > { %733 = vrot.lane.b32.xlu1 %v732_v16, %s765_s21 }
  0x23   : > { %728 = vrot.lane.b32.xlu0 %v732_v16, %s764_s20 }
  0x25   : > { %294 = vperm.xlu1 %738, %v286_v18  }
  0x27   : > { %289 = vperm.xlu0 %737, %v285_v17  }
  0x87   : > { %v222_v19 = vpop.permute.xlu1 %221 }
  0x89   : > { %v709_v20 = vpop.permute.xlu0 %708 }
  0x8a   : > { %v711_v21 = vunpack.i.h.bf16 %v709_v20  ;;  %v710_v22 = vunpack.i.l.bf16 %v709_v20 }
  0x8b   : > { %v719_v23 = vpop.permute.xlu1 %718 }
  0x8c   : > { %v721_v24 = vunpack.i.h.bf16 %v719_v23  ;;  %v720_v25 = vunpack.i.l.bf16 %v719_v23  ;;  %v229_v26 = vsel %vm227_vm0, %v710_v22, %v711_v21 }
  0x8d   : > { %v714_v27 = vpop.permute.xlu0 %713  ;;  %v270_v28 = vpack.c.bf16 %v229_v26, %v200_v4 }
  0x8e   : > { %v716_v29 = vunpack.i.h.bf16 %v714_v27  ;;  %v715_v30 = vunpack.i.l.bf16 %v714_v27  ;;  %v256_v31 = vsel %vm255_vm1, %v720_v25, %v721_v24 }
  0x8f   : > { %328 = vmatprep.subr.bf16.mxu0 %v270_v28  ;;  %v250_v32 = vpop.permute.xlu1 %249  ;;  %v276_v40 = vpack.c.bf16 %v256_v31, %v256_v31 }
  0x90   : > { %v228_v33 = vsel %vm227_vm0, %v715_v30, %v710_v22  ;;  %v231_v34 = vsel %vm227_vm0, %v716_v29, %v222_v19  ;;  %v230_v35 = vsel %vm227_vm0, %v711_v21, %v716_v29 }
  0x91   : > { %v724_v36 = vpop.permute.xlu0 %723  ;;  %v269_v37 = vpack.c.bf16 %v228_v33, %v199_v7  ;;  %v272_v38 = vpack.c.bf16 %v231_v34, %v202_v6  ;;  %v271_v39 = vpack.c.bf16 %v230_v35, %v818_v5  ;;  %v308_v51 = vsel %vm306_vm2, %v276_v40, 0 }
  0x92   : > { %v726_v41 = vunpack.i.h.bf16 %v724_v36  ;;  %v725_v42 = vunpack.i.l.bf16 %v724_v36  ;;  %v767_v6 = vmov 0.0  }
  0x93   : > { %v734_v43 = vpop.permute.xlu1 %733  ;;  %329 = vmatpush1.bf16.msra.mxu0 %v269_v37  ;;  %371 = vmatprep.subr.bf16.mxu1 %v272_v38 }
  0x94   : > { %v259_v44 = vsel %vm255_vm1, %v726_v41, %v250_v32  ;;  %v257_v45 = vsel %vm255_vm1, %v721_v24, %v725_v42  ;;  %v736_v46 = vunpack.i.h.bf16 %v734_v43  ;;  %v735_v47 = vunpack.i.l.bf16 %v734_v43  ;;  %372 = vmatpush1.bf16.msra.mxu1 %v271_v39 }
  0x95   : > { %v279_v48 = vpack.c.bf16 %v259_v44, %v259_v44  ;;  %v277_v49 = vpack.c.bf16 %v257_v45, %v257_v45  ;;  %v729_v50 = vpop.permute.xlu0 %728  ;;  %v258_v52 = vsel %vm255_vm1, %v725_v42, %v726_v41 }
  0x96   : > { %v261_v53 = vsel %vm255_vm1, %v735_v47, %v736_v46  ;;  %v731_v54 = vunpack.i.h.bf16 %v729_v50  ;;  %v730_v55 = vunpack.i.l.bf16 %v729_v50  ;;  %v278_v56 = vpack.c.bf16 %v258_v52, %v258_v52 }
  0x97   : > { %640 = vmatprep.subr.msk.bf16.mxu0 %vm306_vm2, %v277_v49  ;;  %642 = vmatprep.subr.msk.bf16.mxu1 %vm306_vm2, %v279_v48  ;;  %v260_v60 = vsel %vm255_vm1, %v250_v32, %v735_v47  ;;  %v281_v61 = vpack.c.bf16 %v261_v53, %v261_v53  ;;  %v282_v2 = vpack.c.bf16 %v736_v46, %v736_v46 }
  0x98   : > { %v232_v58 = vsel %vm227_vm0, %v222_v19, %v730_v55  ;;  %331 = vmatpush1.bf16.msra.mxu0 %v308_v51  ;;  %v233_v59 = vsel %vm227_vm0, %v730_v55, %v731_v54  ;;  %v314_v63 = vsel %vm306_vm2, %v278_v56, 0  ;;  %v280_v4 = vpack.c.bf16 %v260_v60, %v260_v60 }
  0x99   : > { %v273_v62 = vpack.c.bf16 %v232_v58, %v816_v3  ;;  %v274_v1 = vpack.c.bf16 %v233_v59, %v204_v12  ;;  %374 = vmatpush1.bf16.msra.mxu1 %v314_v63  ;;  %v275_v5 = vpack.c.bf16 %v731_v54, %v205_v13  ;;  %v326_v3 = vsel %vm306_vm2, %v282_v2, 0 }
  0x9a   : > { %668 = vmatprep.subr.bf16.mxu1 %v767_v6  ;;  %v320_v0 = vsel %vm306_vm2, %v280_v4, 0 }
  0x9b   : > { %641 = vmatmul.mubr.msk.bf16.vlgmr.msra.gmra.mrb[0].mxu0 %vm302_vm3, %v739_v57  ;;  %414 = vmatprep.subr.bf16.mxu0 %v274_v1 }
  0x9c   : > { %415 = vmatpush1.bf16.msra.mxu0 %v273_v62  ;;  %643 = vmatmul.mubr.msk.bf16.vlgmr.msra.gmra.mrb[0].mxu1 %vm302_vm3, %v739_v57 }
  0x9d   : > { %644 = vmatprep.subr.msk.bf16.mxu0 %vm306_vm2, %v281_v61  ;;  %669 = vmatpush3.bf16.msra.mxu1 %v275_v5 }
  0x9e   : > { %446 = vmatprep.mubr.bf16.mxu0 %v766_v15  ;;  %670 = vmatprep.subr.bf16.mxu1 %v767_v6 }
  0x9f   : > { %672 = vmatprep.mubr.msk.bf16.mxu1 %vm768_vm4, %v767_v6 }
  0xa0   : > { %417 = vmatpush1.bf16.msra.mxu0 %v320_v0 }
  0xa1   : > { %671 = vmatpush3.bf16.msra.mxu1 %v326_v3 }
  0xa3   : > { %645 = vmatmul.mubr.msk.bf16.vlgmr.msra.gmra.mrb[4].mxu0 %vm302_vm3, %v739_v57 }
  0xa4   : > { %673 = vmatmul.mubr.msk.bf16.vlgmr.msra.gmra.mrb[4].mxu1 %vm302_vm3, %v739_v57  ;;  %v295_v9 = vpop.permute.xlu1 %294 }
  0xa6   : > { %v290_v7 = vpop.permute.xlu0 %289 }
 0x16e   : > { %v362_v8 = vpop.f32.mrb[0].mxu0 }
 0x16f   : > { %v363_v10 = vadd.f32 %v362_v8, %v290_v7  ;;  %v364_v11 = vpop.f32.mrb[1].mxu0  ;;  %v405_v12 = vpop.f32.mrb[0].mxu1 }
 0x170   : > { %v365_v13 = vadd.f32 %v364_v11, %v290_v7  ;;  %v366_v14 = vpop.f32.mrb[2].mxu0  ;;  %v406_v15 = vadd.f32 %v405_v12, %v290_v7  ;;  %v407_v16 = vpop.f32.mrb[1].mxu1 }
 0x171   : > { %v367_v17 = vadd.f32 %v366_v14, %v295_v9  ;;  %v368_v18 = vpop.f32.mrb[3].mxu0  ;;  %v408_v20 = vadd.f32 %v407_v16, %v290_v7  ;;  %v409_v21 = vpop.f32.mrb[2].mxu1 }
 0x172   : > { %v657_v19 = vpack.c.bf16 %v365_v13, %v363_v10  ;;  %v369_v22 = vadd.f32 %v368_v18, %v295_v9  ;;  %v410_v23 = vadd.f32 %v409_v21, %v295_v9  ;;  %v411_v24 = vpop.f32.mrb[3].mxu1 }
 0x173   : > { %v658_v25 = vpack.c.bf16 %v408_v20, %v406_v15  ;;  %v412_v27 = vadd.f32 %v411_v24, %v295_v9 }
 0x174   : > { %542 = vst [vmem:[%s879_s4] sm:$0xff] %v657_v19  ;;  %v661_v26 = vpack.c.bf16 %v369_v22, %v367_v17 }
 0x175   : > { %543 = vst [vmem:[%s879_s4 + $0x8] sm:$0xff] %v658_v25  ;;  %v662_v28 = vpack.c.bf16 %v412_v27, %v410_v23 }
 0x176   : > { %547 = vst [vmem:[%s879_s4 + $0x1c] sm:$0xff] %v661_v26  ;;  %v448_v29 = vpop.f32.mrb[4].mxu0 }
 0x177   : > { %v449_v30 = vadd.f32 %v448_v29, %v290_v7  ;;  %v450_v31 = vpop.f32.mrb[5].mxu0  ;;  %548 = vst [vmem:[%s879_s4 + $0x24] sm:$0xff] %v662_v28  ;;  %v491_v32 = vpop.f32.mrb[4].mxu1 }
 0x178   : > { %v451_v33 = vadd.f32 %v450_v31, %v290_v7  ;;  %v452_v34 = vpop.f32.mrb[6].mxu0  ;;  %v492_v35 = vadd.f32 %v491_v32, %v290_v7  ;;  %v674_v36 = vpop.f32.mrb[5].mxu1 }
 0x179   : > { %v453_v37 = vadd.f32 %v452_v34, %v295_v9  ;;  %v454_v38 = vpop.f32.mrb[7].mxu0  ;;  %v494_v40 = vpop.f32.mrb[6].mxu1 }
 0x17a   : > { %v659_v39 = vpack.c.bf16 %v451_v33, %v449_v30  ;;  %v455_v41 = vadd.f32 %v454_v38, %v295_v9  ;;  %v660_v42 = vpack.c.bf16 %v492_v35, %v492_v35  ;;  %v495_v43 = vadd.f32 %v494_v40, %v295_v9  ;;  %v675_v44 = vpop.f32.mrb[7].mxu1 }
 0x17c   : > { %544 = vst [vmem:[%s879_s4 + $0x10] sm:$0xff] %v659_v39  ;;  %v663_v45 = vpack.c.bf16 %v455_v41, %v453_v37  ;;  %546 = vst.msk [vmem:[%s879_s4 + $0x18] sm:$0xf] %vm545_vm5, %v660_v42  ;;  %v664_v46 = vpack.c.bf16 %v495_v43, %v495_v43 }
 0x17e   : > { %549 = vst [vmem:[%s879_s4 + $0x2c] sm:$0xff] %v663_v45  ;;  %550 = vst.msk [vmem:[%s879_s4 + $0x34] sm:$0xf] %vm545_vm5, %v664_v46 }
 0x17f PF: > { %s13_s14 = sadd.s32 1, %s762_s14   ;;  %s902_s12 = smov %s758_s13 }
 0x180   : > { %p10_p5 = scmp.ge.s32.totalorder %s13_s14, 4   ;;  %s903_s13 = smov %s905_s15 }
 0x182   :  { %12 = sbr.rel (!%p10_p5) target bundleno = 2 (0x2), region = 62 }

// kernel: forward.25
= control target key start
LH: loop header
LB: loop body
LE: loop exit
PB: predicated region body
PF: predicated region fallthrough
CT: control target
= control target key end

     0   :  { %s1281_s27 = smov 0   ;;  %s1283_s28 = smov 0   ;;  %s1486_s0 = inlined_call_operand.vmem [shape: bf16[2,4,3202], index: 0, kind: input, shape index: {}]   ;;  %s1487_s1 = inlined_call_operand.vmem [shape: bf16[4,12], index: 1, kind: input, shape index: {}]   ;;  %s1488_s2 = inlined_call_operand.vmem [shape: f32[4,1], index: 2, kind: input, shape index: {}]   ;;  %s1489_s3 = inlined_call_operand.vmem [shape: bf16[4,4], index: 3, kind: input, shape index: {}]   ;;  %s1490_s4 = inlined_call_operand.vmem [shape: f32[4,1], index: 4, kind: input, shape index: {}]   ;;  %s1491_s5 = inlined_call_operand.vmem [shape: bf16[4,4], index: 5, kind: input, shape index: {}]   ;;  %s1492_s6 = inlined_call_operand.vmem [shape: f32[4,1], index: 6, kind: input, shape index: {}]   ;;  %s1493_s7 = inlined_call_operand.vmem [shape: f32[4,1], index: 7, kind: input, shape index: {}]   ;;  %s1494_s8 = inlined_call_operand.vmem [shape: bf16[2,4,3200], index: 8, kind: output, shape index: {}]  }
   0x1   :  { %s1285_s29 = smov 0   ;;  %s1287_s30 = smov 0  }
   0x2   :  { %s1289_s9 = smov 0  }
   0x3 LB: > { %s27_s10 = sadd.s32 1, %s1220_s29  ;;  %s30_s11 = sadd.s32 1, %s1224_s30  ;;  %s1228_s9 = sphi %s1289_s9, %s18_s9   ;;  %s1224_s30 = sphi %s1287_s30, %s1498_s30   ;;  %s1220_s29 = sphi %s1285_s29, %s1497_s29   ;;  %s1216_s28 = sphi %s1283_s28, %s1496_s28   ;;  %s1212_s27 = sphi %s1281_s27, %s1495_s27  }
   0x4   : > { %p28_p0 = scmp.ge.s32.totalorder %s27_s10, 5  ;;  %p1071_p1 = scmp.ge.s32.totalorder %s1228_s9, 1 }
   0x5   : > { %p276_p2 = scmp.lt.s32.totalorder %s1228_s9, 11 }
   0x6   : > { %s1500_s10 = smov (%p28_p0, %s27_s10), 0  ;;  %s1502_s11 = smov (!%p28_p0, %s30_s11), %s1224_s30 }
   0x7   : > { %p277_p3 = pnand %p1071_p1, %p276_p2  ;;  %p32_p4 = scmp.ge.s32.totalorder %s1502_s11, 2 }
   0x8   : > { %p314_p5 = scmp.lt.s32.totalorder (!%p277_p3), %s1216_s28, 1  ;;  %s330_s12 = smul.u32 (!%p277_p3), 640, %s1212_s27  ;;  %v350_v0 = vlaneseq (!%p277_p3)  ;;  %v1230_v1 = vmov (!%p277_p3), 1983009808   ;;  %v1231_v6 = vmov (!%p277_p3), 0   ;;  %vm383_vm3 = vcmask (!%p277_p3), 1039360  }
   0x9   : > { %s1504_s11 = smov (%p32_p4, %s1502_s11), 0  ;;  %280 = sbr.rel (%p277_p3) target bundleno = 619 (0x26b), region = 52 }
   0xa   : > { %v348_v2 = vunpack.c.l.s4 (!%p277_p3), %v1230_v1  ;;  %v351_v3 = vshrl.u32 (!%p277_p3), %v350_v0, 7  ;;  %s331_s13 = sshra.s32 (!%p277_p3), %s330_s12, 7  ;;  %441 = vmatprep.mubr.bf16.mxu0 (!%p277_p3), %v1231_v6  ;;  %482 = vmatprep.mubr.bf16.mxu1 (!%p277_p3), %v1231_v6  ;;  %s1232_s20 = smov (!%p277_p3), 127   ;;  %v612_v35 = vld [vmem:[%s1488_s2] sm:$0xf] (!%p277_p3)  ;;  %vm393_vm4 = vcmask (!%p277_p3), 1041408  }
   0xb   : > { %s1074_s15 = sshll.u32 (!%p277_p3), %s331_s13, 1  ;;  %1188 = vset.pattern.permute.xlu1 (!%p277_p3), %v1231_v6  ;;  %1187 = vset.pattern.permute.xlu0 (!%p277_p3), %v1231_v6  ;;  %s1233_s21 = smov (!%p277_p3), 126   ;;  %v781_v36 = vld [vmem:[%s1490_s4] sm:$0xf] (!%p277_p3)  ;;  %vm389_vm5 = vcmask (!%p277_p3), 31744   ;;  %v1234_v48 = vmov (!%p277_p3), 0.0  }
   0xc   : > { %v349_v4 = vunpack.c.0.s8 (!%p277_p3), %v348_v2  ;;  %v927_v37 = vld [vmem:[%s1493_s7] sm:$0xf] (!%p277_p3)  ;;  %vm1235_vm6 = vmmov (!%p277_p3), 0   ;;  %vm600_vm7 = vcmask (!%p277_p3), 1043456   ;;  %vm589_vm8 = vcmask (!%p277_p3), 1031168  }
   0xd   : > { %v338_v38 = vld [vmem:[%s1492_s6] sm:$0xf] (!%p277_p3)  ;;  %vm622_vm9 = vcmask (!%p277_p3), 1045504   ;;  %vm618_vm10 = vcmask (!%p277_p3), 97280  }
   0xe   : > { %v1317_v5 = vsub.s32 (!%p277_p3), %v349_v4, %v351_v3  ;;  %v337_v46 = vld [vmem:[%s1491_s5] sm:$0x3] (!%p277_p3) }
  0x10   : > { %s1506_s28 = smov (!%p314_p5, %s1216_s28), 1 }
  0x11   : > { %s1119_s14 = smul.u32 52, %s1506_s28 }
  0x12   : > { %s1120_s22 = smul.u32 25, %s1506_s28 }
  0x13   : > { %s318_s18 = scalar_lea.vmem %s1486_s0, %s1119_s14 }
  0x14   : > { %s334_s19 = scalar_lea.vmem %s318_s18, %s1074_s15 }
  0x15   : > { %v335_v7 = vld [vmem:[%s334_s19] sm:$0xff]  ;;  %v336_v8 = vld [vmem:[%s334_s19 + $0x8] sm:$0xf] }
  0x16   : > { %v353_v9 = vrot.slane %v335_v7, %v1317_v5  ;;  %v531_v10 = vunpack.c.l.bf16 %v335_v7  ;;  %v532_v11 = vunpack.c.h.bf16 %v335_v7  ;;  %v346_v12 = vcombine.high %v335_v7, %v335_v7 }
  0x17   : > { %v369_v13 = vrot.slane %v336_v8, %v1317_v5  ;;  %v533_v22 = vunpack.c.l.bf16 %v336_v8 }
  0x18   : > { %v537_v14 = vmul.f32 0.2, %v531_v10  ;;  %v538_v15 = vmul.f32 0.2, %v532_v11  ;;  %371 = vrot.lane.b32.xlu0 %v353_v9, %s1232_s20  ;;  %v361_v16 = vcombine.high %v353_v9, %v353_v9  ;;  %v360_v17 = vrot.slane %v346_v12, %v1317_v5 }
  0x19   : > { %vm534_vm0 = vcmp.ge.f32.partialorder %v531_v10, 0.0  ;;  %vm535_vm1 = vcmp.ge.f32.partialorder %v532_v11, 0.0  ;;  %v370_v18 = vcombine.high %v369_v13, %v369_v13  ;;  %v539_v27 = vmul.f32 0.2, %v533_v22 }
  0x1a   : > { %375 = vrot.lane.b32.xlu1 %v360_v17, %s1232_s20  ;;  %v1331_v19 = vsel %vm534_vm0, %v531_v10, %v537_v14  ;;  %v1333_v20 = vsel %vm535_vm1, %v532_v11, %v538_v15  ;;  %v362_v23 = vcombine.high %v360_v17, %v360_v17  ;;  %vm536_vm2 = vcmp.ge.f32.partialorder %v533_v22, 0.0 }
  0x1b   : > { %v550_v21 = vcombine.low %v1331_v19, %v1331_v19  ;;  %v551_v24 = vcombine.low %v1333_v20, %v1333_v20  ;;  %v1345_v26 = vcombine.high %v1331_v19, %v1331_v19  ;;  %v1351_v29 = vcombine.high %v1333_v20, %v1333_v20 }
  0x1c   : > { %373 = vrot.lane.b32.xlu0 %v361_v16, %s1232_s20  ;;  %v1356_v31 = vsel %vm536_vm2, %v533_v22, %v539_v27 }
  0x1d   : > { %v1167_v25 = vpack.i.bf16 %v1331_v19, %v550_v21  ;;  %v1172_v28 = vpack.i.bf16 %v1333_v20, %v551_v24  ;;  %v1177_v30 = vpack.i.bf16 %v1345_v26, %v1331_v19  ;;  %v1182_v32 = vpack.i.bf16 %v1351_v29, %v1333_v20 }
  0x1e   : > { %381 = vrot.lane.b32.xlu1 %v370_v18, %s1232_s20  ;;  %v552_v33 = vcombine.low %v1356_v31, %v1356_v31  ;;  %v576_v34 = vcombine.high %v1356_v31, %v1356_v31 }
  0x20   : > { %379 = vrot.lane.b32.xlu0 %v369_v13, %s1232_s20 }
  0x22   : > { %377 = vrot.lane.b32.xlu1 %v362_v23, %s1232_s20 }
  0x24   : > { %1168 = vrot.lane.b32.xlu0 %v1167_v25, %s1232_s20 }
  0x26   : > { %1173 = vrot.lane.b32.xlu1 %v1172_v28, %s1232_s20 }
  0x28   : > { %1178 = vrot.lane.b32.xlu0 %v1177_v30, %s1233_s21 }
  0x2a   : > { %1183 = vrot.lane.b32.xlu1 %v1182_v32, %s1233_s21 }
  0x2c   : > { %561 = vrot.lane.b32.xlu0 %v552_v33, %s1232_s20 }
  0x2e   : > { %585 = vrot.lane.b32.xlu1 %v1356_v31, %s1233_s21 }
  0x30   : > { %563 = vrot.lane.b32.xlu0 %v1356_v31, %s1232_s20 }
  0x32   : > { %587 = vrot.lane.b32.xlu1 %v576_v34, %s1233_s21  ;;  %s319_s21 = smul.u32 5, %s1212_s27 }
  0x34   : > { %615 = vperm.xlu0 %1187, %v612_v35   ;;  %p322_p6 = scmp.lt.s32.totalorder %s319_s21, 24 }
  0x36   : > { %784 = vperm.xlu1 %1188, %v781_v36   ;;  %s1508_s21 = smov (!%p322_p6, %s319_s21), 24 }
  0x37   : > { %s325_s27 = sadd.s32 %s1120_s22, %s1508_s21 }
  0x38   : > { %930 = vperm.xlu0 %1187, %v927_v37   ;;  %s1073_s28 = sshll.u32 %s325_s27, 1 }
  0x39   : > { %s327_s25 = scalar_lea.vmem %s1494_s8, %s1073_s28 }
  0x3a   : > { %341 = vperm.xlu1 %1188, %v338_v38  }
  0x8a   : > { %v372_v39 = vpop.permute.xlu0 %371 }
  0x8c   : > { %v376_v40 = vpop.permute.xlu1 %375 }
  0x8e   : > { %v374_v41 = vpop.permute.xlu0 %373 }
  0x8f   : > { %v385_v42 = vsel %vm383_vm3, %v374_v41, %v376_v40  ;;  %v384_v43 = vsel %vm383_vm3, %v372_v39, %v374_v41 }
  0x90   : > { %1075 = vmatprep.subr.msk.bf16.mxu0 %vm393_vm4, %v385_v42  ;;  %v382_v44 = vpop.permute.xlu1 %381  ;;  %v395_v45 = vsel %vm393_vm4, %v384_v43, 0 }
  0x91   : > { %410 = vmatpush1.bf16.msra.mxu0 %v395_v45 }
  0x92   : > { %v380_v47 = vpop.permute.xlu0 %379  ;;  %1101 = vmatprep.subr.bf16.mxu0 %v1234_v48 }
  0x93   : > { %v388_v49 = vsel %vm383_vm3, %v380_v47, %v382_v44 }
  0x94   : > { %v407_v50 = vsel %vm393_vm4, %v388_v49, 0  ;;  %v378_v51 = vpop.permute.xlu1 %377  ;;  %1076 = vmatmul.mubr.msk.bf16.vlgmr.msra.gmra.mrb[0].mxu0 %vm389_vm5, %v337_v46 }
  0x95   : > { %1102 = vmatpush3.bf16.msra.mxu0 %v407_v50  ;;  %v387_v52 = vsel %vm383_vm3, %v378_v51, %v380_v47  ;;  %v386_v53 = vsel %vm383_vm3, %v376_v40, %v378_v51  ;;  %1103 = vmatprep.mubr.msk.bf16.mxu0 %vm1235_vm6, %v1234_v48 }
  0x96   : > { %v1169_v54 = vpop.permute.xlu0 %1168  ;;  %1077 = vmatprep.subr.msk.bf16.mxu1 %vm393_vm4, %v387_v52  ;;  %v401_v55 = vsel %vm393_vm4, %v386_v53, 0 }
  0x97   : > { %v1171_v56 = vunpack.i.h.bf16 %v1169_v54  ;;  %v1170_v57 = vunpack.i.l.bf16 %v1169_v54  ;;  %451 = vmatpush1.bf16.msra.mxu1 %v401_v55 }
  0x98   : > { %v1174_v58 = vpop.permute.xlu1 %1173 }
  0x99   : > { %v566_v59 = vsel %vm383_vm3, %v1170_v57, %v1171_v56  ;;  %v1176_v60 = vunpack.i.h.bf16 %v1174_v58  ;;  %v1175_v61 = vunpack.i.l.bf16 %v1174_v58 }
  0x9a   : > { %v1179_v62 = vpop.permute.xlu0 %1178  ;;  %1078 = vmatmul.mubr.msk.bf16.vlgmr.msra.gmra.mrb[0].mxu1 %vm389_vm5, %v337_v46  ;;  %v601_v2 = vsel %vm600_vm7, %v1331_v19, %v566_v59 }
  0x9b   : > { %v567_v63 = vsel %vm383_vm3, %v1171_v56, %v1175_v61  ;;  %v1181_v0 = vunpack.i.h.bf16 %v1179_v62  ;;  %v1180_v1 = vunpack.i.l.bf16 %v1179_v62  ;;  %670 = vmatprep.mubr.bf16.mxu1 %v1231_v6  ;;  %v568_v3 = vsel %vm383_vm3, %v1175_v61, %v1176_v60 }
  0x9c   : > { %v1184_v4 = vpop.permute.xlu1 %1183  ;;  %1104 = vmatmul.mubr.msk.bf16.vlgmr.msra.gmra.mrb[4].mxu0 %vm389_vm5, %v337_v46  ;;  %v602_v10 = vsel %vm600_vm7, %v1345_v26, %v567_v63  ;;  %v603_v16 = vsel %vm600_vm7, %v1333_v20, %v568_v3  ;;  %v611_v20 = vld [vmem:[%s1487_s1] sm:$0x3] }
  0x9d   : > { %v590_v7 = vsel %vm589_vm8, %v1180_v1, %v1181_v0  ;;  %v1186_v8 = vunpack.i.h.bf16 %v1184_v4  ;;  %v1185_v9 = vunpack.i.l.bf16 %v1184_v4  ;;  %711 = vmatprep.mubr.bf16.mxu0 %v1231_v6 }
  0x9e   : > { %v562_v11 = vpop.permute.xlu0 %561  ;;  %v606_v12 = vpack.c.bf16 %v590_v7, %v601_v2 }
  0x9f   : > { %v591_v13 = vsel %vm589_vm8, %v1181_v0, %v1185_v9  ;;  %v592_v14 = vsel %vm589_vm8, %v1185_v9, %v1186_v8  ;;  %v569_v15 = vsel %vm383_vm3, %v1176_v60, %v562_v11 }
  0xa0   : > { %v607_v17 = vpack.c.bf16 %v591_v13, %v602_v10  ;;  %v586_v18 = vpop.permute.xlu1 %585  ;;  %v604_v19 = vsel %vm600_vm7, %v1351_v29, %v569_v15  ;;  %v608_v21 = vpack.c.bf16 %v592_v14, %v603_v16  ;;  %v624_v25 = vsel %vm622_vm9, %v606_v12, 0  ;;  %v775_v14 = vld [vmem:[%s1489_s3] sm:$0x3] }
  0xa1   : > { %v593_v22 = vsel %vm589_vm8, %v1186_v8, %v586_v18 }
  0xa2   : > { %v609_v23 = vpack.c.bf16 %v593_v22, %v604_v19  ;;  %v564_v24 = vpop.permute.xlu0 %563  ;;  %1080 = vmatprep.subr.msk.bf16.mxu1 %vm622_vm9, %v607_v17  ;;  %v630_v29 = vsel %vm622_vm9, %v608_v21, 0 }
  0xa3   : > { %v570_v26 = vsel %vm383_vm3, %v562_v11, %v564_v24  ;;  %639 = vmatpush1.bf16.msra.mxu1 %v624_v25 }
  0xa4   : > { %v605_v27 = vsel %vm600_vm7, %v1356_v31, %v570_v26  ;;  %v588_v28 = vpop.permute.xlu1 %587  ;;  %1082 = vmatprep.subr.msk.bf16.mxu0 %vm622_vm9, %v609_v23  ;;  %1107 = vmatprep.subr.bf16.mxu1 %v1234_v48 }
  0xa5   : > { %v594_v30 = vsel %vm589_vm8, %v586_v18, %v588_v28  ;;  %680 = vmatpush1.bf16.msra.mxu0 %v630_v29 }
  0xa6   : > { %v610_v32 = vpack.c.bf16 %v594_v30, %v605_v27  ;;  %1081 = vmatmul.mubr.msk.bf16.vlgmr.msra.gmra.mrb[4].mxu1 %vm618_vm10, %v611_v20 }
  0xa7   : > { %1109 = vmatprep.mubr.msk.bf16.mxu1 %vm1235_vm6, %v1234_v48 }
  0xa8   : > { %1083 = vmatmul.mubr.msk.bf16.vlgmr.msra.gmra.mrb[8].mxu0 %vm618_vm10, %v611_v20  ;;  %v636_v33 = vsel %vm622_vm9, %v610_v32, 0 }
  0xa9   : > { %1108 = vmatpush3.bf16.msra.mxu1 %v636_v33  ;;  %837 = vmatprep.mubr.bf16.mxu0 %v1231_v6 }
  0xae   : > { %1110 = vmatmul.mubr.msk.bf16.vlgmr.msra.gmra.mrb[8].mxu1 %vm618_vm10, %v611_v20 }
  0xaf   : > { %878 = vmatprep.mubr.bf16.mxu1 %v1231_v6 }
  0xb3   : > { %v616_v45 = vpop.permute.xlu0 %615 }
  0xb5   : > { %v785_v21 = vpop.permute.xlu1 %784 }
  0xb7   : > { %v931_v24 = vpop.permute.xlu0 %930 }
  0xb9   : > { %v342_v22 = vpop.permute.xlu1 %341 }
 0x167   : > { %v1435_v31 = vpop.f32.mrb[0].mxu0 }
 0x168   : > { %v1437_v34 = vpop.f32.mrb[1].mxu0 }
 0x169   : > { %v447_v35 = vpop.f32.mrb[2].mxu0 }
 0x16a   : > { %v448_v36 = vpop.f32.mrb[3].mxu0  ;;  %v446_v35 = vadd.f32 %v1437_v34, %v342_v22 }
 0x16d   : > { %v1439_v37 = vpop.f32.mrb[0].mxu1 }
 0x16e   : > { %v1441_v38 = vpop.f32.mrb[1].mxu1 }
 0x16f   : > { %v488_v39 = vpop.f32.mrb[2].mxu1  ;;  %v1443_v40 = vpop.f32.mrb[4].mxu0 }
 0x170   : > { %v489_v41 = vpop.f32.mrb[3].mxu1  ;;  %v1105_v42 = vpop.f32.mrb[5].mxu0 }
 0x171   : > { %v528_v43 = vpop.f32.mrb[6].mxu0  ;;  %v485_v42 = vadd.f32 %v1439_v37, %v342_v22 }
 0x172   : > { %v1106_v44 = vpop.f32.mrb[7].mxu0 }
 0x179   : > { %v672_v46 = vpop.f32.mrb[4].mxu1 }
 0x17a   : > { %v673_v6 = vadd.f32 %v672_v46, %v616_v45  ;;  %v674_v47 = vpop.f32.mrb[5].mxu1  ;;  %v487_v46 = vadd.f32 %v1441_v38, %v342_v22 }
 0x17b   : > { %v675_v49 = vadd.f32 %v674_v47, %v616_v45  ;;  %v676_v50 = vpop.f32.mrb[6].mxu1  ;;  %v713_v51 = vpop.f32.mrb[8].mxu0 }
 0x17c   : > { %vm760_vm11 = vcmp.ge.f32.partialorder %v673_v6, 0.0  ;;  %v765_v52 = vmul.f32 0.2, %v673_v6  ;;  %v714_v53 = vadd.f32 %v713_v51, %v616_v45  ;;  %v677_v54 = vpop.f32.mrb[7].mxu1  ;;  %v715_v55 = vpop.f32.mrb[9].mxu0 }
 0x17d   : > { %vm761_vm12 = vcmp.ge.f32.partialorder %v675_v49, 0.0  ;;  %v766_v56 = vmul.f32 0.2, %v675_v49  ;;  %v716_v57 = vadd.f32 %v715_v55, %v616_v45  ;;  %v717_v58 = vpop.f32.mrb[10].mxu0  ;;  %v526_v55 = vadd.f32 %v1443_v40, %v342_v22 }
 0x17e   : > { %v770_v59 = vsel %vm760_vm11, %v673_v6, %v765_v52  ;;  %vm762_vm13 = vcmp.ge.f32.partialorder %v714_v53, 0.0  ;;  %v767_v60 = vmul.f32 0.2, %v714_v53  ;;  %v718_v61 = vpop.f32.mrb[11].mxu0 }
 0x17f   : > { %v776_v62 = vpack.c.bf16 %v770_v59, %v770_v59  ;;  %v771_v63 = vsel %vm761_vm12, %v675_v49, %v766_v56  ;;  %vm763_vm14 = vcmp.ge.f32.partialorder %v716_v57, 0.0  ;;  %v768_v0 = vmul.f32 0.2, %v716_v57 }
 0x180   : > { %v777_v1 = vpack.c.bf16 %v771_v63, %v771_v63  ;;  %v772_v2 = vsel %vm762_vm13, %v714_v53, %v767_v60 }
 0x181   : > { %v778_v3 = vpack.c.bf16 %v772_v2, %v772_v2  ;;  %v773_v4 = vsel %vm763_vm14, %v716_v57, %v768_v0  ;;  %v754_v7 = vpop.f32.mrb[8].mxu1  ;;  %v791_v8 = vsel %vm393_vm4, %v776_v62, 0 }
 0x182   : > { %v779_v9 = vpack.c.bf16 %v773_v4, %v773_v4  ;;  %v755_v10 = vadd.f32 %v754_v7, %v616_v45  ;;  %v1111_v11 = vpop.f32.mrb[9].mxu1  ;;  %1085 = vmatprep.subr.msk.bf16.mxu0 %vm393_vm4, %v777_v1 }
 0x183   : > { %v757_v12 = vpop.f32.mrb[10].mxu1  ;;  %806 = vmatpush1.bf16.msra.mxu0 %v791_v8  ;;  %v797_v13 = vsel %vm393_vm4, %v778_v3, 0 }
 0x184   : > { %vm764_vm15 = vcmp.ge.f32.partialorder %v755_v10, 0.0  ;;  %v769_v15 = vmul.f32 0.2, %v755_v10  ;;  %v1112_v16 = vpop.f32.mrb[11].mxu1  ;;  %1087 = vmatprep.subr.msk.bf16.mxu1 %vm393_vm4, %v779_v9  ;;  %1113 = vmatprep.subr.bf16.mxu0 %v1234_v48 }
 0x185   : > { %847 = vmatpush1.bf16.msra.mxu1 %v797_v13 }
 0x186   : > { %v774_v17 = vsel %vm764_vm15, %v755_v10, %v769_v15  ;;  %1086 = vmatmul.mubr.msk.bf16.vlgmr.msra.gmra.mrb[12].mxu0 %vm389_vm5, %v775_v14 }
 0x187   : > { %v780_v18 = vpack.c.bf16 %v774_v17, %v774_v17  ;;  %1115 = vmatprep.mubr.msk.bf16.mxu0 %vm1235_vm6, %v1234_v48  ;;  %v444_v48 = vadd.f32 %v1435_v31, %v342_v22 }
 0x188   : > { %1088 = vmatmul.mubr.msk.bf16.vlgmr.msra.gmra.mrb[12].mxu1 %vm389_vm5, %v775_v14 }
 0x189   : > { %v803_v19 = vsel %vm393_vm4, %v780_v18, 0 }
 0x18a   : > { %1114 = vmatpush3.bf16.msra.mxu0 %v803_v19 }
 0x18e   : > { %1116 = vmatmul.mubr.msk.bf16.vlgmr.msra.gmra.mrb[16].mxu0 %vm389_vm5, %v775_v14 }
 0x259   : > { %v839_v23 = vpop.f32.mrb[12].mxu0 }
 0x25a   : > { %v840_v25 = vadd.f32 %v839_v23, %v785_v21  ;;  %v841_v26 = vpop.f32.mrb[13].mxu0 }
 0x25b   : > { %v842_v20 = vadd.f32 %v841_v26, %v785_v21  ;;  %v880_v27 = vpop.f32.mrb[12].mxu1  ;;  %v843_v28 = vpop.f32.mrb[14].mxu0 }
 0x25c   : > { %v933_v29 = vmul.f32 %v931_v24, %v840_v25  ;;  %v881_v30 = vadd.f32 %v880_v27, %v785_v21  ;;  %v882_v32 = vpop.f32.mrb[13].mxu1  ;;  %v844_v33 = vpop.f32.mrb[15].mxu0 }
 0x25d   : > { %v934_v36 = vmul.f32 %v931_v24, %v842_v20  ;;  %v883_v39 = vadd.f32 %v882_v32, %v785_v21  ;;  %v884_v41 = vpop.f32.mrb[14].mxu1 }
 0x25e   : > { %v938_v43 = vadd.f32 %v933_v29, %v444_v48  ;;  %v935_v44 = vmul.f32 %v931_v24, %v881_v30  ;;  %v885_v45 = vpop.f32.mrb[15].mxu1 }
 0x25f   : > { %v939_v6 = vadd.f32 %v934_v36, %v446_v35  ;;  %v936_v47 = vmul.f32 %v931_v24, %v883_v39 }
 0x260   : > { %v940_v31 = vadd.f32 %v935_v44, %v485_v42 }
 0x261   : > { %v1090_v49 = vpack.c.bf16 %v939_v6, %v938_v43  ;;  %v941_v50 = vadd.f32 %v936_v47, %v487_v46  ;;  %v921_v51 = vpop.f32.mrb[16].mxu0 }
 0x262   : > { %v922_v52 = vadd.f32 %v921_v51, %v785_v21  ;;  %v1117_v53 = vpop.f32.mrb[17].mxu0 }
 0x263   : > { %v1091_v34 = vpack.c.bf16 %v941_v50, %v940_v31  ;;  %v924_v54 = vpop.f32.mrb[18].mxu0  ;;  %v961_v57 = vrot.slane %v1090_v49, %v1317_v5 }
 0x264   : > { %v937_v37 = vmul.f32 %v931_v24, %v922_v52  ;;  %v1118_v56 = vpop.f32.mrb[19].mxu0 }
 0x265   : > { %v968_v38 = vrot.slane %v1091_v34, %v1317_v5 }
 0x266   : > { %v942_v58 = vadd.f32 %v937_v37, %v526_v55 }
 0x267   : > { %v969_v59 = vcombine.low %v961_v57, %v968_v38 }
 0x268   : > { %v947_v60 = vpack.c.bf16 %v942_v58, %v942_v58 }
 0x269   : > { %979 = vst [vmem:[%s327_s25] sm:$0xff] %v969_v59 }
 0x26a   : > { %1092 = vst.sshfl [vmem:[%s327_s25 + $0x8] sm:$0x3 pattern:$0x76325410] %v947_v60 }
 0x26b PF: > { %s18_s9 = sadd.s32 1, %s1228_s9   ;;  %s1495_s27 = smov %s1220_s29 }
 0x26c   : > { %p15_p7 = scmp.ge.s32.totalorder %s18_s9, 12   ;;  %s1496_s28 = smov %s1224_s30 }
 0x26d   : > { %s1497_s29 = smov %s1500_s10  ;;  %s1498_s30 = smov %s1504_s11 }
 0x26e   :  { %17 = sbr.rel (!%p15_p7) target bundleno = 3 (0x3), region = 83 }

// kernel: forward.26
= control target key start
LH: loop header
LB: loop body
LE: loop exit
PB: predicated region body
PF: predicated region fallthrough
CT: control target
= control target key end

     0   :  { %s1296_s27 = smov 0   ;;  %s1298_s28 = smov 0   ;;  %s1507_s0 = inlined_call_operand.vmem [shape: bf16[2,4,3206], index: 0, kind: input, shape index: {}]   ;;  %s1508_s1 = inlined_call_operand.vmem [shape: bf16[4,12], index: 1, kind: input, shape index: {}]   ;;  %s1509_s2 = inlined_call_operand.vmem [shape: f32[4,1], index: 2, kind: input, shape index: {}]   ;;  %s1510_s3 = inlined_call_operand.vmem [shape: bf16[4,4], index: 3, kind: input, shape index: {}]   ;;  %s1511_s4 = inlined_call_operand.vmem [shape: f32[4,1], index: 4, kind: input, shape index: {}]   ;;  %s1512_s5 = inlined_call_operand.vmem [shape: bf16[4,4], index: 5, kind: input, shape index: {}]   ;;  %s1513_s6 = inlined_call_operand.vmem [shape: f32[4,1], index: 6, kind: input, shape index: {}]   ;;  %s1514_s7 = inlined_call_operand.vmem [shape: f32[4,1], index: 7, kind: input, shape index: {}]   ;;  %s1515_s8 = inlined_call_operand.vmem [shape: bf16[2,4,3200], index: 8, kind: output, shape index: {}]  }
   0x1   :  { %s1300_s29 = smov 0   ;;  %s1302_s30 = smov 0  }
   0x2   :  { %s1304_s9 = smov 0  }
   0x3 LB: > { %s27_s10 = sadd.s32 1, %s1235_s29  ;;  %s30_s11 = sadd.s32 1, %s1239_s30  ;;  %s1243_s9 = sphi %s1304_s9, %s18_s9   ;;  %s1239_s30 = sphi %s1302_s30, %s1520_s30   ;;  %s1235_s29 = sphi %s1300_s29, %s1519_s29   ;;  %s1231_s28 = sphi %s1298_s28, %s1518_s28   ;;  %s1227_s27 = sphi %s1296_s27, %s1517_s27  }
   0x4   : > { %p28_p0 = scmp.ge.s32.totalorder %s27_s10, 5  ;;  %p1086_p1 = scmp.ge.s32.totalorder %s1243_s9, 1 }
   0x5   : > { %p276_p2 = scmp.lt.s32.totalorder %s1243_s9, 11 }
   0x6   : > { %s1522_s10 = smov (%p28_p0, %s27_s10), 0  ;;  %s1524_s11 = smov (!%p28_p0, %s30_s11), %s1239_s30 }
   0x7   : > { %p277_p3 = pnand %p1086_p1, %p276_p2  ;;  %p32_p4 = scmp.ge.s32.totalorder %s1524_s11, 2 }
   0x8   : > { %p314_p5 = scmp.lt.s32.totalorder (!%p277_p3), %s1231_s28, 1  ;;  %s330_s12 = smul.u32 (!%p277_p3), 640, %s1227_s27  ;;  %v350_v0 = vlaneseq (!%p277_p3)  ;;  %v1245_v1 = vmov (!%p277_p3), 1983009808   ;;  %v1246_v6 = vmov (!%p277_p3), 0   ;;  %vm383_vm3 = vcmask (!%p277_p3), 1022976  }
   0x9   : > { %s1526_s11 = smov (%p32_p4, %s1524_s11), 0  ;;  %280 = sbr.rel (%p277_p3) target bundleno = 622 (0x26e), region = 52 }
   0xa   : > { %v348_v2 = vunpack.c.l.s4 (!%p277_p3), %v1245_v1  ;;  %v351_v3 = vshrl.u32 (!%p277_p3), %v350_v0, 7  ;;  %s331_s13 = sshra.s32 (!%p277_p3), %s330_s12, 7  ;;  %441 = vmatprep.mubr.bf16.mxu0 (!%p277_p3), %v1246_v6  ;;  %482 = vmatprep.mubr.bf16.mxu1 (!%p277_p3), %v1246_v6  ;;  %s1247_s20 = smov (!%p277_p3), 125   ;;  %v612_v35 = vld [vmem:[%s1509_s2] sm:$0xf] (!%p277_p3)  ;;  %vm393_vm4 = vcmask (!%p277_p3), 1041408  }
   0xb   : > { %s1089_s15 = sshll.u32 (!%p277_p3), %s331_s13, 1  ;;  %1203 = vset.pattern.permute.xlu1 (!%p277_p3), %v1246_v6  ;;  %1202 = vset.pattern.permute.xlu0 (!%p277_p3), %v1246_v6  ;;  %s1248_s21 = smov (!%p277_p3), 122   ;;  %v781_v36 = vld [vmem:[%s1511_s4] sm:$0xf] (!%p277_p3)  ;;  %vm389_vm5 = vcmask (!%p277_p3), 31744   ;;  %v1249_v48 = vmov (!%p277_p3), 0.0  }
   0xc   : > { %v349_v4 = vunpack.c.0.s8 (!%p277_p3), %v348_v2  ;;  %v927_v37 = vld [vmem:[%s1514_s7] sm:$0xf] (!%p277_p3)  ;;  %vm1250_vm6 = vmmov (!%p277_p3), 0   ;;  %vm600_vm7 = vcmask (!%p277_p3), 1043456   ;;  %vm589_vm8 = vcmask (!%p277_p3), 998400  }
   0xd   : > { %v338_v38 = vld [vmem:[%s1513_s6] sm:$0xf] (!%p277_p3)  ;;  %vm622_vm9 = vcmask (!%p277_p3), 1045504   ;;  %vm618_vm10 = vcmask (!%p277_p3), 97280  }
   0xe   : > { %v1332_v5 = vsub.s32 (!%p277_p3), %v349_v4, %v351_v3  ;;  %v337_v46 = vld [vmem:[%s1512_s5] sm:$0x3] (!%p277_p3) }
  0x10   : > { %s1528_s28 = smov (!%p314_p5, %s1231_s28), 1 }
  0x11   : > { %s1134_s14 = smul.u32 52, %s1528_s28 }
  0x13   : > { %s318_s18 = scalar_lea.vmem %s1507_s0, %s1134_s14 }
  0x14   : > { %s334_s19 = scalar_lea.vmem %s318_s18, %s1089_s15 }
  0x15   : > { %v335_v7 = vld [vmem:[%s334_s19] sm:$0xff]  ;;  %v336_v8 = vld [vmem:[%s334_s19 + $0x8] sm:$0xf] }
  0x16   : > { %v353_v9 = vrot.slane %v335_v7, %v1332_v5  ;;  %v531_v10 = vunpack.c.l.bf16 %v335_v7  ;;  %v532_v11 = vunpack.c.h.bf16 %v335_v7  ;;  %v346_v12 = vcombine.high %v335_v7, %v335_v7 }
  0x17   : > { %v369_v13 = vrot.slane %v336_v8, %v1332_v5  ;;  %v533_v22 = vunpack.c.l.bf16 %v336_v8 }
  0x18   : > { %v537_v14 = vmul.f32 0.2, %v531_v10  ;;  %v538_v15 = vmul.f32 0.2, %v532_v11  ;;  %371 = vrot.lane.b32.xlu0 %v353_v9, %s1247_s20  ;;  %v361_v16 = vcombine.high %v353_v9, %v353_v9  ;;  %v360_v17 = vrot.slane %v346_v12, %v1332_v5 }
  0x19   : > { %vm534_vm0 = vcmp.ge.f32.partialorder %v531_v10, 0.0  ;;  %vm535_vm1 = vcmp.ge.f32.partialorder %v532_v11, 0.0  ;;  %v370_v18 = vcombine.high %v369_v13, %v369_v13  ;;  %v539_v27 = vmul.f32 0.2, %v533_v22 }
  0x1a   : > { %375 = vrot.lane.b32.xlu1 %v360_v17, %s1247_s20  ;;  %v1346_v19 = vsel %vm534_vm0, %v531_v10, %v537_v14  ;;  %v1348_v20 = vsel %vm535_vm1, %v532_v11, %v538_v15  ;;  %v362_v23 = vcombine.high %v360_v17, %v360_v17  ;;  %vm536_vm2 = vcmp.ge.f32.partialorder %v533_v22, 0.0 }
  0x1b   : > { %v550_v21 = vcombine.low %v1346_v19, %v1346_v19  ;;  %v551_v24 = vcombine.low %v1348_v20, %v1348_v20  ;;  %v1360_v26 = vcombine.high %v1346_v19, %v1346_v19  ;;  %v1366_v29 = vcombine.high %v1348_v20, %v1348_v20 }
  0x1c   : > { %373 = vrot.lane.b32.xlu0 %v361_v16, %s1247_s20  ;;  %v1371_v31 = vsel %vm536_vm2, %v533_v22, %v539_v27 }
  0x1d   : > { %v1182_v25 = vpack.i.bf16 %v1346_v19, %v550_v21  ;;  %v1187_v28 = vpack.i.bf16 %v1348_v20, %v551_v24  ;;  %v1192_v30 = vpack.i.bf16 %v1360_v26, %v1346_v19  ;;  %v1197_v32 = vpack.i.bf16 %v1366_v29, %v1348_v20 }
  0x1e   : > { %381 = vrot.lane.b32.xlu1 %v370_v18, %s1247_s20  ;;  %v552_v33 = vcombine.low %v1371_v31, %v1371_v31  ;;  %v576_v34 = vcombine.high %v1371_v31, %v1371_v31 }
  0x20   : > { %379 = vrot.lane.b32.xlu0 %v369_v13, %s1247_s20 }
  0x22   : > { %377 = vrot.lane.b32.xlu1 %v362_v23, %s1247_s20 }
  0x24   : > { %1183 = vrot.lane.b32.xlu0 %v1182_v25, %s1247_s20 }
  0x26   : > { %1188 = vrot.lane.b32.xlu1 %v1187_v28, %s1247_s20 }
  0x28   : > { %1193 = vrot.lane.b32.xlu0 %v1192_v30, %s1248_s21 }
  0x2a   : > { %1198 = vrot.lane.b32.xlu1 %v1197_v32, %s1248_s21 }
  0x2c   : > { %561 = vrot.lane.b32.xlu0 %v552_v33, %s1247_s20 }
  0x2e   : > { %585 = vrot.lane.b32.xlu1 %v1371_v31, %s1248_s21 }
  0x30   : > { %563 = vrot.lane.b32.xlu0 %v1371_v31, %s1247_s20 }
  0x32   : > { %587 = vrot.lane.b32.xlu1 %v576_v34, %s1248_s21  ;;  %s319_s21 = smul.u32 5, %s1227_s27 }
  0x33   : > { %s1135_s27 = smul.u32 25, %s1528_s28 }
  0x34   : > { %615 = vperm.xlu0 %1202, %v612_v35   ;;  %p1475_p6 = scmp.lt.s32.totalorder %s319_s21, 24 }
  0x36   : > { %784 = vperm.xlu1 %1203, %v781_v36   ;;  %s1530_s21 = smov (!%p1475_p6, %s319_s21), 24 }
  0x37   : > { %s325_s28 = sadd.s32 %s1135_s27, %s1530_s21 }
  0x38   : > { %930 = vperm.xlu0 %1202, %v927_v37   ;;  %s1088_s23 = sshll.u32 %s325_s28, 1 }
  0x39   : > { %s327_s26 = scalar_lea.vmem %s1515_s8, %s1088_s23 }
  0x3a   : > { %341 = vperm.xlu1 %1203, %v338_v38  }
  0x8a   : > { %v372_v39 = vpop.permute.xlu0 %371 }
  0x8c   : > { %v376_v40 = vpop.permute.xlu1 %375 }
  0x8e   : > { %v374_v41 = vpop.permute.xlu0 %373 }
  0x8f   : > { %v385_v42 = vsel %vm383_vm3, %v374_v41, %v376_v40  ;;  %v384_v43 = vsel %vm383_vm3, %v372_v39, %v374_v41 }
  0x90   : > { %1090 = vmatprep.subr.msk.bf16.mxu0 %vm393_vm4, %v385_v42  ;;  %v382_v44 = vpop.permute.xlu1 %381  ;;  %v395_v45 = vsel %vm393_vm4, %v384_v43, 0 }
  0x91   : > { %410 = vmatpush1.bf16.msra.mxu0 %v395_v45 }
  0x92   : > { %v380_v47 = vpop.permute.xlu0 %379  ;;  %1116 = vmatprep.subr.bf16.mxu0 %v1249_v48 }
  0x93   : > { %v388_v49 = vsel %vm383_vm3, %v380_v47, %v382_v44 }
  0x94   : > { %v407_v50 = vsel %vm393_vm4, %v388_v49, 0  ;;  %v378_v51 = vpop.permute.xlu1 %377  ;;  %1091 = vmatmul.mubr.msk.bf16.vlgmr.msra.gmra.mrb[0].mxu0 %vm389_vm5, %v337_v46 }
  0x95   : > { %1117 = vmatpush3.bf16.msra.mxu0 %v407_v50  ;;  %v387_v52 = vsel %vm383_vm3, %v378_v51, %v380_v47  ;;  %v386_v53 = vsel %vm383_vm3, %v376_v40, %v378_v51  ;;  %1118 = vmatprep.mubr.msk.bf16.mxu0 %vm1250_vm6, %v1249_v48 }
  0x96   : > { %v1184_v54 = vpop.permute.xlu0 %1183  ;;  %1092 = vmatprep.subr.msk.bf16.mxu1 %vm393_vm4, %v387_v52  ;;  %v401_v55 = vsel %vm393_vm4, %v386_v53, 0 }
  0x97   : > { %v1186_v56 = vunpack.i.h.bf16 %v1184_v54  ;;  %v1185_v57 = vunpack.i.l.bf16 %v1184_v54  ;;  %451 = vmatpush1.bf16.msra.mxu1 %v401_v55 }
  0x98   : > { %v1189_v58 = vpop.permute.xlu1 %1188 }
  0x99   : > { %v566_v59 = vsel %vm383_vm3, %v1185_v57, %v1186_v56  ;;  %v1191_v60 = vunpack.i.h.bf16 %v1189_v58  ;;  %v1190_v61 = vunpack.i.l.bf16 %v1189_v58 }
  0x9a   : > { %v1194_v62 = vpop.permute.xlu0 %1193  ;;  %1093 = vmatmul.mubr.msk.bf16.vlgmr.msra.gmra.mrb[0].mxu1 %vm389_vm5, %v337_v46  ;;  %v601_v2 = vsel %vm600_vm7, %v1346_v19, %v566_v59 }
  0x9b   : > { %v567_v63 = vsel %vm383_vm3, %v1186_v56, %v1190_v61  ;;  %v1196_v0 = vunpack.i.h.bf16 %v1194_v62  ;;  %v1195_v1 = vunpack.i.l.bf16 %v1194_v62  ;;  %670 = vmatprep.mubr.bf16.mxu1 %v1246_v6  ;;  %v568_v3 = vsel %vm383_vm3, %v1190_v61, %v1191_v60 }
  0x9c   : > { %v1199_v4 = vpop.permute.xlu1 %1198  ;;  %1119 = vmatmul.mubr.msk.bf16.vlgmr.msra.gmra.mrb[4].mxu0 %vm389_vm5, %v337_v46  ;;  %v602_v10 = vsel %vm600_vm7, %v1360_v26, %v567_v63  ;;  %v603_v16 = vsel %vm600_vm7, %v1348_v20, %v568_v3  ;;  %v611_v20 = vld [vmem:[%s1508_s1] sm:$0x3] }
  0x9d   : > { %v590_v7 = vsel %vm589_vm8, %v1195_v1, %v1196_v0  ;;  %v1201_v8 = vunpack.i.h.bf16 %v1199_v4  ;;  %v1200_v9 = vunpack.i.l.bf16 %v1199_v4  ;;  %711 = vmatprep.mubr.bf16.mxu0 %v1246_v6 }
  0x9e   : > { %v562_v11 = vpop.permute.xlu0 %561  ;;  %v606_v12 = vpack.c.bf16 %v590_v7, %v601_v2 }
  0x9f   : > { %v591_v13 = vsel %vm589_vm8, %v1196_v0, %v1200_v9  ;;  %v592_v14 = vsel %vm589_vm8, %v1200_v9, %v1201_v8  ;;  %v569_v15 = vsel %vm383_vm3, %v1191_v60, %v562_v11 }
  0xa0   : > { %v607_v17 = vpack.c.bf16 %v591_v13, %v602_v10  ;;  %v586_v18 = vpop.permute.xlu1 %585  ;;  %v604_v19 = vsel %vm600_vm7, %v1366_v29, %v569_v15  ;;  %v608_v21 = vpack.c.bf16 %v592_v14, %v603_v16  ;;  %v624_v25 = vsel %vm622_vm9, %v606_v12, 0  ;;  %v775_v14 = vld [vmem:[%s1510_s3] sm:$0x3] }
  0xa1   : > { %v593_v22 = vsel %vm589_vm8, %v1201_v8, %v586_v18 }
  0xa2   : > { %v609_v23 = vpack.c.bf16 %v593_v22, %v604_v19  ;;  %v564_v24 = vpop.permute.xlu0 %563  ;;  %1095 = vmatprep.subr.msk.bf16.mxu1 %vm622_vm9, %v607_v17  ;;  %v630_v29 = vsel %vm622_vm9, %v608_v21, 0 }
  0xa3   : > { %v570_v26 = vsel %vm383_vm3, %v562_v11, %v564_v24  ;;  %639 = vmatpush1.bf16.msra.mxu1 %v624_v25 }
  0xa4   : > { %v605_v27 = vsel %vm600_vm7, %v1371_v31, %v570_v26  ;;  %v588_v28 = vpop.permute.xlu1 %587  ;;  %1097 = vmatprep.subr.msk.bf16.mxu0 %vm622_vm9, %v609_v23  ;;  %1122 = vmatprep.subr.bf16.mxu1 %v1249_v48 }
  0xa5   : > { %v594_v30 = vsel %vm589_vm8, %v586_v18, %v588_v28  ;;  %680 = vmatpush1.bf16.msra.mxu0 %v630_v29 }
  0xa6   : > { %v610_v32 = vpack.c.bf16 %v594_v30, %v605_v27  ;;  %1096 = vmatmul.mubr.msk.bf16.vlgmr.msra.gmra.mrb[4].mxu1 %vm618_vm10, %v611_v20 }
  0xa7   : > { %1124 = vmatprep.mubr.msk.bf16.mxu1 %vm1250_vm6, %v1249_v48 }
  0xa8   : > { %1098 = vmatmul.mubr.msk.bf16.vlgmr.msra.gmra.mrb[8].mxu0 %vm618_vm10, %v611_v20  ;;  %v636_v33 = vsel %vm622_vm9, %v610_v32, 0 }
  0xa9   : > { %1123 = vmatpush3.bf16.msra.mxu1 %v636_v33  ;;  %837 = vmatprep.mubr.bf16.mxu0 %v1246_v6 }
  0xae   : > { %1125 = vmatmul.mubr.msk.bf16.vlgmr.msra.gmra.mrb[8].mxu1 %vm618_vm10, %v611_v20 }
  0xaf   : > { %878 = vmatprep.mubr.bf16.mxu1 %v1246_v6 }
  0xb3   : > { %v616_v45 = vpop.permute.xlu0 %615 }
  0xb5   : > { %v785_v21 = vpop.permute.xlu1 %784 }
  0xb7   : > { %v931_v24 = vpop.permute.xlu0 %930 }
  0xb9   : > { %v342_v22 = vpop.permute.xlu1 %341 }
 0x167   : > { %v1450_v31 = vpop.f32.mrb[0].mxu0 }
 0x168   : > { %v1452_v34 = vpop.f32.mrb[1].mxu0 }
 0x169   : > { %v447_v35 = vpop.f32.mrb[2].mxu0 }
 0x16a   : > { %v448_v36 = vpop.f32.mrb[3].mxu0  ;;  %v446_v35 = vadd.f32 %v1452_v34, %v342_v22 }
 0x16d   : > { %v1454_v37 = vpop.f32.mrb[0].mxu1 }
 0x16e   : > { %v1456_v38 = vpop.f32.mrb[1].mxu1 }
 0x16f   : > { %v488_v39 = vpop.f32.mrb[2].mxu1  ;;  %v1458_v40 = vpop.f32.mrb[4].mxu0 }
 0x170   : > { %v489_v41 = vpop.f32.mrb[3].mxu1  ;;  %v1120_v42 = vpop.f32.mrb[5].mxu0 }
 0x171   : > { %v528_v43 = vpop.f32.mrb[6].mxu0  ;;  %v485_v42 = vadd.f32 %v1454_v37, %v342_v22 }
 0x172   : > { %v1121_v44 = vpop.f32.mrb[7].mxu0 }
 0x179   : > { %v672_v46 = vpop.f32.mrb[4].mxu1 }
 0x17a   : > { %v673_v6 = vadd.f32 %v672_v46, %v616_v45  ;;  %v674_v47 = vpop.f32.mrb[5].mxu1  ;;  %v487_v46 = vadd.f32 %v1456_v38, %v342_v22 }
 0x17b   : > { %v675_v49 = vadd.f32 %v674_v47, %v616_v45  ;;  %v676_v50 = vpop.f32.mrb[6].mxu1  ;;  %v713_v51 = vpop.f32.mrb[8].mxu0 }
 0x17c   : > { %vm760_vm11 = vcmp.ge.f32.partialorder %v673_v6, 0.0  ;;  %v765_v52 = vmul.f32 0.2, %v673_v6  ;;  %v714_v53 = vadd.f32 %v713_v51, %v616_v45  ;;  %v677_v54 = vpop.f32.mrb[7].mxu1  ;;  %v715_v55 = vpop.f32.mrb[9].mxu0 }
 0x17d   : > { %vm761_vm12 = vcmp.ge.f32.partialorder %v675_v49, 0.0  ;;  %v766_v56 = vmul.f32 0.2, %v675_v49  ;;  %v716_v57 = vadd.f32 %v715_v55, %v616_v45  ;;  %v717_v58 = vpop.f32.mrb[10].mxu0 }
 0x17e   : > { %v770_v59 = vsel %vm760_vm11, %v673_v6, %v765_v52  ;;  %vm762_vm13 = vcmp.ge.f32.partialorder %v714_v53, 0.0  ;;  %v767_v60 = vmul.f32 0.2, %v714_v53  ;;  %v718_v61 = vpop.f32.mrb[11].mxu0 }
 0x17f   : > { %v776_v62 = vpack.c.bf16 %v770_v59, %v770_v59  ;;  %v771_v63 = vsel %vm761_vm12, %v675_v49, %v766_v56  ;;  %vm763_vm14 = vcmp.ge.f32.partialorder %v716_v57, 0.0  ;;  %v768_v0 = vmul.f32 0.2, %v716_v57 }
 0x180   : > { %v777_v1 = vpack.c.bf16 %v771_v63, %v771_v63  ;;  %v772_v2 = vsel %vm762_vm13, %v714_v53, %v767_v60 }
 0x181   : > { %v778_v3 = vpack.c.bf16 %v772_v2, %v772_v2  ;;  %v773_v4 = vsel %vm763_vm14, %v716_v57, %v768_v0  ;;  %v754_v7 = vpop.f32.mrb[8].mxu1  ;;  %v791_v8 = vsel %vm393_vm4, %v776_v62, 0  ;;  %v526_v57 = vadd.f32 %v1458_v40, %v342_v22 }
 0x182   : > { %v779_v9 = vpack.c.bf16 %v773_v4, %v773_v4  ;;  %v755_v10 = vadd.f32 %v754_v7, %v616_v45  ;;  %v1126_v11 = vpop.f32.mrb[9].mxu1  ;;  %1100 = vmatprep.subr.msk.bf16.mxu0 %vm393_vm4, %v777_v1 }
 0x183   : > { %v757_v12 = vpop.f32.mrb[10].mxu1  ;;  %806 = vmatpush1.bf16.msra.mxu0 %v791_v8  ;;  %v797_v13 = vsel %vm393_vm4, %v778_v3, 0 }
 0x184   : > { %vm764_vm15 = vcmp.ge.f32.partialorder %v755_v10, 0.0  ;;  %v769_v15 = vmul.f32 0.2, %v755_v10  ;;  %v1127_v16 = vpop.f32.mrb[11].mxu1  ;;  %1102 = vmatprep.subr.msk.bf16.mxu1 %vm393_vm4, %v779_v9  ;;  %1128 = vmatprep.subr.bf16.mxu0 %v1249_v48 }
 0x185   : > { %847 = vmatpush1.bf16.msra.mxu1 %v797_v13 }
 0x186   : > { %v774_v17 = vsel %vm764_vm15, %v755_v10, %v769_v15  ;;  %1101 = vmatmul.mubr.msk.bf16.vlgmr.msra.gmra.mrb[12].mxu0 %vm389_vm5, %v775_v14 }
 0x187   : > { %v780_v18 = vpack.c.bf16 %v774_v17, %v774_v17  ;;  %1130 = vmatprep.mubr.msk.bf16.mxu0 %vm1250_vm6, %v1249_v48  ;;  %v444_v48 = vadd.f32 %v1450_v31, %v342_v22 }
 0x188   : > { %1103 = vmatmul.mubr.msk.bf16.vlgmr.msra.gmra.mrb[12].mxu1 %vm389_vm5, %v775_v14 }
 0x189   : > { %v803_v19 = vsel %vm393_vm4, %v780_v18, 0 }
 0x18a   : > { %1129 = vmatpush3.bf16.msra.mxu0 %v803_v19 }
 0x18e   : > { %1131 = vmatmul.mubr.msk.bf16.vlgmr.msra.gmra.mrb[16].mxu0 %vm389_vm5, %v775_v14 }
 0x259   : > { %v839_v23 = vpop.f32.mrb[12].mxu0 }
 0x25a   : > { %v840_v25 = vadd.f32 %v839_v23, %v785_v21  ;;  %v841_v26 = vpop.f32.mrb[13].mxu0 }
 0x25b   : > { %v842_v20 = vadd.f32 %v841_v26, %v785_v21  ;;  %v880_v27 = vpop.f32.mrb[12].mxu1  ;;  %v843_v28 = vpop.f32.mrb[14].mxu0 }
 0x25c   : > { %v933_v29 = vmul.f32 %v931_v24, %v840_v25  ;;  %v881_v30 = vadd.f32 %v880_v27, %v785_v21  ;;  %v882_v32 = vpop.f32.mrb[13].mxu1  ;;  %v844_v33 = vpop.f32.mrb[15].mxu0 }
 0x25d   : > { %v934_v36 = vmul.f32 %v931_v24, %v842_v20  ;;  %v883_v39 = vadd.f32 %v882_v32, %v785_v21  ;;  %v884_v41 = vpop.f32.mrb[14].mxu1 }
 0x25e   : > { %v938_v43 = vadd.f32 %v933_v29, %v444_v48  ;;  %v935_v44 = vmul.f32 %v931_v24, %v881_v30  ;;  %v885_v45 = vpop.f32.mrb[15].mxu1 }
 0x25f   : > { %v939_v6 = vadd.f32 %v934_v36, %v446_v35  ;;  %v936_v31 = vmul.f32 %v931_v24, %v883_v39 }
 0x260   : > { %vm943_vm0 = vcmp.ge.f32.partialorder %v938_v43, 0.0  ;;  %v948_v47 = vmul.f32 0.2, %v938_v43  ;;  %v940_v49 = vadd.f32 %v935_v44, %v485_v42 }
 0x261   : > { %vm944_vm1 = vcmp.ge.f32.partialorder %v939_v6, 0.0  ;;  %v949_v34 = vmul.f32 0.2, %v939_v6  ;;  %v941_v50 = vadd.f32 %v936_v31, %v487_v46  ;;  %v921_v51 = vpop.f32.mrb[16].mxu0 }
 0x262   : > { %v953_v52 = vsel %vm943_vm0, %v938_v43, %v948_v47  ;;  %vm945_vm2 = vcmp.ge.f32.partialorder %v940_v49, 0.0  ;;  %v950_v53 = vmul.f32 0.2, %v940_v49  ;;  %v922_v37 = vadd.f32 %v921_v51, %v785_v21  ;;  %v1132_v54 = vpop.f32.mrb[17].mxu0 }
 0x263   : > { %v954_v55 = vsel %vm944_vm1, %v939_v6, %v949_v34  ;;  %vm946_vm3 = vcmp.ge.f32.partialorder %v941_v50, 0.0  ;;  %v951_v56 = vmul.f32 0.2, %v941_v50  ;;  %v924_v38 = vpop.f32.mrb[18].mxu0 }
 0x264   : > { %v1105_v58 = vpack.c.bf16 %v954_v55, %v953_v52  ;;  %v955_v59 = vsel %vm945_vm2, %v940_v49, %v950_v53  ;;  %v937_v60 = vmul.f32 %v931_v24, %v922_v37  ;;  %v1133_v61 = vpop.f32.mrb[19].mxu0 }
 0x265   : > { %v956_v62 = vsel %vm946_vm3, %v941_v50, %v951_v56 }
 0x266   : > { %v1106_v63 = vpack.c.bf16 %v956_v62, %v955_v59  ;;  %v942_v0 = vadd.f32 %v937_v60, %v526_v57  ;;  %v976_v1 = vrot.slane %v1105_v58, %v1332_v5 }
 0x268   : > { %v983_v2 = vrot.slane %v1106_v63, %v1332_v5  ;;  %vm947_vm4 = vcmp.ge.f32.partialorder %v942_v0, 0.0  ;;  %v952_v3 = vmul.f32 0.2, %v942_v0 }
 0x26a   : > { %v984_v4 = vcombine.low %v976_v1, %v983_v2  ;;  %v957_v40 = vsel %vm947_vm4, %v942_v0, %v952_v3 }
 0x26b   : > { %v962_v7 = vpack.c.bf16 %v957_v40, %v957_v40 }
 0x26c   : > { %994 = vst [vmem:[%s327_s26] sm:$0xff] %v984_v4 }
 0x26d   : > { %1107 = vst.sshfl [vmem:[%s327_s26 + $0x8] sm:$0x3 pattern:$0x76325410] %v962_v7 }
 0x26e PF: > { %s18_s9 = sadd.s32 1, %s1243_s9   ;;  %s1517_s27 = smov %s1235_s29 }
 0x26f   : > { %p15_p7 = scmp.ge.s32.totalorder %s18_s9, 12   ;;  %s1518_s28 = smov %s1239_s30 }
 0x270   : > { %s1519_s29 = smov %s1522_s10  ;;  %s1520_s30 = smov %s1526_s11 }
 0x271   :  { %17 = sbr.rel (!%p15_p7) target bundleno = 3 (0x3), region = 83 }

// kernel: forward.27
= control target key start
LH: loop header
LB: loop body
LE: loop exit
PB: predicated region body
PF: predicated region fallthrough
CT: control target
= control target key end

     0   :  { %s1250_s0 = inlined_call_operand.vmem [shape: bf16[2,4,3206], index: 0, kind: input, shape index: {}]   ;;  %s1251_s1 = inlined_call_operand.vmem [shape: bf16[1,28], index: 1, kind: input, shape index: {}]   ;;  %s1252_s2 = inlined_call_operand.<no memory space> [shape: f32[1,1], index: 2, kind: input, shape index: {}]   ;;  %s1253_s3 = inlined_call_operand.hbm [shape: f32[2,1,3200], index: 3, kind: output, shape index: {}]  }
   0x1   :  { %v8_v0 = vstv %s1252_s2 }
   0x2   :  { %9 = vst [vmem:[#allocation2] sm:$0x1] %v8_v0 }
   0x3   :  { %10 = vsyncpa [#allocation4], 0 }
   0x4   :  { %12 = vsyncpa [#allocation4 + $0x1], 0  ;;  %s989_s14 = smov 0   ;;  %s991_s15 = smov 0  }
   0x5   :  { %s993_s16 = smov 0   ;;  %s995_s17 = smov 0  }
   0x6   :  { %s997_s18 = smov 0   ;;  %s999_s19 = smov 0  }
   0x7   :  { %s1001_s20 = smov 0   ;;  %s1003_s21 = smov 0  }
   0x8 LB: > { %s672_s2 = sadd.s32 4294967295, %s953_s21   ;;  %s673_s22 = sadd.s32 4294967294, %s953_s21   ;;  %s953_s21 = sphi %s1003_s21, %s18_s21   ;;  %s949_s20 = sphi %s1001_s20, %s1262_s20   ;;  %s945_s19 = sphi %s999_s19, %s1261_s19   ;;  %s941_s18 = sphi %s997_s18, %s1260_s18   ;;  %s937_s17 = sphi %s995_s17, %s1259_s17   ;;  %s933_s16 = sphi %s993_s16, %s1258_s16   ;;  %s929_s15 = sphi %s991_s15, %s1257_s15   ;;  %s925_s14 = sphi %s989_s14, %s1256_s14  }
   0x9   : > { %s27_s23 = sadd.s32 1, %s945_s19  ;;  %s30_s24 = sadd.s32 1, %s949_s20 }
   0xa   : > { %p28_p0 = scmp.ge.s32.totalorder %s27_s23, 5  ;;  %p117_p1 = scmp.ne.s32.totalorder %s933_s16, %s929_s15 }
   0xb   : > { %p118_p2 = scmp.eq.s32.totalorder %s672_s2, 9  ;;  %p123_p5 = scmp.ne.s32.totalorder %s929_s15, %s925_s14 }
   0xc   : > { %s1264_s23 = smov (%p28_p0, %s27_s23), 0  ;;  %s1266_s24 = smov (!%p28_p0, %s30_s24), %s949_s20 }
   0xd   : > { %s103_s25 = ssub.s32 %s945_s19, %s1264_s23  ;;  %p1040_p3 = por %p118_p2, %p117_p1 }
   0xe   : > { %p32_p4 = scmp.ge.s32.totalorder %s1266_s24, 2  ;;  %p124_p6 = scmp.eq.s32.totalorder %s673_s22, 9 }
   0xf   : > { %p676_p7 = scmp.ge.s32.totalorder %s953_s21, 1  ;;  %p156_p9 = scmp.lt.s32.totalorder %s953_s21, 11 }
  0x10   : > { %s1268_s24 = smov (%p32_p4, %s1266_s24), 0  ;;  %p1049_p8 = por %p124_p6, %p123_p5 }
  0x11   : > { %s102_s28 = ssub.s32 %s949_s20, %s1268_s24  ;;  %s107_s29 = sadd.s32 1, %s933_s16 }
  0x12   : > { %s104_s30 = sor.u32 %s103_s25, %s102_s28  ;;  %p157_p10 = pnand %p676_p7, %p156_p9 }
  0x13   : > { %p105_p11 = scmp.eq.s32.totalorder %s104_s30, 0  ;;  %p180_p12 = scmp.lt.s32.totalorder (!%p157_p10), %s941_s18, 1  ;;  %v961_v20 = vmov (!%p157_p10), 0   ;;  %v373_v22 = vld [vmem:[#allocation2] sm:$0x1] (!%p157_p10)  ;;  %vm266_vm0 = vcmask (!%p157_p10), 1022976  }
  0x14   : > { %160 = sbr.rel (%p157_p10) target bundleno = 451 (0x1c3), region = 32  ;;  %s955_s2 = smov (!%p157_p10), 126   ;;  %435 = vmatprep.mubr.bf16.mxu0 (!%p157_p10), %v961_v20  ;;  %476 = vmatprep.mubr.bf16.mxu1 (!%p157_p10), %v961_v20  ;;  %vm219_vm1 = vcmask (!%p157_p10), 1039360   ;;  %vm243_vm2 = vcmask (!%p157_p10), 1031168   ;;  %vm346_vm3 = vcmask (!%p157_p10), 1043456   ;;  %vm289_vm4 = vcmask (!%p157_p10), 1014784  }
  0x15   : > { %s1058_s4 = scalar_select %p105_p11, %s933_s16, %s107_s29  }
  0x16   : > { %s187_s5 = smul.u32 (!%p157_p10), 640, %s937_s17  ;;  %s956_s22 = smov (!%p157_p10), 125   ;;  %847 = vset.pattern.permute.xlu1 (!%p157_p10), %v961_v20  ;;  %848 = vset.pattern.permute.xlu0 (!%p157_p10), %v961_v20  ;;  %vm312_vm5 = vcmask (!%p157_p10), 1006592   ;;  %vm335_vm6 = vcmask (!%p157_p10), 998400   ;;  %vm387_vm7 = vcmask (!%p157_p10), 1045504   ;;  %vm383_vm8 = vcmask (!%p157_p10), 228352  }
  0x17   : > { %s957_s25 = smov (!%p157_p10), 127   ;;  %s958_s28 = smov (!%p157_p10), 124   ;;  %vm963_vm9 = vmmov (!%p157_p10), 0  }
  0x18   : > { %s188_s7 = sshra.s32 (!%p157_p10), %s187_s5, 7  ;;  %s959_s29 = smov (!%p157_p10), 123  }
  0x19   : > { %s678_s9 = sshll.u32 (!%p157_p10), %s188_s7, 1  ;;  %s960_s30 = smov (!%p157_p10), 122  }
  0x1a   : > { %s177_s7 = sand.u32 (!%p157_p10), 1, %s929_s15   ;;  %s700_s10 = smul.u32 (!%p157_p10), 25, %s941_s18 }
  0x1b   : > { %s181_s6 = scalar_select %p180_p12, %s941_s18, 1 }
  0x1d   : > { %s699_s8 = smul.u32 52, %s181_s6 }
  0x1f   : > { %s184_s12 = scalar_lea.vmem %s1250_s0, %s699_s8  ;;  %s698_s8 = smul.u32 5, %s177_s7 }
  0x20   : > { %s191_s13 = scalar_lea.vmem %s184_s12, %s678_s9  ;;  %s588_s9 = smul.u32 5, %s937_s17 }
  0x21   : > { %v193_v1 = vld [vmem:[%s191_s13 + $0x8] sm:$0xf]  ;;  %v192_v2 = vld [vmem:[%s191_s13] sm:$0xff]  ;;  %s179_s13 = scalar_lea.vmem [#allocation3], %s698_s8  ;;  %s581_s17 = scalar_lea.sflag [#allocation4], %s177_s7 }
  0x22   : > { %v1066_v3 = vunpack.c.l.bf16 %v193_v1  ;;  %v1068_v4 = vunpack.c.l.bf16 %v192_v2  ;;  %v1070_v5 = vunpack.c.h.bf16 %v192_v2  ;;  %s593_s11 = sadd.s32 %s700_s10, %s588_s9 }
  0x23   : > { %s684_s12 = sshll.u32 %s593_s11, 4 }
  0x24   : > { %239 = vrot.lane.b32.xlu1 %v1066_v3, %s955_s2  ;;  %v205_v6 = vcombine.low %v1070_v5, %v1070_v5  ;;  %v204_v7 = vcombine.low %v1068_v4, %v1068_v4  ;;  %v1080_v8 = vcombine.high %v1068_v4, %v1068_v4  ;;  %v1089_v12 = vcombine.high %v1070_v5, %v1070_v5 }
  0x25   : > { %v206_v14 = vcombine.low %v1066_v3, %v1066_v3  ;;  %v230_v21 = vcombine.high %v1066_v3, %v1066_v3 }
  0x26   : > { %v792_v9 = vpack.i.bf16 %v205_v6, %v1068_v4  ;;  %v797_v10 = vpack.i.bf16 %v1070_v5, %v204_v7  ;;  %v787_v11 = vpack.i.bf16 %v1070_v5, %v1080_v8  ;;  %v802_v13 = vpack.i.bf16 %v1089_v12, %v1068_v4 }
  0x27   : > { %v817_v15 = vpack.i.bf16 %v1080_v8, %v1068_v4  ;;  %v812_v16 = vpack.i.bf16 %v1066_v3, %v206_v14  ;;  %v827_v17 = vpack.i.bf16 %v1068_v4, %v204_v7  ;;  %v822_v18 = vpack.i.bf16 %v1089_v12, %v1070_v5 }
  0x28   : > { %793 = vrot.lane.b32.xlu1 %v792_v9, %s956_s22  ;;  %783 = vrot.lane.b32.xlu0 %v792_v9, %s957_s25  ;;  %v832_v19 = vpack.i.bf16 %v1070_v5, %v205_v6 }
  0x2c   : > { %798 = vrot.lane.b32.xlu1 %v797_v10, %s957_s25  ;;  %788 = vrot.lane.b32.xlu0 %v787_v11, %s955_s2 }
  0x30   : > { %808 = vrot.lane.b32.xlu1 %v797_v10, %s956_s22  ;;  %803 = vrot.lane.b32.xlu0 %v802_v13, %s955_s2 }
  0x34   : > { %818 = vrot.lane.b32.xlu1 %v817_v15, %s958_s28  ;;  %813 = vrot.lane.b32.xlu0 %v812_v16, %s957_s25 }
  0x38   : > { %828 = vrot.lane.b32.xlu1 %v827_v17, %s959_s29  ;;  %262 = vrot.lane.b32.xlu0 %v206_v14, %s956_s22 }
  0x3c   : > { %838 = vrot.lane.b32.xlu1 %v817_v15, %s960_s30  ;;  %823 = vrot.lane.b32.xlu0 %v822_v18, %s958_s28 }
  0x40   : > { %285 = vrot.lane.b32.xlu1 %v1066_v3, %s958_s28  ;;  %833 = vrot.lane.b32.xlu0 %v832_v19, %s959_s29 }
  0x44   : > { %331 = vrot.lane.b32.xlu1 %v1066_v3, %s960_s30  ;;  %843 = vrot.lane.b32.xlu0 %v822_v18, %s960_s30 }
  0x48   : > { %264 = vrot.lane.b32.xlu1 %v1066_v3, %s956_s22  ;;  %308 = vrot.lane.b32.xlu0 %v206_v14, %s959_s29 }
  0x4c   : > { %310 = vrot.lane.b32.xlu1 %v1066_v3, %s959_s29  ;;  %241 = vrot.lane.b32.xlu0 %v230_v21, %s955_s2  ;;  %s597_s2 = sshll.u32 %s179_s13, 4  ;;  %s965_s29 = smov [#allocation3]   ;;  %s1199_s2 = int_to_ptr.vmem [resolvable:$true] %s597_s2 }
  0x4d   : > { %s859_s18 = scalar_lea.vmem %s1199_s2, 80 }
  0x4e   : > { %p860_p13 = scmp.ne.s32.totalorder %s1199_s2, %s859_s18 }
  0x50   : > { %287 = vrot.lane.b32.xlu0 %v230_v21, %s958_s28  ;;  %376 = vperm.xlu1 %847, %v373_v22   ;;  %s1197_s28 = scalar_lea.hbm %s1253_s3, %s684_s12  ;;  %p861_p0 = pnand %p860_p13, %p1040_p3 }
  0x52   : > { %p862_p1 = pneg %p861_p0 }
  0x54   : > { %333 = vrot.lane.b32.xlu0 %v230_v21, %s960_s30  ;;  %s863_s30 = sshll.u32 %s965_s29, 4  ;;  %s864_s30 = int_to_ptr.vmem [resolvable:$false] %s863_s30 }
  0x55   : > { %s865_s5 = scalar_lea.vmem %s864_s30, 160  ;;  %p866_p2 = scmp.lt.s32.totalorder %s1199_s2, %s864_s30 }
  0x56   : > { %p867_p4 = scmp.lt.s32.totalorder %s865_s5, %s859_s18 }
  0x58   : > { %p868_p5 = por %p867_p4, %p866_p2 }
  0x5a   : > { %p869_p6 = pnand %p868_p5, %p862_p1 }
  0x96   : > { %v1114_v23 = vpop.permute.xlu1 %239 }
  0x9a   : > { %v794_v24 = vpop.permute.xlu1 %793  ;;  %v784_v25 = vpop.permute.xlu0 %783 }
  0x9b   : > { %v796_v26 = vunpack.i.h.bf16 %v794_v24  ;;  %v795_v27 = vunpack.i.l.bf16 %v794_v24  ;;  %v786_v28 = vunpack.i.h.bf16 %v784_v25  ;;  %v785_v29 = vunpack.i.l.bf16 %v784_v25 }
  0x9d   : > { %v268_v34 = vsel %vm266_vm0, %v795_v27, %v796_v26  ;;  %v221_v36 = vsel %vm219_vm1, %v785_v29, %v786_v28 }
  0x9e   : > { %v799_v30 = vpop.permute.xlu1 %798  ;;  %v789_v31 = vpop.permute.xlu0 %788  ;;  %v348_v43 = vsel %vm346_vm3, %v1080_v8, %v221_v36 }
  0x9f   : > { %v791_v32 = vunpack.i.h.bf16 %v789_v31  ;;  %v790_v33 = vunpack.i.l.bf16 %v789_v31  ;;  %v800_v35 = vunpack.i.l.bf16 %v799_v30  ;;  %v801_v50 = vunpack.i.h.bf16 %v799_v30 }
  0xa1   : > { %v245_v37 = vsel %vm243_vm2, %v790_v33, %v791_v32  ;;  %v220_v47 = vsel %vm219_vm1, %v800_v35, %v785_v29  ;;  %v222_v62 = vsel %vm219_vm1, %v786_v28, %v801_v50 }
  0xa2   : > { %v809_v38 = vpop.permute.xlu1 %808  ;;  %v804_v39 = vpop.permute.xlu0 %803  ;;  %v353_v40 = vsel %vm346_vm3, %v245_v37, %v268_v34  ;;  %v347_v55 = vsel %vm346_vm3, %v1068_v4, %v220_v47  ;;  %v349_v8 = vsel %vm346_vm3, %v1070_v5, %v222_v62 }
  0xa3   : > { %v810_v41 = vunpack.i.l.bf16 %v809_v38  ;;  %v805_v42 = vunpack.i.l.bf16 %v804_v39  ;;  %v811_v44 = vunpack.i.h.bf16 %v809_v38  ;;  %v806_v45 = vunpack.i.h.bf16 %v804_v39 }
  0xa4   : > { %v363_v46 = vpack.c.bf16 %v353_v40, %v348_v43 }
  0xa5   : > { %v244_v48 = vsel %vm243_vm2, %v805_v42, %v790_v33  ;;  %v267_v49 = vsel %vm266_vm0, %v810_v41, %v795_v27  ;;  %v246_v57 = vsel %vm243_vm2, %v791_v32, %v806_v45  ;;  %v269_v58 = vsel %vm266_vm0, %v796_v26, %v811_v44 }
  0xa6   : > { %403 = vmatprep.subr.bf16.mxu0 %v363_v46  ;;  %v819_v51 = vpop.permute.xlu1 %818  ;;  %v1125_v52 = vpop.permute.xlu0 %813  ;;  %v352_v53 = vsel %vm346_vm3, %v244_v48, %v267_v49  ;;  %v247_v0 = vsel %vm243_vm2, %v806_v45, %v1114_v23  ;;  %v354_v1 = vsel %vm346_vm3, %v246_v57, %v269_v58 }
  0xa7   : > { %v815_v54 = vunpack.i.l.bf16 %v1125_v52  ;;  %v362_v56 = vpack.c.bf16 %v352_v53, %v347_v55  ;;  %v821_v6 = vunpack.i.h.bf16 %v819_v51  ;;  %v820_v9 = vunpack.i.l.bf16 %v819_v51  ;;  %v372_v53 = vld [vmem:[%s1251_s1] sm:$0x1] }
  0xa8   : > { %v364_v15 = vpack.c.bf16 %v354_v1, %v349_v8  ;;  %v816_v33 = vunpack.i.h.bf16 %v1125_v52 }
  0xa9   : > { %v223_v59 = vsel %vm219_vm1, %v801_v50, %v815_v54  ;;  %404 = vmatpush1.bf16.msra.mxu0 %v362_v56  ;;  %v962_v56 = vmov 0.0  }
  0xaa   : > { %v829_v60 = vpop.permute.xlu1 %828  ;;  %v1136_v61 = vpop.permute.xlu0 %262  ;;  %v350_v2 = vsel %vm346_vm3, %v1089_v12, %v223_v59  ;;  %v290_v12 = vsel %vm289_vm4, %v820_v9, %v821_v6  ;;  %v224_v50 = vsel %vm219_vm1, %v815_v54, %v816_v33 }
  0xab   : > { %v270_v63 = vsel %vm266_vm0, %v811_v44, %v1136_v61  ;;  %v831_v10 = vunpack.i.h.bf16 %v829_v60  ;;  %v830_v11 = vunpack.i.l.bf16 %v829_v60  ;;  %v351_v54 = vsel %vm346_vm3, %v1066_v3, %v224_v50 }
  0xac   : > { %v355_v4 = vsel %vm346_vm3, %v247_v0, %v270_v63 }
  0xad   : > { %v365_v7 = vpack.c.bf16 %v355_v4, %v350_v2  ;;  %v313_v18 = vsel %vm312_vm5, %v830_v11, %v831_v10 }
  0xae   : > { %v839_v13 = vpop.permute.xlu1 %838  ;;  %v824_v14 = vpop.permute.xlu0 %823  ;;  %v357_v26 = vsel %vm346_vm3, %v290_v12, %v313_v18 }
  0xaf   : > { %444 = vmatprep.subr.bf16.mxu1 %v365_v7  ;;  %v841_v16 = vunpack.i.h.bf16 %v839_v13  ;;  %v840_v17 = vunpack.i.l.bf16 %v839_v13  ;;  %v825_v22 = vunpack.i.l.bf16 %v824_v14  ;;  %v826_v24 = vunpack.i.h.bf16 %v824_v14 }
  0xb0   : > { %445 = vmatpush1.bf16.msra.mxu1 %v364_v15 }
  0xb1   : > { %v336_v25 = vsel %vm335_vm6, %v840_v17, %v841_v16  ;;  %v291_v34 = vsel %vm289_vm4, %v821_v6, %v825_v22  ;;  %v292_v36 = vsel %vm289_vm4, %v825_v22, %v826_v24  ;;  %v379_v6 = vlaneseq }
  0xb2   : > { %v286_v19 = vpop.permute.xlu1 %285  ;;  %v834_v20 = vpop.permute.xlu0 %833  ;;  %v367_v35 = vpack.c.bf16 %v336_v25, %v357_v26 }
  0xb3   : > { %v836_v5 = vunpack.i.h.bf16 %v834_v20  ;;  %v835_v21 = vunpack.i.l.bf16 %v834_v20  ;;  %v293_v43 = vsel %vm289_vm4, %v826_v24, %v286_v19  ;;  %v380_v7 = vshrl.u32 %v379_v6, 7 }
  0xb4   : > { %v389_v49 = vsel %vm387_vm7, %v367_v35, 0  ;;  %vm577_vm10 = vcmp.lt.s32.totalorder %v379_v6, 640 }
  0xb5   : > { %v314_v27 = vsel %vm312_vm5, %v831_v10, %v835_v21  ;;  %v315_v30 = vsel %vm312_vm5, %v835_v21, %v836_v5  ;;  %v381_v8 = vsub.s32 0, %v380_v7  ;;  %v964_v21 = vmov 1966171168  }
  0xb6   : > { %v332_v28 = vpop.permute.xlu1 %331  ;;  %v844_v29 = vpop.permute.xlu0 %843  ;;  %v358_v38 = vsel %vm346_vm3, %v291_v34, %v314_v27  ;;  %v359_v42 = vsel %vm346_vm3, %v292_v36, %v315_v30  ;;  %v538_v22 = vunpack.c.l.s4 %v964_v21 }
  0xb7   : > { %v846_v31 = vunpack.i.h.bf16 %v844_v29  ;;  %v845_v32 = vunpack.i.l.bf16 %v844_v29 }
  0xb8   : > { %v539_v25 = vunpack.c.0.s8 %v538_v22 }
  0xb9   : > { %v337_v37 = vsel %vm335_vm6, %v841_v16, %v845_v32  ;;  %v338_v39 = vsel %vm335_vm6, %v845_v32, %v846_v31  ;;  %v339_v47 = vsel %vm335_vm6, %v846_v31, %v332_v28 }
  0xba   : > { %v368_v40 = vpack.c.bf16 %v337_v37, %v358_v38  ;;  %v309_v41 = vpop.permute.xlu0 %308  ;;  %v369_v45 = vpack.c.bf16 %v338_v39, %v359_v42  ;;  %v265_v46 = vpop.permute.xlu1 %264 }
  0xbb   : > { %v316_v44 = vsel %vm312_vm5, %v836_v5, %v309_v41  ;;  %v271_v57 = vsel %vm266_vm0, %v1136_v61, %v265_v46 }
  0xbc   : > { %v360_v48 = vsel %vm346_vm3, %v293_v43, %v316_v44  ;;  %679 = vmatprep.subr.msk.bf16.mxu0 %vm387_vm7, %v368_v40  ;;  %v395_v52 = vsel %vm387_vm7, %v369_v45, 0 }
  0xbd   : > { %v370_v51 = vpack.c.bf16 %v339_v47, %v360_v48  ;;  %406 = vmatpush1.bf16.msra.mxu0 %v389_v49 }
  0xbe   : > { %v242_v55 = vpop.permute.xlu0 %241  ;;  %690 = vmatprep.subr.bf16.mxu0 %v962_v56  ;;  %v311_v61 = vpop.permute.xlu1 %310 }
  0xbf   : > { %v248_v58 = vsel %vm243_vm2, %v1114_v23, %v242_v55  ;;  %681 = vmatprep.subr.msk.bf16.mxu1 %vm387_vm7, %v370_v51  ;;  %v317_v63 = vsel %vm312_vm5, %v309_v41, %v311_v61 }
  0xc0   : > { %v356_v59 = vsel %vm346_vm3, %v248_v58, %v271_v57  ;;  %447 = vmatpush1.bf16.msra.mxu1 %v395_v52  ;;  %680 = vmatmul.mubr.msk.bf16.vlgmr.msra.gmra.mrb[0].mxu0 %vm383_vm8, %v372_v53 }
  0xc1   : > { %v366_v60 = vpack.c.bf16 %v356_v59, %v351_v54  ;;  %694 = vmatprep.mubr.msk.bf16.mxu0 %vm963_vm9, %v962_v56 }
  0xc2   : > { %v288_v62 = vpop.permute.xlu0 %287 }
  0xc3   : > { %691 = vmatpush3.bf16.msra.mxu0 %v366_v60  ;;  %682 = vmatmul.mubr.msk.bf16.vlgmr.msra.gmra.mrb[0].mxu1 %vm383_vm8, %v372_v53  ;;  %v294_v23 = vsel %vm289_vm4, %v286_v19, %v288_v62 }
  0xc4   : > { %692 = vmatprep.subr.bf16.mxu0 %v962_v56  ;;  %v361_v3 = vsel %vm346_vm3, %v294_v23, %v317_v63 }
  0xc6   : > { %v334_v0 = vpop.permute.xlu0 %333 }
  0xc7   : > { %v340_v1 = vsel %vm335_vm6, %v332_v28, %v334_v0  ;;  %v542_v28 = vsub.s32 %v539_v25, %v380_v7 }
  0xc8   : > { %v371_v2 = vpack.c.bf16 %v340_v1, %v361_v3 }
  0xca   : > { %v401_v4 = vsel %vm387_vm7, %v371_v2, 0 }
  0xcb   : > { %693 = vmatpush3.bf16.msra.mxu0 %v401_v4 }
  0xce   : > { %695 = vmatmul.mubr.msk.bf16.vlgmr.msra.gmra.mrb[4].mxu0 %vm383_vm8, %v372_v53 }
  0xcf   : > { %v377_v9 = vpop.permute.xlu1 %376 }
  0xd0   : > { %v382_v10 = vrot.slane %v377_v9, %v381_v8 }
 0x193   : > { %v437_v11 = vpop.f32.mrb[0].mxu0 }
 0x194   : > { %v438_v13 = vadd.f32 %v437_v11, %v382_v10  ;;  %v439_v14 = vpop.f32.mrb[1].mxu0 }
 0x195   : > { %v440_v15 = vadd.f32 %v439_v14, %v382_v10  ;;  %v441_v16 = vpop.f32.mrb[2].mxu0 }
 0x196   : > { %849 = vtanh.f32 %v438_v13  ;;  %v478_v17 = vpop.f32.mrb[0].mxu1  ;;  %v442_v12 = vpop.f32.mrb[3].mxu0 }
 0x197   : > { %851 = vtanh.f32 %v440_v15  ;;  %v479_v18 = vadd.f32 %v478_v17, %v382_v10  ;;  %v480_v19 = vpop.f32.mrb[1].mxu1 }
 0x198   : > { %v481_v20 = vadd.f32 %v480_v19, %v382_v10  ;;  %v482_v5 = vpop.f32.mrb[2].mxu1 }
 0x199   : > { %853 = vtanh.f32 %v479_v18  ;;  %v483_v24 = vpop.f32.mrb[3].mxu1 }
 0x19a   : > { %855 = vtanh.f32 %v481_v20 }
 0x1a0   : > { %v850_v26 = vpop.eup %849 }
 0x1a1   : > { %v852_v27 = vpop.eup %851  ;;  %v519_v29 = vpop.f32.mrb[4].mxu0 }
 0x1a2   : > { %v535_v30 = vcombine.low %v850_v26, %v852_v27  ;;  %v520_v31 = vadd.f32 %v519_v29, %v382_v10  ;;  %v696_v32 = vpop.f32.mrb[5].mxu0 }
 0x1a3   : > { %v854_v33 = vpop.eup %853  ;;  %v522_v34 = vpop.f32.mrb[6].mxu0 }
 0x1a4   : > { %v856_v35 = vpop.eup %855  ;;  %857 = vtanh.f32 %v520_v31  ;;  %v697_v36 = vpop.f32.mrb[7].mxu0  ;;  %v543_v38 = vrot.slane %v535_v30, %v542_v28 }
 0x1a5   : > { %v536_v37 = vcombine.low %v854_v33, %v856_v35 }
 0x1a7   : > { %v550_v39 = vrot.slane %v536_v37, %v542_v28 }
 0x1a9   : > { %v558_v40 = vcombine.low %v543_v38, %v550_v39 }
 0x1ab   : > { %v565_v43 = vrot.slane %v558_v40, %v542_v28 }
 0x1ae   : > { %v858_v41 = vpop.eup %857 }
 0x1af   : > { %v557_v42 = vrot.slane %v858_v41, %v542_v28 }
 0x1b1   : > { %v572_v44 = vrot.slane %v557_v42, %v542_v28 }
 0x1b3   : > { %v573_v45 = vcombine.low %v565_v43, %v572_v44 }
 0x1b5   : > { %579 = vst.msk [vmem:[%s179_s13] sm:$0x1f] %vm577_vm10, %v573_v45 }
 0x1b6   : > { %872 = shalt.err (!%p869_p6)
}
 0x1b7   : > { %s873_s6 = scalar_lea.hbm %s1197_s28, 80  ;;  %s877_s9 = scalar_lea.hbm %s1253_s3, 800 }
 0x1b8   : > { %p874_p7 = scmp.ne.s32.totalorder %s1197_s28, %s873_s6  ;;  %p878_p11 = scmp.lt.u32.totalorder %s1197_s28, %s1253_s3 }
 0x1b9   : > { %p879_p12 = scmp.lt.u32.totalorder %s877_s9, %s873_s6  ;;  %p881_p0 = scmp.lt.u32.totalorder %s873_s6, %s1197_s28 }
 0x1ba   : > { %p875_p9 = pnand %p874_p7, %p1040_p3 }
 0x1bb   : > { %p880_p13 = por %p879_p12, %p878_p11 }
 0x1bc   : > { %p876_p10 = pneg %p875_p9 }
 0x1bd   : > { %p882_p1 = por %p881_p0, %p880_p13 }
 0x1bf   : > { %p883_p2 = pnand %p882_p1, %p876_p10 }
 0x1c1   : > { %886 = shalt.err (!%p883_p2)
}
 0x1c2   : > { %701 = dma.vmem_to_hbm [thread:$0]  (%p1040_p3), %s1199_s2, 80, %s1197_s28, %s581_s17  }
 0x1c3 PF: > { %p707_p4 = scmp.ge.s32.totalorder %s953_s21, 2  ;;  %s609_s12 = sand.u32 1, %s925_s14  }
 0x1c4   : > { %s610_s13 = scalar_lea.sflag [#allocation4], %s609_s12 }
 0x1c5   : > { %p704_p5 = pnand %p707_p4, %p1049_p8 }
 0x1c7   : > { %920 = dma.done.wait (!%p704_p5), %s610_s13, 80  }
 0x1c8   : > { %922 = vsyncadd (!%p704_p5), %s610_s13, 4294967216  ;;  %s18_s21 = sadd.s32 1, %s953_s21   ;;  %s1256_s14 = smov %s929_s15 }
 0x1c9   : > { %p15_p6 = scmp.ge.s32.totalorder %s18_s21, 12   ;;  %s1257_s15 = smov %s933_s16 }
 0x1ca   : > { %s1258_s16 = smov %s1058_s4  ;;  %s1259_s17 = smov %s945_s19 }
 0x1cb   : > { %s1260_s18 = smov %s949_s20  ;;  %s1261_s19 = smov %s1264_s23 }
 0x1cc   : > { %s1262_s20 = smov %s1268_s24  ;;  %17 = sbr.rel (!%p15_p6) target bundleno = 8 (0x8), region = 68 }
 0x1d3   :  { %615 = vsyncpa [#allocation4], 1 }
 0x1d4   :  { %617 = vsyncpa [#allocation4 + $0x1], 1 }

</bundles_post_ra>
